<compile_context>
chip_gen: v7x
topology: tpu7x:2x2x1
jax: 0.10.0
libtpu: 0.0.40
codegen_flags: <defaults>
</compile_context>

<pallas_src>
import functools

import jax
import jax.numpy as jnp
from jax.experimental import pallas as pl
from jax.experimental.pallas import tpu as pltpu


# ----------------------------------------------------------------------------
# small helpers
# ----------------------------------------------------------------------------
def _round_up(x, m):
    return (x + m - 1) // m * m


def _pick_tile(dim, prefs):
    """Largest preferred tile that divides `dim` exactly, else the full dim."""
    for p in prefs:
        if p <= dim and dim % p == 0:
            return p
    return dim


# ----------------------------------------------------------------------------
# Pallas kernels
# ----------------------------------------------------------------------------
def _conv1_kernel(a_ref, w_ref, b_ref, o_ref, *, slope):
    """Single-K GEMM tile with fused bias + LeakyReLU (conv1), bf16 output."""
    y = jnp.dot(a_ref[...], w_ref[...], preferred_element_type=jnp.float32)
    y = y + b_ref[...]
    o_ref[...] = jnp.where(y >= 0, y, slope * y).astype(o_ref.dtype)


def _conv2_kernel(z_ref, w_ref, g_ref, beta_ref, o_ref, acc_ref, *,
                  n_batch, h_out, w_out, eps, slope):
    """conv2 with in-VMEM patch extraction + fused BatchNorm2d + LeakyReLU.

    z_ref is the space-to-depth form of conv2's zero-padded input:
      z[n, gh, gw, (dh, dw, c)] = x_pad[n, 2*gh+dh, 2*gw+dw, c]
    so the 4x4/stride-2 conv becomes a 2x2/stride-1 conv whose four taps are
    contiguous unit-stride windows of z.  All M = N*H2*W2 rows are resident,
    so BatchNorm batch statistics are computed directly from the accumulator
    (two-pass centered variance; the conv bias cancels under batch-stat BN).
    """
    m = n_batch * h_out * w_out
    acc_ref[...] = jnp.zeros_like(acc_ref)
    for t in range(4):
        wh, ww = t // 2, t % 2
        a = z_ref[:, wh:wh + h_out, ww:ww + w_out, :]
        # f32 intermediate keeps the leading-dim collapse reshape tile-aligned.
        a = a.astype(jnp.float32).reshape(m, a.shape[-1]).astype(jnp.bfloat16)
        acc_ref[...] += jnp.dot(a, w_ref[t], preferred_element_type=jnp.float32)

    acc = acc_ref[...]
    inv_m = 1.0 / float(m)
    mean = jnp.sum(acc, axis=0, keepdims=True) * inv_m
    centered = acc - mean
    var = jnp.sum(centered * centered, axis=0, keepdims=True) * inv_m
    y = centered * (g_ref[...] * jax.lax.rsqrt(var + eps)) + beta_ref[...]
    o_ref[...] = jnp.where(y >= 0, y, slope * y).astype(o_ref.dtype)


def _fc_kernel(a_ref, w1_ref, g_ref, beta_ref, w2_ref, o_ref, acc_ref, *,
               m_real, eps, slope):
    """fc1 (K-streamed) + BatchNorm1d + LeakyReLU + fc2 partial, fused.

    Grid axis 0 ("parallel") splits the 1024 hidden units in two halves so the
    two v7x TensorCores each stream half of w1.  Rows of A beyond `m_real`
    are zero padding; they are masked out of the variance and their outputs
    are sliced away outside.  fc1's bias cancels under batch-stat BN.
    """
    k = pl.program_id(1)

    @pl.when(k == 0)
    def _():
        acc_ref[...] = jnp.zeros_like(acc_ref)

    acc_ref[...] += jnp.dot(a_ref[...], w1_ref[...],
                            preferred_element_type=jnp.float32)

    @pl.when(k == pl.num_programs(1) - 1)
    def _():
        acc = acc_ref[...]
        inv_m = 1.0 / float(m_real)
        mean = jnp.sum(acc, axis=0, keepdims=True) * inv_m
        rows = jax.lax.broadcasted_iota(jnp.int32, acc.shape, 0)
        centered = jnp.where(rows < m_real, acc - mean, 0.0)
        var = jnp.sum(centered * centered, axis=0, keepdims=True) * inv_m
        h = centered * (g_ref[...] * jax.lax.rsqrt(var + eps)) + beta_ref[...]
        h = jnp.where(h >= 0, h, slope * h)
        o_ref[0] = jnp.dot(h, w2_ref[...], preferred_element_type=jnp.float32)


# ----------------------------------------------------------------------------
# pallas_call wrappers
# ----------------------------------------------------------------------------
def conv1_gemm(cols, w, b, slope=0.2):
    """cols:(M,K) bf16, w:(K,128) bf16, b:(128,) f32 -> (M,128) bf16."""
    M, K = cols.shape
    K2, Np = w.shape
    assert K == K2
    # 2 parallel M blocks (one per v7x TC); grid of 1 when M is small.
    tm = M // 2 if (M % 16 == 0 and M >= 512) else M
    kern = functools.partial(_conv1_kernel, slope=slope)
    return pl.pallas_call(
        kern,
        out_shape=jax.ShapeDtypeStruct((M, Np), jnp.bfloat16),
        grid=(M // tm,),
        in_specs=[
            pl.BlockSpec((tm, K), lambda i: (i, 0)),
            pl.BlockSpec((K, Np), lambda i: (0, 0)),
            pl.BlockSpec((1, Np), lambda i: (0, 0)),
        ],
        out_specs=pl.BlockSpec((tm, Np), lambda i: (i, 0)),
        compiler_params=pltpu.CompilerParams(
            dimension_semantics=("parallel",)),
    )(cols, w, b.reshape(1, Np))


def conv2_bn(z, w_taps, gamma, beta, slope=0.2, eps=1e-5):
    """z:(N,H2+1,W2+1,256) bf16, w_taps:(4,256,128) bf16 -> (N*H2*W2,128) bf16."""
    N, Hp, Wp, Kg = z.shape
    H2, W2 = Hp - 1, Wp - 1
    M = N * H2 * W2
    T, Kt, C = w_taps.shape
    assert T == 4 and Kt == Kg
    kern = functools.partial(_conv2_kernel, n_batch=N, h_out=H2, w_out=W2,
                             eps=eps, slope=slope)
    # Whole-M-resident design; for very large batch the z block / f32 acc would
    # need M tiling, but at these sizes everything fits VMEM comfortably.
    return pl.pallas_call(
        kern,
        out_shape=jax.ShapeDtypeStruct((M, C), jnp.bfloat16),
        grid=(1,),
        in_specs=[
            pl.BlockSpec((N, Hp, Wp, Kg), lambda i: (0, 0, 0, 0)),
            pl.BlockSpec((T, Kt, C), lambda i: (0, 0, 0)),
            pl.BlockSpec((1, C), lambda i: (0, 0)),
            pl.BlockSpec((1, C), lambda i: (0, 0)),
        ],
        out_specs=pl.BlockSpec((M, C), lambda i: (0, 0)),
        scratch_shapes=[pltpu.VMEM((M, C), jnp.float32)],
        compiler_params=pltpu.CompilerParams(
            dimension_semantics=("arbitrary",)),
    )(z, w_taps, gamma.reshape(1, C), beta.reshape(1, C))


def fc_fused(flat_pad, w1, gamma, beta, w2, batch, slope=0.2, eps=1e-5):
    """Fused fc1 + BN1d + LeakyReLU + fc2 (per-half partial outputs).

    flat_pad:(Mp,K) bf16 (rows >= batch are zero), w1:(K,1024) bf16,
    w2:(1024,Np2) f32.  Returns (2, Mp, Np2) f32 partials (sum the halves and
    add the fc2 bias outside).
    """
    Mp, K = flat_pad.shape
    K2, Nh = w1.shape
    Nh2, Np2 = w2.shape
    assert K == K2 and Nh == Nh2 and Nh % 2 == 0
    nh_half = Nh // 2
    tk = _pick_tile(K, (4096, 2048, 1024, 512, 256, 128))
    kern = functools.partial(_fc_kernel, m_real=batch, eps=eps, slope=slope)
    return pl.pallas_call(
        kern,
        out_shape=jax.ShapeDtypeStruct((2, Mp, Np2), jnp.float32),
        grid=(2, K // tk),
        in_specs=[
            pl.BlockSpec((Mp, tk), lambda j, k: (0, k)),
            pl.BlockSpec((tk, nh_half), lambda j, k: (k, j)),
            pl.BlockSpec((1, nh_half), lambda j, k: (0, j)),
            pl.BlockSpec((1, nh_half), lambda j, k: (0, j)),
            pl.BlockSpec((nh_half, Np2), lambda j, k: (j, 0)),
        ],
        out_specs=pl.BlockSpec((1, Mp, Np2), lambda j, k: (j, 0, 0)),
        scratch_shapes=[pltpu.VMEM((Mp, nh_half), jnp.float32)],
        compiler_params=pltpu.CompilerParams(
            dimension_semantics=("parallel", "arbitrary"),
            vmem_limit_bytes=24 * 1024 * 1024),
    )(flat_pad, w1, gamma.reshape(1, Nh), beta.reshape(1, Nh), w2)


# ----------------------------------------------------------------------------
# Glue: im2col (conv1 only), parameter setup, forward pass
# ----------------------------------------------------------------------------
def im2col(x_nhwc, k, s, p):
    """Extract conv patches. Returns (N*Ho*Wo, k*k*C) with (kh,kw,c) ordering."""
    N, H, W, C = x_nhwc.shape
    xp = jnp.pad(x_nhwc, ((0, 0), (p, p), (p, p), (0, 0)))
    Ho = (H + 2 * p - k) // s + 1
    Wo = (W + 2 * p - k) // s + 1
    patches = []
    for i in range(k):
        for j in range(k):
            patches.append(xp[:, i:i + s * Ho:s, j:j + s * Wo:s, :])
    cols = jnp.stack(patches, axis=3)                # (N, Ho, Wo, k*k, C)
    return cols.reshape(N * Ho * Wo, k * k * C), Ho, Wo


def init_params(key, input_dim=1, output_dim=1, input_size=32):
    """Deterministic synthetic init (N(0, 0.02), like utils.initialize_weights).

    Weights are stored directly in the layouts the kernels expect.
    """
    assert input_size % 4 == 0
    ks = jax.random.split(key, 6)
    n = lambda k, shape, std=0.02: std * jax.random.normal(k, shape, jnp.float32)
    s4 = input_size // 4
    feat = 128 * s4 * s4

    # conv1: PyTorch (O=64, I, 4, 4) -> GEMM (kh*kw*I, 64); output channels
    # zero-padded 64 -> 128 for lane-dense stores.  K is NOT padded.
    k1 = 4 * 4 * input_dim
    w1 = jnp.transpose(n(ks[0], (64, input_dim, 4, 4)), (2, 3, 1, 0)).reshape(k1, 64)
    w1 = jnp.zeros((k1, 128), jnp.float32).at[:, :64].set(w1)

    # conv2: PyTorch (128, 64, 4, 4) -> 4 space-to-depth taps, each (2*2*64, 128).
    # Tap (wh, ww) holds kernel positions kh = 2*wh+dh, kw = 2*ww+dw with rows
    # ordered (dh, dw, c) to match the kernel's in-VMEM patch extraction.
    w2 = (n(ks[1], (128, 64, 4, 4))
          .reshape(128, 64, 2, 2, 2, 2)        # o, c, wh, dh, ww, dw
          .transpose(2, 4, 3, 5, 1, 0)         # wh, ww, dh, dw, c, o
          .reshape(4, 2 * 2 * 64, 128))

    # fc1: PyTorch's flatten is NCHW-ordered (c, oh, ow); permute the rows once
    # at init so the kernels consume the natural NHWC flatten of y2.
    wfc1 = (n(ks[3], (feat, 1024))
            .reshape(128, s4, s4, 1024)
            .transpose(1, 2, 0, 3)
            .reshape(feat, 1024))

    # fc2: (1024, out), output dim zero-padded to 128 for lane-dense stores.
    op = _round_up(output_dim, 128)
    wfc2 = jnp.zeros((1024, op), jnp.float32).at[:, :output_dim].set(
        n(ks[5], (1024, output_dim)))

    return {
        "w1": w1.astype(jnp.bfloat16),
        "b1": jnp.zeros((128,), jnp.float32),
        "w2t": w2.astype(jnp.bfloat16),
        # conv2 / fc1 biases cancel exactly under batch-statistics BatchNorm;
        # kept for interface fidelity but never passed to a kernel.
        "b2": jnp.zeros((128,), jnp.float32),
        "g2": 1.0 + n(ks[2], (128,)),
        "beta2": jnp.zeros((128,), jnp.float32),
        "wfc1": wfc1.astype(jnp.bfloat16),
        "bfc1": jnp.zeros((1024,), jnp.float32),
        "gfc1": 1.0 + n(ks[4], (1024,)),
        "betafc1": jnp.zeros((1024,), jnp.float32),
        "wfc2": wfc2,                                    # f32 for final precision
        "bfc2": jnp.zeros((op,), jnp.float32),
    }


def discriminator_forward(params, x_nchw, output_dim=1):
    # layout: NCHW input (PyTorch) -> NHWC internally, bf16 activations.
    N = x_nchw.shape[0]
    x = jnp.transpose(x_nchw, (0, 2, 3, 1)).astype(jnp.bfloat16)

    # conv1 (in -> 64, k=4, s=2, p=1) + LeakyReLU(0.2), fused in GEMM epilogue.
    cols1, H1, W1 = im2col(x, 4, 2, 1)
    y1 = conv1_gemm(cols1, params["w1"], params["b1"], slope=0.2)  # (M1,128) bf16

    # space-to-depth glue for conv2's in-kernel im2col:
    #   z[n, gh, gw, (dh,dw,c)] = pad(y1)[n, 2*gh+dh, 2*gw+dw, c]
    H2, W2 = H1 // 2, W1 // 2
    y1 = y1.reshape(N, H1, W1, 128)[..., :64]            # drop padded channels
    y1p = jnp.pad(y1, ((0, 0), (1, 1), (1, 1), (0, 0)))
    z = (y1p.reshape(N, H2 + 1, 2, W2 + 1, 2, 64)
            .transpose(0, 1, 3, 2, 4, 5)
            .reshape(N, H2 + 1, W2 + 1, 256))

    # conv2 (64 -> 128) + BatchNorm2d(batch stats) + LeakyReLU, single kernel.
    y2 = conv2_bn(z, params["w2t"], params["g2"], params["beta2"], slope=0.2)

    # NHWC flatten (wfc1 rows were pre-permuted at init), pad batch to 8 rows;
    # the zero rows are excluded from the BN statistics inside the kernel.
    feat = 128 * H2 * W2
    flat = y2.reshape(N, feat)
    mpad = _round_up(max(N, 8), 8)
    flat = jnp.pad(flat, ((0, mpad - N), (0, 0)))

    # fc1 + BatchNorm1d + LeakyReLU + fc2, fused; two per-half partials.
    part = fc_fused(flat, params["wfc1"], params["gfc1"], params["betafc1"],
                    params["wfc2"], batch=N, slope=0.2)
    out = part[0] + part[1] + params["bfc2"].reshape(1, -1)
    return out[:N, :output_dim]


if __name__ == "__main__":
    batch, input_dim, output_dim, input_size = 4, 1, 1, 32
    key = jax.random.PRNGKey(0)
    kx, kp = jax.random.split(key)
    x = jax.random.normal(kx, (batch, input_dim, input_size, input_size),
                          jnp.float32)
    params = init_params(kp, input_dim=input_dim, output_dim=output_dim,
                         input_size=input_size)

    fwd = jax.jit(functools.partial(discriminator_forward,
                                    output_dim=output_dim))
    out = fwd(params, x)
    out = jax.block_until_ready(out)
    assert out.shape == (batch, output_dim), out.shape
    assert bool(jnp.all(jnp.isfinite(out)))
    print("KERNEL_OK")
</pallas_src>

<mosaic_0001>
module attributes {stable_mosaic.version = 11 : i64} {
  func.func @_conv1_kernel(%arg0: i32, %arg1: memref<512x16xbf16, #tpu.memory_space<vmem>>, %arg2: memref<16x128xbf16, #tpu.memory_space<vmem>>, %arg3: memref<1x128xf32, #tpu.memory_space<vmem>>, %arg4: memref<512x128xbf16, #tpu.memory_space<vmem>>) attributes {dimension_semantics = [#tpu.dimension_semantics<parallel>], iteration_bounds = array<i64: 2>, scalar_prefetch = 0 : i64, scratch_operands = 0 : i64, tpu.core_type = #tpu.core_type<tc>, window_params = [{transform_indices = @transform_0, window_bounds = array<i64: 512, 16>}, {pipeline_mode = #tpu.pipeline_mode<synchronous>, transform_indices = @transform_1, window_bounds = array<i64: 16, 128>}, {pipeline_mode = #tpu.pipeline_mode<synchronous>, transform_indices = @transform_2, window_bounds = array<i64: 1, 128>}, {transform_indices = @transform_3, window_bounds = array<i64: 512, 128>}]} {
    %c0 = arith.constant 0 : index
    %c0_0 = arith.constant 0 : index
    %0 = vector.load %arg1[%c0, %c0_0] : memref<512x16xbf16, #tpu.memory_space<vmem>>, vector<512x16xbf16>
    %c0_1 = arith.constant 0 : index
    %c0_2 = arith.constant 0 : index
    %1 = vector.load %arg2[%c0_1, %c0_2] : memref<16x128xbf16, #tpu.memory_space<vmem>>, vector<16x128xbf16>
    %cst = arith.constant dense<0.000000e+00> : vector<512x128xf32>
    %2 = tpu.matmul %0, %1, %cst {dimension_numbers = #tpu.dot_dimension_numbers<[1], [0], [0], [1], [0, 0, 1, 1], [], []>} : vector<512x16xbf16>, vector<16x128xbf16>, vector<512x128xf32> -> vector<512x128xf32>
    %c0_3 = arith.constant 0 : index
    %c0_4 = arith.constant 0 : index
    %3 = vector.load %arg3[%c0_3, %c0_4] : memref<1x128xf32, #tpu.memory_space<vmem>>, vector<1x128xf32>
    %4 = vector.broadcast %3 : vector<1x128xf32> to vector<512x128xf32>
    %5 = arith.addf %2, %4 : vector<512x128xf32>
    %cst_5 = arith.constant 0.000000e+00 : f32
    %6 = vector.broadcast %cst_5 : f32 to vector<512x128xf32>
    %7 = arith.cmpf oge, %5, %6 : vector<512x128xf32>
    %cst_6 = arith.constant 2.000000e-01 : f32
    %8 = vector.broadcast %cst_6 : f32 to vector<512x128xf32>
    %9 = arith.mulf %8, %5 : vector<512x128xf32>
    %10 = arith.select %7, %5, %9 : vector<512x128xi1>, vector<512x128xf32>
    %11 = arith.truncf %10 : vector<512x128xf32> to vector<512x128xbf16>
    %c0_7 = arith.constant 0 : index
    %c0_8 = arith.constant 0 : index
    %12 = vector.load %arg4[%c0_7, %c0_8] : memref<512x128xbf16, #tpu.memory_space<vmem>>, vector<512x128xbf16>
    tpu.vector_store %arg4[%c0_7, %c0_8], %11 {strides = array<i32>} : memref<512x128xbf16, #tpu.memory_space<vmem>>, vector<512x128xbf16>,
    return
  }
  func.func @transform_0(%arg0: i32) -> (i32, i32) {
    %c0_i32 = arith.constant 0 : i32
    %c0_i32_0 = arith.constant 0 : i32
    return %arg0, %c0_i32 : i32, i32
  }
  func.func @transform_1(%arg0: i32) -> (i32, i32) {
    %c0_i32 = arith.constant 0 : i32
    %c0_i32_0 = arith.constant 0 : i32
    %c0_i32_1 = arith.constant 0 : i32
    return %c0_i32, %c0_i32_0 : i32, i32
  }
  func.func @transform_2(%arg0: i32) -> (i32, i32) {
    %c0_i32 = arith.constant 0 : i32
    %c0_i32_0 = arith.constant 0 : i32
    %c0_i32_1 = arith.constant 0 : i32
    return %c0_i32, %c0_i32_0 : i32, i32
  }
  func.func @transform_3(%arg0: i32) -> (i32, i32) {
    %c0_i32 = arith.constant 0 : i32
    %c0_i32_0 = arith.constant 0 : i32
    return %arg0, %c0_i32 : i32, i32
  }
}

module attributes {stable_mosaic.version = 11 : i64} {
  func.func @_conv2_kernel(%arg0: i32, %arg1: memref<4x9x9x256xbf16, #tpu.memory_space<vmem>>, %arg2: memref<4x256x128xbf16, #tpu.memory_space<vmem>>, %arg3: memref<1x128xf32, #tpu.memory_space<vmem>>, %arg4: memref<1x128xf32, #tpu.memory_space<vmem>>, %arg5: memref<256x128xbf16, #tpu.memory_space<vmem>>, %arg6: memref<256x128xf32, #tpu.memory_space<vmem>>) attributes {dimension_semantics = [#tpu.dimension_semantics<arbitrary>], iteration_bounds = array<i64: 1>, scalar_prefetch = 0 : i64, scratch_operands = 1 : i64, tpu.core_type = #tpu.core_type<tc>, window_params = [{pipeline_mode = #tpu.pipeline_mode<synchronous>, transform_indices = @transform_0, window_bounds = array<i64: 4, 9, 9, 256>}, {pipeline_mode = #tpu.pipeline_mode<synchronous>, transform_indices = @transform_1, window_bounds = array<i64: 4, 256, 128>}, {pipeline_mode = #tpu.pipeline_mode<synchronous>, transform_indices = @transform_2, window_bounds = array<i64: 1, 128>}, {pipeline_mode = #tpu.pipeline_mode<synchronous>, transform_indices = @transform_3, window_bounds = array<i64: 1, 128>}, {pipeline_mode = #tpu.pipeline_mode<synchronous>, transform_indices = @transform_4, window_bounds = array<i64: 256, 128>}]} {
    %cst = arith.constant 0.000000e+00 : f32
    %0 = vector.broadcast %cst : f32 to vector<256x128xf32>
    %c0 = arith.constant 0 : index
    %c0_0 = arith.constant 0 : index
    %1 = vector.load %arg6[%c0, %c0_0] : memref<256x128xf32, #tpu.memory_space<vmem>>, vector<256x128xf32>
    tpu.vector_store %arg6[%c0, %c0_0], %0 {strides = array<i32>} : memref<256x128xf32, #tpu.memory_space<vmem>>, vector<256x128xf32>,
    %c0_1 = arith.constant 0 : index
    %c0_2 = arith.constant 0 : index
    %c0_3 = arith.constant 0 : index
    %c0_4 = arith.constant 0 : index
    %2 = vector.load %arg1[%c0_1, %c0_2, %c0_3, %c0_4] : memref<4x9x9x256xbf16, #tpu.memory_space<vmem>>, vector<4x8x8x256xbf16>
    %3 = arith.extf %2 : vector<4x8x8x256xbf16> to vector<4x8x8x256xf32>
    %4 = vector.shape_cast %3 : vector<4x8x8x256xf32> to vector<256x256xf32>
    %5 = arith.truncf %4 : vector<256x256xf32> to vector<256x256xbf16>
    %c0_5 = arith.constant 0 : index
    %c0_6 = arith.constant 0 : index
    %6 = vector.load %arg6[%c0_5, %c0_6] : memref<256x128xf32, #tpu.memory_space<vmem>>, vector<256x128xf32>
    %c0_7 = arith.constant 0 : index
    %c0_8 = arith.constant 0 : index
    %c0_9 = arith.constant 0 : index
    %7 = vector.load %arg2[%c0_7, %c0_8, %c0_9] : memref<4x256x128xbf16, #tpu.memory_space<vmem>>, vector<1x256x128xbf16>
    %8 = vector.shape_cast %7 : vector<1x256x128xbf16> to vector<256x128xbf16>
    %cst_10 = arith.constant dense<0.000000e+00> : vector<256x128xf32>
    %9 = tpu.matmul %5, %8, %cst_10 {dimension_numbers = #tpu.dot_dimension_numbers<[1], [0], [0], [1], [0, 0, 1, 1], [], []>} : vector<256x256xbf16>, vector<256x128xbf16>, vector<256x128xf32> -> vector<256x128xf32>
    %10 = arith.addf %6, %9 : vector<256x128xf32>
    %c0_11 = arith.constant 0 : index
    %c0_12 = arith.constant 0 : index
    %11 = vector.load %arg6[%c0_11, %c0_12] : memref<256x128xf32, #tpu.memory_space<vmem>>, vector<256x128xf32>
    tpu.vector_store %arg6[%c0_11, %c0_12], %10 {strides = array<i32>} : memref<256x128xf32, #tpu.memory_space<vmem>>, vector<256x128xf32>,
    %c0_13 = arith.constant 0 : index
    %c0_14 = arith.constant 0 : index
    %c1 = arith.constant 1 : index
    %c0_15 = arith.constant 0 : index
    %12 = vector.load %arg1[%c0_13, %c0_14, %c1, %c0_15] : memref<4x9x9x256xbf16, #tpu.memory_space<vmem>>, vector<4x8x8x256xbf16>
    %13 = arith.extf %12 : vector<4x8x8x256xbf16> to vector<4x8x8x256xf32>
    %14 = vector.shape_cast %13 : vector<4x8x8x256xf32> to vector<256x256xf32>
    %15 = arith.truncf %14 : vector<256x256xf32> to vector<256x256xbf16>
    %c0_16 = arith.constant 0 : index
    %c0_17 = arith.constant 0 : index
    %16 = vector.load %arg6[%c0_16, %c0_17] : memref<256x128xf32, #tpu.memory_space<vmem>>, vector<256x128xf32>
    %c1_18 = arith.constant 1 : index
    %c0_19 = arith.constant 0 : index
    %c0_20 = arith.constant 0 : index
    %17 = vector.load %arg2[%c1_18, %c0_19, %c0_20] : memref<4x256x128xbf16, #tpu.memory_space<vmem>>, vector<1x256x128xbf16>
    %18 = vector.shape_cast %17 : vector<1x256x128xbf16> to vector<256x128xbf16>
    %cst_21 = arith.constant dense<0.000000e+00> : vector<256x128xf32>
    %19 = tpu.matmul %15, %18, %cst_21 {dimension_numbers = #tpu.dot_dimension_numbers<[1], [0], [0], [1], [0, 0, 1, 1], [], []>} : vector<256x256xbf16>, vector<256x128xbf16>, vector<256x128xf32> -> vector<256x128xf32>
    %20 = arith.addf %16, %19 : vector<256x128xf32>
    %c0_22 = arith.constant 0 : index
    %c0_23 = arith.constant 0 : index
    %21 = vector.load %arg6[%c0_22, %c0_23] : memref<256x128xf32, #tpu.memory_space<vmem>>, vector<256x128xf32>
    tpu.vector_store %arg6[%c0_22, %c0_23], %20 {strides = array<i32>} : memref<256x128xf32, #tpu.memory_space<vmem>>, vector<256x128xf32>,
    %c0_24 = arith.constant 0 : index
    %c1_25 = arith.constant 1 : index
    %c0_26 = arith.constant 0 : index
    %c0_27 = arith.constant 0 : index
    %22 = vector.load %arg1[%c0_24, %c1_25, %c0_26, %c0_27] : memref<4x9x9x256xbf16, #tpu.memory_space<vmem>>, vector<4x8x8x256xbf16>
    %23 = arith.extf %22 : vector<4x8x8x256xbf16> to vector<4x8x8x256xf32>
    %24 = vector.shape_cast %23 : vector<4x8x8x256xf32> to vector<256x256xf32>
    %25 = arith.truncf %24 : vector<256x256xf32> to vector<256x256xbf16>
    %c0_28 = arith.constant 0 : index
    %c0_29 = arith.constant 0 : index
    %26 = vector.load %arg6[%c0_28, %c0_29] : memref<256x128xf32, #tpu.memory_space<vmem>>, vector<256x128xf32>
    %c2 = arith.constant 2 : index
    %c0_30 = arith.constant 0 : index
    %c0_31 = arith.constant 0 : index
    %27 = vector.load %arg2[%c2, %c0_30, %c0_31] : memref<4x256x128xbf16, #tpu.memory_space<vmem>>, vector<1x256x128xbf16>
    %28 = vector.shape_cast %27 : vector<1x256x128xbf16> to vector<256x128xbf16>
    %cst_32 = arith.constant dense<0.000000e+00> : vector<256x128xf32>
    %29 = tpu.matmul %25, %28, %cst_32 {dimension_numbers = #tpu.dot_dimension_numbers<[1], [0], [0], [1], [0, 0, 1, 1], [], []>} : vector<256x256xbf16>, vector<256x128xbf16>, vector<256x128xf32> -> vector<256x128xf32>
    %30 = arith.addf %26, %29 : vector<256x128xf32>
    %c0_33 = arith.constant 0 : index
    %c0_34 = arith.constant 0 : index
    %31 = vector.load %arg6[%c0_33, %c0_34] : memref<256x128xf32, #tpu.memory_space<vmem>>, vector<256x128xf32>
    tpu.vector_store %arg6[%c0_33, %c0_34], %30 {strides = array<i32>} : memref<256x128xf32, #tpu.memory_space<vmem>>, vector<256x128xf32>,
    %c0_35 = arith.constant 0 : index
    %c1_36 = arith.constant 1 : index
    %c1_37 = arith.constant 1 : index
    %c0_38 = arith.constant 0 : index
    %32 = vector.load %arg1[%c0_35, %c1_36, %c1_37, %c0_38] : memref<4x9x9x256xbf16, #tpu.memory_space<vmem>>, vector<4x8x8x256xbf16>
    %33 = arith.extf %32 : vector<4x8x8x256xbf16> to vector<4x8x8x256xf32>
    %34 = vector.shape_cast %33 : vector<4x8x8x256xf32> to vector<256x256xf32>
    %35 = arith.truncf %34 : vector<256x256xf32> to vector<256x256xbf16>
    %c0_39 = arith.constant 0 : index
    %c0_40 = arith.constant 0 : index
    %36 = vector.load %arg6[%c0_39, %c0_40] : memref<256x128xf32, #tpu.memory_space<vmem>>, vector<256x128xf32>
    %c3 = arith.constant 3 : index
    %c0_41 = arith.constant 0 : index
    %c0_42 = arith.constant 0 : index
    %37 = vector.load %arg2[%c3, %c0_41, %c0_42] : memref<4x256x128xbf16, #tpu.memory_space<vmem>>, vector<1x256x128xbf16>
    %38 = vector.shape_cast %37 : vector<1x256x128xbf16> to vector<256x128xbf16>
    %cst_43 = arith.constant dense<0.000000e+00> : vector<256x128xf32>
    %39 = tpu.matmul %35, %38, %cst_43 {dimension_numbers = #tpu.dot_dimension_numbers<[1], [0], [0], [1], [0, 0, 1, 1], [], []>} : vector<256x256xbf16>, vector<256x128xbf16>, vector<256x128xf32> -> vector<256x128xf32>
    %40 = arith.addf %36, %39 : vector<256x128xf32>
    %c0_44 = arith.constant 0 : index
    %c0_45 = arith.constant 0 : index
    %41 = vector.load %arg6[%c0_44, %c0_45] : memref<256x128xf32, #tpu.memory_space<vmem>>, vector<256x128xf32>
    tpu.vector_store %arg6[%c0_44, %c0_45], %40 {strides = array<i32>} : memref<256x128xf32, #tpu.memory_space<vmem>>, vector<256x128xf32>,
    %c0_46 = arith.constant 0 : index
    %c0_47 = arith.constant 0 : index
    %42 = vector.load %arg6[%c0_46, %c0_47] : memref<256x128xf32, #tpu.memory_space<vmem>>, vector<256x128xf32>
    %cst_48 = arith.constant dense<0.000000e+00> : vector<128xf32>
    %43 = vector.multi_reduction <add>, %42, %cst_48 [0] : vector<256x128xf32> to vector<128xf32>
    %44 = vector.shape_cast %43 : vector<128xf32> to vector<1x128xf32>
    %cst_49 = arith.constant 3.906250e-03 : f32
    %45 = vector.broadcast %cst_49 : f32 to vector<1x128xf32>
    %46 = arith.mulf %44, %45 : vector<1x128xf32>
    %47 = vector.broadcast %46 : vector<1x128xf32> to vector<256x128xf32>
    %48 = arith.subf %42, %47 : vector<256x128xf32>
    %49 = arith.mulf %48, %48 : vector<256x128xf32>
    %cst_50 = arith.constant dense<0.000000e+00> : vector<128xf32>
    %50 = vector.multi_reduction <add>, %49, %cst_50 [0] : vector<256x128xf32> to vector<128xf32>
    %51 = vector.shape_cast %50 : vector<128xf32> to vector<1x128xf32>
    %cst_51 = arith.constant 3.906250e-03 : f32
    %52 = vector.broadcast %cst_51 : f32 to vector<1x128xf32>
    %53 = arith.mulf %51, %52 : vector<1x128xf32>
    %c0_52 = arith.constant 0 : index
    %c0_53 = arith.constant 0 : index
    %54 = vector.load %arg3[%c0_52, %c0_53] : memref<1x128xf32, #tpu.memory_space<vmem>>, vector<1x128xf32>
    %cst_54 = arith.constant 9.99999974E-6 : f32
    %55 = vector.broadcast %cst_54 : f32 to vector<1x128xf32>
    %56 = arith.addf %53, %55 : vector<1x128xf32>
    %57 = math.rsqrt %56 : vector<1x128xf32>
    %58 = arith.mulf %54, %57 : vector<1x128xf32>
    %59 = vector.broadcast %58 : vector<1x128xf32> to vector<256x128xf32>
    %60 = arith.mulf %48, %59 : vector<256x128xf32>
    %c0_55 = arith.constant 0 : index
    %c0_56 = arith.constant 0 : index
    %61 = vector.load %arg4[%c0_55, %c0_56] : memref<1x128xf32, #tpu.memory_space<vmem>>, vector<1x128xf32>
    %62 = vector.broadcast %61 : vector<1x128xf32> to vector<256x128xf32>
    %63 = arith.addf %60, %62 : vector<256x128xf32>
    %cst_57 = arith.constant 0.000000e+00 : f32
    %64 = vector.broadcast %cst_57 : f32 to vector<256x128xf32>
    %65 = arith.cmpf oge, %63, %64 : vector<256x128xf32>
    %cst_58 = arith.constant 2.000000e-01 : f32
    %66 = vector.broadcast %cst_58 : f32 to vector<256x128xf32>
    %67 = arith.mulf %66, %63 : vector<256x128xf32>
    %68 = arith.select %65, %63, %67 : vector<256x128xi1>, vector<256x128xf32>
    %69 = arith.truncf %68 : vector<256x128xf32> to vector<256x128xbf16>
    %c0_59 = arith.constant 0 : index
    %c0_60 = arith.constant 0 : index
    %70 = vector.load %arg5[%c0_59, %c0_60] : memref<256x128xbf16, #tpu.memory_space<vmem>>, vector<256x128xbf16>
    tpu.vector_store %arg5[%c0_59, %c0_60], %69 {strides = array<i32>} : memref<256x128xbf16, #tpu.memory_space<vmem>>, vector<256x128xbf16>,
    return
  }
  func.func @transform_0(%arg0: i32) -> (i32, i32, i32, i32) {
    %c0_i32 = arith.constant 0 : i32
    %c0_i32_0 = arith.constant 0 : i32
    %c0_i32_1 = arith.constant 0 : i32
    %c0_i32_2 = arith.constant 0 : i32
    %c0_i32_3 = arith.constant 0 : i32
    return %c0_i32, %c0_i32_0, %c0_i32_1, %c0_i32_2 : i32, i32, i32, i32
  }
  func.func @transform_1(%arg0: i32) -> (i32, i32, i32) {
    %c0_i32 = arith.constant 0 : i32
    %c0_i32_0 = arith.constant 0 : i32
    %c0_i32_1 = arith.constant 0 : i32
    %c0_i32_2 = arith.constant 0 : i32
    return %c0_i32, %c0_i32_0, %c0_i32_1 : i32, i32, i32
  }
  func.func @transform_2(%arg0: i32) -> (i32, i32) {
    %c0_i32 = arith.constant 0 : i32
    %c0_i32_0 = arith.constant 0 : i32
    %c0_i32_1 = arith.constant 0 : i32
    return %c0_i32, %c0_i32_0 : i32, i32
  }
  func.func @transform_3(%arg0: i32) -> (i32, i32) {
    %c0_i32 = arith.constant 0 : i32
    %c0_i32_0 = arith.constant 0 : i32
    %c0_i32_1 = arith.constant 0 : i32
    return %c0_i32, %c0_i32_0 : i32, i32
  }
  func.func @transform_4(%arg0: i32) -> (i32, i32) {
    %c0_i32 = arith.constant 0 : i32
    %c0_i32_0 = arith.constant 0 : i32
    %c0_i32_1 = arith.constant 0 : i32
    return %c0_i32, %c0_i32_0 : i32, i32
  }
}

module attributes {stable_mosaic.version = 11 : i64} {
  func.func @_fc_kernel(%arg0: i32, %arg1: i32, %arg2: memref<8x4096xbf16, #tpu.memory_space<vmem>>, %arg3: memref<4096x512xbf16, #tpu.memory_space<vmem>>, %arg4: memref<1x512xf32, #tpu.memory_space<vmem>>, %arg5: memref<1x512xf32, #tpu.memory_space<vmem>>, %arg6: memref<512x128xf32, #tpu.memory_space<vmem>>, %arg7: memref<1x8x128xf32, #tpu.memory_space<vmem>>, %arg8: memref<8x512xf32, #tpu.memory_space<vmem>>) attributes {dimension_semantics = [#tpu.dimension_semantics<parallel>, #tpu.dimension_semantics<arbitrary>], iteration_bounds = array<i64: 2, 2>, scalar_prefetch = 0 : i64, scratch_operands = 1 : i64, tpu.core_type = #tpu.core_type<tc>, window_params = [{transform_indices = @transform_0, window_bounds = array<i64: 8, 4096>}, {transform_indices = @transform_1, window_bounds = array<i64: 4096, 512>}, {transform_indices = @transform_2, window_bounds = array<i64: 1, 512>}, {transform_indices = @transform_3, window_bounds = array<i64: 1, 512>}, {transform_indices = @transform_4, window_bounds = array<i64: 512, 128>}, {transform_indices = @transform_5, window_bounds = array<i64: 1, 8, 128>}]} {
    %c0_i32 = arith.constant 0 : i32
    %0 = arith.cmpi eq, %arg1, %c0_i32 : i32
    %1 = arith.extui %0 : i1 to i32
    %c0_i32_0 = arith.constant 0 : i32
    %2 = arith.cmpi ne, %1, %c0_i32_0 : i32
    scf.if %2 {
      %cst_9 = arith.constant 0.000000e+00 : f32
      %12 = vector.broadcast %cst_9 : f32 to vector<8x512xf32>
      %c0_10 = arith.constant 0 : index
      %c0_11 = arith.constant 0 : index
      %13 = vector.load %arg8[%c0_10, %c0_11] : memref<8x512xf32, #tpu.memory_space<vmem>>, vector<8x512xf32>
      tpu.vector_store %arg8[%c0_10, %c0_11], %12 {strides = array<i32>} : memref<8x512xf32, #tpu.memory_space<vmem>>, vector<8x512xf32>,
    } else {
    }
    %c0 = arith.constant 0 : index
    %c0_1 = arith.constant 0 : index
    %3 = vector.load %arg8[%c0, %c0_1] : memref<8x512xf32, #tpu.memory_space<vmem>>, vector<8x512xf32>
    %c0_2 = arith.constant 0 : index
    %c0_3 = arith.constant 0 : index
    %4 = vector.load %arg2[%c0_2, %c0_3] : memref<8x4096xbf16, #tpu.memory_space<vmem>>, vector<8x4096xbf16>
    %c0_4 = arith.constant 0 : index
    %c0_5 = arith.constant 0 : index
    %5 = vector.load %arg3[%c0_4, %c0_5] : memref<4096x512xbf16, #tpu.memory_space<vmem>>, vector<4096x512xbf16>
    %cst = arith.constant dense<0.000000e+00> : vector<8x512xf32>
    %6 = tpu.matmul %4, %5, %cst {dimension_numbers = #tpu.dot_dimension_numbers<[1], [0], [0], [1], [0, 0, 1, 1], [], []>} : vector<8x4096xbf16>, vector<4096x512xbf16>, vector<8x512xf32> -> vector<8x512xf32>
    %7 = arith.addf %3, %6 : vector<8x512xf32>
    %c0_6 = arith.constant 0 : index
    %c0_7 = arith.constant 0 : index
    %8 = vector.load %arg8[%c0_6, %c0_7] : memref<8x512xf32, #tpu.memory_space<vmem>>, vector<8x512xf32>
    tpu.vector_store %arg8[%c0_6, %c0_7], %7 {strides = array<i32>} : memref<8x512xf32, #tpu.memory_space<vmem>>, vector<8x512xf32>,
    %c1_i32 = arith.constant 1 : i32
    %9 = arith.cmpi eq, %arg1, %c1_i32 : i32
    %10 = arith.extui %9 : i1 to i32
    %c0_i32_8 = arith.constant 0 : i32
    %11 = arith.cmpi ne, %10, %c0_i32_8 : i32
    scf.if %11 {
      %c0_9 = arith.constant 0 : index
      %c0_10 = arith.constant 0 : index
      %12 = vector.load %arg8[%c0_9, %c0_10] : memref<8x512xf32, #tpu.memory_space<vmem>>, vector<8x512xf32>
      %cst_11 = arith.constant dense<0.000000e+00> : vector<512xf32>
      %13 = vector.multi_reduction <add>, %12, %cst_11 [0] : vector<8x512xf32> to vector<512xf32>
      %14 = vector.shape_cast %13 : vector<512xf32> to vector<1x512xf32>
      %cst_12 = arith.constant 2.500000e-01 : f32
      %15 = vector.broadcast %cst_12 : f32 to vector<1x512xf32>
      %16 = arith.mulf %14, %15 : vector<1x512xf32>
      %17 = tpu.iota {dimensions = array<i32: 0>} : vector<8x512xi32>
      %c4_i32 = arith.constant 4 : i32
      %18 = vector.broadcast %c4_i32 : i32 to vector<8x512xi32>
      %19 = arith.cmpi slt, %17, %18 : vector<8x512xi32>
      %20 = vector.broadcast %16 : vector<1x512xf32> to vector<8x512xf32>
      %21 = arith.subf %12, %20 : vector<8x512xf32>
      %cst_13 = arith.constant 0.000000e+00 : f32
      %22 = vector.broadcast %cst_13 : f32 to vector<8x512xf32>
      %23 = arith.select %19, %21, %22 : vector<8x512xi1>, vector<8x512xf32>
      %24 = arith.mulf %23, %23 : vector<8x512xf32>
      %cst_14 = arith.constant dense<0.000000e+00> : vector<512xf32>
      %25 = vector.multi_reduction <add>, %24, %cst_14 [0] : vector<8x512xf32> to vector<512xf32>
      %26 = vector.shape_cast %25 : vector<512xf32> to vector<1x512xf32>
      %cst_15 = arith.constant 2.500000e-01 : f32
      %27 = vector.broadcast %cst_15 : f32 to vector<1x512xf32>
      %28 = arith.mulf %26, %27 : vector<1x512xf32>
      %c0_16 = arith.constant 0 : index
      %c0_17 = arith.constant 0 : index
      %29 = vector.load %arg4[%c0_16, %c0_17] : memref<1x512xf32, #tpu.memory_space<vmem>>, vector<1x512xf32>
      %cst_18 = arith.constant 9.99999974E-6 : f32
      %30 = vector.broadcast %cst_18 : f32 to vector<1x512xf32>
      %31 = arith.addf %28, %30 : vector<1x512xf32>
      %32 = math.rsqrt %31 : vector<1x512xf32>
      %33 = arith.mulf %29, %32 : vector<1x512xf32>
      %34 = vector.broadcast %33 : vector<1x512xf32> to vector<8x512xf32>
      %35 = arith.mulf %23, %34 : vector<8x512xf32>
      %c0_19 = arith.constant 0 : index
      %c0_20 = arith.constant 0 : index
      %36 = vector.load %arg5[%c0_19, %c0_20] : memref<1x512xf32, #tpu.memory_space<vmem>>, vector<1x512xf32>
      %37 = vector.broadcast %36 : vector<1x512xf32> to vector<8x512xf32>
      %38 = arith.addf %35, %37 : vector<8x512xf32>
      %cst_21 = arith.constant 0.000000e+00 : f32
      %39 = vector.broadcast %cst_21 : f32 to vector<8x512xf32>
      %40 = arith.cmpf oge, %38, %39 : vector<8x512xf32>
      %cst_22 = arith.constant 2.000000e-01 : f32
      %41 = vector.broadcast %cst_22 : f32 to vector<8x512xf32>
      %42 = arith.mulf %41, %38 : vector<8x512xf32>
      %43 = arith.select %40, %38, %42 : vector<8x512xi1>, vector<8x512xf32>
      %c0_23 = arith.constant 0 : index
      %c0_24 = arith.constant 0 : index
      %44 = vector.load %arg6[%c0_23, %c0_24] : memref<512x128xf32, #tpu.memory_space<vmem>>, vector<512x128xf32>
      %cst_25 = arith.constant dense<0.000000e+00> : vector<8x128xf32>
      %45 = tpu.matmul %43, %44, %cst_25 {dimension_numbers = #tpu.dot_dimension_numbers<[1], [0], [0], [1], [0, 0, 1, 1], [], []>} : vector<8x512xf32>, vector<512x128xf32>, vector<8x128xf32> -> vector<8x128xf32>
      %c0_26 = arith.constant 0 : index
      %c0_27 = arith.constant 0 : index
      %c0_28 = arith.constant 0 : index
      %46 = vector.load %arg7[%c0_26, %c0_27, %c0_28] : memref<1x8x128xf32, #tpu.memory_space<vmem>>, vector<1x8x128xf32>
      %47 = vector.shape_cast %46 : vector<1x8x128xf32> to vector<8x128xf32>
      %48 = vector.shape_cast %45 : vector<8x128xf32> to vector<1x8x128xf32>
      tpu.vector_store %arg7[%c0_26, %c0_27, %c0_28], %48 {strides = array<i32>} : memref<1x8x128xf32, #tpu.memory_space<vmem>>, vector<1x8x128xf32>,
    } else {
    }
    return
  }
  func.func @transform_0(%arg0: i32, %arg1: i32) -> (i32, i32) {
    %c0_i32 = arith.constant 0 : i32
    %c0_i32_0 = arith.constant 0 : i32
    return %c0_i32, %arg1 : i32, i32
  }
  func.func @transform_1(%arg0: i32, %arg1: i32) -> (i32, i32) {
    %c0_i32 = arith.constant 0 : i32
    return %arg1, %arg0 : i32, i32
  }
  func.func @transform_2(%arg0: i32, %arg1: i32) -> (i32, i32) {
    %c0_i32 = arith.constant 0 : i32
    %c0_i32_0 = arith.constant 0 : i32
    return %c0_i32, %arg0 : i32, i32
  }
  func.func @transform_3(%arg0: i32, %arg1: i32) -> (i32, i32) {
    %c0_i32 = arith.constant 0 : i32
    %c0_i32_0 = arith.constant 0 : i32
    return %c0_i32, %arg0 : i32, i32
  }
  func.func @transform_4(%arg0: i32, %arg1: i32) -> (i32, i32) {
    %c0_i32 = arith.constant 0 : i32
    %c0_i32_0 = arith.constant 0 : i32
    return %arg0, %c0_i32 : i32, i32
  }
  func.func @transform_5(%arg0: i32, %arg1: i32) -> (i32, i32, i32) {
    %c0_i32 = arith.constant 0 : i32
    %c0_i32_0 = arith.constant 0 : i32
    %c0_i32_1 = arith.constant 0 : i32
    return %arg0, %c0_i32, %c0_i32_0 : i32, i32, i32
  }
}

</mosaic_0001>

<bundles_post_ra>
// kernel: discriminator_forward.3
= control target key start
LH: loop header
LB: loop body
LE: loop exit
PB: predicated region body
PF: predicated region fallthrough
CT: control target
= control target key end

     0   :  { %8 = vsyncpa [#allocation3], 0  ;;  %s2358_s0 = inlined_call_operand.vmem [shape: bf16[1024,16], index: 0, kind: input, shape index: {}]   ;;  %s2359_s1 = inlined_call_operand.hbm [shape: bf16[16,128], index: 1, kind: input, shape index: {}]   ;;  %s2360_s2 = inlined_call_operand.hbm [shape: f32[1,128], index: 2, kind: input, shape index: {}]   ;;  %s2361_s3 = inlined_call_operand.vmem [shape: bf16[1024,128], index: 3, kind: output, shape index: {}]  }
   0x1   :  { %9 = vsyncpa [#allocation5], 0  ;;  %s2079_s12 = smov 0  }
   0x2 LB: > { %s1418_s13 = sadd.s32 4294967295, %s2053_s12   ;;  %p1420_p0 = scmp.ge.s32.totalorder %s2053_s12, 1  ;;  %s2053_s12 = sphi %s2079_s12, %s15_s12  }
   0x3   : > { %p114_p1 = scmp.lt.s32.totalorder %s2053_s12, 3  ;;  %s2055_s14 = smov [#allocation2]  }
   0x4   : > { %s126_s15 = sshll.u32 %s2055_s14, 4  ;;  %p2093_p3 = scmp.eq.s32.totalorder %s1418_s13, 0  ;;  %s127_s15 = int_to_ptr.vmem [resolvable:$true] %s126_s15 }
   0x5   : > { %p2087_p2 = pnand %p1420_p0, %p114_p1  ;;  %s2056_s18 = smov [#allocation4]  }
   0x6   : > { %s2366_s17 = scalar_select %p2093_p3, 1, 0 }
   0x7   : > { %s2365_s16 = scalar_select %p2087_p2, 1, 0 }
   0x8   : > { %p1927_p4 = pneg %p2087_p2  ;;  %s140_s19 = sshll.u32 %s2056_s18, 4  ;;  %s2105_s19 = int_to_ptr.vmem [resolvable:$true] %s140_s19 }
   0x9   : > { %s1983_s23 = scalar_lea.hbm %s2359_s1, 128 }
   0xa   : > { %p2101_p5 = pnand %p2093_p3, %p1927_p4  ;;  %p1984_p6 = scmp.ne.s32.totalorder %s2359_s1, %s1983_s23 }
   0xb   : > { %p1990_p10 = scmp.lt.u32.totalorder %s1983_s23, %s2359_s1 }
   0xc   : > { %p1985_p7 = pneg %p2101_p5 }
   0xe   : > { %p1986_p8 = pnand %p1985_p7, %p1984_p6 }
  0x10   : > { %p1987_p9 = pneg %p1986_p8 }
  0x12   : > { %p1992_p11 = pnand %p1990_p10, %p1987_p9 }
  0x14   : > { %1995 = shalt.err (!%p1992_p11)
}
  0x15   : > { %s1996_s28 = scalar_lea.vmem %s127_s15, 128  ;;  %p2004_p1 = scmp.lt.s32.totalorder %s127_s15, %s127_s15 }
  0x16   : > { %p1997_p12 = scmp.ne.s32.totalorder %s127_s15, %s1996_s28  ;;  %p2005_p4 = scmp.lt.s32.totalorder %s1996_s28, %s1996_s28 }
  0x18   : > { %p1999_p13 = pnand %p1997_p12, %p1985_p7  ;;  %p2006_p3 = por %p2005_p4, %p2004_p1 }
  0x1a   : > { %p2000_p0 = pneg %p1999_p13 }
  0x1c   : > { %p2007_p2 = pnand %p2006_p3, %p2000_p0 }
  0x1e   : > { %2010 = shalt.err (!%p2007_p2)
}
  0x1f   : > { %s2057_s29 = smov 64   ;;  %s2058_s30 = smov 4  }
  0x20   : > { %1930 = dma.hbm_to_vmem [thread:$0]  (!%p2101_p5), %s2359_s1, 128, %s127_s15, [#allocation3], %s2057_s29, %s2057_s29, %s2058_s30  }
  0x21   : > { %s2011_s8 = scalar_lea.hbm %s2360_s2, 16 }
  0x22   : > { %p2012_p6 = scmp.ne.s32.totalorder %s2360_s2, %s2011_s8  ;;  %p2018_p8 = scmp.lt.u32.totalorder %s2011_s8, %s2360_s2 }
  0x24   : > { %p2014_p2 = pnand %p2012_p6, %p1985_p7 }
  0x26   : > { %p2015_p3 = pneg %p2014_p2 }
  0x28   : > { %p2020_p9 = pnand %p2018_p8, %p2015_p3 }
  0x2a   : > { %2023 = shalt.err (!%p2020_p9)
}
  0x2b   : > { %s2024_s15 = scalar_lea.vmem %s2105_s19, 16  ;;  %s2031_s18 = scalar_lea.vmem %s2105_s19, 32 }
  0x2c   : > { %p2025_p10 = scmp.ne.s32.totalorder %s2105_s19, %s2024_s15  ;;  %p2032_p13 = scmp.lt.s32.totalorder %s2105_s19, %s2105_s19 }
  0x2d   : > { %p2033_p0 = scmp.lt.s32.totalorder %s2031_s18, %s2024_s15 }
  0x2e   : > { %p2027_p11 = pnand %p2025_p10, %p1985_p7 }
  0x2f   : > { %p2034_p1 = por %p2033_p0, %p2032_p13 }
  0x30   : > { %p2028_p12 = pneg %p2027_p11 }
  0x32   : > { %p2035_p4 = pnand %p2034_p1, %p2028_p12 }
  0x34   : > { %2038 = shalt.err (!%p2035_p4)
}
  0x35   : > { %1933 = dma.hbm_to_vmem [thread:$0]  (!%p2101_p5), %s2360_s2, 16, %s2105_s19, [#allocation5]  }
  0x36   : > { %p2368_p6 = scmp.ne.s32.totalorder %s2365_s16, 0 }
  0x37   : > { %p2369_p7 = scmp.ne.s32.totalorder (!%p2368_p6), %s2366_s17, 0 }
  0x38   : > { %162 = sbr.rel (%p2368_p6) target bundleno = 363 (0x16b), region = 32 }
  0x3f   : > { %2044 = dma.done.wait (%p2369_p7), [#allocation3], 128  }
  0x40   : > { %2046 = vsyncadd (%p2369_p7), [#allocation3], 4294967168 }
  0x41   : > { %2048 = dma.done.wait (%p2369_p7), [#allocation5], 16  }
  0x42   : > { %2050 = vsyncadd (%p2369_p7), [#allocation5], 4294967280  ;;  %s1427_s20 = sshll.u32 %s1418_s13, 6  ;;  %v1950_v0 = vld [vmem:[#allocation2] sm:$0xff]   ;;  %vm442_vm0 = vcmask 130048  }
  0x43   : > { %p191_p2 = scmp.lt.s32.totalorder %s1427_s20, 127  ;;  %1851 = vmatprep.subr.bf16.mxu0 %v1950_v0  ;;  %1917 = vmatprep.subr.bf16.mxu1 %v1950_v0  ;;  %v2241_v33 = vld [vmem:[#allocation4] ss:$0 sm:$0xff] }
  0x44   : > { %1852 = vmatpush3.bf16.msra.mxu0 %v1950_v0  ;;  %1918 = vmatpush3.bf16.msra.mxu1 %v1950_v0 }
  0x45   : > { %s2371_s20 = smov (!%p191_p2, %s1427_s20), 127 }
  0x46   : > { %s1428_s16 = sshll.u32 %s2371_s20, 2 }
  0x47   : > { %s2175_s24 = scalar_lea.vmem %s2358_s0, %s1428_s16  ;;  %s2258_s25 = scalar_lea.vmem %s2361_s3, %s1428_s16 }
  0x48   : > { %v1951_v1 = vld [vmem:[%s2175_s24] sm:$0xff]   ;;  %v1953_v3 = vld [vmem:[%s2175_s24 + $0x8] sm:$0xff]   ;;  %v1955_v5 = vld [vmem:[%s2175_s24 + $0x10] sm:$0xff]  }
  0x49   : > { %v1952_v2 = vld [vmem:[%s2175_s24 + $0x80] sm:$0xff]   ;;  %1853 = vmatprep.mubr.msk.bf16.mxu0 %vm442_vm0, %v1951_v1  ;;  %v1954_v4 = vld [vmem:[%s2175_s24 + $0x88] sm:$0xff]   ;;  %v1956_v6 = vld [vmem:[%s2175_s24 + $0x90] sm:$0xff]  }
  0x4a   : > { %1885 = vmatprep.mubr.msk.bf16.mxu1 %vm442_vm0, %v1952_v2  ;;  %1854 = vmatmul.mubr.msk.bf16.vlgmr.msra.gmra.mrb[0].mxu0 %vm442_vm0, %v1953_v3  ;;  %v1957_v7 = vld [vmem:[%s2175_s24 + $0x18] sm:$0xff]   ;;  %v1959_v9 = vld [vmem:[%s2175_s24 + $0x20] sm:$0xff]   ;;  %v1961_v11 = vld [vmem:[%s2175_s24 + $0x28] sm:$0xff]  }
  0x4b   : > { %1886 = vmatmul.mubr.msk.bf16.vlgmr.msra.gmra.mrb[0].mxu1 %vm442_vm0, %v1954_v4  ;;  %1857 = vmatprep.mubr.msk.bf16.mxu0 %vm442_vm0, %v1955_v5  ;;  %v1958_v8 = vld [vmem:[%s2175_s24 + $0x98] sm:$0xff]   ;;  %v1960_v10 = vld [vmem:[%s2175_s24 + $0xa0] sm:$0xff]   ;;  %v1962_v12 = vld [vmem:[%s2175_s24 + $0xa8] sm:$0xff]  }
  0x4c   : > { %1889 = vmatprep.mubr.msk.bf16.mxu1 %vm442_vm0, %v1956_v6  ;;  %v1963_v13 = vld [vmem:[%s2175_s24 + $0x30] sm:$0xff]   ;;  %v1965_v15 = vld [vmem:[%s2175_s24 + $0x38] sm:$0xff]   ;;  %v1967_v17 = vld [vmem:[%s2175_s24 + $0x40] sm:$0xff]  }
  0x4d   : > { %v1964_v14 = vld [vmem:[%s2175_s24 + $0xb0] sm:$0xff]   ;;  %v1966_v16 = vld [vmem:[%s2175_s24 + $0xb8] sm:$0xff]   ;;  %v1968_v18 = vld [vmem:[%s2175_s24 + $0xc0] sm:$0xff]  }
  0x4e   : > { %v1969_v19 = vld [vmem:[%s2175_s24 + $0x48] sm:$0xff]   ;;  %v1971_v21 = vld [vmem:[%s2175_s24 + $0x50] sm:$0xff]   ;;  %v1973_v23 = vld [vmem:[%s2175_s24 + $0x58] sm:$0xff]  }
  0x4f   : > { %v1970_v20 = vld [vmem:[%s2175_s24 + $0xc8] sm:$0xff]   ;;  %v1972_v22 = vld [vmem:[%s2175_s24 + $0xd0] sm:$0xff]   ;;  %v1974_v24 = vld [vmem:[%s2175_s24 + $0xd8] sm:$0xff]  }
  0x50   : > { %v1975_v25 = vld [vmem:[%s2175_s24 + $0x60] sm:$0xff]   ;;  %v1977_v27 = vld [vmem:[%s2175_s24 + $0x68] sm:$0xff]   ;;  %v1979_v29 = vld [vmem:[%s2175_s24 + $0x70] sm:$0xff]  }
  0x51   : > { %v1976_v26 = vld [vmem:[%s2175_s24 + $0xe0] sm:$0xff]   ;;  %v1978_v28 = vld [vmem:[%s2175_s24 + $0xe8] sm:$0xff]   ;;  %v1980_v30 = vld [vmem:[%s2175_s24 + $0xf0] sm:$0xff]  }
  0x52   : > { %1858 = vmatmul.mubr.msk.bf16.gmra.mrb[4].mxu0 %vm442_vm0, %v1957_v7  ;;  %v1981_v31 = vld [vmem:[%s2175_s24 + $0x78] sm:$0xff]  }
  0x53   : > { %1890 = vmatmul.mubr.msk.bf16.gmra.mrb[4].mxu1 %vm442_vm0, %v1958_v8  ;;  %1861 = vmatprep.mubr.msk.bf16.mxu0 %vm442_vm0, %v1959_v9  ;;  %v1982_v32 = vld [vmem:[%s2175_s24 + $0xf8] sm:$0xff]  }
  0x54   : > { %1893 = vmatprep.mubr.msk.bf16.mxu1 %vm442_vm0, %v1960_v10 }
  0x5a   : > { %1862 = vmatmul.mubr.msk.bf16.gmra.mrb[8].mxu0 %vm442_vm0, %v1961_v11 }
  0x5b   : > { %1894 = vmatmul.mubr.msk.bf16.gmra.mrb[8].mxu1 %vm442_vm0, %v1962_v12  ;;  %1865 = vmatprep.mubr.msk.bf16.mxu0 %vm442_vm0, %v1963_v13 }
  0x5c   : > { %1897 = vmatprep.mubr.msk.bf16.mxu1 %vm442_vm0, %v1964_v14 }
  0x62   : > { %1866 = vmatmul.mubr.msk.bf16.gmra.mrb[12].mxu0 %vm442_vm0, %v1965_v15 }
  0x63   : > { %1898 = vmatmul.mubr.msk.bf16.gmra.mrb[12].mxu1 %vm442_vm0, %v1966_v16  ;;  %1869 = vmatprep.mubr.msk.bf16.mxu0 %vm442_vm0, %v1967_v17 }
  0x64   : > { %1901 = vmatprep.mubr.msk.bf16.mxu1 %vm442_vm0, %v1968_v18 }
  0x6a   : > { %1870 = vmatmul.mubr.msk.bf16.gmra.mrb[16].mxu0 %vm442_vm0, %v1969_v19 }
  0x6b   : > { %1902 = vmatmul.mubr.msk.bf16.gmra.mrb[16].mxu1 %vm442_vm0, %v1970_v20  ;;  %1873 = vmatprep.mubr.msk.bf16.mxu0 %vm442_vm0, %v1971_v21 }
  0x6c   : > { %1905 = vmatprep.mubr.msk.bf16.mxu1 %vm442_vm0, %v1972_v22 }
  0x72   : > { %1874 = vmatmul.mubr.msk.bf16.gmra.mrb[20].mxu0 %vm442_vm0, %v1973_v23 }
  0x73   : > { %1906 = vmatmul.mubr.msk.bf16.gmra.mrb[20].mxu1 %vm442_vm0, %v1974_v24  ;;  %1877 = vmatprep.mubr.msk.bf16.mxu0 %vm442_vm0, %v1975_v25 }
  0x74   : > { %1909 = vmatprep.mubr.msk.bf16.mxu1 %vm442_vm0, %v1976_v26 }
  0x7a   : > { %1878 = vmatmul.mubr.msk.bf16.gmra.mrb[24].mxu0 %vm442_vm0, %v1977_v27 }
  0x7b   : > { %1910 = vmatmul.mubr.msk.bf16.gmra.mrb[24].mxu1 %vm442_vm0, %v1978_v28  ;;  %1881 = vmatprep.mubr.msk.bf16.mxu0 %vm442_vm0, %v1979_v29 }
  0x7c   : > { %1913 = vmatprep.mubr.msk.bf16.mxu1 %vm442_vm0, %v1980_v30 }
  0x82   : > { %1882 = vmatmul.mubr.msk.bf16.gmra.mrb[28].mxu0 %vm442_vm0, %v1981_v31 }
  0x83   : > { %1914 = vmatmul.mubr.msk.bf16.gmra.mrb[28].mxu1 %vm442_vm0, %v1982_v32 }
 0x11d   : > { %v1855_v34 = vpop.f32.mrb[0].mxu0 }
 0x11e   : > { %v1887_v35 = vpop.f32.mrb[0].mxu1  ;;  %v582_v36 = vadd.f32 %v1855_v34, %v2241_v33  ;;  %v573_v38 = vpop.f32.mrb[1].mxu0 }
 0x11f   : > { %v710_v37 = vadd.f32 %v1887_v35, %v2241_v33  ;;  %v701_v39 = vpop.f32.mrb[1].mxu1  ;;  %v574_v40 = vadd.f32 %v2241_v33, %v573_v38  ;;  %v1856_v42 = vpop.f32.mrb[2].mxu0 }
 0x120   : > { %v702_v41 = vadd.f32 %v2241_v33, %v701_v39  ;;  %v1888_v43 = vpop.f32.mrb[2].mxu1  ;;  %vm830_vm1 = vcmp.ge.f32.partialorder %v582_v36, 0.0  ;;  %v894_v44 = vmul.f32 0.2, %v582_v36  ;;  %v585_v48 = vadd.f32 %v1856_v42, %v2241_v33  ;;  %v576_v50 = vpop.f32.mrb[3].mxu0 }
 0x121   : > { %vm862_vm2 = vcmp.ge.f32.partialorder %v710_v37, 0.0  ;;  %v926_v45 = vmul.f32 0.2, %v710_v37  ;;  %vm828_vm3 = vcmp.ge.f32.partialorder %v574_v40, 0.0  ;;  %v892_v46 = vmul.f32 0.2, %v574_v40 }
 0x122   : > { %vm860_vm4 = vcmp.ge.f32.partialorder %v702_v41, 0.0  ;;  %v924_v47 = vmul.f32 0.2, %v702_v41  ;;  %v713_v49 = vadd.f32 %v1888_v43, %v2241_v33  ;;  %v704_v51 = vpop.f32.mrb[3].mxu1  ;;  %v958_v52 = vsel %vm830_vm1, %v582_v36, %v894_v44 }
 0x123   : > { %v990_v53 = vsel %vm862_vm2, %v710_v37, %v926_v45  ;;  %v577_v54 = vadd.f32 %v2241_v33, %v576_v50  ;;  %v705_v55 = vadd.f32 %v2241_v33, %v704_v51  ;;  %vm831_vm5 = vcmp.ge.f32.partialorder %v585_v48, 0.0 }
 0x124   : > { %v895_v56 = vmul.f32 0.2, %v585_v48  ;;  %vm863_vm6 = vcmp.ge.f32.partialorder %v713_v49, 0.0  ;;  %v927_v57 = vmul.f32 0.2, %v713_v49  ;;  %v956_v60 = vsel %vm828_vm3, %v574_v40, %v892_v46 }
 0x125   : > { %vm829_vm7 = vcmp.ge.f32.partialorder %v577_v54, 0.0  ;;  %v893_v58 = vmul.f32 0.2, %v577_v54  ;;  %vm861_vm8 = vcmp.ge.f32.partialorder %v705_v55, 0.0  ;;  %v925_v59 = vmul.f32 0.2, %v705_v55 }
 0x126   : > { %v988_v61 = vsel %vm860_vm4, %v702_v41, %v924_v47  ;;  %v959_v62 = vsel %vm831_vm5, %v585_v48, %v895_v56  ;;  %v991_v63 = vsel %vm863_vm6, %v713_v49, %v927_v57  ;;  %v1859_v0 = vpop.f32.mrb[4].mxu0  ;;  %v1891_v1 = vpop.f32.mrb[4].mxu1 }
 0x127   : > { %v1635_v2 = vpack.c.bf16 %v959_v62, %v958_v52  ;;  %v1715_v3 = vpack.c.bf16 %v991_v63, %v990_v53  ;;  %v957_v4 = vsel %vm829_vm7, %v577_v54, %v893_v58  ;;  %v989_v5 = vsel %vm861_vm8, %v705_v55, %v925_v59  ;;  %v589_v6 = vpop.f32.mrb[5].mxu0  ;;  %v717_v7 = vpop.f32.mrb[5].mxu1 }
 0x128   : > { %v1630_v8 = vpack.c.bf16 %v957_v4, %v956_v60  ;;  %v1710_v9 = vpack.c.bf16 %v989_v5, %v988_v61  ;;  %v598_v10 = vadd.f32 %v1859_v0, %v2241_v33  ;;  %v726_v11 = vadd.f32 %v1891_v1, %v2241_v33  ;;  %v1860_v12 = vpop.f32.mrb[6].mxu0  ;;  %v1892_v13 = vpop.f32.mrb[6].mxu1 }
 0x129   : > { %1787 = vst [vmem:[%s2258_s25 + $0x8] sm:$0xff] %v1635_v2   ;;  %1803 = vst [vmem:[%s2258_s25 + $0x88] sm:$0xff] %v1715_v3   ;;  %v590_v14 = vadd.f32 %v2241_v33, %v589_v6  ;;  %v718_v15 = vadd.f32 %v2241_v33, %v717_v7  ;;  %v601_v16 = vadd.f32 %v1860_v12, %v2241_v33  ;;  %v592_v18 = vpop.f32.mrb[7].mxu0  ;;  %v720_v19 = vpop.f32.mrb[7].mxu1 }
 0x12a   : > { %v729_v17 = vadd.f32 %v1892_v13, %v2241_v33  ;;  %1631 = vst [vmem:[%s2258_s25] sm:$0xff] %v1630_v8   ;;  %1802 = vst [vmem:[%s2258_s25 + $0x80] sm:$0xff] %v1710_v9   ;;  %vm834_vm9 = vcmp.ge.f32.partialorder %v598_v10, 0.0  ;;  %v898_v20 = vmul.f32 0.2, %v598_v10  ;;  %vm866_vm10 = vcmp.ge.f32.partialorder %v726_v11, 0.0 }
 0x12b   : > { %v930_v21 = vmul.f32 0.2, %v726_v11  ;;  %vm832_vm11 = vcmp.ge.f32.partialorder %v590_v14, 0.0  ;;  %v896_v22 = vmul.f32 0.2, %v590_v14  ;;  %vm864_vm12 = vcmp.ge.f32.partialorder %v718_v15, 0.0 }
 0x12c   : > { %v928_v23 = vmul.f32 0.2, %v718_v15  ;;  %v962_v24 = vsel %vm834_vm9, %v598_v10, %v898_v20  ;;  %vm835_vm13 = vcmp.ge.f32.partialorder %v601_v16, 0.0  ;;  %v899_v26 = vmul.f32 0.2, %v601_v16 }
 0x12d   : > { %v994_v25 = vsel %vm866_vm10, %v726_v11, %v930_v21  ;;  %v960_v27 = vsel %vm832_vm11, %v590_v14, %v896_v22  ;;  %vm867_vm14 = vcmp.ge.f32.partialorder %v729_v17, 0.0  ;;  %v931_v29 = vmul.f32 0.2, %v729_v17  ;;  %v1863_v30 = vpop.f32.mrb[8].mxu0 }
 0x12e   : > { %v992_v28 = vsel %vm864_vm12, %v718_v15, %v928_v23  ;;  %v1895_v31 = vpop.f32.mrb[8].mxu1  ;;  %v963_v32 = vsel %vm835_vm13, %v601_v16, %v899_v26  ;;  %v593_v34 = vadd.f32 %v2241_v33, %v592_v18  ;;  %v721_v35 = vadd.f32 %v2241_v33, %v720_v19  ;;  %v605_v37 = vpop.f32.mrb[9].mxu0 }
 0x12f   : > { %v614_v36 = vadd.f32 %v1863_v30, %v2241_v33  ;;  %v733_v38 = vpop.f32.mrb[9].mxu1  ;;  %v1645_v39 = vpack.c.bf16 %v963_v32, %v962_v24  ;;  %v995_v40 = vsel %vm867_vm14, %v729_v17, %v931_v29  ;;  %v742_v41 = vadd.f32 %v1895_v31, %v2241_v33  ;;  %v1864_v43 = vpop.f32.mrb[10].mxu0 }
 0x130   : > { %v606_v42 = vadd.f32 %v2241_v33, %v605_v37  ;;  %v1896_v44 = vpop.f32.mrb[10].mxu1  ;;  %v1725_v45 = vpack.c.bf16 %v995_v40, %v994_v25  ;;  %vm833_vm15 = vcmp.ge.f32.partialorder %v593_v34, 0.0  ;;  %v897_v46 = vmul.f32 0.2, %v593_v34  ;;  %v608_v47 = vpop.f32.mrb[11].mxu0 }
 0x131   : > { %vm865_vm0 = vcmp.ge.f32.partialorder %v721_v35, 0.0  ;;  %v736_v48 = vpop.f32.mrb[11].mxu1  ;;  %1789 = vst [vmem:[%s2258_s25 + $0x18] sm:$0xff] %v1645_v39   ;;  %v929_v49 = vmul.f32 0.2, %v721_v35  ;;  %vm838_vm1 = vcmp.ge.f32.partialorder %v614_v36, 0.0  ;;  %v734_v57 = vadd.f32 %v2241_v33, %v733_v38 }
 0x132   : > { %v902_v50 = vmul.f32 0.2, %v614_v36  ;;  %vm870_vm2 = vcmp.ge.f32.partialorder %v742_v41, 0.0  ;;  %1805 = vst [vmem:[%s2258_s25 + $0x98] sm:$0xff] %v1725_v45   ;;  %v961_v51 = vsel %vm833_vm15, %v593_v34, %v897_v46  ;;  %v934_v52 = vmul.f32 0.2, %v742_v41 }
 0x133   : > { %vm836_vm3 = vcmp.ge.f32.partialorder %v606_v42, 0.0  ;;  %v900_v53 = vmul.f32 0.2, %v606_v42  ;;  %v1640_v54 = vpack.c.bf16 %v961_v51, %v960_v27  ;;  %v993_v55 = vsel %vm865_vm0, %v721_v35, %v929_v49 }
 0x134   : > { %v966_v56 = vsel %vm838_vm1, %v614_v36, %v902_v50  ;;  %v1720_v58 = vpack.c.bf16 %v993_v55, %v992_v28  ;;  %v998_v59 = vsel %vm870_vm2, %v742_v41, %v934_v52  ;;  %v617_v61 = vadd.f32 %v1864_v43, %v2241_v33 }
 0x135   : > { %v964_v60 = vsel %vm836_vm3, %v606_v42, %v900_v53  ;;  %1788 = vst [vmem:[%s2258_s25 + $0x10] sm:$0xff] %v1640_v54   ;;  %vm868_vm4 = vcmp.ge.f32.partialorder %v734_v57, 0.0  ;;  %v932_v62 = vmul.f32 0.2, %v734_v57  ;;  %v745_v63 = vadd.f32 %v1896_v44, %v2241_v33  ;;  %v1867_v1 = vpop.f32.mrb[12].mxu0 }
 0x136   : > { %v609_v0 = vadd.f32 %v2241_v33, %v608_v47  ;;  %v1899_v2 = vpop.f32.mrb[12].mxu1  ;;  %1804 = vst [vmem:[%s2258_s25 + $0x90] sm:$0xff] %v1720_v58   ;;  %vm839_vm5 = vcmp.ge.f32.partialorder %v617_v61, 0.0  ;;  %v903_v3 = vmul.f32 0.2, %v617_v61  ;;  %v737_v4 = vadd.f32 %v2241_v33, %v736_v48  ;;  %v621_v6 = vpop.f32.mrb[13].mxu0 }
 0x137   : > { %v630_v5 = vadd.f32 %v1867_v1, %v2241_v33  ;;  %v749_v7 = vpop.f32.mrb[13].mxu1  ;;  %v996_v8 = vsel %vm868_vm4, %v734_v57, %v932_v62  ;;  %vm871_vm6 = vcmp.ge.f32.partialorder %v745_v63, 0.0  ;;  %v935_v9 = vmul.f32 0.2, %v745_v63  ;;  %v1868_v10 = vpop.f32.mrb[14].mxu0 }
 0x138   : > { %vm837_vm7 = vcmp.ge.f32.partialorder %v609_v0, 0.0  ;;  %v1900_v11 = vpop.f32.mrb[14].mxu1  ;;  %v967_v12 = vsel %vm839_vm5, %v617_v61, %v903_v3  ;;  %v901_v13 = vmul.f32 0.2, %v609_v0  ;;  %vm869_vm8 = vcmp.ge.f32.partialorder %v737_v4, 0.0  ;;  %v624_v15 = vpop.f32.mrb[15].mxu0 }
 0x139   : > { %v933_v14 = vmul.f32 0.2, %v737_v4  ;;  %v1655_v16 = vpack.c.bf16 %v967_v12, %v966_v56  ;;  %v999_v17 = vsel %vm871_vm6, %v745_v63, %v935_v9  ;;  %vm842_vm9 = vcmp.ge.f32.partialorder %v630_v5, 0.0  ;;  %v752_v19 = vpop.f32.mrb[15].mxu1 }
 0x13a   : > { %v906_v18 = vmul.f32 0.2, %v630_v5  ;;  %v1735_v20 = vpack.c.bf16 %v999_v17, %v998_v59  ;;  %v965_v21 = vsel %vm837_vm7, %v609_v0, %v901_v13  ;;  %v758_v23 = vadd.f32 %v1899_v2, %v2241_v33 }
 0x13b   : > { %v997_v22 = vsel %vm869_vm8, %v737_v4, %v933_v14  ;;  %1791 = vst [vmem:[%s2258_s25 + $0x28] sm:$0xff] %v1655_v16   ;;  %v1650_v24 = vpack.c.bf16 %v965_v21, %v964_v60  ;;  %v622_v27 = vadd.f32 %v2241_v33, %v621_v6  ;;  %v750_v29 = vadd.f32 %v2241_v33, %v749_v7 }
 0x13c   : > { %v1730_v25 = vpack.c.bf16 %v997_v22, %v996_v8  ;;  %v970_v26 = vsel %vm842_vm9, %v630_v5, %v906_v18  ;;  %1807 = vst [vmem:[%s2258_s25 + $0xa8] sm:$0xff] %v1735_v20   ;;  %vm874_vm10 = vcmp.ge.f32.partialorder %v758_v23, 0.0  ;;  %v938_v28 = vmul.f32 0.2, %v758_v23 }
 0x13d   : > { %v633_v30 = vadd.f32 %v1868_v10, %v2241_v33  ;;  %1790 = vst [vmem:[%s2258_s25 + $0x20] sm:$0xff] %v1650_v24   ;;  %vm840_vm11 = vcmp.ge.f32.partialorder %v622_v27, 0.0  ;;  %v904_v31 = vmul.f32 0.2, %v622_v27  ;;  %v761_v32 = vadd.f32 %v1900_v11, %v2241_v33  ;;  %v1871_v35 = vpop.f32.mrb[16].mxu0 }
 0x13e   : > { %1806 = vst [vmem:[%s2258_s25 + $0xa0] sm:$0xff] %v1730_v25   ;;  %v625_v34 = vadd.f32 %v2241_v33, %v624_v15  ;;  %v1903_v36 = vpop.f32.mrb[16].mxu1  ;;  %v1002_v37 = vsel %vm874_vm10, %v758_v23, %v938_v28  ;;  %vm872_vm12 = vcmp.ge.f32.partialorder %v750_v29, 0.0  ;;  %v936_v38 = vmul.f32 0.2, %v750_v29  ;;  %v637_v39 = vpop.f32.mrb[17].mxu0 }
 0x13f   : > { %vm843_vm13 = vcmp.ge.f32.partialorder %v633_v30, 0.0  ;;  %v765_v40 = vpop.f32.mrb[17].mxu1  ;;  %v968_v41 = vsel %vm840_vm11, %v622_v27, %v904_v31  ;;  %v907_v42 = vmul.f32 0.2, %v633_v30  ;;  %vm875_vm14 = vcmp.ge.f32.partialorder %v761_v32, 0.0  ;;  %v1872_v44 = vpop.f32.mrb[18].mxu0 }
 0x140   : > { %v939_v43 = vmul.f32 0.2, %v761_v32  ;;  %v1000_v45 = vsel %vm872_vm12, %v750_v29, %v936_v38  ;;  %vm841_vm15 = vcmp.ge.f32.partialorder %v625_v34, 0.0  ;;  %v905_v46 = vmul.f32 0.2, %v625_v34  ;;  %v1904_v48 = vpop.f32.mrb[18].mxu1 }
 0x141   : > { %v753_v47 = vadd.f32 %v2241_v33, %v752_v19  ;;  %v640_v49 = vpop.f32.mrb[19].mxu0  ;;  %v971_v50 = vsel %vm843_vm13, %v633_v30, %v907_v42  ;;  %v646_v52 = vadd.f32 %v1871_v35, %v2241_v33  ;;  %v774_v53 = vadd.f32 %v1903_v36, %v2241_v33  ;;  %v768_v54 = vpop.f32.mrb[19].mxu1 }
 0x142   : > { %v1003_v51 = vsel %vm875_vm14, %v761_v32, %v939_v43  ;;  %v1665_v55 = vpack.c.bf16 %v971_v50, %v970_v26  ;;  %v969_v57 = vsel %vm841_vm15, %v625_v34, %v905_v46  ;;  %v638_v62 = vadd.f32 %v2241_v33, %v637_v39 }
 0x143   : > { %v1745_v56 = vpack.c.bf16 %v1003_v51, %v1002_v37  ;;  %vm873_vm0 = vcmp.ge.f32.partialorder %v753_v47, 0.0  ;;  %v1660_v58 = vpack.c.bf16 %v969_v57, %v968_v41  ;;  %v937_v59 = vmul.f32 0.2, %v753_v47 }
 0x144   : > { %vm846_vm1 = vcmp.ge.f32.partialorder %v646_v52, 0.0  ;;  %v910_v60 = vmul.f32 0.2, %v646_v52  ;;  %1793 = vst [vmem:[%s2258_s25 + $0x38] sm:$0xff] %v1665_v55   ;;  %vm878_vm2 = vcmp.ge.f32.partialorder %v774_v53, 0.0  ;;  %v766_v63 = vadd.f32 %v2241_v33, %v765_v40 }
 0x145   : > { %1809 = vst [vmem:[%s2258_s25 + $0xb8] sm:$0xff] %v1745_v56   ;;  %v942_v61 = vmul.f32 0.2, %v774_v53  ;;  %1792 = vst [vmem:[%s2258_s25 + $0x30] sm:$0xff] %v1660_v58   ;;  %v1001_v0 = vsel %vm873_vm0, %v753_v47, %v937_v59  ;;  %v649_v2 = vadd.f32 %v1872_v44, %v2241_v33  ;;  %v777_v3 = vadd.f32 %v1904_v48, %v2241_v33  ;;  %v1875_v4 = vpop.f32.mrb[20].mxu0 }
 0x146   : > { %v974_v1 = vsel %vm846_vm1, %v646_v52, %v910_v60  ;;  %v1907_v5 = vpop.f32.mrb[20].mxu1  ;;  %v1740_v6 = vpack.c.bf16 %v1001_v0, %v1000_v45  ;;  %vm844_vm3 = vcmp.ge.f32.partialorder %v638_v62, 0.0  ;;  %v908_v8 = vmul.f32 0.2, %v638_v62  ;;  %v653_v9 = vpop.f32.mrb[21].mxu0 }
 0x147   : > { %v1006_v7 = vsel %vm878_vm2, %v774_v53, %v942_v61  ;;  %v781_v10 = vpop.f32.mrb[21].mxu1  ;;  %vm876_vm4 = vcmp.ge.f32.partialorder %v766_v63, 0.0  ;;  %v940_v11 = vmul.f32 0.2, %v766_v63  ;;  %vm847_vm5 = vcmp.ge.f32.partialorder %v649_v2, 0.0  ;;  %v1876_v16 = vpop.f32.mrb[22].mxu0 }
 0x148   : > { %v911_v12 = vmul.f32 0.2, %v649_v2  ;;  %1808 = vst [vmem:[%s2258_s25 + $0xb0] sm:$0xff] %v1740_v6   ;;  %v972_v13 = vsel %vm844_vm3, %v638_v62, %v908_v8  ;;  %vm879_vm6 = vcmp.ge.f32.partialorder %v777_v3, 0.0  ;;  %v943_v14 = vmul.f32 0.2, %v777_v3 }
 0x149   : > { %v641_v15 = vadd.f32 %v2241_v33, %v640_v49  ;;  %v1908_v17 = vpop.f32.mrb[22].mxu1  ;;  %v1004_v18 = vsel %vm876_vm4, %v766_v63, %v940_v11  ;;  %v769_v20 = vadd.f32 %v2241_v33, %v768_v54  ;;  %v662_v21 = vadd.f32 %v1875_v4, %v2241_v33  ;;  %v656_v22 = vpop.f32.mrb[23].mxu0 }
 0x14a   : > { %v975_v19 = vsel %vm847_vm5, %v649_v2, %v911_v12  ;;  %v784_v23 = vpop.f32.mrb[23].mxu1  ;;  %v1007_v25 = vsel %vm879_vm6, %v777_v3, %v943_v14  ;;  %v790_v31 = vadd.f32 %v1907_v5, %v2241_v33  ;;  %v654_v32 = vadd.f32 %v2241_v33, %v653_v9 }
 0x14b   : > { %v1675_v24 = vpack.c.bf16 %v975_v19, %v974_v1  ;;  %vm845_vm7 = vcmp.ge.f32.partialorder %v641_v15, 0.0  ;;  %v909_v26 = vmul.f32 0.2, %v641_v15  ;;  %v1755_v27 = vpack.c.bf16 %v1007_v25, %v1006_v7 }
 0x14c   : > { %vm877_vm8 = vcmp.ge.f32.partialorder %v769_v20, 0.0  ;;  %v941_v28 = vmul.f32 0.2, %v769_v20  ;;  %vm850_vm9 = vcmp.ge.f32.partialorder %v662_v21, 0.0  ;;  %v914_v30 = vmul.f32 0.2, %v662_v21 }
 0x14d   : > { %1795 = vst [vmem:[%s2258_s25 + $0x48] sm:$0xff] %v1675_v24   ;;  %v973_v29 = vsel %vm845_vm7, %v641_v15, %v909_v26  ;;  %1811 = vst [vmem:[%s2258_s25 + $0xc8] sm:$0xff] %v1755_v27   ;;  %v782_v36 = vadd.f32 %v2241_v33, %v781_v10  ;;  %v665_v37 = vadd.f32 %v1876_v16, %v2241_v33  ;;  %v1879_v38 = vpop.f32.mrb[24].mxu0  ;;  %vm882_vm10 = vcmp.ge.f32.partialorder %v790_v31, 0.0 }
 0x14e   : > { %v1670_v34 = vpack.c.bf16 %v973_v29, %v972_v13  ;;  %v1005_v35 = vsel %vm877_vm8, %v769_v20, %v941_v28  ;;  %v1911_v39 = vpop.f32.mrb[24].mxu1  ;;  %v946_v41 = vmul.f32 0.2, %v790_v31  ;;  %v669_v42 = vpop.f32.mrb[25].mxu0  ;;  %v978_v44 = vsel %vm850_vm9, %v662_v21, %v914_v30 }
 0x14f   : > { %v1750_v40 = vpack.c.bf16 %v1005_v35, %v1004_v18  ;;  %v797_v43 = vpop.f32.mrb[25].mxu1  ;;  %vm848_vm11 = vcmp.ge.f32.partialorder %v654_v32, 0.0  ;;  %v912_v45 = vmul.f32 0.2, %v654_v32  ;;  %v944_v46 = vmul.f32 0.2, %v782_v36 }
 0x150   : > { %1794 = vst [vmem:[%s2258_s25 + $0x40] sm:$0xff] %v1670_v34   ;;  %vm880_vm12 = vcmp.ge.f32.partialorder %v782_v36, 0.0  ;;  %vm851_vm13 = vcmp.ge.f32.partialorder %v665_v37, 0.0  ;;  %v915_v47 = vmul.f32 0.2, %v665_v37  ;;  %v793_v48 = vadd.f32 %v1908_v17, %v2241_v33  ;;  %v1880_v49 = vpop.f32.mrb[26].mxu0 }
 0x151   : > { %1810 = vst [vmem:[%s2258_s25 + $0xc0] sm:$0xff] %v1750_v40   ;;  %v1912_v50 = vpop.f32.mrb[26].mxu1  ;;  %v1010_v51 = vsel %vm882_vm10, %v790_v31, %v946_v41  ;;  %v976_v52 = vsel %vm848_vm11, %v654_v32, %v912_v45  ;;  %v657_v53 = vadd.f32 %v2241_v33, %v656_v22  ;;  %v785_v54 = vadd.f32 %v2241_v33, %v784_v23  ;;  %v672_v55 = vpop.f32.mrb[27].mxu0 }
 0x152   : > { %v800_v56 = vpop.f32.mrb[27].mxu1  ;;  %v979_v57 = vsel %vm851_vm13, %v665_v37, %v915_v47  ;;  %vm883_vm14 = vcmp.ge.f32.partialorder %v793_v48, 0.0  ;;  %v947_v58 = vmul.f32 0.2, %v793_v48  ;;  %v678_v59 = vadd.f32 %v1879_v38, %v2241_v33 }
 0x153   : > { %v1685_v60 = vpack.c.bf16 %v979_v57, %v978_v44  ;;  %vm849_vm15 = vcmp.ge.f32.partialorder %v657_v53, 0.0  ;;  %v913_v61 = vmul.f32 0.2, %v657_v53  ;;  %vm881_vm0 = vcmp.ge.f32.partialorder %v785_v54, 0.0 }
 0x154   : > { %v1011_v62 = vsel %vm883_vm14, %v793_v48, %v947_v58  ;;  %v945_v63 = vmul.f32 0.2, %v785_v54  ;;  %vm854_vm1 = vcmp.ge.f32.partialorder %v678_v59, 0.0  ;;  %v918_v0 = vmul.f32 0.2, %v678_v59 }
 0x155   : > { %1797 = vst [vmem:[%s2258_s25 + $0x58] sm:$0xff] %v1685_v60   ;;  %v1765_v1 = vpack.c.bf16 %v1011_v62, %v1010_v51  ;;  %v977_v2 = vsel %vm849_vm15, %v657_v53, %v913_v61  ;;  %v806_v3 = vadd.f32 %v1911_v39, %v2241_v33  ;;  %v670_v4 = vadd.f32 %v2241_v33, %v669_v42  ;;  %v1883_v5 = vpop.f32.mrb[28].mxu0 }
 0x156   : > { %v1915_v6 = vpop.f32.mrb[28].mxu1  ;;  %v1008_v7 = vsel %vm880_vm12, %v782_v36, %v944_v46  ;;  %v1680_v8 = vpack.c.bf16 %v977_v2, %v976_v52  ;;  %v1009_v9 = vsel %vm881_vm0, %v785_v54, %v945_v63  ;;  %v798_v10 = vadd.f32 %v2241_v33, %v797_v43  ;;  %v685_v11 = vpop.f32.mrb[29].mxu0 }
 0x157   : > { %v813_v12 = vpop.f32.mrb[29].mxu1  ;;  %1813 = vst [vmem:[%s2258_s25 + $0xd8] sm:$0xff] %v1765_v1   ;;  %v1760_v13 = vpack.c.bf16 %v1009_v9, %v1008_v7  ;;  %vm886_vm2 = vcmp.ge.f32.partialorder %v806_v3, 0.0  ;;  %v950_v14 = vmul.f32 0.2, %v806_v3  ;;  %vm852_vm3 = vcmp.ge.f32.partialorder %v670_v4, 0.0 }
 0x158   : > { %v1884_v15 = vpop.f32.mrb[30].mxu0  ;;  %v1916_v16 = vpop.f32.mrb[30].mxu1  ;;  %1796 = vst [vmem:[%s2258_s25 + $0x50] sm:$0xff] %v1680_v8   ;;  %v982_v17 = vsel %vm854_vm1, %v678_v59, %v918_v0  ;;  %v916_v18 = vmul.f32 0.2, %v670_v4  ;;  %vm884_vm4 = vcmp.ge.f32.partialorder %v798_v10, 0.0  ;;  %v681_v19 = vadd.f32 %v1880_v49, %v2241_v33 }
 0x159   : > { %v688_v20 = vpop.f32.mrb[31].mxu0  ;;  %1812 = vst [vmem:[%s2258_s25 + $0xd0] sm:$0xff] %v1760_v13   ;;  %v948_v21 = vmul.f32 0.2, %v798_v10  ;;  %v809_v22 = vadd.f32 %v1912_v50, %v2241_v33  ;;  %v673_v23 = vadd.f32 %v2241_v33, %v672_v55  ;;  %v801_v24 = vadd.f32 %v2241_v33, %v800_v56  ;;  %v816_v25 = vpop.f32.mrb[31].mxu1 }
 0x15a   : > { %v1014_v26 = vsel %vm886_vm2, %v806_v3, %v950_v14  ;;  %v980_v27 = vsel %vm852_vm3, %v670_v4, %v916_v18  ;;  %vm855_vm5 = vcmp.ge.f32.partialorder %v681_v19, 0.0  ;;  %v919_v28 = vmul.f32 0.2, %v681_v19 }
 0x15b   : > { %vm887_vm6 = vcmp.ge.f32.partialorder %v809_v22, 0.0  ;;  %v951_v29 = vmul.f32 0.2, %v809_v22  ;;  %vm853_vm7 = vcmp.ge.f32.partialorder %v673_v23, 0.0  ;;  %v917_v30 = vmul.f32 0.2, %v673_v23 }
 0x15c   : > { %v983_v31 = vsel %vm855_vm5, %v681_v19, %v919_v28  ;;  %vm885_vm8 = vcmp.ge.f32.partialorder %v801_v24, 0.0  ;;  %v949_v32 = vmul.f32 0.2, %v801_v24  ;;  %v694_v34 = vadd.f32 %v1883_v5, %v2241_v33 }
 0x15d   : > { %v1695_v35 = vpack.c.bf16 %v983_v31, %v982_v17  ;;  %v1015_v36 = vsel %vm887_vm6, %v809_v22, %v951_v29  ;;  %v981_v37 = vsel %vm853_vm7, %v673_v23, %v917_v30  ;;  %v822_v38 = vadd.f32 %v1915_v6, %v2241_v33 }
 0x15e   : > { %v1012_v39 = vsel %vm884_vm4, %v798_v10, %v948_v21  ;;  %v1775_v40 = vpack.c.bf16 %v1015_v36, %v1014_v26  ;;  %v1690_v41 = vpack.c.bf16 %v981_v37, %v980_v27  ;;  %v1013_v42 = vsel %vm885_vm8, %v801_v24, %v949_v32 }
 0x15f   : > { %1799 = vst [vmem:[%s2258_s25 + $0x68] sm:$0xff] %v1695_v35   ;;  %v1770_v43 = vpack.c.bf16 %v1013_v42, %v1012_v39  ;;  %vm858_vm9 = vcmp.ge.f32.partialorder %v694_v34, 0.0  ;;  %v922_v44 = vmul.f32 0.2, %v694_v34  ;;  %v954_v45 = vmul.f32 0.2, %v822_v38 }
 0x160   : > { %1815 = vst [vmem:[%s2258_s25 + $0xe8] sm:$0xff] %v1775_v40   ;;  %1798 = vst [vmem:[%s2258_s25 + $0x60] sm:$0xff] %v1690_v41   ;;  %v686_v46 = vadd.f32 %v2241_v33, %v685_v11  ;;  %v814_v47 = vadd.f32 %v2241_v33, %v813_v12  ;;  %v697_v48 = vadd.f32 %v1884_v15, %v2241_v33  ;;  %vm890_vm10 = vcmp.ge.f32.partialorder %v822_v38, 0.0 }
 0x161   : > { %v825_v49 = vadd.f32 %v1916_v16, %v2241_v33  ;;  %1814 = vst [vmem:[%s2258_s25 + $0xe0] sm:$0xff] %v1770_v43   ;;  %v689_v50 = vadd.f32 %v2241_v33, %v688_v20  ;;  %v817_v51 = vadd.f32 %v2241_v33, %v816_v25  ;;  %v986_v52 = vsel %vm858_vm9, %v694_v34, %v922_v44 }
 0x162   : > { %vm856_vm11 = vcmp.ge.f32.partialorder %v686_v46, 0.0  ;;  %v920_v53 = vmul.f32 0.2, %v686_v46  ;;  %v952_v54 = vmul.f32 0.2, %v814_v47  ;;  %vm859_vm12 = vcmp.ge.f32.partialorder %v697_v48, 0.0 }
 0x163   : > { %v923_v55 = vmul.f32 0.2, %v697_v48  ;;  %vm891_vm13 = vcmp.ge.f32.partialorder %v825_v49, 0.0  ;;  %v955_v56 = vmul.f32 0.2, %v825_v49  ;;  %v1018_v57 = vsel %vm890_vm10, %v822_v38, %v954_v45 }
 0x164   : > { %vm888_vm14 = vcmp.ge.f32.partialorder %v814_v47, 0.0  ;;  %vm857_vm15 = vcmp.ge.f32.partialorder %v689_v50, 0.0  ;;  %v921_v58 = vmul.f32 0.2, %v689_v50  ;;  %vm889_vm0 = vcmp.ge.f32.partialorder %v817_v51, 0.0 }
 0x165   : > { %v987_v59 = vsel %vm859_vm12, %v697_v48, %v923_v55  ;;  %v1019_v60 = vsel %vm891_vm13, %v825_v49, %v955_v56  ;;  %v953_v33 = vmul.f32 0.2, %v817_v51  ;;  %v984_v61 = vsel %vm856_vm11, %v686_v46, %v920_v53 }
 0x166   : > { %v1705_v62 = vpack.c.bf16 %v987_v59, %v986_v52  ;;  %v1785_v63 = vpack.c.bf16 %v1019_v60, %v1018_v57  ;;  %v985_v0 = vsel %vm857_vm15, %v689_v50, %v921_v58  ;;  %v1016_v1 = vsel %vm888_vm14, %v814_v47, %v952_v54 }
 0x167   : > { %v1700_v2 = vpack.c.bf16 %v985_v0, %v984_v61  ;;  %v1017_v3 = vsel %vm889_vm0, %v817_v51, %v953_v33 }
 0x168   : > { %1801 = vst [vmem:[%s2258_s25 + $0x78] sm:$0xff] %v1705_v62   ;;  %1817 = vst [vmem:[%s2258_s25 + $0xf8] sm:$0xff] %v1785_v63   ;;  %v1780_v4 = vpack.c.bf16 %v1017_v3, %v1016_v1 }
 0x169   : > { %1800 = vst [vmem:[%s2258_s25 + $0x70] sm:$0xff] %v1700_v2  }
 0x16a   : > { %1816 = vst [vmem:[%s2258_s25 + $0xf0] sm:$0xff] %v1780_v4  }
 0x16b PF: > { %s15_s12 = sadd.s32 1, %s2053_s12  }
 0x16c   : > { %p12_p5 = scmp.ge.s32.totalorder %s15_s12, 4  }
 0x16e   :  { %14 = sbr.rel (!%p12_p5) target bundleno = 2 (0x2), region = 71 }
 0x175   :  { %1362 = vsyncpa [#allocation3], 1 }
 0x176   :  { %1364 = vsyncpa [#allocation3 + $0x1], 1 }
 0x177   :  { %1365 = vsyncpa [#allocation5], 1 }

// kernel: discriminator_forward.4
= control target key start
LH: loop header
LB: loop body
LE: loop exit
PB: predicated region body
PF: predicated region fallthrough
CT: control target
= control target key end

     0   :  { %9 = vsyncpa [#allocation4], 0  ;;  %s6298_s0 = inlined_call_operand.vmem [shape: bf16[4,9,9,256], index: 0, kind: input, shape index: {}]   ;;  %s6299_s1 = inlined_call_operand.hbm [shape: bf16[4,256,128], index: 1, kind: input, shape index: {}]   ;;  %s6300_s2 = inlined_call_operand.hbm [shape: f32[1,128], index: 2, kind: input, shape index: {}]   ;;  %s6301_s3 = inlined_call_operand.hbm [shape: f32[1,128], index: 3, kind: input, shape index: {}]   ;;  %s6302_s4 = inlined_call_operand.vmem [shape: bf16[256,128], index: 4, kind: output, shape index: {}]  }
   0x1   :  { %10 = vsyncpa [#allocation6], 0  ;;  %s4656_s15 = smov [#allocation5]   ;;  %s4657_s17 = smov [#allocation3]  }
   0x2   :  { %s31_s16 = sshll.u32 %s4656_s15, 4  ;;  %s18_s18 = sshll.u32 %s4657_s17, 4  ;;  %s32_s16 = int_to_ptr.vmem [resolvable:$true] %s31_s16  ;;  %s4686_s18 = int_to_ptr.vmem [resolvable:$true] %s18_s18 }
   0x3   :  { %s4586_s21 = scalar_lea.hbm %s6300_s2, 16 }
   0x4   :  { %p4587_p0 = scmp.ne.s32.totalorder %s6300_s2, %s4586_s21  ;;  %p4590_p1 = scmp.lt.u32.totalorder %s4586_s21, %s6300_s2 }
   0x6   :  { %p4592_p2 = pnand %p4590_p1, %p4587_p0 }
   0x8   :  { %4595 = shalt.err (!%p4592_p2)
}
   0x9   :  { %s4596_s26 = scalar_lea.vmem %s32_s16, 16  ;;  %s4600_s27 = scalar_lea.vmem %s32_s16, 32 }
   0xa   :  { %p4597_p3 = scmp.ne.s32.totalorder %s32_s16, %s4596_s26  ;;  %p4601_p4 = scmp.lt.s32.totalorder %s32_s16, %s32_s16 }
   0xb   :  { %p4602_p5 = scmp.lt.s32.totalorder %s4600_s27, %s4596_s26 }
   0xd   :  { %p4603_p6 = por %p4602_p5, %p4601_p4 }
   0xf   :  { %p4604_p7 = pnand %p4603_p6, %p4597_p3 }
  0x11   :  { %4607 = shalt.err (!%p4604_p7)
}
  0x12   :  { %34 = dma.hbm_to_vmem [thread:$0]  %s6300_s2, 16, %s32_s16, [#allocation6]  }
  0x13   :  { %s4608_s6 = scalar_lea.hbm %s6299_s1, 8192 }
  0x14   :  { %p4609_p8 = scmp.ne.s32.totalorder %s6299_s1, %s4608_s6  ;;  %p4612_p9 = scmp.lt.u32.totalorder %s4608_s6, %s6299_s1 }
  0x16   :  { %p4614_p10 = pnand %p4612_p9, %p4609_p8 }
  0x18   :  { %4617 = shalt.err (!%p4614_p10)
}
  0x19   :  { %s4618_s11 = scalar_lea.vmem %s4686_s18, 8192  ;;  %p4623_p12 = scmp.lt.s32.totalorder %s4686_s18, %s4686_s18 }
  0x1a   :  { %p4619_p11 = scmp.ne.s32.totalorder %s4686_s18, %s4618_s11  ;;  %p4624_p13 = scmp.lt.s32.totalorder %s4618_s11, %s4618_s11 }
  0x1c   :  { %p4625_p0 = por %p4624_p13, %p4623_p12 }
  0x1e   :  { %p4626_p1 = pnand %p4625_p0, %p4619_p11 }
  0x20   :  { %4629 = shalt.err (!%p4626_p1)
}
  0x21   :  { %s4658_s2 = smov 64   ;;  %s4659_s12 = smov 4  }
  0x22   :  { %24 = dma.hbm_to_vmem [thread:$0]  %s6299_s1, 8192, %s4686_s18, [#allocation4], %s4658_s2, %s4658_s2, %s4659_s12  }
  0x23   :  { %s4660_s15 = smov [#allocation7]   ;;  %s4630_s20 = scalar_lea.hbm %s6301_s3, 16 }
  0x24   :  { %s41_s16 = sshll.u32 %s4660_s15, 4  ;;  %p4631_p2 = scmp.ne.s32.totalorder %s6301_s3, %s4630_s20  ;;  %s42_s16 = int_to_ptr.vmem [resolvable:$true] %s41_s16 }
  0x25   :  { %p4634_p3 = scmp.lt.u32.totalorder %s4630_s20, %s6301_s3 }
  0x27   :  { %p4636_p4 = pnand %p4634_p3, %p4631_p2 }
  0x29   :  { %4639 = shalt.err (!%p4636_p4)
}
  0x2a   :  { %s4640_s25 = scalar_lea.vmem %s42_s16, 16  ;;  %s4644_s1 = scalar_lea.vmem %s42_s16, 32 }
  0x2b   :  { %p4641_p5 = scmp.ne.s32.totalorder %s42_s16, %s4640_s25  ;;  %p4645_p6 = scmp.lt.s32.totalorder %s42_s16, %s42_s16 }
  0x2c   :  { %p4646_p7 = scmp.lt.s32.totalorder %s4644_s1, %s4640_s25 }
  0x2e   :  { %p4647_p8 = por %p4646_p7, %p4645_p6 }
  0x30   :  { %p4648_p9 = pnand %p4647_p8, %p4641_p5 }
  0x32   :  { %4651 = shalt.err (!%p4648_p9)
}
  0x33   :  { %44 = dma.hbm_to_vmem [thread:$0]  %s6301_s3, 16, %s42_s16, [#allocation6]  }
  0x34   :  { %4652 = dma.done.wait [#allocation4], 8192  }
  0x35   :  { %4653 = vsyncadd [#allocation4], 4294959104 }
  0x36   :  { %4654 = dma.done.wait [#allocation6], 32  }
  0x37   :  { %4655 = vsyncadd [#allocation6], 4294967264  ;;  %v4456_v0 = vld [vmem:[#allocation3 + $0x40] sm:$0xff]   ;;  %v4460_v4 = vld [vmem:[#allocation3 + $0x48] sm:$0xff]   ;;  %vm920_vm0 = vcmask 1046528  }
  0x38   :  { %v4457_v1 = vld [vmem:[#allocation3 + $0xc0] sm:$0xff]   ;;  %4003 = vmatprep.subr.bf16.mxu0 %v4456_v0  ;;  %v4461_v5 = vld [vmem:[#allocation3 + $0xc8] sm:$0xff]   ;;  %v4464_v8 = vld [vmem:[#allocation3 + $0x50] sm:$0xff]  }
  0x39   :  { %v4458_v2 = vld [vmem:[#allocation3] sm:$0xff]   ;;  %4115 = vmatprep.subr.bf16.mxu1 %v4457_v1  ;;  %v4462_v6 = vld [vmem:[#allocation3 + $0x8] sm:$0xff]   ;;  %v4465_v9 = vld [vmem:[#allocation3 + $0xd0] sm:$0xff]  }
  0x3a   :  { %v4459_v3 = vld [vmem:[#allocation3 + $0x80] sm:$0xff]   ;;  %4004 = vmatpush3.bf16.msra.mxu0 %v4458_v2  ;;  %v4463_v7 = vld [vmem:[#allocation3 + $0x88] sm:$0xff]   ;;  %v4466_v10 = vld [vmem:[#allocation3 + $0x10] sm:$0xff]  }
  0x3b   :  { %4116 = vmatpush3.bf16.msra.mxu1 %v4459_v3  ;;  %4005 = vmatprep.subr.bf16.mxu0 %v4460_v4  ;;  %v4467_v11 = vld [vmem:[#allocation3 + $0x90] sm:$0xff]   ;;  %v4468_v12 = vld [vmem:[#allocation3 + $0x58] sm:$0xff]   ;;  %v4472_v16 = vld [vmem:[#allocation3 + $0x60] sm:$0xff]  }
  0x3c   :  { %4117 = vmatprep.subr.bf16.mxu1 %v4461_v5  ;;  %v4469_v13 = vld [vmem:[#allocation3 + $0xd8] sm:$0xff]   ;;  %v4473_v17 = vld [vmem:[#allocation3 + $0xe0] sm:$0xff]   ;;  %v4476_v20 = vld [vmem:[#allocation3 + $0x68] sm:$0xff]  }
  0x3d   :  { %v4470_v14 = vld [vmem:[#allocation3 + $0x18] sm:$0xff]   ;;  %v4474_v18 = vld [vmem:[#allocation3 + $0x20] sm:$0xff]   ;;  %v4477_v21 = vld [vmem:[#allocation3 + $0xe8] sm:$0xff]  }
  0x3e   :  { %4006 = vmatpush3.bf16.msra.mxu0 %v4462_v6  ;;  %v4471_v15 = vld [vmem:[#allocation3 + $0x98] sm:$0xff]   ;;  %v4475_v19 = vld [vmem:[#allocation3 + $0xa0] sm:$0xff]   ;;  %v4478_v22 = vld [vmem:[#allocation3 + $0x28] sm:$0xff]  }
  0x3f   :  { %4118 = vmatpush3.bf16.msra.mxu1 %v4463_v7  ;;  %4007 = vmatprep.subr.bf16.mxu0 %v4464_v8  ;;  %v4479_v23 = vld [vmem:[#allocation3 + $0xa8] sm:$0xff]   ;;  %v4480_v24 = vld [vmem:[#allocation3 + $0x70] sm:$0xff]   ;;  %v4484_v28 = vld [vmem:[#allocation3 + $0x78] sm:$0xff]  }
  0x40   :  { %4119 = vmatprep.subr.bf16.mxu1 %v4465_v9  ;;  %v4481_v25 = vld [vmem:[#allocation3 + $0xf0] sm:$0xff]   ;;  %v4485_v29 = vld [vmem:[#allocation3 + $0xf8] sm:$0xff]   ;;  %v87_v32 = vld [vmem:[%s6298_s0] sm:$0xff] }
  0x41   :  { %v4482_v26 = vld [vmem:[#allocation3 + $0x30] sm:$0xff]   ;;  %v4486_v30 = vld [vmem:[#allocation3 + $0x38] sm:$0xff]   ;;  %v601_v34 = vld [vmem:[%s6298_s0 + $0x8] sm:$0x11]  ;;  %v664_v38 = vunpack.c.l.bf16 %v87_v32  ;;  %v665_v39 = vunpack.c.h.bf16 %v87_v32 }
  0x42   :  { %4008 = vmatpush3.bf16.msra.mxu0 %v4466_v10  ;;  %v4483_v27 = vld [vmem:[#allocation3 + $0xb0] sm:$0xff]   ;;  %v4487_v31 = vld [vmem:[#allocation3 + $0xb8] sm:$0xff]   ;;  %v666_v40 = vunpack.c.l.bf16 %v601_v34  ;;  %v667_v41 = vunpack.c.h.bf16 %v601_v34  ;;  %v4490_v44 = vld [vmem:[#allocation3 + $0x140] sm:$0xff]  }
  0x43   :  { %4120 = vmatpush3.bf16.msra.mxu1 %v4467_v11  ;;  %4009 = vmatprep.subr.bf16.mxu0 %v4468_v12  ;;  %v88_v33 = vld [vmem:[%s6298_s0 + $0x10] sm:$0xff]  ;;  %v603_v37 = vld [vmem:[%s6298_s0 + $0x18] sm:$0x11]  ;;  %v921_v47 = vrot.slane %v664_v38, 1  ;;  %v924_v48 = vrot.slane %v665_v39, 1  ;;  %v4491_v49 = vld [vmem:[#allocation3 + $0x100] sm:$0xff]  }
  0x44   :  { %4121 = vmatprep.subr.bf16.mxu1 %v4469_v13  ;;  %v3619_v35 = vcombine.low %v87_v32, %v88_v33  ;;  %v3620_v36 = vcombine.high %v87_v32, %v88_v33  ;;  %v668_v42 = vunpack.c.l.bf16 %v88_v33  ;;  %v669_v43 = vunpack.c.h.bf16 %v88_v33  ;;  %v4492_v50 = vld [vmem:[#allocation3 + $0x1c0] sm:$0xff]   ;;  %v90_v60 = vld [vmem:[%s6298_s0 + $0x30] sm:$0xff]  ;;  %v605_v1 = vld [vmem:[%s6298_s0 + $0x28] sm:$0x11] }
  0x45   :  { %v670_v45 = vunpack.c.l.bf16 %v603_v37  ;;  %v671_v46 = vunpack.c.h.bf16 %v603_v37  ;;  %v922_v51 = vrot.slane %v666_v40, 1  ;;  %v925_v52 = vrot.slane %v667_v41, 1  ;;  %v89_v59 = vld [vmem:[%s6298_s0 + $0x20] sm:$0xff]  ;;  %v607_v2 = vld [vmem:[%s6298_s0 + $0x38] sm:$0x11]  ;;  %v4765_v9 = vld [vmem:[%s6298_s0 + $0x50] sm:$0xff] }
  0x46   :  { %4010 = vmatpush3.bf16.msra.mxu0 %v4470_v14  ;;  %407 = vmatprep.mubr.bf16.mxu0 %v3620_v36  ;;  %v927_v53 = vrot.slane %v668_v42, 1  ;;  %v930_v54 = vrot.slane %v669_v43, 1  ;;  %v4493_v63 = vld [vmem:[#allocation3 + $0x180] sm:$0xff]   ;;  %v3622_v0 = vcombine.high %v89_v59, %v90_v60  ;;  %v673_v3 = vunpack.c.h.bf16 %v89_v59  ;;  %v609_v10 = vld [vmem:[%s6298_s0 + $0x48] sm:$0x11] }
  0x47   :  { %4122 = vmatpush3.bf16.msra.mxu1 %v4471_v15  ;;  %4011 = vmatprep.subr.bf16.mxu0 %v4472_v16  ;;  %v928_v55 = vrot.slane %v670_v45, 1  ;;  %v931_v56 = vrot.slane %v671_v46, 1  ;;  %v926_v57 = vsel %vm920_vm0, %v924_v48, %v925_v52  ;;  %v923_v58 = vsel %vm920_vm0, %v921_v47, %v922_v51  ;;  %v4760_v8 = vld [vmem:[%s6298_s0 + $0x40] sm:$0xff]  ;;  %v611_v15 = vld [vmem:[%s6298_s0 + $0x58] sm:$0x11]  ;;  %v4498_v16 = vld [vmem:[#allocation3 + $0x148] sm:$0xff]  }
  0x48   :  { %4123 = vmatprep.subr.bf16.mxu1 %v4473_v17  ;;  %v675_v6 = vunpack.c.h.bf16 %v605_v1  ;;  %v677_v7 = vunpack.c.h.bf16 %v90_v60  ;;  %v679_v11 = vunpack.c.h.bf16 %v607_v2  ;;  %v936_v12 = vrot.slane %v673_v3, 1  ;;  %v4791_v45 = vld [vmem:[%s6298_s0 + $0x70] sm:$0xff]  ;;  %v613_v46 = vld [vmem:[%s6298_s0 + $0x68] sm:$0x11]  ;;  %v615_v51 = vld [vmem:[%s6298_s0 + $0x78] sm:$0x11] }
  0x49   :  { %v932_v61 = vsel %vm920_vm0, %v930_v54, %v931_v56  ;;  %v929_v62 = vsel %vm920_vm0, %v927_v53, %v928_v55  ;;  %v3621_v13 = vcombine.low %v89_v59, %v90_v60  ;;  %v672_v14 = vunpack.c.l.bf16 %v89_v59  ;;  %v4506_v52 = vld [vmem:[#allocation3 + $0x150] sm:$0xff]  }
  0x4a   :  { %4012 = vmatpush3.bf16.msra.mxu0 %v4474_v18  ;;  %v1178_v4 = vpack.c.bf16 %v932_v61, %v926_v57  ;;  %v1177_v5 = vpack.c.bf16 %v929_v62, %v923_v58  ;;  %v937_v17 = vrot.slane %v675_v6, 1  ;;  %v942_v18 = vrot.slane %v677_v7, 1  ;;  %v4507_v61 = vld [vmem:[#allocation3 + $0x110] sm:$0xff]  }
  0x4b   :  { %4124 = vmatpush3.bf16.msra.mxu1 %v4475_v19  ;;  %4013 = vmatprep.subr.bf16.mxu0 %v4476_v20  ;;  %v674_v19 = vunpack.c.l.bf16 %v605_v1  ;;  %v676_v20 = vunpack.c.l.bf16 %v90_v60  ;;  %v683_v33 = vunpack.c.h.bf16 %v609_v10  ;;  %v685_v34 = vunpack.c.h.bf16 %v4765_v9  ;;  %v4508_v62 = vld [vmem:[#allocation3 + $0x1d0] sm:$0xff]  }
  0x4c   :  { %4125 = vmatprep.subr.bf16.mxu1 %v4477_v21  ;;  %1402 = vmatprep.mubr.bf16.mxu1 %v1178_v4  ;;  %v943_v21 = vrot.slane %v679_v11, 1  ;;  %v687_v38 = vunpack.c.h.bf16 %v611_v15  ;;  %v3623_v43 = vcombine.low %v4760_v8, %v4765_v9  ;;  %v684_v54 = vunpack.c.l.bf16 %v4765_v9  ;;  %v4509_v7 = vld [vmem:[#allocation3 + $0x190] sm:$0xff]  }
  0x4d   :  { %v949_v41 = vrot.slane %v683_v33, 1  ;;  %v954_v42 = vrot.slane %v685_v34, 1  ;;  %v686_v55 = vunpack.c.l.bf16 %v611_v15  ;;  %v693_v4 = vunpack.c.h.bf16 %v4791_v45 }
  0x4e   :  { %4014 = vmatpush3.bf16.msra.mxu0 %v4478_v22  ;;  %v678_v22 = vunpack.c.l.bf16 %v607_v2  ;;  %v955_v48 = vrot.slane %v687_v38, 1  ;;  %v691_v2 = vunpack.c.h.bf16 %v613_v46 }
  0x4f   :  { %4126 = vmatpush3.bf16.msra.mxu1 %v4479_v23  ;;  %4015 = vmatprep.subr.bf16.mxu0 %v4480_v24  ;;  %v933_v23 = vrot.slane %v672_v14, 1  ;;  %v3624_v24 = vcombine.high %v4760_v8, %v4765_v9  ;;  %v952_v1 = vrot.slane %v686_v55, 1  ;;  %v966_v14 = vrot.slane %v693_v4, 1  ;;  %v4869_v4 = vld [vmem:[%s6298_s0 + $0xd8] sm:$0x11] }
  0x50   :  { %4127 = vmatprep.subr.bf16.mxu1 %v4481_v25  ;;  %v4499_v25 = vld [vmem:[#allocation3 + $0x108] sm:$0xff]   ;;  %v940_v32 = vrot.slane %v678_v22, 1  ;;  %v956_v57 = vsel %vm920_vm0, %v954_v42, %v955_v48  ;;  %v961_v9 = vrot.slane %v691_v2, 1  ;;  %v4517_v42 = vld [vmem:[#allocation3 + $0x198] sm:$0xff]  }
  0x52   :  { %4016 = vmatpush3.bf16.msra.mxu0 %v4482_v26  ;;  %v4500_v26 = vld [vmem:[#allocation3 + $0x1c8] sm:$0xff]  }
  0x53   :  { %4128 = vmatpush3.bf16.msra.mxu1 %v4483_v27  ;;  %4017 = vmatprep.subr.bf16.mxu0 %v4484_v28  ;;  %v938_v27 = vsel %vm920_vm0, %v936_v12, %v937_v17  ;;  %v934_v28 = vrot.slane %v674_v19, 1  ;;  %v4815_v12 = vld [vmem:[%s6298_s0 + $0x90] sm:$0xff]  ;;  %v4820_v17 = vld [vmem:[%s6298_s0 + $0xa0] sm:$0xff] }
  0x54   :  { %4129 = vmatprep.subr.bf16.mxu1 %v4485_v29  ;;  %v939_v29 = vrot.slane %v676_v20, 1  ;;  %v692_v20 = vunpack.c.l.bf16 %v4791_v45  ;;  %v701_v34 = vunpack.c.h.bf16 %v4820_v17 }
  0x55   :  { %v935_v37 = vsel %vm920_vm0, %v933_v23, %v934_v28  ;;  %v619_v23 = vld [vmem:[%s6298_s0 + $0xa8] sm:$0x11]  ;;  %v697_v28 = vunpack.c.h.bf16 %v4815_v12 }
  0x56   :  { %4018 = vmatpush3.bf16.msra.mxu0 %v4486_v30  ;;  %v681_v30 = vunpack.c.h.bf16 %v4760_v8  ;;  %v941_v40 = vsel %vm920_vm0, %v939_v29, %v940_v32  ;;  %v4515_v29 = vld [vmem:[#allocation3 + $0x118] sm:$0xff]  }
  0x57   :  { %4130 = vmatpush3.bf16.msra.mxu1 %v4487_v31  ;;  %4227 = vmatprep.subr.bf16.mxu0 %v4490_v44  ;;  %v944_v31 = vsel %vm920_vm0, %v942_v18, %v943_v21  ;;  %v4786_v44 = vld [vmem:[%s6298_s0 + $0x60] sm:$0xff]  ;;  %v1179_v47 = vpack.c.bf16 %v941_v40, %v935_v37  ;;  %v617_v18 = vld [vmem:[%s6298_s0 + $0x98] sm:$0x11]  ;;  %v694_v21 = vunpack.c.l.bf16 %v615_v51  ;;  %v696_v40 = vunpack.c.l.bf16 %v4815_v12 }
  0x58   :  { %4339 = vmatprep.subr.bf16.mxu1 %v4492_v50  ;;  %v1180_v36 = vpack.c.bf16 %v944_v31, %v938_v27  ;;  %v948_v39 = vrot.slane %v681_v30, 1  ;;  %v682_v50 = vunpack.c.l.bf16 %v609_v10  ;;  %v3626_v56 = vcombine.high %v4786_v44, %v4791_v45  ;;  %v4516_v37 = vld [vmem:[#allocation3 + $0x1d8] sm:$0xff]  }
  0x59   :  { %408 = vmatmul.mubr.bf16.vlgmr.msra.gmra.mrb[0].mxu0 %v3619_v35  ;;  %v4501_v35 = vld [vmem:[#allocation3 + $0x188] sm:$0xff]   ;;  %v689_v60 = vunpack.c.h.bf16 %v4786_v44  ;;  %v3625_v10 = vcombine.low %v4786_v44, %v4791_v45  ;;  %v688_v11 = vunpack.c.l.bf16 %v4786_v44  ;;  %v3628_v27 = vcombine.high %v4815_v12, %v4820_v17 }
  0x5a   :  { %4228 = vmatpush3.bf16.msra.mxu0 %v4491_v49  ;;  %415 = vmatprep.mubr.bf16.mxu0 %v3622_v0  ;;  %v680_v49 = vunpack.c.l.bf16 %v4760_v8  ;;  %v950_v53 = vsel %vm920_vm0, %v948_v39, %v949_v41  ;;  %v946_v59 = vrot.slane %v682_v50, 1  ;;  %v951_v0 = vrot.slane %v684_v54, 1  ;;  %v4840_v41 = vld [vmem:[%s6298_s0 + $0xb0] sm:$0xff] }
  0x5b   :  { %1403 = vmatmul.mubr.bf16.vlgmr.msra.gmra.mrb[0].mxu1 %v1177_v5  ;;  %4229 = vmatprep.subr.bf16.mxu0 %v4498_v16  ;;  %v695_v5 = vunpack.c.h.bf16 %v615_v51  ;;  %v960_v6 = vrot.slane %v689_v60, 1  ;;  %v690_v16 = vunpack.c.l.bf16 %v613_v46  ;;  %v957_v22 = vrot.slane %v688_v11, 1 }
  0x5c   :  { %4340 = vmatpush3.bf16.msra.mxu1 %v4493_v63  ;;  %1410 = vmatprep.mubr.bf16.mxu1 %v1180_v36  ;;  %v945_v58 = vrot.slane %v680_v49, 1  ;;  %v1182_v63 = vpack.c.bf16 %v956_v57, %v950_v53  ;;  %v953_v8 = vsel %vm920_vm0, %v951_v0, %v952_v1  ;;  %v963_v31 = vrot.slane %v692_v20, 1  ;;  %v623_v53 = vld [vmem:[%s6298_s0 + $0xc8] sm:$0x11] }
  0x5d   :  { %4341 = vmatprep.subr.bf16.mxu1 %v4500_v26  ;;  %v967_v15 = vrot.slane %v695_v5, 1  ;;  %v962_v19 = vsel %vm920_vm0, %v960_v6, %v961_v9  ;;  %v958_v26 = vrot.slane %v690_v16, 1  ;;  %v964_v32 = vrot.slane %v694_v21, 1  ;;  %v4523_v5 = vld [vmem:[#allocation3 + $0x120] sm:$0xff]  }
  0x5e   :  { %4230 = vmatpush3.bf16.msra.mxu0 %v4499_v25  ;;  %v947_v3 = vsel %vm920_vm0, %v945_v58, %v946_v59  ;;  %v699_v33 = vunpack.c.h.bf16 %v617_v18  ;;  %v972_v36 = vrot.slane %v697_v28, 1  ;;  %v978_v44 = vrot.slane %v701_v34, 1  ;;  %v4522_v58 = vld [vmem:[#allocation3 + $0x160] sm:$0xff]   ;;  %v4892_v28 = vld [vmem:[%s6298_s0 + $0xf0] sm:$0xff] }
  0x5f   :  { %4231 = vmatprep.subr.bf16.mxu0 %v4506_v52  ;;  %v968_v25 = vsel %vm920_vm0, %v966_v14, %v967_v15  ;;  %v959_v38 = vsel %vm920_vm0, %v957_v22, %v958_v26  ;;  %v698_v46 = vunpack.c.l.bf16 %v617_v18  ;;  %v3627_v49 = vcombine.low %v4815_v12, %v4820_v17  ;;  %v4853_v52 = vld [vmem:[%s6298_s0 + $0xc0] sm:$0xff] }
  0x60   :  { %4342 = vmatpush3.bf16.msra.mxu1 %v4501_v35  ;;  %v1184_v30 = vpack.c.bf16 %v968_v25, %v962_v19  ;;  %v703_v35 = vunpack.c.h.bf16 %v619_v23  ;;  %v973_v39 = vrot.slane %v699_v33, 1  ;;  %v700_v50 = vunpack.c.l.bf16 %v4820_v17  ;;  %v4524_v9 = vld [vmem:[#allocation3 + $0x1e0] sm:$0xff]   ;;  %v627_v19 = vld [vmem:[%s6298_s0 + $0xe8] sm:$0x11] }
  0x61   :  { %416 = vmatmul.mubr.bf16.gmra.mrb[4].mxu0 %v3621_v13  ;;  %4343 = vmatprep.subr.bf16.mxu1 %v4508_v62  ;;  %v1181_v13 = vpack.c.bf16 %v953_v8, %v947_v3  ;;  %v702_v51 = vunpack.c.l.bf16 %v619_v23  ;;  %v969_v55 = vrot.slane %v696_v40, 1  ;;  %v705_v57 = vunpack.c.h.bf16 %v4840_v41  ;;  %v4880_v18 = vld [vmem:[%s6298_s0 + $0xe0] sm:$0xff]  ;;  %v4530_v33 = vld [vmem:[#allocation3 + $0x168] sm:$0xff]  }
  0x62   :  { %423 = vmatprep.mubr.bf16.mxu0 %v3624_v24  ;;  %4232 = vmatpush3.bf16.msra.mxu0 %v4507_v61  ;;  %v4514_v24 = vld [vmem:[#allocation3 + $0x158] sm:$0xff]   ;;  %v979_v45 = vrot.slane %v703_v35, 1  ;;  %v974_v48 = vsel %vm920_vm0, %v972_v36, %v973_v39  ;;  %v975_v60 = vrot.slane %v700_v50, 1  ;;  %v709_v1 = vunpack.c.h.bf16 %v4853_v52  ;;  %v4531_v39 = vld [vmem:[#allocation3 + $0x128] sm:$0xff]  }
  0x63   :  { %1411 = vmatmul.mubr.bf16.gmra.mrb[4].mxu1 %v1179_v47  ;;  %4233 = vmatprep.subr.bf16.mxu0 %v4514_v24  ;;  %v621_v47 = vld [vmem:[%s6298_s0 + $0xb8] sm:$0x11]  ;;  %v976_v61 = vrot.slane %v702_v51, 1  ;;  %v711_v2 = vunpack.c.h.bf16 %v623_v53  ;;  %v984_v3 = vrot.slane %v705_v57, 1  ;;  %v3630_v6 = vcombine.high %v4840_v41, %v4853_v52 }
  0x64   :  { %1418 = vmatprep.mubr.bf16.mxu1 %v1182_v63  ;;  %4344 = vmatpush3.bf16.msra.mxu1 %v4509_v7  ;;  %v980_v54 = vsel %vm920_vm0, %v978_v44, %v979_v45  ;;  %v707_v62 = vunpack.c.h.bf16 %v621_v47  ;;  %v4863_v63 = vld [vmem:[%s6298_s0 + $0xd0] sm:$0xff]  ;;  %v704_v8 = vunpack.c.l.bf16 %v4840_v41  ;;  %v706_v12 = vunpack.c.l.bf16 %v621_v47  ;;  %v4912_v45 = vld [vmem:[%s6298_s0 + $0x100] sm:$0xff] }
  0x65   :  { %4345 = vmatprep.subr.bf16.mxu1 %v4516_v37  ;;  %v1186_v0 = vpack.c.bf16 %v980_v54, %v974_v48  ;;  %v991_v11 = vrot.slane %v711_v2, 1  ;;  %v977_v15 = vsel %vm920_vm0, %v975_v60, %v976_v61  ;;  %v708_v16 = vunpack.c.l.bf16 %v4853_v52  ;;  %v4533_v48 = vld [vmem:[#allocation3 + $0x1a8] sm:$0xff]   ;;  %v4538_v60 = vld [vmem:[#allocation3 + $0x170] sm:$0xff]  }
  0x66   :  { %4234 = vmatpush3.bf16.msra.mxu0 %v4515_v29  ;;  %v985_v7 = vrot.slane %v707_v62, 1  ;;  %v710_v17 = vunpack.c.l.bf16 %v623_v53  ;;  %v981_v22 = vrot.slane %v704_v8, 1  ;;  %v713_v23 = vunpack.c.h.bf16 %v4863_v63  ;;  %v4539_v62 = vld [vmem:[#allocation3 + $0x130] sm:$0xff]  }
  0x67   :  { %4235 = vmatprep.subr.bf16.mxu0 %v4522_v58  ;;  %v982_v24 = vrot.slane %v706_v12, 1  ;;  %v987_v25 = vrot.slane %v708_v16, 1  ;;  %v717_v29 = vunpack.c.h.bf16 %v4880_v18  ;;  %v3629_v35 = vcombine.low %v4840_v41, %v4853_v52  ;;  %v4532_v41 = vld [vmem:[#allocation3 + $0x1e8] sm:$0xff]   ;;  %v4541_v12 = vld [vmem:[#allocation3 + $0x1b0] sm:$0xff]  }
  0x68   :  { %4346 = vmatpush3.bf16.msra.mxu1 %v4517_v42  ;;  %v986_v20 = vsel %vm920_vm0, %v984_v3, %v985_v7  ;;  %v988_v26 = vrot.slane %v710_v17, 1  ;;  %v712_v37 = vunpack.c.l.bf16 %v4863_v63  ;;  %v714_v44 = vunpack.c.l.bf16 %v4869_v4  ;;  %v4540_v7 = vld [vmem:[#allocation3 + $0x1f0] sm:$0xff]   ;;  %v633_v16 = vld [vmem:[%s6298_s0 + $0x128] sm:$0x11]  ;;  %v635_v17 = vld [vmem:[%s6298_s0 + $0x138] sm:$0x11] }
  0x69   :  { %424 = vmatmul.mubr.bf16.gmra.mrb[8].mxu0 %v3623_v43  ;;  %v965_v43 = vsel %vm920_vm0, %v963_v31, %v964_v32  ;;  %4347 = vmatprep.subr.bf16.mxu1 %v4524_v9  ;;  %v996_v31 = vrot.slane %v713_v23, 1  ;;  %v4898_v32 = vld [vmem:[%s6298_s0 + $0xf8] sm:$0x11]  ;;  %v1002_v42 = vrot.slane %v717_v29, 1  ;;  %v716_v47 = vunpack.c.l.bf16 %v4880_v18 }
  0x6a   :  { %431 = vmatprep.mubr.bf16.mxu0 %v3626_v56  ;;  %v970_v56 = vrot.slane %v698_v46, 1  ;;  %v1183_v59 = vpack.c.bf16 %v965_v43, %v959_v38  ;;  %4236 = vmatpush3.bf16.msra.mxu0 %v4523_v5  ;;  %v4906_v38 = vld [vmem:[%s6298_s0 + $0x108] sm:$0x11]  ;;  %v3632_v46 = vcombine.high %v4863_v63, %v4880_v18  ;;  %v718_v50 = vunpack.c.l.bf16 %v627_v19 }
  0x6b   :  { %1419 = vmatmul.mubr.bf16.gmra.mrb[8].mxu1 %v1181_v13  ;;  %v4525_v13 = vld [vmem:[#allocation3 + $0x1a0] sm:$0xff]   ;;  %4237 = vmatprep.subr.bf16.mxu0 %v4530_v33  ;;  %v721_v51 = vunpack.c.h.bf16 %v4892_v28  ;;  %v989_v52 = vsel %vm920_vm0, %v987_v25, %v988_v26  ;;  %v993_v54 = vrot.slane %v712_v37, 1  ;;  %v994_v57 = vrot.slane %v714_v44, 1  ;;  %v4548_v33 = vld [vmem:[#allocation3 + $0x1f8] sm:$0xff]  }
  0x6c   :  { %1426 = vmatprep.mubr.bf16.mxu1 %v1184_v30  ;;  %v971_v14 = vsel %vm920_vm0, %v969_v55, %v970_v56  ;;  %4348 = vmatpush3.bf16.msra.mxu1 %v4525_v13  ;;  %v719_v30 = vunpack.c.h.bf16 %v627_v19  ;;  %v723_v55 = vunpack.c.h.bf16 %v4898_v32  ;;  %v725_v58 = vunpack.c.h.bf16 %v4912_v45  ;;  %v4549_v37 = vld [vmem:[#allocation3 + $0x1b8] sm:$0xff]  }
  0x6d   :  { %v1185_v34 = vpack.c.bf16 %v977_v15, %v971_v14  ;;  %4349 = vmatprep.subr.bf16.mxu1 %v4532_v41  ;;  %v999_v61 = vrot.slane %v716_v47, 1  ;;  %v1008_v2 = vrot.slane %v721_v51, 1  ;;  %v726_v13 = vunpack.c.l.bf16 %v4906_v38  ;;  %v4936_v14 = vld [vmem:[%s6298_s0 + $0x120] sm:$0xff]  ;;  %v4941_v15 = vld [vmem:[%s6298_s0 + $0x130] sm:$0xff]  ;;  %v639_v44 = vld [vmem:[%s6298_s0 + $0x158] sm:$0x11] }
  0x6e   :  { %v1003_v43 = vrot.slane %v719_v30, 1  ;;  %4238 = vmatpush3.bf16.msra.mxu0 %v4531_v39  ;;  %v1009_v5 = vrot.slane %v723_v55, 1  ;;  %v1014_v8 = vrot.slane %v725_v58, 1  ;;  %v729_v26 = vunpack.c.h.bf16 %v4936_v14 }
  0x6f   :  { %4239 = vmatprep.subr.bf16.mxu0 %v4538_v60  ;;  %v731_v29 = vunpack.c.h.bf16 %v633_v16  ;;  %v733_v30 = vunpack.c.h.bf16 %v4941_v15  ;;  %v734_v51 = vunpack.c.l.bf16 %v635_v17  ;;  %v743_v55 = vunpack.c.h.bf16 %v639_v44 }
  0x70   :  { %v1004_v56 = vsel %vm920_vm0, %v1002_v42, %v1003_v43  ;;  %4350 = vmatpush3.bf16.msra.mxu1 %v4533_v48  ;;  %v1020_v42 = vrot.slane %v729_v26, 1  ;;  %v4968_v43 = vld [vmem:[%s6298_s0 + $0x150] sm:$0xff]  ;;  %v728_v48 = vunpack.c.l.bf16 %v4936_v14 }
  0x71   :  { %432 = vmatmul.mubr.bf16.gmra.mrb[12].mxu0 %v3625_v10  ;;  %v990_v10 = vrot.slane %v709_v1, 1  ;;  %v1000_v1 = vrot.slane %v718_v50, 1  ;;  %4351 = vmatprep.subr.bf16.mxu1 %v4540_v7  ;;  %v1021_v41 = vrot.slane %v731_v29, 1  ;;  %v732_v50 = vunpack.c.l.bf16 %v4941_v15 }
  0x72   :  { %439 = vmatprep.mubr.bf16.mxu0 %v3628_v27  ;;  %v715_v27 = vunpack.c.h.bf16 %v4869_v4  ;;  %4240 = vmatpush3.bf16.msra.mxu0 %v4539_v62  ;;  %v1024_v62 = vrot.slane %v734_v51, 1 }
  0x73   :  { %1427 = vmatmul.mubr.bf16.gmra.mrb[12].mxu1 %v1183_v59  ;;  %v992_v21 = vsel %vm920_vm0, %v990_v10, %v991_v11  ;;  %v727_v59 = vunpack.c.h.bf16 %v4906_v38  ;;  %v722_v10 = vunpack.c.l.bf16 %v4898_v32  ;;  %v724_v11 = vunpack.c.l.bf16 %v4912_v45  ;;  %v4547_v32 = vld [vmem:[#allocation3 + $0x138] sm:$0xff]  }
  0x74   :  { %1434 = vmatprep.mubr.bf16.mxu1 %v1186_v0  ;;  %v997_v36 = vrot.slane %v715_v27, 1  ;;  %v1188_v40 = vpack.c.bf16 %v992_v21, %v986_v20  ;;  %v3631_v0 = vcombine.low %v4863_v63, %v4880_v18  ;;  %v3634_v63 = vcombine.high %v4892_v28, %v4912_v45  ;;  %4352 = vmatpush3.bf16.msra.mxu1 %v4541_v12 }
  0x75   :  { %v1015_v9 = vrot.slane %v727_v59, 1  ;;  %v995_v18 = vsel %vm920_vm0, %v993_v54, %v994_v57  ;;  %v1001_v19 = vsel %vm920_vm0, %v999_v61, %v1000_v1  ;;  %v1010_v20 = vsel %vm920_vm0, %v1008_v2, %v1009_v5  ;;  %4353 = vmatprep.subr.bf16.mxu1 %v4548_v33 }
  0x76   :  { %v998_v53 = vsel %vm920_vm0, %v996_v31, %v997_v36  ;;  %v1011_v25 = vrot.slane %v724_v11, 1  ;;  %v1012_v27 = vrot.slane %v726_v13, 1  ;;  %v735_v31 = vunpack.c.h.bf16 %v635_v17  ;;  %v4960_v36 = vld [vmem:[%s6298_s0 + $0x140] sm:$0xff] }
  0x77   :  { %v1190_v4 = vpack.c.bf16 %v1004_v56, %v998_v53  ;;  %v1016_v23 = vsel %vm920_vm0, %v1014_v8, %v1015_v9  ;;  %v741_v54 = vunpack.c.h.bf16 %v4968_v43  ;;  %v1022_v57 = vsel %vm920_vm0, %v1020_v42, %v1021_v41  ;;  %v4995_v8 = vld [vmem:[%s6298_s0 + $0x170] sm:$0xff]  ;;  %v641_v9 = vld [vmem:[%s6298_s0 + $0x168] sm:$0x11] }
  0x78   :  { %v1192_v38 = vpack.c.bf16 %v1016_v23, %v1010_v20  ;;  %v1027_v47 = vrot.slane %v735_v31, 1  ;;  %4354 = vmatpush3.bf16.msra.mxu1 %v4549_v37  ;;  %v1017_v59 = vrot.slane %v728_v48, 1  ;;  %v1023_v61 = vrot.slane %v732_v50, 1  ;;  %v645_v42 = vld [vmem:[%s6298_s0 + $0x188] sm:$0x11] }
  0x79   :  { %440 = vmatmul.mubr.bf16.gmra.mrb[16].mxu0 %v3627_v49  ;;  %v983_v49 = vsel %vm920_vm0, %v981_v22, %v982_v24  ;;  %v4546_v22 = vld [vmem:[#allocation3 + $0x178] sm:$0xff]   ;;  %v1006_v24 = vrot.slane %v722_v10, 1  ;;  %v1038_v2 = vrot.slane %v741_v54, 1  ;;  %v3635_v5 = vcombine.low %v4936_v14, %v4941_v15 }
  0x7a   :  { %447 = vmatprep.mubr.bf16.mxu0 %v3630_v6  ;;  %v1187_v3 = vpack.c.bf16 %v989_v52, %v983_v49  ;;  %v720_v6 = vunpack.c.l.bf16 %v4892_v28  ;;  %4241 = vmatprep.subr.bf16.mxu0 %v4546_v22  ;;  %v730_v49 = vunpack.c.l.bf16 %v633_v16  ;;  %v737_v52 = vunpack.c.h.bf16 %v4960_v36  ;;  %v643_v10 = vld [vmem:[%s6298_s0 + $0x178] sm:$0x11] }
  0x7b   :  { %1435 = vmatmul.mubr.bf16.gmra.mrb[16].mxu1 %v1185_v34  ;;  %v1189_v34 = vpack.c.bf16 %v1001_v19, %v995_v18  ;;  %4242 = vmatpush3.bf16.msra.mxu0 %v4547_v32  ;;  %v3638_v7 = vcombine.high %v4960_v36, %v4968_v43  ;;  %v1025_v12 = vsel %vm920_vm0, %v1023_v61, %v1024_v62  ;;  %v740_v16 = vunpack.c.l.bf16 %v4968_v43 }
  0x7c   :  { %1442 = vmatprep.mubr.bf16.mxu1 %v1188_v40  ;;  %v1005_v21 = vrot.slane %v720_v6, 1  ;;  %v3636_v40 = vcombine.high %v4936_v14, %v4941_v15  ;;  %v1018_v60 = vrot.slane %v730_v49, 1  ;;  %v4988_v6 = vld [vmem:[%s6298_s0 + $0x160] sm:$0xff]  ;;  %v742_v17 = vunpack.c.l.bf16 %v639_v44 }
  0x7d   :  { %v745_v18 = vunpack.c.h.bf16 %v4988_v6  ;;  %v747_v19 = vunpack.c.h.bf16 %v641_v9  ;;  %v749_v20 = vunpack.c.h.bf16 %v4995_v8  ;;  %v3637_v23 = vcombine.low %v4960_v36, %v4968_v43  ;;  %v647_v43 = vld [vmem:[%s6298_s0 + $0x198] sm:$0x11] }
  0x7e   :  { %v1007_v39 = vsel %vm920_vm0, %v1005_v21, %v1006_v24  ;;  %v1019_v11 = vsel %vm920_vm0, %v1017_v59, %v1018_v60  ;;  %v751_v21 = vunpack.c.h.bf16 %v643_v10  ;;  %v1036_v29 = vrot.slane %v742_v17, 1  ;;  %v5051_v59 = vld [vmem:[%s6298_s0 + $0x1c0] sm:$0xff]  ;;  %v649_v60 = vld [vmem:[%s6298_s0 + $0x1b8] sm:$0x11] }
  0x7f   :  { %v1193_v22 = vpack.c.bf16 %v1025_v12, %v1019_v11  ;;  %v1045_v31 = vrot.slane %v747_v19, 1  ;;  %v1050_v32 = vrot.slane %v749_v20, 1  ;;  %v744_v37 = vunpack.c.l.bf16 %v4988_v6 }
  0x80   :  { %v1051_v33 = vrot.slane %v751_v21, 1  ;;  %v759_v49 = vunpack.c.h.bf16 %v647_v43  ;;  %v765_v11 = vunpack.c.h.bf16 %v5051_v59 }
  0x81   :  { %448 = vmatmul.mubr.bf16.gmra.mrb[20].mxu0 %v3629_v35  ;;  %v3633_v35 = vcombine.low %v4892_v28, %v4912_v45  ;;  %v637_v28 = vld [vmem:[%s6298_s0 + $0x148] sm:$0x11]  ;;  %v1013_v45 = vsel %vm920_vm0, %v1011_v25, %v1012_v27  ;;  %v1035_v27 = vrot.slane %v740_v16, 1  ;;  %v1041_v50 = vrot.slane %v744_v37, 1 }
  0x82   :  { %455 = vmatprep.mubr.bf16.mxu0 %v3632_v46  ;;  %v1026_v46 = vrot.slane %v733_v30, 1  ;;  %v739_v53 = vunpack.c.h.bf16 %v637_v28  ;;  %v1191_v56 = vpack.c.bf16 %v1013_v45, %v1007_v39  ;;  %v738_v13 = vunpack.c.l.bf16 %v637_v28 }
  0x83   :  { %1443 = vmatmul.mubr.bf16.gmra.mrb[20].mxu1 %v1187_v3  ;;  %v1039_v3 = vrot.slane %v743_v55, 1  ;;  %v1044_v30 = vrot.slane %v745_v18, 1  ;;  %v750_v39 = vunpack.c.l.bf16 %v643_v10  ;;  %v1037_v44 = vsel %vm920_vm0, %v1035_v27, %v1036_v29  ;;  %v5079_v27 = vld [vmem:[%s6298_s0 + $0x1e0] sm:$0xff]  ;;  %v653_v29 = vld [vmem:[%s6298_s0 + $0x1d8] sm:$0x11] }
  0x84   :  { %1450 = vmatprep.mubr.bf16.mxu1 %v1190_v4  ;;  %v1028_v58 = vsel %vm920_vm0, %v1026_v46, %v1027_v47  ;;  %v1033_v1 = vrot.slane %v739_v53, 1  ;;  %v1030_v26 = vrot.slane %v738_v13, 1  ;;  %v1052_v41 = vsel %vm920_vm0, %v1050_v32, %v1051_v33  ;;  %v655_v33 = vld [vmem:[%s6298_s0 + $0x1e8] sm:$0x11] }
  0x85   :  { %v1194_v4 = vpack.c.bf16 %v1028_v58, %v1022_v57  ;;  %v1040_v15 = vsel %vm920_vm0, %v1038_v2, %v1039_v3  ;;  %v1046_v45 = vsel %vm920_vm0, %v1044_v30, %v1045_v31  ;;  %v755_v47 = vunpack.c.h.bf16 %v645_v42  ;;  %v5046_v58 = vld [vmem:[%s6298_s0 + $0x1b0] sm:$0xff]  ;;  %v651_v2 = vld [vmem:[%s6298_s0 + $0x1c8] sm:$0x11] }
  0x86   :  { %v1048_v53 = vrot.slane %v750_v39, 1  ;;  %v1198_v55 = vpack.c.bf16 %v1052_v41, %v1046_v45  ;;  %v763_v10 = vunpack.c.h.bf16 %v649_v60  ;;  %v767_v12 = vunpack.c.h.bf16 %v651_v2 }
  0x87   :  { %v1057_v62 = vrot.slane %v755_v47, 1  ;;  %v760_v31 = vunpack.c.l.bf16 %v5046_v58  ;;  %v762_v32 = vunpack.c.l.bf16 %v649_v60  ;;  %v764_v37 = vunpack.c.l.bf16 %v5051_v59 }
  0x88   :  { %v1069_v20 = vrot.slane %v763_v10, 1  ;;  %v772_v60 = vunpack.c.l.bf16 %v5079_v27 }
  0x89   :  { %456 = vmatmul.mubr.bf16.gmra.mrb[24].mxu0 %v3631_v0  ;;  %v1032_v0 = vrot.slane %v737_v52, 1  ;;  %v1065_v45 = vrot.slane %v760_v31, 1  ;;  %v1066_v41 = vrot.slane %v762_v32, 1  ;;  %v1071_v47 = vrot.slane %v764_v37, 1 }
  0x8a   :  { %463 = vmatprep.mubr.bf16.mxu0 %v3634_v63  ;;  %v736_v63 = vunpack.c.l.bf16 %v4960_v36  ;;  %v746_v36 = vunpack.c.l.bf16 %v641_v9  ;;  %v761_v9 = vunpack.c.h.bf16 %v5046_v58 }
  0x8b   :  { %1451 = vmatmul.mubr.bf16.gmra.mrb[24].mxu1 %v1189_v34  ;;  %v1034_v14 = vsel %vm920_vm0, %v1032_v0, %v1033_v1  ;;  %v3640_v34 = vcombine.high %v4988_v6, %v4995_v8  ;;  %v1063_v1 = vrot.slane %v759_v49, 1 }
  0x8c   :  { %1458 = vmatprep.mubr.bf16.mxu1 %v1192_v38  ;;  %v1029_v24 = vrot.slane %v736_v63, 1  ;;  %v1196_v25 = vpack.c.bf16 %v1040_v15, %v1034_v14  ;;  %v748_v38 = vunpack.c.l.bf16 %v4995_v8  ;;  %v1042_v51 = vrot.slane %v746_v36, 1 }
  0x8d   :  { %v1068_v19 = vrot.slane %v761_v9, 1  ;;  %v766_v36 = vunpack.c.l.bf16 %v651_v2  ;;  %v1083_v9 = vrot.slane %v772_v60, 1 }
  0x8e   :  { %v1031_v28 = vsel %vm920_vm0, %v1029_v24, %v1030_v26  ;;  %v1047_v52 = vrot.slane %v748_v38, 1  ;;  %v1043_v3 = vsel %vm920_vm0, %v1041_v50, %v1042_v51  ;;  %v1075_v24 = vrot.slane %v767_v12, 1  ;;  %v5074_v26 = vld [vmem:[%s6298_s0 + $0x1d0] sm:$0xff]  ;;  %v657_v51 = vld [vmem:[%s6298_s0 + $0x1f8] sm:$0x11] }
  0x8f   :  { %v1195_v54 = vpack.c.bf16 %v1037_v44, %v1031_v28  ;;  %v769_v39 = vunpack.c.h.bf16 %v5074_v26  ;;  %v3643_v44 = vcombine.low %v5046_v58, %v5051_v59  ;;  %v3646_v49 = vcombine.high %v5074_v26, %v5079_v27  ;;  %v5102_v50 = vld [vmem:[%s6298_s0 + $0x1f0] sm:$0xff] }
  0x91   :  { %464 = vmatmul.mubr.bf16.gmra.mrb[28].mxu0 %v3633_v35  ;;  %v5018_v35 = vld [vmem:[%s6298_s0 + $0x180] sm:$0xff] }
  0x92   :  { %471 = vmatprep.mubr.bf16.mxu0 %v3636_v40  ;;  %v5025_v40 = vld [vmem:[%s6298_s0 + $0x190] sm:$0xff]  ;;  %v753_v46 = vunpack.c.h.bf16 %v5018_v35 }
  0x93   :  { %1459 = vmatmul.mubr.bf16.gmra.mrb[28].mxu1 %v1191_v56  ;;  %v757_v48 = vunpack.c.h.bf16 %v5025_v40  ;;  %v3639_v56 = vcombine.low %v4988_v6, %v4995_v8  ;;  %v3642_v57 = vcombine.high %v5018_v35, %v5025_v40  ;;  %v754_v6 = vunpack.c.l.bf16 %v645_v42 }
  0x94   :  { %1466 = vmatprep.mubr.bf16.mxu1 %v1194_v4  ;;  %v1056_v61 = vrot.slane %v753_v46, 1  ;;  %v1049_v4 = vsel %vm920_vm0, %v1047_v52, %v1048_v53  ;;  %v758_v8 = vunpack.c.l.bf16 %v647_v43  ;;  %v773_v42 = vunpack.c.h.bf16 %v5079_v27 }
  0x95   :  { %v1062_v0 = vrot.slane %v757_v48, 1  ;;  %v1197_v14 = vpack.c.bf16 %v1049_v4, %v1043_v3  ;;  %v1054_v16 = vrot.slane %v754_v6, 1  ;;  %v775_v43 = vunpack.c.h.bf16 %v655_v33 }
  0x96   :  { %v1058_v63 = vsel %vm920_vm0, %v1056_v61, %v1057_v62  ;;  %v1060_v18 = vrot.slane %v758_v8, 1  ;;  %v1072_v48 = vrot.slane %v766_v36, 1  ;;  %v1080_v52 = vrot.slane %v769_v39, 1 }
  0x97   :  { %v1064_v13 = vsel %vm920_vm0, %v1062_v0, %v1063_v1  ;;  %v774_v61 = vunpack.c.l.bf16 %v655_v33  ;;  %v777_v62 = vunpack.c.h.bf16 %v5102_v50  ;;  %v779_v0 = vunpack.c.h.bf16 %v657_v51 }
  0x98   :  { %v1200_v21 = vpack.c.bf16 %v1064_v13, %v1058_v63  ;;  %v1067_v3 = vsel %vm920_vm0, %v1065_v45, %v1066_v41  ;;  %v1073_v4 = vsel %vm920_vm0, %v1071_v47, %v1072_v48  ;;  %v5159_v48 = vld [vmem:[%s6298_s0 + $0x10] sm:$0xff] }
  0x99   :  { %472 = vmatmul.mubr.bf16.gmra.mrb[32].mxu0 %v3635_v5  ;;  %v752_v5 = vunpack.c.l.bf16 %v5018_v35  ;;  %v1084_v10 = vrot.slane %v774_v61, 1  ;;  %v1093_v12 = vrot.slane %v779_v0, 1  ;;  %v1201_v63 = vpack.c.bf16 %v1073_v4, %v1067_v3 }
  0x9a   :  { %479 = vmatprep.mubr.bf16.mxu0 %v3638_v7  ;;  %v756_v7 = vunpack.c.l.bf16 %v5025_v40  ;;  %v2175_v60 = vunpack.c.h.bf16 %v5159_v48 }
  0x9b   :  { %1467 = vmatmul.mubr.bf16.gmra.mrb[32].mxu1 %v1193_v22  ;;  %v1053_v15 = vrot.slane %v752_v5, 1  ;;  %v3641_v22 = vcombine.low %v5018_v35, %v5025_v40  ;;  %v1070_v35 = vsel %vm920_vm0, %v1068_v19, %v1069_v20  ;;  %v771_v40 = vunpack.c.h.bf16 %v653_v29 }
  0x9c   :  { %1474 = vmatprep.mubr.bf16.mxu1 %v1196_v25  ;;  %v1059_v17 = vrot.slane %v756_v7, 1  ;;  %v3644_v25 = vcombine.high %v5046_v58, %v5051_v59  ;;  %v1087_v58 = vrot.slane %v775_v43, 1  ;;  %v770_v59 = vunpack.c.l.bf16 %v653_v29 }
  0x9d   :  { %v1055_v30 = vsel %vm920_vm0, %v1053_v15, %v1054_v16  ;;  %v1081_v53 = vrot.slane %v771_v40, 1  ;;  %v3645_v16 = vcombine.low %v5074_v26, %v5079_v27  ;;  %v1085_v20 = vsel %vm920_vm0, %v1083_v9, %v1084_v10  ;;  %v5193_v10 = vld [vmem:[%s6298_s0 + $0x40] sm:$0xff] }
  0x9e   :  { %v1078_v8 = vrot.slane %v770_v59, 1  ;;  %v2174_v9 = vunpack.c.l.bf16 %v5159_v48 }
  0x9f   :  { %v1082_v5 = vsel %vm920_vm0, %v1080_v52, %v1081_v53  ;;  %v3764_v52 = vld [vmem:[%s6298_s0 + $0x18] sm:$0x11]  ;;  %v3766_v53 = vld [vmem:[%s6298_s0 + $0x28] sm:$0x11] }
  0xa0   :  { %v2177_v61 = vunpack.c.h.bf16 %v3764_v52  ;;  %v2181_v0 = vunpack.c.h.bf16 %v3766_v53 }
  0xa1   :  { %480 = vmatmul.mubr.bf16.gmra.mrb[36].mxu0 %v3637_v23  ;;  %v1074_v23 = vrot.slane %v765_v11, 1  ;;  %v1092_v11 = vrot.slane %v777_v62, 1 }
  0xa2   :  { %487 = vmatprep.mubr.bf16.mxu0 %v3640_v34  ;;  %v1061_v34 = vsel %vm920_vm0, %v1059_v17, %v1060_v18  ;;  %v5128_v17 = vld [vmem:[%s6298_s0 + $0x210] sm:$0xff]  ;;  %v661_v18 = vld [vmem:[%s6298_s0 + $0x218] sm:$0x11] }
  0xa3   :  { %1475 = vmatmul.mubr.bf16.gmra.mrb[36].mxu1 %v1195_v54  ;;  %v1076_v38 = vsel %vm920_vm0, %v1074_v23, %v1075_v24  ;;  %v1199_v28 = vpack.c.bf16 %v1061_v34, %v1055_v30  ;;  %v1086_v54 = vrot.slane %v773_v42, 1  ;;  %v663_v23 = vld [vmem:[%s6298_s0 + $0x228] sm:$0x11]  ;;  %v1094_v24 = vsel %vm920_vm0, %v1092_v11, %v1093_v12  ;;  %v3768_v11 = vld [vmem:[%s6298_s0 + $0x38] sm:$0x11] }
  0xa4   :  { %1482 = vmatprep.mubr.bf16.mxu1 %v1198_v55  ;;  %v1202_v46 = vpack.c.bf16 %v1076_v38, %v1070_v35  ;;  %v768_v55 = vunpack.c.l.bf16 %v5074_v26  ;;  %v778_v26 = vunpack.c.l.bf16 %v657_v51  ;;  %v785_v31 = vunpack.c.h.bf16 %v5128_v17  ;;  %v5165_v51 = vld [vmem:[%s6298_s0 + $0x20] sm:$0xff]  ;;  %v3770_v12 = vld [vmem:[%s6298_s0 + $0x48] sm:$0x11] }
  0xa5   :  { %v1088_v7 = vsel %vm920_vm0, %v1086_v54, %v1087_v58  ;;  %v787_v32 = vunpack.c.h.bf16 %v661_v18  ;;  %v791_v34 = vunpack.c.h.bf16 %v663_v23  ;;  %v784_v41 = vunpack.c.l.bf16 %v5128_v17 }
  0xa6   :  { %v1077_v6 = vrot.slane %v768_v55, 1  ;;  %v1204_v15 = vpack.c.bf16 %v1088_v7, %v1082_v5  ;;  %v1090_v39 = vrot.slane %v778_v26, 1  ;;  %v1104_v43 = vrot.slane %v785_v31, 1  ;;  %v5184_v5 = vld [vmem:[%s6298_s0 + $0x30] sm:$0xff] }
  0xa7   :  { %v1111_v45 = vrot.slane %v791_v34, 1  ;;  %v1101_v58 = vrot.slane %v784_v41, 1  ;;  %v2179_v62 = vunpack.c.h.bf16 %v5165_v51  ;;  %v3774_v41 = vld [vmem:[%s6298_s0 + $0x68] sm:$0x11] }
  0xa8   :  { %v1079_v19 = vsel %vm920_vm0, %v1077_v6, %v1078_v8  ;;  %v3716_v8 = vcombine.high %v5159_v48, %v5165_v51 }
  0xa9   :  { %488 = vmatmul.mubr.bf16.gmra.mrb[40].mxu0 %v3639_v56  ;;  %v5111_v56 = vld [vmem:[%s6298_s0 + $0x200] sm:$0xff]  ;;  %v1203_v37 = vpack.c.bf16 %v1085_v20, %v1079_v19  ;;  %v2180_v19 = vunpack.c.l.bf16 %v3766_v53  ;;  %v2183_v20 = vunpack.c.h.bf16 %v5184_v5 }
  0xaa   :  { %495 = vmatprep.mubr.bf16.mxu0 %v3642_v57  ;;  %v659_v57 = vld [vmem:[%s6298_s0 + $0x208] sm:$0x11]  ;;  %v781_v1 = vunpack.c.h.bf16 %v5111_v56  ;;  %v780_v27 = vunpack.c.l.bf16 %v5111_v56  ;;  %v3647_v35 = vcombine.low %v5102_v50, %v5111_v56 }
  0xab   :  { %1483 = vmatmul.mubr.bf16.gmra.mrb[40].mxu1 %v1197_v14  ;;  %v783_v2 = vunpack.c.h.bf16 %v659_v57  ;;  %v782_v30 = vunpack.c.l.bf16 %v659_v57 }
  0xac   :  { %1490 = vmatprep.mubr.bf16.mxu1 %v1200_v21  ;;  %v1098_v13 = vrot.slane %v781_v1, 1  ;;  %v3648_v21 = vcombine.high %v5102_v50, %v5111_v56  ;;  %v1095_v40 = vrot.slane %v780_v27, 1 }
  0xad   :  { %v1099_v14 = vrot.slane %v783_v2, 1  ;;  %v1096_v42 = vrot.slane %v782_v30, 1 }
  0xaf   :  { %v1100_v29 = vsel %vm920_vm0, %v1098_v13, %v1099_v14  ;;  %v1097_v55 = vsel %vm920_vm0, %v1095_v40, %v1096_v42  ;;  %v2434_v13 = vrot.slane %v2177_v61, 1  ;;  %v2439_v14 = vrot.slane %v2179_v62, 1 }
  0xb0   :  { %v1206_v36 = vpack.c.bf16 %v1100_v29, %v1094_v24  ;;  %v2430_v29 = vrot.slane %v2174_v9, 1  ;;  %v2186_v40 = vunpack.c.l.bf16 %v5193_v10  ;;  %v3718_v42 = vcombine.high %v5184_v5, %v5193_v10 }
  0xb1   :  { %496 = vmatmul.mubr.bf16.gmra.mrb[44].mxu0 %v3641_v22  ;;  %v5140_v22 = vld [vmem:[%s6298_s0 + $0x220] sm:$0xff] }
  0xb2   :  { %503 = vmatprep.mubr.bf16.mxu0 %v3644_v25  ;;  %v776_v25 = vunpack.c.l.bf16 %v5102_v50  ;;  %v789_v33 = vunpack.c.h.bf16 %v5140_v22  ;;  %v3650_v47 = vcombine.high %v5128_v17, %v5140_v22  ;;  %v790_v50 = vunpack.c.l.bf16 %v663_v23 }
  0xb3   :  { %1491 = vmatmul.mubr.bf16.gmra.mrb[44].mxu1 %v1199_v28  ;;  %v1105_v28 = vrot.slane %v787_v32, 1  ;;  %v3649_v4 = vcombine.low %v5128_v17, %v5140_v22  ;;  %v2176_v17 = vunpack.c.l.bf16 %v3764_v52  ;;  %v2189_v23 = vunpack.c.h.bf16 %v3770_v12 }
  0xb4   :  { %1498 = vmatprep.mubr.bf16.mxu1 %v1202_v46  ;;  %v1089_v38 = vrot.slane %v776_v25, 1  ;;  %v786_v46 = vunpack.c.l.bf16 %v661_v18  ;;  %v1108_v2 = vrot.slane %v790_v50, 1  ;;  %v2178_v18 = vunpack.c.l.bf16 %v5165_v51 }
  0xb5   :  { %v1106_v56 = vsel %vm920_vm0, %v1104_v43, %v1105_v28  ;;  %v3715_v25 = vcombine.low %v5159_v48, %v5165_v51  ;;  %v2431_v30 = vrot.slane %v2176_v17, 1  ;;  %v2437_v32 = vrot.slane %v2180_v19, 1  ;;  %v5216_v28 = vld [vmem:[%s6298_s0 + $0x50] sm:$0xff] }
  0xb6   :  { %v1091_v54 = vsel %vm920_vm0, %v1089_v38, %v1090_v39  ;;  %v1102_v59 = vrot.slane %v786_v46, 1  ;;  %v2436_v31 = vrot.slane %v2178_v18, 1  ;;  %v2182_v38 = vunpack.c.l.bf16 %v5184_v5 }
  0xb7   :  { %v1205_v3 = vpack.c.bf16 %v1097_v55, %v1091_v54  ;;  %v2184_v39 = vunpack.c.l.bf16 %v3768_v11  ;;  %v2188_v43 = vunpack.c.l.bf16 %v3770_v12  ;;  %v2432_v46 = vsel %vm920_vm0, %v2430_v29, %v2431_v30  ;;  %v5268_v30 = vld [vmem:[%s6298_s0 + $0xa0] sm:$0xff] }
  0xb8   :  { %v1103_v7 = vsel %vm920_vm0, %v1101_v58, %v1102_v59  ;;  %v2442_v50 = vrot.slane %v2182_v38, 1  ;;  %v2448_v52 = vrot.slane %v2186_v40, 1  ;;  %v2191_v53 = vunpack.c.h.bf16 %v5216_v28 }
  0xb9   :  { %504 = vmatmul.mubr.bf16.gmra.mrb[48].mxu0 %v3643_v44  ;;  %v1110_v44 = vrot.slane %v789_v33, 1  ;;  %v2445_v33 = vrot.slane %v2183_v20, 1  ;;  %v2443_v51 = vrot.slane %v2184_v39, 1  ;;  %v2449_v54 = vrot.slane %v2188_v43, 1 }
  0xba   :  { %511 = vmatprep.mubr.bf16.mxu0 %v3646_v49  ;;  %v788_v49 = vunpack.c.l.bf16 %v5140_v22  ;;  %v2187_v22 = vunpack.c.h.bf16 %v5193_v10  ;;  %v3717_v59 = vcombine.low %v5184_v5, %v5193_v10  ;;  %v2190_v9 = vunpack.c.l.bf16 %v5216_v28 }
  0xbb   :  { %1499 = vmatmul.mubr.bf16.gmra.mrb[48].mxu1 %v1201_v63  ;;  %v1112_v57 = vsel %vm920_vm0, %v1110_v44, %v1111_v45  ;;  %v2433_v63 = vrot.slane %v2175_v60, 1  ;;  %v5221_v44 = vld [vmem:[%s6298_s0 + $0x60] sm:$0xff]  ;;  %v3772_v45 = vld [vmem:[%s6298_s0 + $0x58] sm:$0x11]  ;;  %v5240_v60 = vld [vmem:[%s6298_s0 + $0x70] sm:$0xff]  ;;  %v2444_v62 = vsel %vm920_vm0, %v2442_v50, %v2443_v51  ;;  %v2450_v5 = vsel %vm920_vm0, %v2448_v52, %v2449_v54 }
  0xbc   :  { %1506 = vmatprep.mubr.bf16.mxu1 %v1204_v15  ;;  %v1107_v1 = vrot.slane %v788_v49, 1  ;;  %v1208_v6 = vpack.c.bf16 %v1112_v57, %v1106_v56  ;;  %v2440_v15 = vrot.slane %v2181_v0, 1  ;;  %v2193_v55 = vunpack.c.h.bf16 %v3772_v45 }
  0xbd   :  { %v2435_v26 = vsel %vm920_vm0, %v2433_v63, %v2434_v13  ;;  %v2195_v56 = vunpack.c.h.bf16 %v5221_v44  ;;  %v2197_v57 = vunpack.c.h.bf16 %v3774_v41  ;;  %v3720_v0 = vcombine.high %v5216_v28, %v5221_v44 }
  0xbe   :  { %v2441_v27 = vsel %vm920_vm0, %v2439_v14, %v2440_v15  ;;  %v2192_v10 = vunpack.c.l.bf16 %v3772_v45  ;;  %v2196_v12 = vunpack.c.l.bf16 %v3774_v41  ;;  %v2199_v63 = vunpack.c.h.bf16 %v5240_v60 }
  0xbf   :  { %v2454_v19 = vrot.slane %v2190_v9, 1  ;;  %v3719_v29 = vcombine.low %v5216_v28, %v5221_v44  ;;  %v2207_v28 = vunpack.c.h.bf16 %v5268_v30 }
  0xc0   :  { %v2455_v20 = vrot.slane %v2192_v10, 1 }
  0xc1   :  { %512 = vmatmul.mubr.bf16.gmra.mrb[52].mxu0 %v3645_v16  ;;  %v1109_v16 = vsel %vm920_vm0, %v1107_v1, %v1108_v2  ;;  %v2457_v1 = vrot.slane %v2191_v53, 1  ;;  %v5248_v2 = vld [vmem:[%s6298_s0 + $0x80] sm:$0xff]  ;;  %v2481_v53 = vrot.slane %v2207_v28, 1 }
  0xc2   :  { %519 = vmatprep.mubr.bf16.mxu0 %v3648_v21  ;;  %v2185_v21 = vunpack.c.h.bf16 %v3768_v11  ;;  %v1207_v24 = vpack.c.bf16 %v1109_v16, %v1103_v7  ;;  %v2463_v7 = vrot.slane %v2195_v56, 1  ;;  %v2194_v11 = vunpack.c.l.bf16 %v5221_v44 }
  0xc3   :  { %1507 = vmatmul.mubr.bf16.gmra.mrb[52].mxu1 %v1203_v37  ;;  %v2452_v37 = vrot.slane %v2189_v23, 1  ;;  %v2203_v14 = vunpack.c.h.bf16 %v5248_v2  ;;  %v2688_v16 = vpack.c.bf16 %v2450_v5, %v2444_v62  ;;  %v2469_v23 = vrot.slane %v2199_v63, 1 }
  0xc4   :  { %1514 = vmatprep.mubr.bf16.mxu1 %v1206_v36  ;;  %v2446_v34 = vrot.slane %v2185_v21, 1  ;;  %v2687_v36 = vpack.c.bf16 %v2441_v27, %v2435_v26  ;;  %v2460_v21 = vrot.slane %v2194_v11, 1 }
  0xc6   :  { %v2447_v48 = vsel %vm920_vm0, %v2445_v33, %v2446_v34  ;;  %v3780_v33 = vld [vmem:[%s6298_s0 + $0xa8] sm:$0x11]  ;;  %v3782_v34 = vld [vmem:[%s6298_s0 + $0xb8] sm:$0x11] }
  0xc7   :  { %v2209_v44 = vunpack.c.h.bf16 %v3780_v33  ;;  %v2213_v41 = vunpack.c.h.bf16 %v3782_v34  ;;  %v2212_v62 = vunpack.c.l.bf16 %v3782_v34 }
  0xc9   :  { %520 = vmatmul.mubr.bf16.gmra.mrb[56].mxu0 %v3647_v35  ;;  %v2451_v35 = vrot.slane %v2187_v22, 1  ;;  %v2461_v22 = vrot.slane %v2196_v12, 1  ;;  %v2482_v54 = vrot.slane %v2209_v44, 1  ;;  %v2488_v56 = vrot.slane %v2213_v41, 1 }
  0xca   :  { %527 = vmatprep.mubr.bf16.mxu0 %v3650_v47  ;;  %v2438_v47 = vsel %vm920_vm0, %v2436_v31, %v2437_v32  ;;  %v3722_v31 = vcombine.high %v5240_v60, %v5248_v2  ;;  %v5275_v32 = vld [vmem:[%s6298_s0 + $0xb0] sm:$0xff] }
  0xcb   :  { %1515 = vmatmul.mubr.bf16.gmra.mrb[56].mxu1 %v1205_v3  ;;  %v2453_v49 = vsel %vm920_vm0, %v2451_v35, %v2452_v37  ;;  %v2686_v58 = vpack.c.bf16 %v2438_v47, %v2432_v46  ;;  %v3776_v3 = vld [vmem:[%s6298_s0 + $0x78] sm:$0x11]  ;;  %v2456_v35 = vsel %vm920_vm0, %v2454_v19, %v2455_v20  ;;  %v2462_v37 = vsel %vm920_vm0, %v2460_v21, %v2461_v22  ;;  %v5331_v19 = vld [vmem:[%s6298_s0 + $0xf0] sm:$0xff]  ;;  %v3788_v20 = vld [vmem:[%s6298_s0 + $0xe8] sm:$0x11] }
  0xcc   :  { %1522 = vmatprep.mubr.bf16.mxu1 %v1208_v6  ;;  %v2689_v61 = vpack.c.bf16 %v2453_v49, %v2447_v48  ;;  %v2458_v6 = vrot.slane %v2193_v55, 1  ;;  %v2201_v13 = vunpack.c.h.bf16 %v3776_v3  ;;  %v2200_v38 = vunpack.c.l.bf16 %v3776_v3 }
  0xcd   :  { %v2211_v45 = vunpack.c.h.bf16 %v5275_v32  ;;  %v2690_v46 = vpack.c.bf16 %v2462_v37, %v2456_v35  ;;  %v3721_v47 = vcombine.low %v5240_v60, %v5248_v2  ;;  %v2483_v5 = vsel %vm920_vm0, %v2481_v53, %v2482_v54 }
  0xce   :  { %v2459_v17 = vsel %vm920_vm0, %v2457_v1, %v2458_v6  ;;  %v2467_v50 = vrot.slane %v2200_v38, 1  ;;  %v3784_v1 = vld [vmem:[%s6298_s0 + $0xc8] sm:$0x11]  ;;  %v2225_v34 = vunpack.c.h.bf16 %v3788_v20  ;;  %v2227_v35 = vunpack.c.h.bf16 %v5331_v19 }
  0xcf   :  { %v2487_v55 = vrot.slane %v2211_v45, 1 }
  0xd0   :  { %v2506_v45 = vrot.slane %v2225_v34, 1 }
  0xd1   :  { %528 = vmatmul.mubr.bf16.gmra.mrb[60].mxu0 %v3649_v4  ;;  %v3778_v4 = vld [vmem:[%s6298_s0 + $0x88] sm:$0x11]  ;;  %v2489_v6 = vsel %vm920_vm0, %v2487_v55, %v2488_v56  ;;  %v2224_v55 = vunpack.c.l.bf16 %v3788_v20  ;;  %v3794_v56 = vld [vmem:[%s6298_s0 + $0x118] sm:$0x11] }
  0xd2   :  { %1917 = vmatprep.mubr.bf16.mxu0 %v3716_v8  ;;  %v2464_v8 = vrot.slane %v2197_v57, 1  ;;  %v2205_v15 = vunpack.c.h.bf16 %v3778_v4  ;;  %v2204_v43 = vunpack.c.l.bf16 %v3778_v4  ;;  %v3724_v57 = vcombine.high %v5268_v30, %v5275_v32 }
  0xd3   :  { %1523 = vmatmul.mubr.bf16.gmra.mrb[60].mxu1 %v1207_v24  ;;  %v2470_v24 = vrot.slane %v2201_v13, 1  ;;  %v2485_v13 = vrot.slane %v2212_v62, 1 }
  0xd4   :  { %2911 = vmatprep.mubr.bf16.mxu1 %v2687_v36  ;;  %v2465_v18 = vsel %vm920_vm0, %v2463_v7, %v2464_v8  ;;  %v2476_v26 = vrot.slane %v2205_v15, 1  ;;  %v2198_v36 = vunpack.c.l.bf16 %v5240_v60  ;;  %v2473_v52 = vrot.slane %v2204_v43, 1 }
  0xd5   :  { %v2691_v27 = vpack.c.bf16 %v2465_v18, %v2459_v17  ;;  %v2471_v39 = vsel %vm920_vm0, %v2469_v23, %v2470_v24  ;;  %v2208_v60 = vunpack.c.l.bf16 %v3780_v33  ;;  %v2217_v8 = vunpack.c.h.bf16 %v3784_v1  ;;  %v5326_v18 = vld [vmem:[%s6298_s0 + $0xe0] sm:$0xff] }
  0xd6   :  { %v2466_v48 = vrot.slane %v2198_v36, 1  ;;  %v2695_v15 = vpack.c.bf16 %v2489_v6, %v2483_v5  ;;  %v2223_v33 = vunpack.c.h.bf16 %v5326_v18  ;;  %v2222_v54 = vunpack.c.l.bf16 %v5326_v18 }
  0xd7   :  { %v2479_v12 = vrot.slane %v2208_v60, 1  ;;  %v2494_v22 = vrot.slane %v2217_v8, 1  ;;  %v2503_v6 = vrot.slane %v2224_v55, 1 }
  0xd8   :  { %v2468_v3 = vsel %vm920_vm0, %v2466_v48, %v2467_v50  ;;  %v2505_v44 = vrot.slane %v2223_v33, 1  ;;  %v5354_v50 = vld [vmem:[%s6298_s0 + $0x100] sm:$0xff]  ;;  %v2502_v5 = vrot.slane %v2222_v54, 1 }
  0xd9   :  { %1918 = vmatmul.mubr.bf16.vlgmr.msra.gmra.mrb[64].mxu0 %v3715_v25  ;;  %v2475_v25 = vrot.slane %v2203_v14, 1  ;;  %v2231_v62 = vunpack.c.h.bf16 %v5354_v50 }
  0xda   :  { %1925 = vmatprep.mubr.bf16.mxu0 %v3718_v42  ;;  %v2202_v42 = vunpack.c.l.bf16 %v5248_v2  ;;  %v3786_v2 = vld [vmem:[%s6298_s0 + $0xd8] sm:$0x11] }
  0xdb   :  { %2912 = vmatmul.mubr.bf16.vlgmr.msra.gmra.mrb[64].mxu1 %v2686_v58  ;;  %v2477_v40 = vsel %vm920_vm0, %v2475_v25, %v2476_v26  ;;  %v5298_v58 = vld [vmem:[%s6298_s0 + $0xc0] sm:$0xff]  ;;  %v2221_v10 = vunpack.c.h.bf16 %v3786_v2  ;;  %v3790_v25 = vld [vmem:[%s6298_s0 + $0xf8] sm:$0x11] }
  0xdc   :  { %2919 = vmatprep.mubr.bf16.mxu1 %v2689_v61  ;;  %v2693_v49 = vpack.c.bf16 %v2477_v40, %v2471_v39  ;;  %v2472_v51 = vrot.slane %v2202_v42, 1  ;;  %v2210_v61 = vunpack.c.l.bf16 %v5275_v32  ;;  %v2215_v7 = vunpack.c.h.bf16 %v5298_v58 }
  0xdd   :  { %v2500_v24 = vrot.slane %v2221_v10, 1  ;;  %v2229_v37 = vunpack.c.h.bf16 %v3790_v25  ;;  %v2228_v60 = vunpack.c.l.bf16 %v3790_v25 }
  0xde   :  { %v2474_v4 = vsel %vm920_vm0, %v2472_v51, %v2473_v52  ;;  %v2484_v63 = vrot.slane %v2210_v61, 1  ;;  %v2493_v21 = vrot.slane %v2215_v7, 1  ;;  %v5359_v51 = vld [vmem:[%s6298_s0 + $0x110] sm:$0xff]  ;;  %v3792_v52 = vld [vmem:[%s6298_s0 + $0x108] sm:$0x11] }
  0xdf   :  { %v2692_v14 = vpack.c.bf16 %v2474_v4, %v2468_v3  ;;  %v2512_v48 = vrot.slane %v2229_v37, 1  ;;  %v3727_v4 = vcombine.low %v5326_v18, %v5331_v19  ;;  %v3730_v10 = vcombine.high %v5354_v50, %v5359_v51 }
  0xe0   :  { %v2495_v36 = vsel %vm920_vm0, %v2493_v21, %v2494_v22  ;;  %v2234_v20 = vunpack.c.l.bf16 %v5359_v51  ;;  %v2236_v21 = vunpack.c.l.bf16 %v3794_v56 }
  0xe1   :  { %1926 = vmatmul.mubr.bf16.gmra.mrb[68].mxu0 %v3717_v59  ;;  %v2206_v59 = vunpack.c.l.bf16 %v5268_v30 }
  0xe2   :  { %1933 = vmatprep.mubr.bf16.mxu0 %v3720_v0  ;;  %v5305_v0 = vld [vmem:[%s6298_s0 + $0xd0] sm:$0xff]  ;;  %v2520_v33 = vrot.slane %v2234_v20, 1  ;;  %v2521_v34 = vrot.slane %v2236_v21, 1 }
  0xe3   :  { %2920 = vmatmul.mubr.bf16.gmra.mrb[68].mxu1 %v2688_v16  ;;  %v2219_v9 = vunpack.c.h.bf16 %v5305_v0  ;;  %v2478_v11 = vrot.slane %v2206_v59, 1  ;;  %v3723_v16 = vcombine.low %v5268_v30, %v5275_v32  ;;  %v3726_v17 = vcombine.high %v5298_v58, %v5305_v0 }
  0xe4   :  { %2927 = vmatprep.mubr.bf16.mxu1 %v2691_v27  ;;  %v2486_v27 = vsel %vm920_vm0, %v2484_v63, %v2485_v13  ;;  %v2216_v30 = vunpack.c.l.bf16 %v3784_v1  ;;  %v2220_v32 = vunpack.c.l.bf16 %v3786_v2  ;;  %v2226_v59 = vunpack.c.l.bf16 %v5331_v19 }
  0xe5   :  { %v2499_v23 = vrot.slane %v2219_v9, 1  ;;  %v2480_v26 = vsel %vm920_vm0, %v2478_v11, %v2479_v12  ;;  %v2235_v1 = vunpack.c.h.bf16 %v5359_v51  ;;  %v2237_v2 = vunpack.c.h.bf16 %v3794_v56  ;;  %v5382_v11 = vld [vmem:[%s6298_s0 + $0x130] sm:$0xff]  ;;  %v3796_v12 = vld [vmem:[%s6298_s0 + $0x138] sm:$0x11] }
  0xe6   :  { %v2694_v39 = vpack.c.bf16 %v2486_v27, %v2480_v26  ;;  %v2491_v42 = vrot.slane %v2216_v30, 1  ;;  %v2497_v28 = vrot.slane %v2220_v32, 1  ;;  %v2508_v8 = vrot.slane %v2226_v59, 1 }
  0xe7   :  { %v2501_v38 = vsel %vm920_vm0, %v2499_v23, %v2500_v24  ;;  %v2509_v9 = vrot.slane %v2228_v60, 1  ;;  %v2517_v63 = vrot.slane %v2231_v62, 1  ;;  %v2239_v22 = vunpack.c.h.bf16 %v5382_v11 }
  0xe8   :  { %v2697_v41 = vpack.c.bf16 %v2501_v38, %v2495_v36  ;;  %v2241_v23 = vunpack.c.h.bf16 %v3796_v12  ;;  %v2504_v26 = vsel %vm920_vm0, %v2502_v5, %v2503_v6 }
  0xe9   :  { %1934 = vmatmul.mubr.bf16.gmra.mrb[72].mxu0 %v3719_v29  ;;  %v2214_v29 = vunpack.c.l.bf16 %v5298_v58  ;;  %v2510_v27 = vsel %vm920_vm0, %v2508_v8, %v2509_v9 }
  0xea   :  { %1941 = vmatprep.mubr.bf16.mxu0 %v3722_v31  ;;  %v2218_v31 = vunpack.c.l.bf16 %v5305_v0  ;;  %v2530_v37 = vrot.slane %v2241_v23, 1  ;;  %v2698_v36 = vpack.c.bf16 %v2510_v27, %v2504_v26 }
  0xeb   :  { %2928 = vmatmul.mubr.bf16.gmra.mrb[72].mxu1 %v2690_v46  ;;  %v2490_v40 = vrot.slane %v2214_v29, 1  ;;  %v3725_v46 = vcombine.low %v5298_v58, %v5305_v0  ;;  %v2507_v58 = vsel %vm920_vm0, %v2505_v44, %v2506_v45  ;;  %v2233_v0 = vunpack.c.h.bf16 %v3792_v52 }
  0xec   :  { %2935 = vmatprep.mubr.bf16.mxu1 %v2693_v49  ;;  %v2496_v43 = vrot.slane %v2218_v31, 1  ;;  %v3728_v49 = vcombine.high %v5326_v18, %v5331_v19  ;;  %v2524_v18 = vrot.slane %v2237_v2, 1  ;;  %v2232_v19 = vunpack.c.l.bf16 %v3792_v52 }
  0xed   :  { %v2492_v53 = vsel %vm920_vm0, %v2490_v40, %v2491_v42  ;;  %v2518_v13 = vrot.slane %v2233_v0, 1  ;;  %v3729_v42 = vcombine.low %v5354_v50, %v5359_v51  ;;  %v2522_v45 = vsel %vm920_vm0, %v2520_v33, %v2521_v34  ;;  %v5472_v34 = vld [vmem:[%s6298_s0 + $0x1a0] sm:$0xff] }
  0xee   :  { %v2515_v32 = vrot.slane %v2232_v19, 1 }
  0xef   :  { %v2519_v29 = vsel %vm920_vm0, %v2517_v63, %v2518_v13  ;;  %v3804_v63 = vld [vmem:[%s6298_s0 + $0x178] sm:$0x11]  ;;  %v3806_v13 = vld [vmem:[%s6298_s0 + $0x188] sm:$0x11] }
  0xf0   :  { %v2257_v23 = vunpack.c.h.bf16 %v3804_v63 }
  0xf1   :  { %1942 = vmatmul.mubr.bf16.gmra.mrb[76].mxu0 %v3721_v47  ;;  %v2511_v47 = vrot.slane %v2227_v35, 1  ;;  %v2529_v35 = vrot.slane %v2239_v22, 1 }
  0xf2   :  { %1949 = vmatprep.mubr.bf16.mxu0 %v3724_v57  ;;  %v2498_v57 = vsel %vm920_vm0, %v2496_v43, %v2497_v28  ;;  %v5408_v43 = vld [vmem:[%s6298_s0 + $0x150] sm:$0xff]  ;;  %v3800_v28 = vld [vmem:[%s6298_s0 + $0x158] sm:$0x11] }
  0xf3   :  { %2936 = vmatmul.mubr.bf16.gmra.mrb[76].mxu1 %v2692_v14  ;;  %v2513_v61 = vsel %vm920_vm0, %v2511_v47, %v2512_v48  ;;  %v2696_v3 = vpack.c.bf16 %v2498_v57, %v2492_v53  ;;  %v2523_v14 = vrot.slane %v2235_v1, 1  ;;  %v3802_v47 = vld [vmem:[%s6298_s0 + $0x168] sm:$0x11]  ;;  %v2531_v48 = vsel %vm920_vm0, %v2529_v35, %v2530_v37  ;;  %v3808_v35 = vld [vmem:[%s6298_s0 + $0x198] sm:$0x11] }
  0xf4   :  { %2943 = vmatprep.mubr.bf16.mxu1 %v2695_v15  ;;  %v2699_v7 = vpack.c.bf16 %v2513_v61, %v2507_v58  ;;  %v2230_v15 = vunpack.c.l.bf16 %v5354_v50  ;;  %v2240_v50 = vunpack.c.l.bf16 %v3796_v12  ;;  %v2247_v54 = vunpack.c.h.bf16 %v5408_v43  ;;  %v5445_v12 = vld [vmem:[%s6298_s0 + $0x180] sm:$0xff]  ;;  %v3810_v37 = vld [vmem:[%s6298_s0 + $0x1a8] sm:$0x11] }
  0xf5   :  { %v2525_v31 = vsel %vm920_vm0, %v2523_v14, %v2524_v18  ;;  %v2249_v55 = vunpack.c.h.bf16 %v3800_v28  ;;  %v2253_v57 = vunpack.c.h.bf16 %v3802_v47 }
  0xf6   :  { %v2514_v30 = vrot.slane %v2230_v15, 1  ;;  %v2701_v40 = vpack.c.bf16 %v2525_v31, %v2519_v29  ;;  %v2527_v62 = vrot.slane %v2240_v50, 1  ;;  %v2541_v2 = vrot.slane %v2247_v54, 1  ;;  %v5464_v29 = vld [vmem:[%s6298_s0 + $0x190] sm:$0xff] }
  0xf7   :  { %v2548_v6 = vrot.slane %v2253_v57, 1 }
  0xf8   :  { %v2516_v44 = vsel %vm920_vm0, %v2514_v30, %v2515_v32 }
  0xf9   :  { %1950 = vmatmul.mubr.bf16.gmra.mrb[80].mxu0 %v3723_v16  ;;  %v5391_v16 = vld [vmem:[%s6298_s0 + $0x140] sm:$0xff]  ;;  %v2700_v58 = vpack.c.bf16 %v2522_v45, %v2516_v44  ;;  %v2260_v44 = vunpack.c.l.bf16 %v3806_v13  ;;  %v2263_v45 = vunpack.c.h.bf16 %v5464_v29 }
  0xfa   :  { %1957 = vmatprep.mubr.bf16.mxu0 %v3726_v17  ;;  %v3798_v17 = vld [vmem:[%s6298_s0 + $0x148] sm:$0x11]  ;;  %v2243_v24 = vunpack.c.h.bf16 %v5391_v16  ;;  %v2242_v51 = vunpack.c.l.bf16 %v5391_v16  ;;  %v3731_v59 = vcombine.low %v5382_v11, %v5391_v16 }
  0xfb   :  { %2944 = vmatmul.mubr.bf16.gmra.mrb[80].mxu1 %v2694_v39  ;;  %v2245_v25 = vunpack.c.h.bf16 %v3798_v17  ;;  %v2244_v53 = vunpack.c.l.bf16 %v3798_v17  ;;  %v2557_v54 = vrot.slane %v2260_v44, 1 }
  0xfc   :  { %2951 = vmatprep.mubr.bf16.mxu1 %v2697_v41  ;;  %v2535_v38 = vrot.slane %v2243_v24, 1  ;;  %v3732_v41 = vcombine.high %v5382_v11, %v5391_v16  ;;  %v2532_v0 = vrot.slane %v2242_v51, 1  ;;  %v2259_v24 = vunpack.c.h.bf16 %v5445_v12 }
  0xfd   :  { %v2536_v39 = vrot.slane %v2245_v25, 1  ;;  %v2533_v1 = vrot.slane %v2244_v53, 1  ;;  %v2261_v25 = vunpack.c.h.bf16 %v3806_v13 }
  0xff   :  { %v2537_v52 = vsel %vm920_vm0, %v2535_v38, %v2536_v39  ;;  %v2534_v15 = vsel %vm920_vm0, %v2532_v0, %v2533_v1  ;;  %v2554_v38 = vrot.slane %v2257_v23, 1  ;;  %v2559_v39 = vrot.slane %v2259_v24, 1  ;;  %v5499_v0 = vld [vmem:[%s6298_s0 + $0x1d0] sm:$0xff]  ;;  %v3812_v1 = vld [vmem:[%s6298_s0 + $0x1c8] sm:$0x11] }
 0x100   :  { %v2703_v60 = vpack.c.bf16 %v2537_v52, %v2531_v48 }
 0x101   :  { %1958 = vmatmul.mubr.bf16.gmra.mrb[84].mxu0 %v3725_v46  ;;  %v5420_v46 = vld [vmem:[%s6298_s0 + $0x160] sm:$0xff] }
 0x102   :  { %1965 = vmatprep.mubr.bf16.mxu0 %v3728_v49  ;;  %v2238_v49 = vunpack.c.l.bf16 %v5382_v11  ;;  %v2251_v56 = vunpack.c.h.bf16 %v5420_v46  ;;  %v2250_v8 = vunpack.c.l.bf16 %v5420_v46  ;;  %v3734_v9 = vcombine.high %v5408_v43, %v5420_v46  ;;  %v5440_v11 = vld [vmem:[%s6298_s0 + $0x170] sm:$0xff] }
 0x103   :  { %2952 = vmatmul.mubr.bf16.gmra.mrb[84].mxu1 %v2696_v3  ;;  %v2542_v3 = vrot.slane %v2249_v55, 1  ;;  %v2255_v21 = vunpack.c.h.bf16 %v5440_v11  ;;  %v3733_v27 = vcombine.low %v5408_v43, %v5420_v46  ;;  %v3736_v32 = vcombine.high %v5440_v11, %v5445_v12 }
 0x104   :  { %2959 = vmatprep.mubr.bf16.mxu1 %v2699_v7  ;;  %v2526_v61 = vrot.slane %v2238_v49, 1  ;;  %v2547_v5 = vrot.slane %v2251_v56, 1  ;;  %v2248_v7 = vunpack.c.l.bf16 %v3800_v28  ;;  %v2544_v20 = vrot.slane %v2250_v8, 1 }
 0x105   :  { %v2543_v16 = vsel %vm920_vm0, %v2541_v2, %v2542_v3  ;;  %v2553_v33 = vrot.slane %v2255_v21, 1  ;;  %v2258_v28 = vunpack.c.l.bf16 %v5445_v12  ;;  %v2267_v46 = vunpack.c.h.bf16 %v5472_v34  ;;  %v5507_v2 = vld [vmem:[%s6298_s0 + $0x1d8] sm:$0x11] }
 0x106   :  { %v2528_v14 = vsel %vm920_vm0, %v2526_v61, %v2527_v62  ;;  %v2549_v18 = vsel %vm920_vm0, %v2547_v5, %v2548_v6  ;;  %v2539_v19 = vrot.slane %v2248_v7, 1  ;;  %v2565_v55 = vrot.slane %v2263_v45, 1  ;;  %v5492_v61 = vld [vmem:[%s6298_s0 + $0x1c0] sm:$0xff] }
 0x107   :  { %v2702_v26 = vpack.c.bf16 %v2534_v15, %v2528_v14  ;;  %v2705_v30 = vpack.c.bf16 %v2549_v18, %v2543_v16  ;;  %v2555_v49 = vsel %vm920_vm0, %v2553_v33, %v2554_v38  ;;  %v2556_v53 = vrot.slane %v2258_v28, 1  ;;  %v5542_v38 = vld [vmem:[%s6298_s0 + $0x1f8] sm:$0x11] }
 0x108   :  { %v2571_v57 = vrot.slane %v2267_v46, 1  ;;  %v3738_v62 = vcombine.high %v5464_v29, %v5472_v34  ;;  %v2262_v5 = vunpack.c.l.bf16 %v5464_v29  ;;  %v2264_v6 = vunpack.c.l.bf16 %v3808_v35 }
 0x109   :  { %1966 = vmatmul.mubr.bf16.gmra.mrb[88].mxu0 %v3727_v4  ;;  %v2246_v4 = vunpack.c.l.bf16 %v5408_v43  ;;  %v2256_v43 = vunpack.c.l.bf16 %v3804_v63  ;;  %v2275_v63 = vunpack.c.h.bf16 %v5499_v0  ;;  %v2277_v13 = vunpack.c.h.bf16 %v5507_v2 }
 0x10a   :  { %1973 = vmatprep.mubr.bf16.mxu0 %v3730_v10  ;;  %v2252_v10 = vunpack.c.l.bf16 %v3802_v47  ;;  %v2269_v47 = vunpack.c.h.bf16 %v3810_v37  ;;  %v3737_v14 = vcombine.low %v5464_v29, %v5472_v34  ;;  %v2562_v15 = vrot.slane %v2262_v5, 1  ;;  %v5525_v29 = vld [vmem:[%s6298_s0 + $0x1e0] sm:$0xff] }
 0x10b   :  { %2960 = vmatmul.mubr.bf16.gmra.mrb[88].mxu1 %v2698_v36  ;;  %v2538_v17 = vrot.slane %v2246_v4, 1  ;;  %v2551_v52 = vrot.slane %v2256_v43, 1  ;;  %v2558_v4 = vsel %vm920_vm0, %v2556_v53, %v2557_v54  ;;  %v2563_v16 = vrot.slane %v2264_v6, 1 }
 0x10c   :  { %2967 = vmatprep.mubr.bf16.mxu1 %v2701_v40  ;;  %v2545_v22 = vrot.slane %v2252_v10, 1  ;;  %v2560_v40 = vrot.slane %v2261_v25, 1  ;;  %v2268_v10 = vunpack.c.l.bf16 %v3810_v37  ;;  %v2583_v25 = vrot.slane %v2275_v63, 1 }
 0x10d   :  { %v2540_v31 = vsel %vm920_vm0, %v2538_v17, %v2539_v19  ;;  %v2272_v37 = vunpack.c.l.bf16 %v3812_v1  ;;  %v2276_v43 = vunpack.c.l.bf16 %v5507_v2  ;;  %v2279_v45 = vunpack.c.h.bf16 %v5525_v29 }
 0x10e   :  { %v2546_v36 = vsel %vm920_vm0, %v2544_v20, %v2545_v22  ;;  %v2561_v50 = vsel %vm920_vm0, %v2559_v39, %v2560_v40  ;;  %v2569_v21 = vrot.slane %v2268_v10, 1 }
 0x10f   :  { %v2704_v48 = vpack.c.bf16 %v2546_v36, %v2540_v31  ;;  %v3740_v31 = vcombine.high %v5492_v61, %v5499_v0  ;;  %v5537_v36 = vld [vmem:[%s6298_s0 + $0x1f0] sm:$0xff] }
 0x110   :  { %v2283_v46 = vunpack.c.h.bf16 %v5537_v36 }
 0x111   :  { %1974 = vmatmul.mubr.bf16.gmra.mrb[92].mxu0 %v3729_v42  ;;  %v2254_v42 = vunpack.c.l.bf16 %v5440_v11 }
 0x112   :  { %1981 = vmatprep.mubr.bf16.mxu0 %v3732_v41  ;;  %v2265_v41 = vunpack.c.h.bf16 %v3808_v35  ;;  %v2270_v35 = vunpack.c.l.bf16 %v5492_v61 }
 0x113   :  { %2968 = vmatmul.mubr.bf16.gmra.mrb[92].mxu1 %v2700_v58  ;;  %v2550_v51 = vrot.slane %v2254_v42, 1  ;;  %v2572_v58 = vrot.slane %v2269_v47, 1  ;;  %v2274_v42 = vunpack.c.l.bf16 %v5499_v0  ;;  %v2285_v47 = vunpack.c.h.bf16 %v5542_v38 }
 0x114   :  { %2975 = vmatprep.mubr.bf16.mxu1 %v2703_v60  ;;  %v2566_v56 = vrot.slane %v2265_v41, 1  ;;  %v3735_v60 = vcombine.low %v5440_v11, %v5445_v12  ;;  %v2271_v11 = vunpack.c.h.bf16 %v5492_v61  ;;  %v2273_v12 = vunpack.c.h.bf16 %v3812_v1 }
 0x115   :  { %v2552_v3 = vsel %vm920_vm0, %v2550_v51, %v2551_v52  ;;  %v2573_v8 = vsel %vm920_vm0, %v2571_v57, %v2572_v58  ;;  %v2574_v51 = vrot.slane %v2270_v35, 1  ;;  %v2575_v52 = vrot.slane %v2272_v37, 1 }
 0x116   :  { %v2567_v7 = vsel %vm920_vm0, %v2565_v55, %v2566_v56  ;;  %v2706_v17 = vpack.c.bf16 %v2558_v4, %v2552_v3  ;;  %v2577_v23 = vrot.slane %v2271_v11, 1  ;;  %v2578_v24 = vrot.slane %v2273_v12, 1  ;;  %v5571_v4 = vld [vmem:[%s6298_s0 + $0x208] sm:$0x11]  ;;  %v5577_v11 = vld [vmem:[%s6298_s0 + $0x218] sm:$0x11] }
 0x117   :  { %v2709_v19 = vpack.c.bf16 %v2573_v8, %v2567_v7  ;;  %v2580_v56 = vrot.slane %v2274_v42, 1  ;;  %v2581_v57 = vrot.slane %v2276_v43, 1  ;;  %v3742_v58 = vcombine.high %v5525_v29, %v5537_v36 }
 0x118   :  { %v2579_v28 = vsel %vm920_vm0, %v2577_v23, %v2578_v24  ;;  %v2589_v1 = vrot.slane %v2279_v45, 1  ;;  %v2278_v3 = vunpack.c.l.bf16 %v5525_v29  ;;  %v2595_v8 = vrot.slane %v2283_v46, 1 }
 0x119   :  { %1982 = vmatmul.mubr.bf16.gmra.mrb[96].mxu0 %v3731_v59  ;;  %v2707_v59 = vpack.c.bf16 %v2561_v50, %v2555_v49  ;;  %v3739_v50 = vcombine.low %v5492_v61, %v5499_v0  ;;  %v2293_v23 = vunpack.c.h.bf16 %v5577_v11  ;;  %v3741_v37 = vcombine.low %v5525_v29, %v5537_v36  ;;  %v5601_v29 = vld [vmem:[%s6298_s0 + $0x220] sm:$0xff] }
 0x11a   :  { %1989 = vmatprep.mubr.bf16.mxu0 %v3734_v9  ;;  %v2266_v9 = vunpack.c.l.bf16 %v5472_v34  ;;  %v2564_v34 = vsel %vm920_vm0, %v2562_v15, %v2563_v16  ;;  %v2284_v15 = vunpack.c.l.bf16 %v5542_v38 }
 0x11b   :  { %2976 = vmatmul.mubr.bf16.gmra.mrb[96].mxu1 %v2702_v26  ;;  %v2584_v26 = vrot.slane %v2277_v13, 1  ;;  %v2608_v45 = vrot.slane %v2293_v23, 1 }
 0x11c   :  { %2983 = vmatprep.mubr.bf16.mxu1 %v2705_v30  ;;  %v2568_v20 = vrot.slane %v2266_v9, 1  ;;  %v2596_v9 = vrot.slane %v2285_v47, 1 }
 0x11d   :  { %v2585_v44 = vsel %vm920_vm0, %v2583_v25, %v2584_v26  ;;  %v2586_v26 = vrot.slane %v2278_v3, 1  ;;  %v2295_v3 = vunpack.c.h.bf16 %v5601_v29 }
 0x11e   :  { %v2570_v40 = vsel %vm920_vm0, %v2568_v20, %v2569_v21  ;;  %v2711_v55 = vpack.c.bf16 %v2585_v44, %v2579_v28  ;;  %v2582_v21 = vsel %vm920_vm0, %v2580_v56, %v2581_v57  ;;  %v2597_v25 = vsel %vm920_vm0, %v2595_v8, %v2596_v9  ;;  %v5618_v56 = vld [vmem:[%s6298_s0 + $0x238] sm:$0x11] }
 0x11f   :  { %v2708_v49 = vpack.c.bf16 %v2570_v40, %v2564_v34 }
 0x121   :  { %1990 = vmatmul.mubr.bf16.gmra.mrb[100].mxu0 %v3733_v27 }
 0x122   :  { %1997 = vmatprep.mubr.bf16.mxu0 %v3736_v32  ;;  %v5530_v32 = vld [vmem:[%s6298_s0 + $0x1e8] sm:$0x11] }
 0x123   :  { %2984 = vmatmul.mubr.bf16.gmra.mrb[100].mxu1 %v2704_v48  ;;  %v2281_v41 = vunpack.c.h.bf16 %v5530_v32  ;;  %v2280_v10 = vunpack.c.l.bf16 %v5530_v32  ;;  %v2593_v32 = vrot.slane %v2284_v15, 1 }
 0x124   :  { %2991 = vmatprep.mubr.bf16.mxu1 %v2707_v59  ;;  %v5560_v59 = vld [vmem:[%s6298_s0 + $0x200] sm:$0xff] }
 0x125   :  { %v2590_v2 = vrot.slane %v2281_v41, 1 }
 0x127   :  { %v2591_v24 = vsel %vm920_vm0, %v2589_v1, %v2590_v2  ;;  %v2292_v2 = vunpack.c.l.bf16 %v5577_v11 }
 0x128   :  { %v2713_v28 = vpack.c.bf16 %v2597_v25, %v2591_v24 }
 0x129   :  { %1998 = vmatmul.mubr.bf16.gmra.mrb[104].mxu0 %v3735_v60  ;;  %v5565_v60 = vld [vmem:[%s6298_s0 + $0x210] sm:$0xff] }
 0x12a   :  { %2005 = vmatprep.mubr.bf16.mxu0 %v3738_v62  ;;  %v3743_v9 = vcombine.low %v5560_v59, %v5565_v60 }
 0x12b   :  { %2992 = vmatmul.mubr.bf16.gmra.mrb[104].mxu1 %v2706_v17  ;;  %v2576_v17 = vsel %vm920_vm0, %v2574_v51, %v2575_v52 }
 0x12c   :  { %v4019_v18 = vpop.f32.mrb[0].mxu0  ;;  %2999 = vmatprep.mubr.bf16.mxu1 %v2709_v19  ;;  %v2289_v19 = vunpack.c.h.bf16 %v5571_v4  ;;  %v2710_v34 = vpack.c.bf16 %v2582_v21, %v2576_v17  ;;  %v2605_v21 = vrot.slane %v2292_v2, 1 }
 0x12d   :  { %v4020_v22 = vpop.f32.mrb[1].mxu0 }
 0x12e   :  { %v4021_v27 = vadd.f32 %v4020_v22, %v4019_v18  ;;  %v4022_v30 = vpop.f32.mrb[2].mxu0  ;;  %v4131_v48 = vpop.f32.mrb[0].mxu1  ;;  %v2287_v18 = vunpack.c.h.bf16 %v5560_v59  ;;  %v2291_v22 = vunpack.c.h.bf16 %v5565_v60 }
 0x12f   :  { %v4023_v33 = vpop.f32.mrb[3].mxu0  ;;  %v4132_v53 = vpop.f32.mrb[1].mxu1 }
 0x130   :  { %v4024_v39 = vadd.f32 %v4023_v33, %v4022_v30  ;;  %v4133_v61 = vadd.f32 %v4132_v53, %v4131_v48  ;;  %v4134_v62 = vpop.f32.mrb[2].mxu1  ;;  %v2601_v38 = vrot.slane %v2287_v18, 1  ;;  %v2607_v44 = vrot.slane %v2291_v22, 1 }
 0x131   :  { %2006 = vmatmul.mubr.bf16.gmra.mrb[108].mxu0 %v3737_v14  ;;  %v4135_v5 = vpop.f32.mrb[3].mxu1  ;;  %v2282_v14 = vunpack.c.l.bf16 %v5537_v36  ;;  %v2286_v53 = vunpack.c.l.bf16 %v5560_v59  ;;  %v2613_v22 = vrot.slane %v2295_v3, 1 }
 0x132   :  { %2013 = vmatprep.mubr.bf16.mxu0 %v3740_v31  ;;  %v5579_v12 = vadd.f32 %v4133_v61, %v4021_v27  ;;  %v4136_v63 = vadd.f32 %v4135_v5, %v4134_v62  ;;  %v2587_v27 = vrot.slane %v2280_v10, 1  ;;  %v2288_v61 = vunpack.c.l.bf16 %v5571_v4 }
 0x133   :  { %3000 = vmatmul.mubr.bf16.gmra.mrb[108].mxu1 %v2708_v49  ;;  %v2592_v31 = vrot.slane %v2282_v14, 1  ;;  %v3744_v49 = vcombine.high %v5560_v59, %v5565_v60  ;;  %v2290_v62 = vunpack.c.l.bf16 %v5565_v60  ;;  %v2609_v1 = vsel %vm920_vm0, %v2607_v44, %v2608_v45 }
 0x134   :  { %v4025_v54 = vpop.f32.mrb[4].mxu0  ;;  %v5586_v20 = vadd.f32 %v4136_v63, %v4024_v39  ;;  %3007 = vmatprep.mubr.bf16.mxu1 %v2711_v55  ;;  %v2602_v39 = vrot.slane %v2289_v19, 1  ;;  %v2588_v48 = vsel %vm920_vm0, %v2586_v26, %v2587_v27  ;;  %v3824_v55 = vld [vmem:[%s6298_s0 + $0x228] sm:$0x11]  ;;  %v2598_v14 = vrot.slane %v2286_v53, 1 }
 0x135   :  { %v4026_v0 = vpop.f32.mrb[5].mxu0  ;;  %v2594_v52 = vsel %vm920_vm0, %v2592_v31, %v2593_v32  ;;  %v2297_v5 = vunpack.c.h.bf16 %v3824_v55  ;;  %v2599_v15 = vrot.slane %v2288_v61, 1  ;;  %v2604_v19 = vrot.slane %v2290_v62, 1 }
 0x136   :  { %v4027_v6 = vadd.f32 %v4026_v0, %v4025_v54  ;;  %v4028_v7 = vpop.f32.mrb[6].mxu0  ;;  %v4137_v30 = vpop.f32.mrb[4].mxu1  ;;  %v5610_v54 = vld [vmem:[%s6298_s0 + $0x230] sm:$0xff]  ;;  %v2712_v4 = vpack.c.bf16 %v2594_v52, %v2588_v48 }
 0x137   :  { %v4029_v13 = vpop.f32.mrb[7].mxu0  ;;  %v4138_v33 = vpop.f32.mrb[5].mxu1  ;;  %v3746_v11 = vcombine.high %v5601_v29, %v5610_v54  ;;  %v2614_v26 = vrot.slane %v2297_v5, 1 }
 0x138   :  { %v4030_v16 = vadd.f32 %v4029_v13, %v4028_v7  ;;  %v4139_v40 = vadd.f32 %v4138_v33, %v4137_v30  ;;  %v4140_v42 = vpop.f32.mrb[6].mxu1  ;;  %v2301_v7 = vunpack.c.h.bf16 %v5618_v56  ;;  %v2600_v33 = vsel %vm920_vm0, %v2598_v14, %v2599_v15 }
 0x139   :  { %2014 = vmatmul.mubr.bf16.gmra.mrb[112].mxu0 %v3739_v50  ;;  %v4141_v41 = vpop.f32.mrb[7].mxu1 }
 0x13a   :  { %2021 = vmatprep.mubr.bf16.mxu0 %v3742_v58  ;;  %v5603_v36 = vadd.f32 %v4139_v40, %v4027_v6  ;;  %v4142_v50 = vadd.f32 %v4141_v41, %v4140_v42  ;;  %v2603_v58 = vsel %vm920_vm0, %v2601_v38, %v2602_v39  ;;  %v2299_v6 = vunpack.c.h.bf16 %v5610_v54 }
 0x13b   :  { %3008 = vmatmul.mubr.bf16.gmra.mrb[112].mxu1 %v2710_v34  ;;  %v2715_v13 = vpack.c.bf16 %v2609_v1, %v2603_v58  ;;  %v2620_v59 = vrot.slane %v2301_v7, 1  ;;  %v2294_v34 = vunpack.c.l.bf16 %v5601_v29  ;;  %v2606_v38 = vsel %vm920_vm0, %v2604_v19, %v2605_v21 }
 0x13c   :  { %v4031_v35 = vpop.f32.mrb[8].mxu0  ;;  %v5623_v0 = vadd.f32 %v4142_v50, %v4030_v16  ;;  %3015 = vmatprep.mubr.bf16.mxu1 %v2713_v28  ;;  %v2619_v27 = vrot.slane %v2299_v6, 1  ;;  %v2298_v39 = vunpack.c.l.bf16 %v5610_v54  ;;  %v2300_v40 = vunpack.c.l.bf16 %v5618_v56 }
 0x13d   :  { %v4032_v43 = vpop.f32.mrb[9].mxu0  ;;  %v2615_v42 = vsel %vm920_vm0, %v2613_v22, %v2614_v26  ;;  %v2714_v45 = vpack.c.bf16 %v2606_v38, %v2600_v33 }
 0x13e   :  { %v4033_v46 = vadd.f32 %v4032_v43, %v4031_v35  ;;  %v4034_v47 = vpop.f32.mrb[10].mxu0  ;;  %v4143_v8 = vpop.f32.mrb[8].mxu1  ;;  %v2296_v35 = vunpack.c.l.bf16 %v3824_v55  ;;  %v2621_v43 = vsel %vm920_vm0, %v2619_v27, %v2620_v59  ;;  %v2616_v53 = vrot.slane %v2298_v39, 1 }
 0x13f   :  { %v4035_v51 = vpop.f32.mrb[11].mxu0  ;;  %v4144_v10 = vpop.f32.mrb[9].mxu1  ;;  %v2717_v52 = vpack.c.bf16 %v2621_v43, %v2615_v42  ;;  %v2617_v55 = vrot.slane %v2300_v40, 1 }
 0x140   :  { %v4036_v57 = vadd.f32 %v4035_v51, %v4034_v47  ;;  %v4145_v16 = vadd.f32 %v4144_v10, %v4143_v8  ;;  %v4146_v17 = vpop.f32.mrb[10].mxu1  ;;  %v2610_v47 = vrot.slane %v2294_v34, 1  ;;  %v2611_v48 = vrot.slane %v2296_v35, 1 }
 0x141   :  { %2022 = vmatmul.mubr.bf16.gmra.mrb[116].mxu0 %v3741_v37  ;;  %v4147_v23 = vpop.f32.mrb[11].mxu1 }
 0x142   :  { %2029 = vmatprep.mubr.bf16.mxu0 %v3744_v49  ;;  %v5634_v60 = vadd.f32 %v4145_v16, %v4033_v46  ;;  %v4148_v30 = vadd.f32 %v4147_v23, %v4146_v17  ;;  %v3745_v46 = vcombine.low %v5601_v29, %v5610_v54  ;;  %v2612_v29 = vsel %vm920_vm0, %v2610_v47, %v2611_v48 }
 0x143   :  { %3016 = vmatmul.mubr.bf16.gmra.mrb[116].mxu1 %v2712_v4  ;;  %v2618_v54 = vsel %vm920_vm0, %v2616_v53, %v2617_v55 }
 0x144   :  { %v4037_v63 = vpop.f32.mrb[12].mxu0  ;;  %v5638_v37 = vadd.f32 %v4148_v30, %v4036_v57  ;;  %3023 = vmatprep.mubr.bf16.mxu1 %v2715_v13  ;;  %v2716_v7 = vpack.c.bf16 %v2618_v54, %v2612_v29 }
 0x145   :  { %v4038_v18 = vpop.f32.mrb[13].mxu0 }
 0x146   :  { %v4039_v24 = vadd.f32 %v4038_v18, %v4037_v63  ;;  %v4040_v25 = vpop.f32.mrb[14].mxu0  ;;  %v4149_v28 = vpop.f32.mrb[12].mxu1 }
 0x147   :  { %v4041_v31 = vpop.f32.mrb[15].mxu0  ;;  %v4150_v44 = vpop.f32.mrb[13].mxu1 }
 0x148   :  { %v4042_v32 = vadd.f32 %v4041_v31, %v4040_v25  ;;  %v4151_v49 = vadd.f32 %v4150_v44, %v4149_v28  ;;  %v4152_v50 = vpop.f32.mrb[14].mxu1 }
 0x149   :  { %2030 = vmatmul.mubr.bf16.gmra.mrb[120].mxu0 %v3743_v9  ;;  %v4153_v56 = vpop.f32.mrb[15].mxu1 }
 0x14a   :  { %2037 = vmatprep.mubr.bf16.mxu0 %v3746_v11  ;;  %v5647_v61 = vadd.f32 %v4151_v49, %v4039_v24  ;;  %v4154_v62 = vadd.f32 %v4153_v56, %v4152_v50 }
 0x14b   :  { %3024 = vmatmul.mubr.bf16.gmra.mrb[120].mxu1 %v2714_v45 }
 0x14c   :  { %v4043_v41 = vpop.f32.mrb[16].mxu0  ;;  %v5649_v3 = vadd.f32 %v4154_v62, %v4042_v32  ;;  %3031 = vmatprep.mubr.bf16.mxu1 %v2717_v52 }
 0x14d   :  { %v4044_v51 = vpop.f32.mrb[17].mxu0 }
 0x14e   :  { %v4045_v57 = vadd.f32 %v4044_v51, %v4043_v41  ;;  %v4046_v58 = vpop.f32.mrb[18].mxu0  ;;  %v4155_v5 = vpop.f32.mrb[16].mxu1 }
 0x14f   :  { %v4047_v1 = vpop.f32.mrb[19].mxu0  ;;  %v4156_v6 = vpop.f32.mrb[17].mxu1 }
 0x150   :  { %v4048_v2 = vadd.f32 %v4047_v1, %v4046_v58  ;;  %v4157_v4 = vadd.f32 %v4156_v6, %v4155_v5  ;;  %v4158_v9 = vpop.f32.mrb[18].mxu1 }
 0x151   :  { %2038 = vmatmul.mubr.bf16.gmra.mrb[124].mxu0 %v3745_v46  ;;  %v4159_v63 = vpop.f32.mrb[19].mxu1 }
 0x152   :  { %v5653_v15 = vadd.f32 %v4157_v4, %v4045_v57  ;;  %v4160_v11 = vadd.f32 %v4159_v63, %v4158_v9 }
 0x153   :  { %3032 = vmatmul.mubr.bf16.gmra.mrb[124].mxu1 %v2716_v7 }
 0x154   :  { %v4049_v8 = vpop.f32.mrb[20].mxu0  ;;  %v5655_v18 = vadd.f32 %v4160_v11, %v4048_v2 }
 0x155   :  { %v4050_v10 = vpop.f32.mrb[21].mxu0 }
 0x156   :  { %v4051_v13 = vadd.f32 %v4050_v10, %v4049_v8  ;;  %v4052_v14 = vpop.f32.mrb[22].mxu0  ;;  %v4161_v19 = vpop.f32.mrb[20].mxu1 }
 0x157   :  { %v4053_v16 = vpop.f32.mrb[23].mxu0  ;;  %v4162_v21 = vpop.f32.mrb[21].mxu1 }
 0x158   :  { %v4054_v17 = vadd.f32 %v4053_v16, %v4052_v14  ;;  %v4163_v23 = vadd.f32 %v4162_v21, %v4161_v19  ;;  %v4164_v24 = vpop.f32.mrb[22].mxu1 }
 0x159   :  { %v4165_v26 = vpop.f32.mrb[23].mxu1 }
 0x15a   :  { %v5657_v30 = vadd.f32 %v4163_v23, %v4051_v13  ;;  %v4166_v31 = vadd.f32 %v4165_v26, %v4164_v24 }
 0x15c   :  { %v4055_v22 = vpop.f32.mrb[24].mxu0  ;;  %v5659_v34 = vadd.f32 %v4166_v31, %v4054_v17 }
 0x15d   :  { %v4056_v25 = vpop.f32.mrb[25].mxu0 }
 0x15e   :  { %v4057_v27 = vadd.f32 %v4056_v25, %v4055_v22  ;;  %v4058_v59 = vpop.f32.mrb[26].mxu0  ;;  %v4167_v35 = vpop.f32.mrb[24].mxu1 }
 0x15f   :  { %v4059_v32 = vpop.f32.mrb[27].mxu0  ;;  %v4168_v38 = vpop.f32.mrb[25].mxu1 }
 0x160   :  { %v4060_v33 = vadd.f32 %v4059_v32, %v4058_v59  ;;  %v4169_v40 = vadd.f32 %v4168_v38, %v4167_v35  ;;  %v4170_v42 = vpop.f32.mrb[26].mxu1 }
 0x161   :  { %v4171_v28 = vpop.f32.mrb[27].mxu1 }
 0x162   :  { %v5661_v41 = vadd.f32 %v4169_v40, %v4057_v27  ;;  %v4172_v46 = vadd.f32 %v4171_v28, %v4170_v42 }
 0x164   :  { %v4061_v39 = vpop.f32.mrb[28].mxu0  ;;  %v5663_v49 = vadd.f32 %v4172_v46, %v4060_v33 }
 0x165   :  { %v4062_v43 = vpop.f32.mrb[29].mxu0 }
 0x166   :  { %v4063_v44 = vadd.f32 %v4062_v43, %v4061_v39  ;;  %v4064_v45 = vpop.f32.mrb[30].mxu0  ;;  %v4173_v50 = vpop.f32.mrb[28].mxu1 }
 0x167   :  { %v4065_v47 = vpop.f32.mrb[31].mxu0  ;;  %v4174_v51 = vpop.f32.mrb[29].mxu1 }
 0x168   :  { %v4066_v48 = vadd.f32 %v4065_v47, %v4064_v45  ;;  %v4175_v53 = vadd.f32 %v4174_v51, %v4173_v50  ;;  %v4176_v55 = vpop.f32.mrb[30].mxu1 }
 0x169   :  { %v4177_v57 = vpop.f32.mrb[31].mxu1 }
 0x16a   :  { %v5665_v1 = vadd.f32 %v4175_v53, %v4063_v44  ;;  %v4178_v2 = vadd.f32 %v4177_v57, %v4176_v55 }
 0x16c   :  { %v4067_v52 = vpop.f32.mrb[32].mxu0  ;;  %v5667_v5 = vadd.f32 %v4178_v2, %v4066_v48 }
 0x16d   :  { %v4068_v56 = vpop.f32.mrb[33].mxu0 }
 0x16e   :  { %v4069_v58 = vadd.f32 %v4068_v56, %v4067_v52  ;;  %v4070_v62 = vpop.f32.mrb[34].mxu0  ;;  %v4179_v6 = vpop.f32.mrb[32].mxu1 }
 0x16f   :  { %v4071_v29 = vpop.f32.mrb[35].mxu0  ;;  %v4180_v7 = vpop.f32.mrb[33].mxu1 }
 0x170   :  { %v4072_v54 = vadd.f32 %v4071_v29, %v4070_v62  ;;  %v4181_v4 = vadd.f32 %v4180_v7, %v4179_v6  ;;  %v4182_v9 = vpop.f32.mrb[34].mxu1 }
 0x171   :  { %v4183_v63 = vpop.f32.mrb[35].mxu1 }
 0x172   :  { %v5669_v11 = vadd.f32 %v4181_v4, %v4069_v58  ;;  %v4184_v16 = vadd.f32 %v4183_v63, %v4182_v9 }
 0x174   :  { %v4073_v8 = vpop.f32.mrb[36].mxu0  ;;  %v5671_v21 = vadd.f32 %v4184_v16, %v4072_v54 }
 0x175   :  { %v4074_v10 = vpop.f32.mrb[37].mxu0 }
 0x176   :  { %v4075_v13 = vadd.f32 %v4074_v10, %v4073_v8  ;;  %v4076_v14 = vpop.f32.mrb[38].mxu0  ;;  %v4185_v22 = vpop.f32.mrb[36].mxu1 }
 0x177   :  { %v4077_v17 = vpop.f32.mrb[39].mxu0  ;;  %v4186_v23 = vpop.f32.mrb[37].mxu1 }
 0x178   :  { %v4078_v19 = vadd.f32 %v4077_v17, %v4076_v14  ;;  %v4187_v25 = vadd.f32 %v4186_v23, %v4185_v22  ;;  %v4188_v26 = vpop.f32.mrb[38].mxu1 }
 0x179   :  { %v4189_v59 = vpop.f32.mrb[39].mxu1 }
 0x17a   :  { %v5673_v33 = vadd.f32 %v4187_v25, %v4075_v13  ;;  %v4190_v35 = vadd.f32 %v4189_v59, %v4188_v26 }
 0x17c   :  { %v4079_v24 = vpop.f32.mrb[40].mxu0  ;;  %v5675_v40 = vadd.f32 %v4190_v35, %v4078_v19 }
 0x17d   :  { %v4080_v27 = vpop.f32.mrb[41].mxu0 }
 0x17e   :  { %v4081_v31 = vadd.f32 %v4080_v27, %v4079_v24  ;;  %v4082_v32 = vpop.f32.mrb[42].mxu0  ;;  %v4191_v42 = vpop.f32.mrb[40].mxu1 }
 0x17f   :  { %v4083_v38 = vpop.f32.mrb[43].mxu0  ;;  %v4192_v43 = vpop.f32.mrb[41].mxu1 }
 0x180   :  { %v4084_v39 = vadd.f32 %v4083_v38, %v4082_v32  ;;  %v4193_v44 = vadd.f32 %v4192_v43, %v4191_v42  ;;  %v4194_v45 = vpop.f32.mrb[42].mxu1 }
 0x181   :  { %v4195_v47 = vpop.f32.mrb[43].mxu1 }
 0x182   :  { %v5677_v51 = vadd.f32 %v4193_v44, %v4081_v31  ;;  %v4196_v52 = vadd.f32 %v4195_v47, %v4194_v45 }
 0x184   :  { %v4085_v28 = vpop.f32.mrb[44].mxu0  ;;  %v5679_v56 = vadd.f32 %v4196_v52, %v4084_v39 }
 0x185   :  { %v4086_v46 = vpop.f32.mrb[45].mxu0 }
 0x186   :  { %v4087_v48 = vadd.f32 %v4086_v46, %v4085_v28  ;;  %v4088_v50 = vpop.f32.mrb[46].mxu0  ;;  %v4197_v57 = vpop.f32.mrb[44].mxu1 }
 0x187   :  { %v4089_v53 = vpop.f32.mrb[47].mxu0  ;;  %v4198_v58 = vpop.f32.mrb[45].mxu1 }
 0x188   :  { %v4090_v55 = vadd.f32 %v4089_v53, %v4088_v50  ;;  %v4199_v2 = vadd.f32 %v4198_v58, %v4197_v57  ;;  %v4200_v29 = vpop.f32.mrb[46].mxu1 }
 0x189   :  { %v4201_v6 = vpop.f32.mrb[47].mxu1 }
 0x18a   :  { %v5681_v4 = vadd.f32 %v4199_v2, %v4087_v48  ;;  %v4202_v9 = vadd.f32 %v4201_v6, %v4200_v29 }
 0x18c   :  { %v4091_v62 = vpop.f32.mrb[48].mxu0  ;;  %v5683_v13 = vadd.f32 %v4202_v9, %v4090_v55 }
 0x18d   :  { %v4092_v54 = vpop.f32.mrb[49].mxu0 }
 0x18e   :  { %v4093_v7 = vadd.f32 %v4092_v54, %v4091_v62  ;;  %v4094_v8 = vpop.f32.mrb[50].mxu0  ;;  %v4203_v14 = vpop.f32.mrb[48].mxu1 }
 0x18f   :  { %v4095_v10 = vpop.f32.mrb[51].mxu0  ;;  %v4204_v16 = vpop.f32.mrb[49].mxu1 }
 0x190   :  { %v4096_v63 = vadd.f32 %v4095_v10, %v4094_v8  ;;  %v4205_v19 = vadd.f32 %v4204_v16, %v4203_v14  ;;  %v4206_v22 = vpop.f32.mrb[50].mxu1 }
 0x191   :  { %v4207_v24 = vpop.f32.mrb[51].mxu1 }
 0x192   :  { %v5685_v27 = vadd.f32 %v4205_v19, %v4093_v7  ;;  %v4208_v59 = vadd.f32 %v4207_v24, %v4206_v22 }
 0x194   :  { %v4097_v17 = vpop.f32.mrb[52].mxu0  ;;  %v5687_v35 = vadd.f32 %v4208_v59, %v4096_v63 }
 0x195   :  { %v4098_v23 = vpop.f32.mrb[53].mxu0 }
 0x196   :  { %v4099_v25 = vadd.f32 %v4098_v23, %v4097_v17  ;;  %v4100_v26 = vpop.f32.mrb[54].mxu0  ;;  %v4209_v38 = vpop.f32.mrb[52].mxu1 }
 0x197   :  { %v4101_v31 = vpop.f32.mrb[55].mxu0  ;;  %v4210_v39 = vpop.f32.mrb[53].mxu1 }
 0x198   :  { %v4102_v32 = vadd.f32 %v4101_v31, %v4100_v26  ;;  %v4211_v43 = vadd.f32 %v4210_v39, %v4209_v38  ;;  %v4212_v28 = vpop.f32.mrb[54].mxu1 }
 0x199   :  { %v4213_v45 = vpop.f32.mrb[55].mxu1 }
 0x19a   :  { %v5689_v48 = vadd.f32 %v4211_v43, %v4099_v25  ;;  %v4214_v50 = vadd.f32 %v4213_v45, %v4212_v28 }
 0x19c   :  { %v4103_v42 = vpop.f32.mrb[56].mxu0  ;;  %v5691_v55 = vadd.f32 %v4214_v50, %v4102_v32 }
 0x19d   :  { %v4104_v44 = vpop.f32.mrb[57].mxu0 }
 0x19e   :  { %v4105_v46 = vadd.f32 %v4104_v44, %v4103_v42  ;;  %v4106_v47 = vpop.f32.mrb[58].mxu0  ;;  %v4215_v57 = vpop.f32.mrb[56].mxu1 }
 0x19f   :  { %v4107_v52 = vpop.f32.mrb[59].mxu0  ;;  %v4216_v58 = vpop.f32.mrb[57].mxu1 }
 0x1a0   :  { %v4108_v53 = vadd.f32 %v4107_v52, %v4106_v47  ;;  %v4217_v2 = vadd.f32 %v4216_v58, %v4215_v57  ;;  %v4218_v29 = vpop.f32.mrb[58].mxu1 }
 0x1a1   :  { %v4219_v6 = vpop.f32.mrb[59].mxu1 }
 0x1a2   :  { %v5693_v9 = vadd.f32 %v4217_v2, %v4105_v46  ;;  %v4220_v10 = vadd.f32 %v4219_v6, %v4218_v29 }
 0x1a4   :  { %v4109_v62 = vpop.f32.mrb[60].mxu0  ;;  %v5695_v16 = vadd.f32 %v4220_v10, %v4108_v53 }
 0x1a5   :  { %v4110_v54 = vpop.f32.mrb[61].mxu0 }
 0x1a6   :  { %v4111_v7 = vadd.f32 %v4110_v54, %v4109_v62  ;;  %v4112_v8 = vpop.f32.mrb[62].mxu0  ;;  %v4221_v17 = vpop.f32.mrb[60].mxu1 }
 0x1a7   :  { %v4113_v63 = vpop.f32.mrb[63].mxu0  ;;  %v4222_v19 = vpop.f32.mrb[61].mxu1 }
 0x1a8   :  { %v4114_v14 = vadd.f32 %v4113_v63, %v4112_v8  ;;  %v4223_v23 = vadd.f32 %v4222_v19, %v4221_v17  ;;  %v4224_v24 = vpop.f32.mrb[62].mxu1 }
 0x1a9   :  { %v4225_v26 = vpop.f32.mrb[63].mxu1 }
 0x1aa   :  { %v5697_v32 = vadd.f32 %v4223_v23, %v4111_v7  ;;  %v4226_v38 = vadd.f32 %v4225_v26, %v4224_v24 }
 0x1ac   :  { %v4243_v22 = vpop.f32.mrb[64].mxu0  ;;  %v5700_v28 = vadd.f32 %v4226_v38, %v4114_v14 }
 0x1ad   :  { %v4244_v25 = vpop.f32.mrb[65].mxu0 }
 0x1ae   :  { %v4245_v59 = vadd.f32 %v4244_v25, %v4243_v22  ;;  %v4246_v31 = vpop.f32.mrb[66].mxu0  ;;  %v4355_v45 = vpop.f32.mrb[64].mxu1 }
 0x1af   :  { %v4247_v39 = vpop.f32.mrb[67].mxu0  ;;  %v4356_v46 = vpop.f32.mrb[65].mxu1 }
 0x1b0   :  { %v2046_v42 = vadd.f32 %v4245_v59, %v5579_v12  ;;  %v4248_v43 = vadd.f32 %v4247_v39, %v4246_v31  ;;  %v4357_v50 = vadd.f32 %v4356_v46, %v4355_v45  ;;  %v4358_v52 = vpop.f32.mrb[66].mxu1 }
 0x1b1   :  { %v4359_v57 = vpop.f32.mrb[67].mxu1 }
 0x1b2   :  { %v2047_v44 = vadd.f32 %v4248_v43, %v5586_v20  ;;  %v5703_v2 = vadd.f32 %v4357_v50, %v2046_v42  ;;  %v4360_v29 = vadd.f32 %v4359_v57, %v4358_v52 }
 0x1b4   :  { %v4249_v47 = vpop.f32.mrb[68].mxu0  ;;  %v5706_v7 = vadd.f32 %v4360_v29, %v2047_v44 }
 0x1b5   :  { %v4250_v53 = vpop.f32.mrb[69].mxu0 }
 0x1b6   :  { %v4251_v58 = vadd.f32 %v4250_v53, %v4249_v47  ;;  %v4252_v62 = vpop.f32.mrb[70].mxu0  ;;  %v4361_v8 = vpop.f32.mrb[68].mxu1 }
 0x1b7   :  { %v4253_v54 = vpop.f32.mrb[71].mxu0  ;;  %v4362_v10 = vpop.f32.mrb[69].mxu1 }
 0x1b8   :  { %v2048_v12 = vadd.f32 %v4251_v58, %v5603_v36  ;;  %v4254_v6 = vadd.f32 %v4253_v54, %v4252_v62  ;;  %v4363_v14 = vadd.f32 %v4362_v10, %v4361_v8  ;;  %v4364_v17 = vpop.f32.mrb[70].mxu1 }
 0x1b9   :  { %v4365_v22 = vpop.f32.mrb[71].mxu1 }
 0x1ba   :  { %v2049_v20 = vadd.f32 %v4254_v6, %v5623_v0  ;;  %v5709_v25 = vadd.f32 %v4363_v14, %v2048_v12  ;;  %v4366_v26 = vadd.f32 %v4365_v22, %v4364_v17 }
 0x1bc   :  { %v4255_v63 = vpop.f32.mrb[72].mxu0  ;;  %v5712_v38 = vadd.f32 %v4366_v26, %v2049_v20  ;;  %v3136_v26 = vadd.f32 %v5706_v7, %v5703_v2 }
 0x1bd   :  { %v4256_v19 = vpop.f32.mrb[73].mxu0 }
 0x1be   :  { %v4257_v23 = vadd.f32 %v4256_v19, %v4255_v63  ;;  %v4258_v24 = vpop.f32.mrb[74].mxu0  ;;  %v4367_v39 = vpop.f32.mrb[72].mxu1 }
 0x1bf   :  { %v4259_v59 = vpop.f32.mrb[75].mxu0  ;;  %v4368_v42 = vpop.f32.mrb[73].mxu1 }
 0x1c0   :  { %v2050_v36 = vadd.f32 %v4257_v23, %v5634_v60  ;;  %v4260_v31 = vadd.f32 %v4259_v59, %v4258_v24  ;;  %v4369_v44 = vadd.f32 %v4368_v42, %v4367_v39  ;;  %v4370_v45 = vpop.f32.mrb[74].mxu1 }
 0x1c1   :  { %v4371_v47 = vpop.f32.mrb[75].mxu1 }
 0x1c2   :  { %v2051_v0 = vadd.f32 %v4260_v31, %v5638_v37  ;;  %v5715_v53 = vadd.f32 %v4369_v44, %v2050_v36  ;;  %v4372_v57 = vadd.f32 %v4371_v47, %v4370_v45  ;;  %v3137_v36 = vadd.f32 %v3136_v26, %v5709_v25 }
 0x1c4   :  { %v4261_v43 = vpop.f32.mrb[76].mxu0  ;;  %v5718_v29 = vadd.f32 %v4372_v57, %v2051_v0 }
 0x1c5   :  { %v4262_v46 = vpop.f32.mrb[77].mxu0 }
 0x1c6   :  { %v4263_v50 = vadd.f32 %v4262_v46, %v4261_v43  ;;  %v4264_v52 = vpop.f32.mrb[78].mxu0  ;;  %v4373_v54 = vpop.f32.mrb[76].mxu1 }
 0x1c7   :  { %v4265_v58 = vpop.f32.mrb[79].mxu0  ;;  %v4374_v12 = vpop.f32.mrb[77].mxu1 }
 0x1c8   :  { %v2052_v60 = vadd.f32 %v4263_v50, %v5647_v61  ;;  %v4266_v62 = vadd.f32 %v4265_v58, %v4264_v52  ;;  %v4375_v20 = vadd.f32 %v4374_v12, %v4373_v54  ;;  %v4376_v8 = vpop.f32.mrb[78].mxu1 }
 0x1c9   :  { %v4377_v63 = vpop.f32.mrb[79].mxu1 }
 0x1ca   :  { %v2053_v37 = vadd.f32 %v4266_v62, %v5649_v3  ;;  %v5721_v19 = vadd.f32 %v4375_v20, %v2052_v60  ;;  %v4378_v22 = vadd.f32 %v4377_v63, %v4376_v8 }
 0x1cc   :  { %v4267_v6 = vpop.f32.mrb[80].mxu0  ;;  %v5726_v3 = vadd.f32 %v4378_v22, %v2053_v37 }
 0x1cd   :  { %v4268_v10 = vpop.f32.mrb[81].mxu0 }
 0x1ce   :  { %v4269_v14 = vadd.f32 %v4268_v10, %v4267_v6  ;;  %v4270_v17 = vpop.f32.mrb[82].mxu0  ;;  %v4379_v31 = vpop.f32.mrb[80].mxu1 }
 0x1cf   :  { %v4271_v23 = vpop.f32.mrb[83].mxu0  ;;  %v4380_v0 = vpop.f32.mrb[81].mxu1 }
 0x1d0   :  { %v2054_v61 = vadd.f32 %v4269_v14, %v5653_v15  ;;  %v4272_v24 = vadd.f32 %v4271_v23, %v4270_v17  ;;  %v4381_v42 = vadd.f32 %v4380_v0, %v4379_v31  ;;  %v4382_v43 = vpop.f32.mrb[82].mxu1  ;;  %v3138_v15 = vadd.f32 %v3137_v36, %v5712_v38 }
 0x1d1   :  { %v4383_v45 = vpop.f32.mrb[83].mxu1 }
 0x1d2   :  { %v2055_v59 = vadd.f32 %v4272_v24, %v5655_v18  ;;  %v5731_v50 = vadd.f32 %v4381_v42, %v2054_v61  ;;  %v4384_v52 = vadd.f32 %v4383_v45, %v4382_v43  ;;  %v3139_v60 = vadd.f32 %v3138_v15, %v5715_v53 }
 0x1d4   :  { %v4273_v39 = vpop.f32.mrb[84].mxu0  ;;  %v5735_v62 = vadd.f32 %v4384_v52, %v2055_v59  ;;  %v3140_v20 = vadd.f32 %v3139_v60, %v5718_v29 }
 0x1d5   :  { %v4274_v44 = vpop.f32.mrb[85].mxu0 }
 0x1d6   :  { %v4275_v46 = vadd.f32 %v4274_v44, %v4273_v39  ;;  %v4276_v47 = vpop.f32.mrb[86].mxu0  ;;  %v4385_v54 = vpop.f32.mrb[84].mxu1 }
 0x1d7   :  { %v4277_v57 = vpop.f32.mrb[87].mxu0  ;;  %v4386_v12 = vpop.f32.mrb[85].mxu1 }
 0x1d8   :  { %v2056_v58 = vadd.f32 %v4275_v46, %v5657_v30  ;;  %v4278_v18 = vadd.f32 %v4277_v57, %v4276_v47  ;;  %v4387_v8 = vadd.f32 %v4386_v12, %v4385_v54  ;;  %v4388_v10 = vpop.f32.mrb[86].mxu1  ;;  %v3141_v30 = vadd.f32 %v3140_v20, %v5721_v19 }
 0x1d9   :  { %v4389_v14 = vpop.f32.mrb[87].mxu1 }
 0x1da   :  { %v2057_v37 = vadd.f32 %v4278_v18, %v5659_v34  ;;  %v5740_v23 = vadd.f32 %v4387_v8, %v2056_v58  ;;  %v4390_v61 = vadd.f32 %v4389_v14, %v4388_v10  ;;  %v3142_v31 = vadd.f32 %v3141_v30, %v5726_v3 }
 0x1dc   :  { %v4279_v6 = vpop.f32.mrb[88].mxu0  ;;  %v5743_v59 = vadd.f32 %v4390_v61, %v2057_v37  ;;  %v3143_v43 = vadd.f32 %v3142_v31, %v5731_v50 }
 0x1dd   :  { %v4280_v63 = vpop.f32.mrb[89].mxu0 }
 0x1de   :  { %v4281_v17 = vadd.f32 %v4280_v63, %v4279_v6  ;;  %v4282_v22 = vpop.f32.mrb[90].mxu0  ;;  %v4391_v0 = vpop.f32.mrb[88].mxu1  ;;  %v3144_v60 = vadd.f32 %v3143_v43, %v5735_v62 }
 0x1df   :  { %v4283_v24 = vpop.f32.mrb[91].mxu0  ;;  %v4392_v39 = vpop.f32.mrb[89].mxu1 }
 0x1e0   :  { %v2058_v26 = vadd.f32 %v4281_v17, %v5661_v41  ;;  %v4284_v34 = vadd.f32 %v4283_v24, %v4282_v22  ;;  %v4393_v44 = vadd.f32 %v4392_v39, %v4391_v0  ;;  %v4394_v45 = vpop.f32.mrb[90].mxu1  ;;  %v3145_v12 = vadd.f32 %v3144_v60, %v5740_v23 }
 0x1e1   :  { %v4395_v47 = vpop.f32.mrb[91].mxu1 }
 0x1e2   :  { %v2059_v36 = vadd.f32 %v4284_v34, %v5663_v49  ;;  %v5748_v57 = vadd.f32 %v4393_v44, %v2058_v26  ;;  %v4396_v41 = vadd.f32 %v4395_v47, %v4394_v45 }
 0x1e4   :  { %v4285_v42 = vpop.f32.mrb[92].mxu0  ;;  %v5752_v37 = vadd.f32 %v4396_v41, %v2059_v36 }
 0x1e5   :  { %v4286_v46 = vpop.f32.mrb[93].mxu0 }
 0x1e6   :  { %v4287_v15 = vadd.f32 %v4286_v46, %v4285_v42  ;;  %v4288_v52 = vpop.f32.mrb[94].mxu0  ;;  %v4397_v6 = vpop.f32.mrb[92].mxu1 }
 0x1e7   :  { %v4289_v58 = vpop.f32.mrb[95].mxu0  ;;  %v4398_v20 = vpop.f32.mrb[93].mxu1 }
 0x1e8   :  { %v2060_v18 = vadd.f32 %v4287_v15, %v5665_v1  ;;  %v4290_v49 = vadd.f32 %v4289_v58, %v4288_v52  ;;  %v4399_v10 = vadd.f32 %v4398_v20, %v4397_v6  ;;  %v4400_v63 = vpop.f32.mrb[94].mxu1  ;;  %v3146_v1 = vadd.f32 %v3145_v12, %v5743_v59 }
 0x1e9   :  { %v4401_v17 = vpop.f32.mrb[95].mxu1 }
 0x1ea   :  { %v2061_v54 = vadd.f32 %v4290_v49, %v5667_v5  ;;  %v5757_v61 = vadd.f32 %v4399_v10, %v2060_v18  ;;  %v4402_v24 = vadd.f32 %v4401_v17, %v4400_v63  ;;  %v3147_v36 = vadd.f32 %v3146_v1, %v5748_v57 }
 0x1ec   :  { %v4291_v8 = vpop.f32.mrb[96].mxu0  ;;  %v5761_v31 = vadd.f32 %v4402_v24, %v2061_v54  ;;  %v3148_v44 = vadd.f32 %v3147_v36, %v5752_v37 }
 0x1ed   :  { %v4292_v14 = vpop.f32.mrb[97].mxu0 }
 0x1ee   :  { %v4293_v22 = vadd.f32 %v4292_v14, %v4291_v8  ;;  %v4294_v30 = vpop.f32.mrb[98].mxu0  ;;  %v4403_v39 = vpop.f32.mrb[96].mxu1 }
 0x1ef   :  { %v4295_v26 = vpop.f32.mrb[99].mxu0  ;;  %v4404_v42 = vpop.f32.mrb[97].mxu1 }
 0x1f0   :  { %v2062_v34 = vadd.f32 %v4293_v22, %v5669_v11  ;;  %v4296_v5 = vadd.f32 %v4295_v26, %v4294_v30  ;;  %v4405_v45 = vadd.f32 %v4404_v42, %v4403_v39  ;;  %v4406_v46 = vpop.f32.mrb[98].mxu1  ;;  %v3149_v11 = vadd.f32 %v3148_v44, %v5757_v61 }
 0x1f1   :  { %v4407_v15 = vpop.f32.mrb[99].mxu1 }
 0x1f2   :  { %v2063_v0 = vadd.f32 %v4296_v5, %v5671_v21  ;;  %v5766_v58 = vadd.f32 %v4405_v45, %v2062_v34  ;;  %v4408_v18 = vadd.f32 %v4407_v15, %v4406_v46  ;;  %v3150_v6 = vadd.f32 %v3149_v11, %v5761_v31 }
 0x1f4   :  { %v4297_v43 = vpop.f32.mrb[100].mxu0  ;;  %v5769_v54 = vadd.f32 %v4408_v18, %v2063_v0  ;;  %v3151_v63 = vadd.f32 %v3150_v6, %v5766_v58 }
 0x1f5   :  { %v4298_v47 = vpop.f32.mrb[101].mxu0 }
 0x1f6   :  { %v4299_v52 = vadd.f32 %v4298_v47, %v4297_v43  ;;  %v4300_v41 = vpop.f32.mrb[102].mxu0  ;;  %v4409_v20 = vpop.f32.mrb[100].mxu1  ;;  %v3152_v36 = vadd.f32 %v3151_v63, %v5769_v54 }
 0x1f7   :  { %v4301_v49 = vpop.f32.mrb[103].mxu0  ;;  %v4410_v8 = vpop.f32.mrb[101].mxu1 }
 0x1f8   :  { %v2064_v60 = vadd.f32 %v4299_v52, %v5673_v33  ;;  %v4302_v21 = vadd.f32 %v4301_v49, %v4300_v41  ;;  %v4411_v14 = vadd.f32 %v4410_v8, %v4409_v20  ;;  %v4412_v17 = vpop.f32.mrb[102].mxu1 }
 0x1f9   :  { %v4413_v30 = vpop.f32.mrb[103].mxu1 }
 0x1fa   :  { %v2065_v12 = vadd.f32 %v4302_v21, %v5675_v40  ;;  %v5774_v26 = vadd.f32 %v4411_v14, %v2064_v60  ;;  %v4414_v33 = vadd.f32 %v4413_v30, %v4412_v17 }
 0x1fc   :  { %v4303_v10 = vpop.f32.mrb[104].mxu0  ;;  %v5778_v0 = vadd.f32 %v4414_v33, %v2065_v12  ;;  %v3153_v42 = vadd.f32 %v3152_v36, %v5774_v26 }
 0x1fd   :  { %v4304_v22 = vpop.f32.mrb[105].mxu0 }
 0x1fe   :  { %v4305_v1 = vadd.f32 %v4304_v22, %v4303_v10  ;;  %v4306_v24 = vpop.f32.mrb[106].mxu0  ;;  %v4415_v43 = vpop.f32.mrb[104].mxu1 }
 0x1ff   :  { %v4307_v34 = vpop.f32.mrb[107].mxu0  ;;  %v4416_v44 = vpop.f32.mrb[105].mxu1 }
 0x200   :  { %v2066_v5 = vadd.f32 %v4305_v1, %v5677_v51  ;;  %v4308_v40 = vadd.f32 %v4307_v34, %v4306_v24  ;;  %v4417_v46 = vadd.f32 %v4416_v44, %v4415_v43  ;;  %v4418_v47 = vpop.f32.mrb[106].mxu1  ;;  %v3154_v51 = vadd.f32 %v3153_v42, %v5778_v0 }
 0x201   :  { %v4419_v52 = vpop.f32.mrb[107].mxu1 }
 0x202   :  { %v2067_v39 = vadd.f32 %v4308_v40, %v5679_v56  ;;  %v5783_v18 = vadd.f32 %v4417_v46, %v2066_v5  ;;  %v4420_v49 = vadd.f32 %v4419_v52, %v4418_v47 }
 0x204   :  { %v4309_v45 = vpop.f32.mrb[108].mxu0  ;;  %v3155_v12 = vadd.f32 %v3154_v51, %v5783_v18  ;;  %v5787_v6 = vadd.f32 %v4420_v49, %v2067_v39 }
 0x205   :  { %v4310_v15 = vpop.f32.mrb[109].mxu0 }
 0x206   :  { %v4311_v41 = vadd.f32 %v4310_v15, %v4309_v45  ;;  %v4312_v11 = vpop.f32.mrb[110].mxu0  ;;  %v3156_v8 = vadd.f32 %v3155_v12, %v5787_v6  ;;  %v4421_v10 = vpop.f32.mrb[108].mxu1 }
 0x207   :  { %v4313_v60 = vpop.f32.mrb[111].mxu0  ;;  %v4422_v63 = vpop.f32.mrb[109].mxu1 }
 0x208   :  { %v2068_v21 = vadd.f32 %v4311_v41, %v5681_v4  ;;  %v4314_v56 = vadd.f32 %v4313_v60, %v4312_v11  ;;  %v4423_v17 = vadd.f32 %v4422_v63, %v4421_v10  ;;  %v4424_v22 = vpop.f32.mrb[110].mxu1 }
 0x209   :  { %v4425_v1 = vpop.f32.mrb[111].mxu1 }
 0x20a   :  { %v2069_v20 = vadd.f32 %v4314_v56, %v5683_v13  ;;  %v5791_v34 = vadd.f32 %v4423_v17, %v2068_v21  ;;  %v4426_v4 = vadd.f32 %v4425_v1, %v4424_v22 }
 0x20c   :  { %v4315_v14 = vpop.f32.mrb[112].mxu0  ;;  %v3157_v13 = vadd.f32 %v3156_v8, %v5791_v34  ;;  %v5795_v39 = vadd.f32 %v4426_v4, %v2069_v20 }
 0x20d   :  { %v4316_v30 = vpop.f32.mrb[113].mxu0 }
 0x20e   :  { %v4317_v24 = vadd.f32 %v4316_v30, %v4315_v14  ;;  %v4318_v33 = vpop.f32.mrb[114].mxu0  ;;  %v3158_v43 = vadd.f32 %v3157_v13, %v5795_v39  ;;  %v4427_v44 = vpop.f32.mrb[112].mxu1 }
 0x20f   :  { %v4319_v5 = vpop.f32.mrb[115].mxu0  ;;  %v4428_v45 = vpop.f32.mrb[113].mxu1 }
 0x210   :  { %v2070_v40 = vadd.f32 %v4317_v24, %v5685_v27  ;;  %v4320_v36 = vadd.f32 %v4319_v5, %v4318_v33  ;;  %v4429_v47 = vadd.f32 %v4428_v45, %v4427_v44  ;;  %v4430_v15 = vpop.f32.mrb[114].mxu1 }
 0x211   :  { %v4431_v41 = vpop.f32.mrb[115].mxu1 }
 0x212   :  { %v2071_v42 = vadd.f32 %v4320_v36, %v5687_v35  ;;  %v5799_v49 = vadd.f32 %v4429_v47, %v2070_v40  ;;  %v4432_v27 = vadd.f32 %v4431_v41, %v4430_v15 }
 0x214   :  { %v4321_v46 = vpop.f32.mrb[116].mxu0  ;;  %v3159_v35 = vadd.f32 %v3158_v43, %v5799_v49  ;;  %v3065_v12 = vadd.f32 %v4432_v27, %v2071_v42 }
 0x215   :  { %v4322_v52 = vpop.f32.mrb[117].mxu0 }
 0x216   :  { %v4323_v11 = vadd.f32 %v4322_v52, %v4321_v46  ;;  %v4324_v51 = vpop.f32.mrb[118].mxu0  ;;  %v3160_v8 = vadd.f32 %v3159_v35, %v3065_v12  ;;  %v4433_v10 = vpop.f32.mrb[116].mxu1 }
 0x217   :  { %v4325_v60 = vpop.f32.mrb[119].mxu0  ;;  %v4434_v63 = vpop.f32.mrb[117].mxu1 }
 0x218   :  { %v2072_v21 = vadd.f32 %v4323_v11, %v5689_v48  ;;  %v4326_v56 = vadd.f32 %v4325_v60, %v4324_v51  ;;  %v4435_v17 = vadd.f32 %v4434_v63, %v4433_v10  ;;  %v4436_v22 = vpop.f32.mrb[118].mxu1 }
 0x219   :  { %v4437_v1 = vpop.f32.mrb[119].mxu1 }
 0x21a   :  { %v2073_v20 = vadd.f32 %v4326_v56, %v5691_v55  ;;  %v3066_v4 = vadd.f32 %v4435_v17, %v2072_v21  ;;  %v4438_v5 = vadd.f32 %v4437_v1, %v4436_v22 }
 0x21c   :  { %v4327_v14 = vpop.f32.mrb[120].mxu0  ;;  %v3161_v13 = vadd.f32 %v3160_v8, %v3066_v4  ;;  %v3067_v42 = vadd.f32 %v4438_v5, %v2073_v20 }
 0x21d   :  { %v4328_v30 = vpop.f32.mrb[121].mxu0 }
 0x21e   :  { %v4329_v24 = vadd.f32 %v4328_v30, %v4327_v14  ;;  %v4330_v33 = vpop.f32.mrb[122].mxu0  ;;  %v3162_v43 = vadd.f32 %v3161_v13, %v3067_v42  ;;  %v4439_v44 = vpop.f32.mrb[120].mxu1 }
 0x21f   :  { %v4331_v40 = vpop.f32.mrb[123].mxu0  ;;  %v4440_v45 = vpop.f32.mrb[121].mxu1 }
 0x220   :  { %v2074_v48 = vadd.f32 %v4329_v24, %v5693_v9  ;;  %v4332_v36 = vadd.f32 %v4331_v40, %v4330_v33  ;;  %v4441_v47 = vadd.f32 %v4440_v45, %v4439_v44  ;;  %v4442_v15 = vpop.f32.mrb[122].mxu1 }
 0x221   :  { %v4443_v41 = vpop.f32.mrb[123].mxu1 }
 0x222   :  { %v2075_v55 = vadd.f32 %v4332_v36, %v5695_v16  ;;  %v3068_v27 = vadd.f32 %v4441_v47, %v2074_v48  ;;  %v4444_v60 = vadd.f32 %v4443_v41, %v4442_v15 }
 0x224   :  { %v4333_v46 = vpop.f32.mrb[124].mxu0  ;;  %v3163_v35 = vadd.f32 %v3162_v43, %v3068_v27  ;;  %v3069_v20 = vadd.f32 %v4444_v60, %v2075_v55 }
 0x225   :  { %v4334_v52 = vpop.f32.mrb[125].mxu0 }
 0x226   :  { %v4335_v11 = vadd.f32 %v4334_v52, %v4333_v46  ;;  %v4336_v51 = vpop.f32.mrb[126].mxu0  ;;  %v3164_v8 = vadd.f32 %v3163_v35, %v3069_v20  ;;  %v4445_v10 = vpop.f32.mrb[124].mxu1 }
 0x227   :  { %v4337_v21 = vpop.f32.mrb[127].mxu0  ;;  %v4446_v63 = vpop.f32.mrb[125].mxu1 }
 0x228   :  { %v2076_v9 = vadd.f32 %v4335_v11, %v5697_v32  ;;  %v4338_v56 = vadd.f32 %v4337_v21, %v4336_v51  ;;  %v4447_v14 = vadd.f32 %v4446_v63, %v4445_v10  ;;  %v4448_v17 = vpop.f32.mrb[126].mxu1 }
 0x229   :  { %v4449_v22 = vpop.f32.mrb[127].mxu1 }
 0x22a   :  { %v2077_v16 = vadd.f32 %v4338_v56, %v5700_v28  ;;  %v3070_v30 = vadd.f32 %v4447_v14, %v2076_v9  ;;  %v4450_v1 = vadd.f32 %v4449_v22, %v4448_v17 }
 0x22c   :  { %v3165_v24 = vadd.f32 %v3164_v8, %v3070_v30  ;;  %v3071_v33 = vadd.f32 %v4450_v1, %v2077_v16 }
 0x22e   :  { %v3166_v5 = vadd.f32 %v3165_v24, %v3071_v33 }
 0x230   :  { %v3167_v40 = vrot.slane %v3166_v5, 4 }
 0x232   :  { %v3168_v48 = vadd.f32 %v3167_v40, %v3166_v5 }
 0x234   :  { %v3169_v36 = vrot.slane %v3168_v48, 2 }
 0x236   :  { %v3170_v32 = vadd.f32 %v3169_v36, %v3168_v48 }
 0x238   :  { %v3171_v13 = vrot.slane %v3170_v32, 1 }
 0x23a   :  { %v3172_v43 = vadd.f32 %v3171_v13, %v3170_v32 }
 0x23c   :  { %v5808_v55 = vmul.f32 0.00390625, %v3172_v43 }
 0x23e   :  { %v5812_v28 = vsub.f32 %v5783_v18, %v5808_v55  ;;  %v5816_v44 = vsub.f32 %v5787_v6, %v5808_v55  ;;  %v5820_v45 = vsub.f32 %v5791_v34, %v5808_v55  ;;  %v5824_v46 = vsub.f32 %v5795_v39, %v5808_v55 }
 0x23f   :  { %v5828_v47 = vsub.f32 %v5799_v49, %v5808_v55  ;;  %v5831_v15 = vsub.f32 %v3065_v12, %v5808_v55  ;;  %v5834_v18 = vsub.f32 %v3066_v4, %v5808_v55  ;;  %v5837_v6 = vsub.f32 %v3067_v42, %v5808_v55 }
 0x240   :  { %v5840_v34 = vsub.f32 %v3068_v27, %v5808_v55  ;;  %v5843_v52 = vsub.f32 %v3069_v20, %v5808_v55  ;;  %v5846_v39 = vsub.f32 %v3070_v30, %v5808_v55  ;;  %v5849_v49 = vsub.f32 %v3071_v33, %v5808_v55 }
 0x241   :  { %v5853_v12 = vsub.f32 %v5703_v2, %v5808_v55  ;;  %v5857_v4 = vsub.f32 %v5706_v7, %v5808_v55  ;;  %v5861_v42 = vsub.f32 %v5709_v25, %v5808_v55  ;;  %v5869_v51 = vsub.f32 %v5712_v38, %v5808_v55 }
 0x242   :  { %v5873_v2 = vsub.f32 %v5715_v53, %v5808_v55  ;;  %v5879_v25 = vsub.f32 %v5718_v29, %v5808_v55  ;;  %v5885_v38 = vsub.f32 %v5721_v19, %v5808_v55  ;;  %v5891_v56 = vsub.f32 %v5726_v3, %v5808_v55 }
 0x243   :  { %v3206_v41 = vmul.f32 %v5853_v12, %v5853_v12  ;;  %v3207_v11 = vmul.f32 %v5857_v4, %v5857_v4  ;;  %v3208_v7 = vmul.f32 %v5861_v42, %v5861_v42  ;;  %v3209_v60 = vmul.f32 %v5869_v51, %v5869_v51 }
 0x244   :  { %v3210_v53 = vmul.f32 %v5873_v2, %v5873_v2  ;;  %v3211_v29 = vmul.f32 %v5879_v25, %v5879_v25  ;;  %v5897_v20 = vsub.f32 %v5731_v50, %v5808_v55  ;;  %v3212_v19 = vmul.f32 %v5885_v38, %v5885_v38 }
 0x245   :  { %v3238_v27 = vadd.f32 %v3207_v11, %v3206_v41  ;;  %v5903_v8 = vsub.f32 %v5735_v62, %v5808_v55  ;;  %v3213_v3 = vmul.f32 %v5891_v56, %v5891_v56  ;;  %v5909_v63 = vsub.f32 %v5740_v23, %v5808_v55 }
 0x246   :  { %v3214_v50 = vmul.f32 %v5897_v20, %v5897_v20  ;;  %v5915_v17 = vsub.f32 %v5743_v59, %v5808_v55  ;;  %v5921_v30 = vsub.f32 %v5748_v57, %v5808_v55  ;;  %v5927_v24 = vsub.f32 %v5752_v37, %v5808_v55 }
 0x247   :  { %v3239_v21 = vadd.f32 %v3238_v27, %v3208_v7  ;;  %v3215_v62 = vmul.f32 %v5903_v8, %v5903_v8  ;;  %v3216_v23 = vmul.f32 %v5909_v63, %v5909_v63  ;;  %v5933_v5 = vsub.f32 %v5757_v61, %v5808_v55 }
 0x248   :  { %v3217_v59 = vmul.f32 %v5915_v17, %v5915_v17  ;;  %v3218_v57 = vmul.f32 %v5921_v30, %v5921_v30  ;;  %v5939_v48 = vsub.f32 %v5761_v31, %v5808_v55  ;;  %v3219_v37 = vmul.f32 %v5927_v24, %v5927_v24 }
 0x249   :  { %v3240_v9 = vadd.f32 %v3239_v21, %v3209_v60  ;;  %v5945_v32 = vsub.f32 %v5766_v58, %v5808_v55  ;;  %v3220_v61 = vmul.f32 %v5933_v5, %v5933_v5  ;;  %v5951_v43 = vsub.f32 %v5769_v54, %v5808_v55 }
 0x24a   :  { %v3221_v31 = vmul.f32 %v5939_v48, %v5939_v48  ;;  %v3192_v11 = vsub.f32 %v5774_v26, %v5808_v55  ;;  %v3193_v27 = vsub.f32 %v5778_v0, %v5808_v55  ;;  %v3227_v26 = vmul.f32 %v5816_v44, %v5816_v44 }
 0x24b   :  { %v3241_v35 = vadd.f32 %v3240_v9, %v3210_v53  ;;  %v3222_v7 = vmul.f32 %v5945_v32, %v5945_v32  ;;  %v3223_v60 = vmul.f32 %v5951_v43, %v5951_v43  ;;  %v3229_v55 = vmul.f32 %v5824_v46, %v5824_v46 }
 0x24c   :  { %v3224_v54 = vmul.f32 %v3192_v11, %v3192_v11  ;;  %v3225_v9 = vmul.f32 %v3193_v27, %v3193_v27 }
 0x24d   :  { %v3242_v16 = vadd.f32 %v3241_v35, %v3211_v29  ;;  %v3226_v35 = vmul.f32 %v5812_v28, %v5812_v28 }
 0x24f   :  { %v3243_v10 = vadd.f32 %v3242_v16, %v3212_v19 }
 0x251   :  { %v3244_v14 = vadd.f32 %v3243_v10, %v3213_v3  ;;  %v3228_v3 = vmul.f32 %v5820_v45, %v5820_v45 }
 0x253   :  { %v3245_v22 = vadd.f32 %v3244_v14, %v3214_v50  ;;  %v3230_v50 = vmul.f32 %v5828_v47, %v5828_v47 }
 0x255   :  { %v3246_v1 = vadd.f32 %v3245_v22, %v3215_v62  ;;  %v3231_v62 = vmul.f32 %v5831_v15, %v5831_v15 }
 0x257   :  { %v3247_v33 = vadd.f32 %v3246_v1, %v3216_v23  ;;  %v3232_v23 = vmul.f32 %v5834_v18, %v5834_v18 }
 0x259   :  { %v3248_v40 = vadd.f32 %v3247_v33, %v3217_v59  ;;  %v3233_v59 = vmul.f32 %v5837_v6, %v5837_v6 }
 0x25b   :  { %v3249_v36 = vadd.f32 %v3248_v40, %v3218_v57  ;;  %v3234_v57 = vmul.f32 %v5840_v34, %v5840_v34 }
 0x25d   :  { %v3250_v13 = vadd.f32 %v3249_v36, %v3219_v37  ;;  %v3235_v37 = vmul.f32 %v5843_v52, %v5843_v52 }
 0x25f   :  { %v3251_v41 = vadd.f32 %v3250_v13, %v3220_v61  ;;  %v3236_v61 = vmul.f32 %v5846_v39, %v5846_v39 }
 0x261   :  { %v3252_v58 = vadd.f32 %v3251_v41, %v3221_v31  ;;  %v3237_v31 = vmul.f32 %v5849_v49, %v5849_v49 }
 0x263   :  { %v3253_v21 = vadd.f32 %v3252_v58, %v3222_v7 }
 0x265   :  { %v3254_v53 = vadd.f32 %v3253_v21, %v3223_v60 }
 0x267   :  { %v3255_v29 = vadd.f32 %v3254_v53, %v3224_v54 }
 0x269   :  { %v3256_v19 = vadd.f32 %v3255_v29, %v3225_v9 }
 0x26b   :  { %v3257_v16 = vadd.f32 %v3256_v19, %v3226_v35  ;;  %v3281_v19 = vlaneseq }
 0x26d   :  { %v3258_v0 = vadd.f32 %v3257_v16, %v3227_v26  ;;  %v3282_v26 = vshrl.u32 %v3281_v19, 7  ;;  %v3276_v16 = vld [vmem:[#allocation5] sm:$0x1] }
 0x26f   :  { %v3259_v10 = vadd.f32 %v3258_v0, %v3228_v3 }
 0x271   :  { %v3260_v14 = vadd.f32 %v3259_v10, %v3229_v55  ;;  %v3283_v55 = vsub.s32 0, %v3282_v26 }
 0x273   :  { %v3261_v22 = vadd.f32 %v3260_v14, %v3230_v50 }
 0x275   :  { %v3262_v1 = vadd.f32 %v3261_v22, %v3231_v62 }
 0x277   :  { %v3263_v33 = vadd.f32 %v3262_v1, %v3232_v23 }
 0x279   :  { %v3264_v40 = vadd.f32 %v3263_v33, %v3233_v59 }
 0x27b   :  { %v3265_v36 = vadd.f32 %v3264_v40, %v3234_v57 }
 0x27d   :  { %v3266_v13 = vadd.f32 %v3265_v36, %v3235_v37 }
 0x27f   :  { %v3267_v41 = vadd.f32 %v3266_v13, %v3236_v61 }
 0x281   :  { %v3268_v7 = vadd.f32 %v3267_v41, %v3237_v31 }
 0x283   :  { %v3269_v58 = vrot.slane %v3268_v7, 4 }
 0x285   :  { %v3270_v60 = vadd.f32 %v3269_v58, %v3268_v7 }
 0x287   :  { %v3271_v21 = vrot.slane %v3270_v60, 2 }
 0x289   :  { %v3272_v54 = vadd.f32 %v3271_v21, %v3270_v60 }
 0x28b   :  { %v3273_v53 = vrot.slane %v3272_v54, 1 }
 0x28d   :  { %v3274_v9 = vadd.f32 %v3273_v53, %v3272_v54 }
 0x28f   :  { %v3275_v29 = vmul.f32 0.00390625, %v3274_v9 }
 0x291   :  { %v3277_v35 = vadd.f32 1e-05, %v3275_v29 }
 0x293   :  { %4584 = vrsqrt.f32 %v3277_v35 }
 0x29d   :  { %v4585_v3 = vpop.eup %4584 }
 0x29e   :  { %v3279_v0 = vmul.f32 %v4585_v3, %v3276_v16 }
 0x2a0   :  { %v3284_v10 = vrot.slane %v3279_v0, %v3283_v55 }
 0x2a2   :  { %v3304_v50 = vmul.f32 %v3284_v10, %v3192_v11  ;;  %v3305_v14 = vmul.f32 %v3284_v10, %v3193_v27  ;;  %v3306_v62 = vmul.f32 %v3284_v10, %v5812_v28  ;;  %v3307_v22 = vmul.f32 %v3284_v10, %v5816_v44  ;;  %v3843_v27 = vld [vmem:[#allocation7] ss:$0 sm:$0xff] }
 0x2a3   :  { %v3308_v23 = vmul.f32 %v3284_v10, %v5820_v45  ;;  %v3309_v1 = vmul.f32 %v3284_v10, %v5824_v46  ;;  %v3310_v59 = vmul.f32 %v3284_v10, %v5828_v47  ;;  %v3311_v33 = vmul.f32 %v3284_v10, %v5831_v15 }
 0x2a4   :  { %v3312_v57 = vmul.f32 %v3284_v10, %v5834_v18  ;;  %v3313_v40 = vmul.f32 %v3284_v10, %v5837_v6  ;;  %v3314_v37 = vmul.f32 %v3284_v10, %v5840_v34  ;;  %v3315_v11 = vmul.f32 %v3284_v10, %v5843_v52 }
 0x2a5   :  { %v3316_v28 = vmul.f32 %v3284_v10, %v5846_v39  ;;  %v5999_v44 = vmul.f32 %v3284_v10, %v5849_v49  ;;  %v3286_v45 = vmul.f32 %v3284_v10, %v5853_v12  ;;  %v3287_v46 = vmul.f32 %v3284_v10, %v5857_v4 }
 0x2a6   :  { %v3288_v47 = vmul.f32 %v3284_v10, %v5861_v42  ;;  %v3289_v15 = vmul.f32 %v3284_v10, %v5869_v51  ;;  %v3290_v18 = vmul.f32 %v3284_v10, %v5873_v2  ;;  %v3291_v6 = vmul.f32 %v3284_v10, %v5879_v25 }
 0x2a7   :  { %v3292_v34 = vmul.f32 %v3284_v10, %v5885_v38  ;;  %v3293_v52 = vmul.f32 %v3284_v10, %v5891_v56  ;;  %v3294_v39 = vmul.f32 %v3284_v10, %v5897_v20  ;;  %v3295_v49 = vmul.f32 %v3284_v10, %v5903_v8 }
 0x2a8   :  { %v3296_v12 = vmul.f32 %v3284_v10, %v5909_v63  ;;  %v3297_v4 = vmul.f32 %v3284_v10, %v5915_v17  ;;  %v3298_v42 = vmul.f32 %v3284_v10, %v5921_v30  ;;  %v3299_v51 = vmul.f32 %v3284_v10, %v5927_v24 }
 0x2a9   :  { %v3300_v2 = vmul.f32 %v3284_v10, %v5933_v5  ;;  %v3301_v25 = vmul.f32 %v3284_v10, %v5939_v48  ;;  %v3302_v38 = vmul.f32 %v3284_v10, %v5945_v32  ;;  %v3303_v56 = vmul.f32 %v3284_v10, %v5951_v43 }
 0x2aa   :  { %v6019_v20 = vadd.f32 %v3843_v27, %v3286_v45  ;;  %v6021_v8 = vadd.f32 %v3843_v27, %v3287_v46  ;;  %v6023_v36 = vadd.f32 %v3843_v27, %v3288_v47  ;;  %v6025_v63 = vadd.f32 %v3843_v27, %v3289_v15 }
 0x2ab   :  { %v6027_v17 = vadd.f32 %v3843_v27, %v3290_v18  ;;  %v6029_v30 = vadd.f32 %v3843_v27, %v3291_v6  ;;  %v6031_v24 = vadd.f32 %v3843_v27, %v3292_v34  ;;  %v6033_v5 = vadd.f32 %v3843_v27, %v3293_v52 }
 0x2ac   :  { %v6035_v48 = vadd.f32 %v3843_v27, %v3294_v39  ;;  %v6037_v32 = vadd.f32 %v3843_v27, %v3295_v49  ;;  %v6039_v43 = vadd.f32 %v3843_v27, %v3296_v12  ;;  %v6041_v61 = vadd.f32 %v3843_v27, %v3297_v4 }
 0x2ad   :  { %v6043_v13 = vadd.f32 %v3843_v27, %v3298_v42  ;;  %v6045_v31 = vadd.f32 %v3843_v27, %v3299_v51  ;;  %v6047_v41 = vadd.f32 %v3843_v27, %v3300_v2  ;;  %v6049_v7 = vadd.f32 %v3843_v27, %v3301_v25 }
 0x2ae   :  { %v6051_v58 = vadd.f32 %v3843_v27, %v3302_v38  ;;  %v6053_v60 = vadd.f32 %v3843_v27, %v3303_v56  ;;  %v6055_v21 = vadd.f32 %v3843_v27, %v3304_v50  ;;  %v6057_v54 = vadd.f32 %v3843_v27, %v3305_v14 }
 0x2af   :  { %v6059_v53 = vadd.f32 %v3843_v27, %v3306_v62  ;;  %v6061_v9 = vadd.f32 %v3843_v27, %v3307_v22  ;;  %v6063_v29 = vadd.f32 %v3843_v27, %v3308_v23  ;;  %v6065_v35 = vadd.f32 %v3843_v27, %v3309_v1 }
 0x2b0   :  { %v6067_v19 = vadd.f32 %v3843_v27, %v3310_v59  ;;  %v6069_v26 = vadd.f32 %v3843_v27, %v3311_v33  ;;  %v6071_v16 = vadd.f32 %v3843_v27, %v3312_v57  ;;  %v6073_v3 = vadd.f32 %v3843_v27, %v3313_v40 }
 0x2b1   :  { %v6075_v0 = vadd.f32 %v3843_v27, %v3314_v37  ;;  %v6077_v55 = vadd.f32 %v3843_v27, %v3315_v11  ;;  %vm3357_vm1 = vcmp.ge.f32.partialorder %v6019_v20, 0.0  ;;  %vm3358_vm2 = vcmp.ge.f32.partialorder %v6021_v8, 0.0 }
 0x2b2   :  { %vm3359_vm3 = vcmp.ge.f32.partialorder %v6023_v36, 0.0  ;;  %vm3360_vm4 = vcmp.ge.f32.partialorder %v6025_v63, 0.0  ;;  %vm3361_vm5 = vcmp.ge.f32.partialorder %v6027_v17, 0.0  ;;  %vm3362_vm6 = vcmp.ge.f32.partialorder %v6029_v30, 0.0 }
 0x2b3   :  { %vm3363_vm7 = vcmp.ge.f32.partialorder %v6031_v24, 0.0  ;;  %vm3364_vm8 = vcmp.ge.f32.partialorder %v6033_v5, 0.0  ;;  %vm3365_vm9 = vcmp.ge.f32.partialorder %v6035_v48, 0.0  ;;  %v6089_v10 = vadd.f32 %v3843_v27, %v3316_v28 }
 0x2b4   :  { %v3389_v50 = vmul.f32 0.2, %v6019_v20  ;;  %v3390_v14 = vmul.f32 0.2, %v6021_v8  ;;  %v3391_v62 = vmul.f32 0.2, %v6023_v36  ;;  %v6099_v22 = vadd.f32 %v3843_v27, %v5999_v44 }
 0x2b5   :  { %vm3372_vm0 = vcmp.ge.f32.partialorder %v6049_v7, 0.0  ;;  %vm3373_vm11 = vcmp.ge.f32.partialorder %v6051_v58, 0.0  ;;  %v3392_v23 = vmul.f32 0.2, %v6025_v63  ;;  %v3393_v1 = vmul.f32 0.2, %v6027_v17 }
 0x2b6   :  { %v3394_v59 = vmul.f32 0.2, %v6029_v30  ;;  %vm3378_vm15 = vcmp.ge.f32.partialorder %v6061_v9, 0.0  ;;  %v3395_v33 = vmul.f32 0.2, %v6031_v24  ;;  %v6118_v37 = vsel %vm3357_vm1, %v6019_v20, %v3389_v50 }
 0x2b7   :  { %v3396_v57 = vmul.f32 0.2, %v6033_v5  ;;  %v3397_v40 = vmul.f32 0.2, %v6035_v48  ;;  %vm3382_vm10 = vcmp.ge.f32.partialorder %v6069_v26, 0.0  ;;  %v6130_v45 = vsel %vm3358_vm2, %v6021_v8, %v3390_v14 }
 0x2b8   :  { %v3398_v11 = vmul.f32 0.2, %v6037_v32  ;;  %v3399_v28 = vmul.f32 0.2, %v6039_v43  ;;  %v3400_v44 = vmul.f32 0.2, %v6041_v61  ;;  %v3423_v18 = vsel %vm3359_vm3, %v6023_v36, %v3391_v62 }
 0x2b9   :  { %vm3384_vm12 = vcmp.ge.f32.partialorder %v6073_v3, 0.0  ;;  %vm3385_vm14 = vcmp.ge.f32.partialorder %v6075_v0, 0.0  ;;  %vm3386_vm13 = vcmp.ge.f32.partialorder %v6077_v55, 0.0  ;;  %v3401_v46 = vmul.f32 0.2, %v6043_v13 }
 0x2ba   :  { %v3402_v47 = vmul.f32 0.2, %v6045_v31  ;;  %v3403_v15 = vmul.f32 0.2, %v6047_v41  ;;  %vm3387_vm2 = vcmp.ge.f32.partialorder %v6089_v10, 0.0  ;;  %vm3388_vm1 = vcmp.ge.f32.partialorder %v6099_v22, 0.0 }
 0x2bb   :  { %v3404_v6 = vmul.f32 0.2, %v6049_v7  ;;  %v3405_v34 = vmul.f32 0.2, %v6051_v58  ;;  %v3406_v52 = vmul.f32 0.2, %v6053_v60  ;;  %v3424_v39 = vsel %vm3360_vm4, %v6025_v63, %v3392_v23 }
 0x2bc   :  { %v3407_v49 = vmul.f32 0.2, %v6055_v21  ;;  %v3408_v27 = vmul.f32 0.2, %v6057_v54  ;;  %v3409_v12 = vmul.f32 0.2, %v6059_v53  ;;  %v3425_v4 = vsel %vm3361_vm5, %v6027_v17, %v3393_v1 }
 0x2bd   :  { %v3410_v42 = vmul.f32 0.2, %v6061_v9  ;;  %v3411_v51 = vmul.f32 0.2, %v6063_v29  ;;  %v3412_v2 = vmul.f32 0.2, %v6065_v35  ;;  %v3426_v25 = vsel %vm3362_vm6, %v6029_v30, %v3394_v59 }
 0x2be   :  { %v3413_v38 = vmul.f32 0.2, %v6067_v19  ;;  %v3414_v56 = vmul.f32 0.2, %v6069_v26  ;;  %v3415_v20 = vmul.f32 0.2, %v6071_v16  ;;  %v3427_v8 = vsel %vm3363_vm7, %v6031_v24, %v3395_v33 }
 0x2bf   :  { %v3416_v36 = vmul.f32 0.2, %v6073_v3  ;;  %v3417_v63 = vmul.f32 0.2, %v6075_v0  ;;  %v3418_v17 = vmul.f32 0.2, %v6077_v55  ;;  %v3428_v30 = vsel %vm3364_vm8, %v6033_v5, %v3396_v57 }
 0x2c0   :  { %v3419_v50 = vmul.f32 0.2, %v6089_v10  ;;  %v3420_v14 = vmul.f32 0.2, %v6099_v22  ;;  %v3429_v62 = vsel %vm3365_vm9, %v6035_v48, %v3397_v40  ;;  %vm6303_vm3 = vcmp.ge.f32.partialorder %v6037_v32, 0.0 }
 0x2c1   :  { %v3430_v24 = vsel %vm6303_vm3, %v6037_v32, %v3398_v11  ;;  %vm6304_vm4 = vcmp.ge.f32.partialorder %v6039_v43, 0.0  ;;  %vm6305_vm5 = vcmp.ge.f32.partialorder %v6041_v61, 0.0  ;;  %vm6306_vm6 = vcmp.ge.f32.partialorder %v6043_v13, 0.0 }
 0x2c2   :  { %v3431_v23 = vsel %vm6304_vm4, %v6039_v43, %v3399_v28  ;;  %v3432_v5 = vsel %vm6305_vm5, %v6041_v61, %v3400_v44  ;;  %v3433_v1 = vsel %vm6306_vm6, %v6043_v13, %v3401_v46  ;;  %vm6307_vm7 = vcmp.ge.f32.partialorder %v6045_v31, 0.0 }
 0x2c3   :  { %v3434_v48 = vsel %vm6307_vm7, %v6045_v31, %v3402_v47  ;;  %vm6308_vm8 = vcmp.ge.f32.partialorder %v6047_v41, 0.0  ;;  %v3436_v43 = vsel %vm3372_vm0, %v6049_v7, %v3404_v6  ;;  %v3437_v61 = vsel %vm3373_vm11, %v6051_v58, %v3405_v34 }
 0x2c4   :  { %v3435_v32 = vsel %vm6308_vm8, %v6047_v41, %v3403_v15  ;;  %vm6309_vm9 = vcmp.ge.f32.partialorder %v6053_v60, 0.0  ;;  %vm6310_vm3 = vcmp.ge.f32.partialorder %v6055_v21, 0.0  ;;  %vm6311_vm4 = vcmp.ge.f32.partialorder %v6057_v54, 0.0 }
 0x2c5   :  { %v3438_v13 = vsel %vm6309_vm9, %v6053_v60, %v3406_v52  ;;  %v3439_v31 = vsel %vm6310_vm3, %v6055_v21, %v3407_v49  ;;  %v3440_v41 = vsel %vm6311_vm4, %v6057_v54, %v3408_v27  ;;  %vm6312_vm5 = vcmp.ge.f32.partialorder %v6059_v53, 0.0 }
 0x2c6   :  { %v3441_v7 = vsel %vm6312_vm5, %v6059_v53, %v3409_v12  ;;  %v3442_v58 = vsel %vm3378_vm15, %v6061_v9, %v3410_v42  ;;  %vm6313_vm11 = vcmp.ge.f32.partialorder %v6063_v29, 0.0  ;;  %vm6314_vm0 = vcmp.ge.f32.partialorder %v6065_v35, 0.0 }
 0x2c7   :  { %v3443_v60 = vsel %vm6313_vm11, %v6063_v29, %v3411_v51  ;;  %v3444_v21 = vsel %vm6314_vm0, %v6065_v35, %v3412_v2  ;;  %vm6315_vm6 = vcmp.ge.f32.partialorder %v6067_v19, 0.0  ;;  %v3446_v53 = vsel %vm3382_vm10, %v6069_v26, %v3414_v56 }
 0x2c8   :  { %v3445_v54 = vsel %vm6315_vm6, %v6067_v19, %v3413_v38  ;;  %vm6316_vm7 = vcmp.ge.f32.partialorder %v6071_v16, 0.0  ;;  %v3448_v29 = vsel %vm3384_vm12, %v6073_v3, %v3416_v36  ;;  %v3449_v35 = vsel %vm3385_vm14, %v6075_v0, %v3417_v63 }
 0x2c9   :  { %v3447_v9 = vsel %vm6316_vm7, %v6071_v16, %v3415_v20  ;;  %v3450_v19 = vsel %vm3386_vm13, %v6077_v55, %v3418_v17  ;;  %v3451_v26 = vsel %vm3387_vm2, %v6089_v10, %v3419_v50  ;;  %v3452_v16 = vsel %vm3388_vm1, %v6099_v22, %v3420_v14 }
 0x2ca   :  { %v3911_v59 = vpack.c.bf16 %v6130_v45, %v6118_v37  ;;  %v3916_v3 = vpack.c.bf16 %v3424_v39, %v3423_v18  ;;  %v3921_v33 = vpack.c.bf16 %v3426_v25, %v3425_v4  ;;  %v3926_v57 = vpack.c.bf16 %v3428_v30, %v3427_v8 }
 0x2cb   :  { %v3931_v40 = vpack.c.bf16 %v3430_v24, %v3429_v62  ;;  %v3936_v0 = vpack.c.bf16 %v3432_v5, %v3431_v23  ;;  %v3941_v55 = vpack.c.bf16 %v3434_v48, %v3433_v1  ;;  %v3946_v10 = vpack.c.bf16 %v3436_v43, %v3435_v32 }
 0x2cc   :  { %3912 = vst [vmem:[%s6302_s4] sm:$0xff] %v3911_v59   ;;  %3988 = vst [vmem:[%s6302_s4 + $0x8] sm:$0xff] %v3916_v3   ;;  %v3951_v11 = vpack.c.bf16 %v3438_v13, %v3437_v61  ;;  %v3956_v22 = vpack.c.bf16 %v3440_v41, %v3439_v31  ;;  %v3961_v37 = vpack.c.bf16 %v3442_v58, %v3441_v7 }
 0x2cd   :  { %3989 = vst [vmem:[%s6302_s4 + $0x10] sm:$0xff] %v3921_v33   ;;  %3990 = vst [vmem:[%s6302_s4 + $0x18] sm:$0xff] %v3926_v57   ;;  %v3966_v28 = vpack.c.bf16 %v3444_v21, %v3443_v60  ;;  %v3971_v44 = vpack.c.bf16 %v3446_v53, %v3445_v54  ;;  %v3976_v45 = vpack.c.bf16 %v3448_v29, %v3447_v9 }
 0x2ce   :  { %3991 = vst [vmem:[%s6302_s4 + $0x20] sm:$0xff] %v3931_v40   ;;  %3992 = vst [vmem:[%s6302_s4 + $0x28] sm:$0xff] %v3936_v0   ;;  %v3981_v46 = vpack.c.bf16 %v3450_v19, %v3449_v35  ;;  %v3986_v47 = vpack.c.bf16 %v3452_v16, %v3451_v26 }
 0x2cf   :  { %3993 = vst [vmem:[%s6302_s4 + $0x30] sm:$0xff] %v3941_v55   ;;  %3994 = vst [vmem:[%s6302_s4 + $0x38] sm:$0xff] %v3946_v10  }
 0x2d0   :  { %3995 = vst [vmem:[%s6302_s4 + $0x40] sm:$0xff] %v3951_v11   ;;  %3996 = vst [vmem:[%s6302_s4 + $0x48] sm:$0xff] %v3956_v22  }
 0x2d1   :  { %3997 = vst [vmem:[%s6302_s4 + $0x50] sm:$0xff] %v3961_v37   ;;  %3998 = vst [vmem:[%s6302_s4 + $0x58] sm:$0xff] %v3966_v28  }
 0x2d2   :  { %3999 = vst [vmem:[%s6302_s4 + $0x60] sm:$0xff] %v3971_v44   ;;  %4000 = vst [vmem:[%s6302_s4 + $0x68] sm:$0xff] %v3976_v45  }
 0x2d3   :  { %4001 = vst [vmem:[%s6302_s4 + $0x70] sm:$0xff] %v3981_v46   ;;  %4002 = vst [vmem:[%s6302_s4 + $0x78] sm:$0xff] %v3986_v47  }
 0x2d4   :  { %3617 = vsyncpa [#allocation4], 1 }
 0x2d5   :  { %3618 = vsyncpa [#allocation6], 1 }

// kernel: discriminator_forward.5
= control target key start
LH: loop header
LB: loop body
LE: loop exit
PB: predicated region body
PF: predicated region fallthrough
CT: control target
= control target key end

     0   :  { %s13497_s0 = inlined_call_operand.vmem [shape: bf16[8,8192], index: 0, kind: input, shape index: {}]   ;;  %s13498_s1 = inlined_call_operand.hbm [shape: bf16[8192,1024], index: 1, kind: input, shape index: {}]   ;;  %s13499_s2 = inlined_call_operand.hbm [shape: f32[1,1024], index: 2, kind: input, shape index: {}]   ;;  %s13500_s3 = inlined_call_operand.hbm [shape: f32[1,1024], index: 3, kind: input, shape index: {}]   ;;  %s13501_s4 = inlined_call_operand.hbm [shape: f32[1024,128], index: 4, kind: input, shape index: {}]   ;;  %s13502_s5 = inlined_call_operand.vmem [shape: f32[2,8,128], index: 5, kind: output, shape index: {}]  }
   0x1   :  { %13517 = sst [smem:[#allocation22_spill]] %s13497_s0 }
   0x2   :  { %13518 = sst [smem:[#allocation23_spill]] %s13498_s1 }
   0x3   :  { %13519 = sst [smem:[#allocation24_spill]] %s13499_s2 }
   0x4   :  { %13520 = sst [smem:[#allocation25_spill]] %s13502_s5 }
   0x5   :  { %10 = vsyncpa [#allocation4], 0 }
   0x6   :  { %12 = vsyncpa [#allocation4 + $0x1], 0 }
   0x7   :  { %13 = vsyncpa [#allocation6], 0 }
   0x8   :  { %15 = vsyncpa [#allocation6 + $0x1], 0 }
   0x9   :  { %16 = vsyncpa [#allocation9], 0 }
   0xa   :  { %18 = vsyncpa [#allocation9 + $0x1], 0  ;;  %s11725_s18 = smov 0   ;;  %s11727_s19 = smov 0  }
   0xb   :  { %s11729_s20 = smov 0   ;;  %s11731_s21 = smov 0  }
   0xc   :  { %s11733_s22 = smov 0   ;;  %s11735_s23 = smov 0  }
   0xd   :  { %s11737_s24 = smov 0   ;;  %s11739_s25 = smov 0  }
   0xe   :  { %s11741_s26 = smov 0   ;;  %s11743_s27 = smov 0  }
   0xf   :  { %s11745_s28 = smov 0  }
  0x10 LB: > { %13521 = sst [smem:[#allocation13_spill]] %s11650_s20  ;;  %s13503_s29 = sadd.s32 4294967295, %s11682_s28   ;;  %s11682_s28 = sphi %s11745_s28, %s24_s28   ;;  %s11678_s27 = sphi %s11743_s27, %s13567_s27   ;;  %s11674_s26 = sphi %s11741_s26, %s13566_s26   ;;  %s11670_s25 = sphi %s11739_s25, %s13565_s25   ;;  %s11666_s24 = sphi %s11737_s24, %s13558_s24   ;;  %s11662_s23 = sphi %s11735_s23, %s13557_s23   ;;  %s11658_s22 = sphi %s11733_s22, %s13564_s22   ;;  %s11654_s21 = sphi %s11731_s21, %s13563_s21   ;;  %s11650_s20 = sphi %s11729_s20, %s13555_s20   ;;  %s11646_s19 = sphi %s11727_s19, %s13562_s19   ;;  %s11642_s18 = sphi %s11725_s18, %s13561_s18  }
  0x11   : > { %13522 = sst [smem:[#allocation14_spill]] %s11662_s23  ;;  %s33_s30 = sadd.s32 1, %s11674_s26 }
  0x12   : > { %13523 = sst [smem:[#allocation15_spill]] %s11666_s24  ;;  %p34_p0 = scmp.ge.s32.totalorder %s33_s30, 2 }
  0x13   : > { %13524 = sst [smem:[#allocation16_spill]] %s11670_s25  ;;  %s36_s6 = sadd.s32 1, %s11678_s27 }
  0x14   : > { %13525 = sst [smem:[#allocation17_spill]] %s11674_s26  ;;  %s71_s7 = sadd.s32 1, %s11662_s23 }
  0x15   : > { %p78_p1 = scmp.ne.s32.totalorder %s11662_s23, %s11658_s22  ;;  %s13569_s30 = smov (%p34_p0, %s33_s30), 0 }
  0x16   : > { %13526 = sst [smem:[#allocation18_spill]] %s13569_s30  ;;  %s13571_s6 = smov (!%p34_p0, %s36_s6), %s11678_s27 }
  0x17   : > { %s66_s8 = ssub.s32 %s11674_s26, %s13569_s30  ;;  %p79_p2 = scmp.eq.s32.totalorder %s11682_s28, 0 }
  0x18   : > { %p38_p3 = scmp.ge.s32.totalorder %s13571_s6, 2  ;;  %p84_p4 = scmp.ne.s32.totalorder %s11658_s22, %s11654_s21 }
  0x19   : > { %p11793_p5 = por %p79_p2, %p78_p1  ;;  %p11799_p6 = scmp.eq.s32.totalorder %s13503_s29, 0 }
  0x1a   : > { %s13573_s6 = smov (%p38_p3, %s13571_s6), 0  ;;  %s97_s12 = sadd.s32 1, %s11650_s20 }
  0x1b   : > { %13529 = sst [smem:[#allocation19_spill]] %s13573_s6  ;;  %p11807_p7 = por %p11799_p6, %p84_p4 }
  0x1c   : > { %s67_s13 = ssub.s32 %s11678_s27, %s13573_s6  ;;  %p104_p8 = scmp.ne.s32.totalorder %s11650_s20, %s11646_s19 }
  0x1d   : > { %s13530_s11 = scalar_select %p11807_p7, 1, 0 }
  0x1e   : > { %s68_s14 = sor.u32 %s67_s13, %s66_s8  ;;  %p95_p9 = scmp.eq.s32.totalorder %s67_s13, 0 }
  0x1f   : > { %p69_p10 = scmp.eq.s32.totalorder %s68_s14, 0  ;;  %p11818_p11 = por %p104_p8, %p79_p2 }
  0x20   : > { %s11823_s16 = scalar_select %p95_p9, %s11650_s20, %s97_s12  }
  0x21   : > { %s11826_s17 = scalar_select %p69_p10, %s11662_s23, %s71_s7  }
  0x22   : > { %13532 = sst [smem:[#allocation20_spill]] %s11823_s16  ;;  %p110_p12 = scmp.ne.s32.totalorder %s11646_s19, %s11642_s18 }
  0x23   : > { %13533 = sst [smem:[#allocation21_spill]] %s11826_s17  ;;  %p9792_p13 = scmp.lt.s32.totalorder %s11682_s28, 4 }
  0x24   : > { %s245_s21 = sand.u32 1, %s11682_s28   ;;  %p11834_p0 = por %p110_p12, %p11799_p6 }
  0x25   : > { %p11840_p1 = pnand %p9792_p13, %p11793_p5  ;;  %s11845_s13 = sand.u32 1, %s11650_s20  }
  0x26   : > { %s13534_s29 = scalar_select %p11834_p0, 1, 0 }
  0x27   : > { %s13535_s8 = scalar_select %p11840_p1, 1, 0 }
  0x28   : > { %s13507_s12 = sshll.u32 %s11845_s13, 2  ;;  %s9634_s7 = sshll.u32 %s11678_s27, 6 }
  0x29   : > { %s13536_s2 = sld [smem:[#allocation24_spill]]  ;;  %s249_s9 = scalar_lea.vmem [#allocation5], %s13507_s12 }
  0x2a   : > { %s257_s10 = sshll.u32 %s249_s9, 4  ;;  %p11860_p2 = pnand %p9792_p13, %p11818_p11  ;;  %s11856_s10 = int_to_ptr.vmem [resolvable:$true] %s257_s10 }
  0x2b   : > { %s11867_s14 = scalar_lea.hbm %s13500_s3, %s9634_s7  ;;  %s11870_s18 = scalar_lea.sflag [#allocation6], %s245_s21 }
  0x2c   : > { %s13537_s30 = scalar_select %p11860_p2, 1, 0 }
  0x2d   : > { %p11876_p5 = pneg %p11860_p2 }
  0x2f   : > { %s11852_s6 = scalar_lea.hbm %s13536_s2, %s9634_s7  ;;  %s11469_s16 = scalar_lea.hbm %s13536_s2, 128 }
  0x30   : > { %s11464_s20 = scalar_lea.hbm %s11852_s6, 64  ;;  %p11470_p9 = scmp.lt.u32.totalorder %s11852_s6, %s13536_s2 }
  0x31   : > { %p11465_p4 = scmp.ne.s32.totalorder %s11852_s6, %s11464_s20  ;;  %p11471_p10 = scmp.lt.u32.totalorder %s11469_s16, %s11464_s20 }
  0x32   : > { %p11473_p12 = scmp.lt.u32.totalorder %s11464_s20, %s11852_s6 }
  0x33   : > { %p11467_p6 = pnand %p11876_p5, %p11465_p4  ;;  %p11472_p11 = por %p11471_p10, %p11470_p9 }
  0x35   : > { %p11468_p8 = pneg %p11467_p6  ;;  %p11474_p13 = por %p11473_p12, %p11472_p11 }
  0x37   : > { %p11475_p3 = pnand %p11474_p13, %p11468_p8 }
  0x39   : > { %11478 = shalt.err (!%p11475_p3)
}
  0x3a   : > { %s11479_s21 = scalar_lea.vmem %s11856_s10, 64  ;;  %s11684_s12 = smov [#allocation5]  }
  0x3b   : > { %p11480_p4 = scmp.ne.s32.totalorder %s11856_s10, %s11479_s21  ;;  %s11484_s15 = sshll.u32 %s11684_s12, 4  ;;  %s11485_s15 = int_to_ptr.vmem [resolvable:$false] %s11484_s15 }
  0x3c   : > { %s11486_s17 = scalar_lea.vmem %s11485_s15, 128  ;;  %p11487_p7 = scmp.lt.s32.totalorder %s11856_s10, %s11485_s15 }
  0x3d   : > { %p11482_p6 = pnand %p11480_p4, %p11876_p5  ;;  %p11488_p1 = scmp.lt.s32.totalorder %s11486_s17, %s11479_s21 }
  0x3f   : > { %p11483_p0 = pneg %p11482_p6  ;;  %p11489_p9 = por %p11488_p1, %p11487_p7 }
  0x41   : > { %p11490_p10 = pnand %p11489_p9, %p11483_p0 }
  0x43   : > { %11493 = shalt.err (!%p11490_p10)
}
  0x44   : > { %9785 = dma.hbm_to_vmem [thread:$0]  (!%p11860_p2), %s11852_s6, 64, %s11856_s10, %s11870_s18  }
  0x45   : > { %p302_p3 = scmp.lt.s32.totalorder %s11682_s28, 5  ;;  %p13539_p8 = scmp.ge.s32.totalorder %s11682_s28, 1 }
  0x46   : > { %s221_s16 = sand.u32 1, %s11662_s23   ;;  %s8553_s7 = sshll.u32 %s11678_s27, 2 }
  0x47   : > { %p11903_p11 = pnand %p13539_p8, %p302_p3  ;;  %s8551_s21 = sshll.u32 %s221_s16, 13 }
  0x48   : > { %s9633_s12 = sshll.u32 %s11674_s26, 12  ;;  %s225_s17 = scalar_lea.vmem [#allocation3], %s8551_s21 }
  0x49   : > { %s13540_s20 = scalar_select %p11903_p11, 1, 0 }
  0x4a   : > { %s232_s15 = sadd.s32 %s9633_s12, %s8553_s7  ;;  %s235_s2 = sshll.u32 %s225_s17, 4  ;;  %s11910_s2 = int_to_ptr.vmem [resolvable:$true] %s235_s2 }
  0x4b   : > { %s8555_s0 = sshll.u32 %s232_s15, 6  ;;  %s13541_s1 = sld [smem:[#allocation23_spill]] }
  0x4c   : > { %s11917_s25 = scalar_lea.sflag [#allocation4], %s221_s16  ;;  %p13542_p0 = scmp.ne.s32.totalorder %s13535_s8, 0 }
  0x4e   : > { %p11496_p1 = pneg %p13542_p0 }
  0x51   : > { %s11915_s10 = scalar_lea.hbm %s13541_s1, %s8555_s0  ;;  %s11499_s5 = scalar_lea.hbm %s13541_s1, 524288 }
  0x52   : > { %s11494_s23 = scalar_lea.hbm %s11915_s10, 131072  ;;  %p11500_p4 = scmp.lt.u32.totalorder %s11915_s10, %s13541_s1 }
  0x53   : > { %p11495_p7 = scmp.ne.s32.totalorder %s11915_s10, %s11494_s23  ;;  %p11501_p6 = scmp.lt.u32.totalorder %s11499_s5, %s11494_s23 }
  0x54   : > { %p11503_p10 = scmp.lt.u32.totalorder %s11494_s23, %s11915_s10 }
  0x55   : > { %p11497_p12 = pnand %p11496_p1, %p11495_p7  ;;  %p11502_p9 = por %p11501_p6, %p11500_p4 }
  0x57   : > { %p11498_p13 = pneg %p11497_p12  ;;  %p11504_p3 = por %p11503_p10, %p11502_p9 }
  0x59   : > { %p11505_p8 = pnand %p11504_p3, %p11498_p13 }
  0x5b   : > { %11508 = shalt.err (!%p11505_p8)
}
  0x5c   : > { %s11509_s16 = scalar_lea.vmem %s11910_s2, 131072  ;;  %s11685_s15 = smov [#allocation3]  }
  0x5d   : > { %p11510_p7 = scmp.ne.s32.totalorder %s11910_s2, %s11509_s16  ;;  %s11514_s17 = sshll.u32 %s11685_s15, 4  ;;  %s11515_s17 = int_to_ptr.vmem [resolvable:$false] %s11514_s17 }
  0x5e   : > { %s11516_s6 = scalar_lea.vmem %s11515_s17, 262144  ;;  %p11517_p2 = scmp.lt.s32.totalorder %s11910_s2, %s11515_s17 }
  0x5f   : > { %p11512_p12 = pnand %p11510_p7, %p11496_p1  ;;  %p11518_p4 = scmp.lt.s32.totalorder %s11516_s6, %s11509_s16 }
  0x61   : > { %p11513_p11 = pneg %p11512_p12  ;;  %p11519_p6 = por %p11518_p4, %p11517_p2 }
  0x63   : > { %p11520_p9 = pnand %p11519_p6, %p11513_p11 }
  0x65   : > { %11523 = shalt.err (!%p11520_p9)
}
  0x66   : > { %s11686_s23 = smov 512   ;;  %s11687_s7 = smov 256  }
  0x67   : > { %s11688_s21 = smov 16   ;;  %s13543_s5 = sshll.u32 %s11845_s13, 2 }
  0x68   : > { %9782 = dma.hbm_to_vmem [thread:$0]  (!%p13542_p0), %s11915_s10, 131072, %s11910_s2, %s11917_s25, %s11686_s23, %s11687_s7, %s11688_s21  }
  0x69   : > { %s268_s0 = scalar_lea.vmem [#allocation7], %s13543_s5  ;;  %s8562_s16 = sshll.u32 %s11845_s13, 9 }
  0x6a   : > { %s276_s12 = sshll.u32 %s268_s0, 4  ;;  %s11524_s15 = scalar_lea.hbm %s11867_s14, 64  ;;  %s277_s12 = int_to_ptr.vmem [resolvable:$true] %s276_s12 }
  0x6b   : > { %p11525_p2 = scmp.ne.s32.totalorder %s11867_s14, %s11524_s15  ;;  %s11529_s1 = scalar_lea.hbm %s13500_s3, 128 }
  0x6c   : > { %p11530_p13 = scmp.lt.u32.totalorder %s11867_s14, %s13500_s3  ;;  %p11531_p10 = scmp.lt.u32.totalorder %s11529_s1, %s11524_s15 }
  0x6d   : > { %p11527_p11 = pnand %p11525_p2, %p11876_p5  ;;  %p11533_p3 = scmp.lt.u32.totalorder %s11524_s15, %s11867_s14 }
  0x6e   : > { %p11532_p0 = por %p11531_p10, %p11530_p13 }
  0x6f   : > { %p11528_p1 = pneg %p11527_p11 }
  0x70   : > { %p11534_p8 = por %p11533_p3, %p11532_p0 }
  0x72   : > { %p11535_p7 = pnand %p11534_p8, %p11528_p1 }
  0x74   : > { %11538 = shalt.err (!%p11535_p7)
}
  0x75   : > { %s11539_s2 = scalar_lea.vmem %s277_s12, 64  ;;  %s11689_s25 = smov [#allocation7]  }
  0x76   : > { %p11540_p12 = scmp.ne.s32.totalorder %s277_s12, %s11539_s2  ;;  %s11544_s8 = sshll.u32 %s11689_s25, 4  ;;  %s11545_s8 = int_to_ptr.vmem [resolvable:$false] %s11544_s8 }
  0x77   : > { %s11546_s10 = scalar_lea.vmem %s11545_s8, 128  ;;  %p11547_p9 = scmp.lt.s32.totalorder %s277_s12, %s11545_s8 }
  0x78   : > { %p11542_p4 = pnand %p11540_p12, %p11876_p5  ;;  %p11548_p2 = scmp.lt.s32.totalorder %s11546_s10, %s11539_s2 }
  0x7a   : > { %p11543_p6 = pneg %p11542_p4  ;;  %p11549_p11 = por %p11548_p2, %p11547_p9 }
  0x7c   : > { %p11550_p10 = pnand %p11549_p11, %p11543_p6 }
  0x7e   : > { %11553 = shalt.err (!%p11550_p10)
}
  0x7f   : > { %p13544_p13 = scmp.ne.s32.totalorder %s13537_s30, 0  ;;  %s9636_s1 = sshll.u32 %s11678_s27, 13 }
  0x80   : > { %s11970_s23 = scalar_lea.hbm %s13501_s4, %s9636_s1  ;;  %s287_s7 = scalar_lea.vmem [#allocation8], %s8562_s16 }
  0x81   : > { %9788 = dma.hbm_to_vmem [thread:$0]  (!%p13544_p13), %s11867_s14, 64, %s277_s12, %s11870_s18  }
  0x82   : > { %s294_s21 = sshll.u32 %s287_s7, 4  ;;  %s284_s5 = scalar_lea.sflag [#allocation9], %s11845_s13  ;;  %s11974_s21 = int_to_ptr.vmem [resolvable:$true] %s294_s21 }
  0x83   : > { %s11554_s0 = scalar_lea.hbm %s11970_s23, 8192  ;;  %s11559_s12 = scalar_lea.hbm %s13501_s4, 16384 }
  0x84   : > { %p11555_p1 = scmp.ne.s32.totalorder %s11970_s23, %s11554_s0  ;;  %p11560_p8 = scmp.lt.u32.totalorder %s11970_s23, %s13501_s4 }
  0x85   : > { %p11561_p7 = scmp.lt.u32.totalorder %s11559_s12, %s11554_s0  ;;  %p11563_p4 = scmp.lt.u32.totalorder %s11554_s0, %s11970_s23 }
  0x86   : > { %p11557_p0 = pnand %p11555_p1, %p11876_p5 }
  0x87   : > { %p11562_p12 = por %p11561_p7, %p11560_p8 }
  0x88   : > { %p11558_p3 = pneg %p11557_p0 }
  0x89   : > { %p11564_p6 = por %p11563_p4, %p11562_p12 }
  0x8b   : > { %p11565_p9 = pnand %p11564_p6, %p11558_p3 }
  0x8d   : > { %11568 = shalt.err (!%p11565_p9)
}
  0x8e   : > { %s11569_s16 = scalar_lea.vmem %s11974_s21, 8192  ;;  %s11690_s6 = smov [#allocation8]  }
  0x8f   : > { %p11570_p2 = scmp.ne.s32.totalorder %s11974_s21, %s11569_s16  ;;  %s11574_s2 = sshll.u32 %s11690_s6, 4  ;;  %s11575_s2 = int_to_ptr.vmem [resolvable:$false] %s11574_s2 }
  0x90   : > { %s11576_s25 = scalar_lea.vmem %s11575_s2, 16384  ;;  %p11577_p1 = scmp.lt.s32.totalorder %s11974_s21, %s11575_s2 }
  0x91   : > { %p11572_p11 = pnand %p11570_p2, %p11876_p5  ;;  %p11578_p0 = scmp.lt.s32.totalorder %s11576_s25, %s11569_s16 }
  0x93   : > { %p11573_p10 = pneg %p11572_p11  ;;  %p11579_p8 = por %p11578_p0, %p11577_p1 }
  0x95   : > { %p11580_p7 = pnand %p11579_p8, %p11573_p10 }
  0x97   : > { %11583 = shalt.err (!%p11580_p7)
}
  0x98   : > { %s11691_s8 = smov 128   ;;  %s11692_s10 = smov 8  }
  0x99   : > { %9791 = dma.hbm_to_vmem [thread:$0]  (!%p13544_p13), %s11970_s23, 8192, %s11974_s21, %s284_s5, %s11691_s8, %s11691_s8, %s11692_s10  }
  0x9a   : > { %p13545_p5 = scmp.ne.s32.totalorder %s13540_s20, 0 }
  0x9b   : > { %s308_s9 = sand.u32 (!%p13545_p5), 1, %s11658_s22   ;;  %p13546_p3 = scmp.ne.s32.totalorder (!%p13545_p5), %s13530_s11, 0 }
  0x9c   : > { %306 = sbr.rel (%p13545_p5) target bundleno = 1727 (0x6bf), region = 40  ;;  %s8566_s1 = sshll.u32 (!%p13545_p5), %s308_s9, 13 }
  0x9d   : > { %s309_s24 = scalar_lea.sflag (!%p13545_p5), [#allocation4], %s308_s9  ;;  %s12003_s26 = scalar_lea.vmem (!%p13545_p5), [#allocation3], %s8566_s1 }
  0xa3   : > { %11629 = dma.done.wait (%p13546_p3), %s309_s24, 131072  }
  0xa4   : > { %11631 = vsyncadd (%p13546_p3), %s309_s24, 4294836224  ;;  %s13547_s7 = sadd.s32 4294967295, %s11682_s28   ;;  %s319_s13 = sand.u32 1, %s11646_s19  }
  0xa5   : > { %s317_s30 = sand.u32 1, %s13547_s7   ;;  %s8567_s20 = sshll.u32 %s319_s13, 2 }
  0xa6   : > { %s318_s23 = scalar_lea.sflag [#allocation6], %s317_s30  ;;  %s12012_s21 = scalar_lea.vmem [#allocation5], %s8567_s20 }
  0xa7   : > { %p13548_p13 = scmp.ne.s32.totalorder %s13534_s29, 0 }
  0xa9   : > { %11633 = dma.done.wait (%p13548_p13), %s318_s23, 128  }
  0xaa   : > { %11635 = vsyncadd (%p13548_p13), %s318_s23, 4294967168  ;;  %s8569_s5 = sshll.u32 %s319_s13, 9  ;;  %s12018_s0 = scalar_lea.vmem [#allocation7], %s8567_s20 }
  0xab   : > { %s336_s11 = scalar_lea.sflag [#allocation9], %s319_s13  ;;  %s12020_s14 = scalar_lea.vmem [#allocation8], %s8569_s5 }
  0xac   : > { %11637 = dma.done.wait (%p13548_p13), %s336_s11, 8192  }
  0xad   : > { %11639 = vsyncadd (%p13548_p13), %s336_s11, 4294959104  ;;  %s13549_s18 = sld [smem:[#allocation15_spill]]  ;;  %s13550_s12 = sld [smem:[#allocation16_spill]] }
  0xae   : > { %s13551_s25 = sld [smem:[#allocation25_spill]]  ;;  %s13552_s1 = sld [smem:[#allocation22_spill]] }
  0xb3   : > { %s8570_s15 = sshll.u32 %s13549_s18, 5  ;;  %p396_p12 = scmp.lt.s32.totalorder %s13550_s12, 1 }
  0xb4   : > { %p386_p4 = scmp.lt.s32.totalorder %s8570_s15, 63  ;;  %p8573_p6 = scmp.ne.s32.totalorder %s13549_s18, 0 }
  0xb5   : > { %s13575_s12 = smov (!%p396_p12, %s13550_s12), 1  ;;  %v11693_v0 = vmov (!%p8573_p6), 0.0  }
  0xb6   : > { %s13577_s15 = smov (!%p386_p4, %s8570_s15), 63  ;;  %s8572_s17 = sshll.u32 %s13575_s12, 3  ;;  %404 = vst [vmem:[#allocation2] sm:$0xff] (!%p8573_p6), %v11693_v0  ;;  %405 = vst [vmem:[#allocation2 + $0x8] sm:$0xff] (!%p8573_p6), %v11693_v0 }
  0xb7   : > { %s8571_s16 = sshll.u32 %s13577_s15, 2  ;;  %s12032_s8 = scalar_lea.vmem %s13551_s25, %s8572_s17  ;;  %406 = vst [vmem:[#allocation2 + $0x10] sm:$0xff] (!%p8573_p6), %v11693_v0  ;;  %407 = vst [vmem:[#allocation2 + $0x18] sm:$0xff] (!%p8573_p6), %v11693_v0 }
  0xb8   : > { %s12037_s29 = scalar_lea.vmem %s13552_s1, %s8571_s16  ;;  %403 = sbr.rel (%p8573_p6) target bundleno = 191 (0xbf), region = 60 }
  0xbf PF: > { %v9888_v1 = vld [vmem:[%s12003_s26 + $0x4] ss:$16 sps:$4 sm:$0xff]   ;;  %v9892_v3 = vld [vmem:[%s12003_s26] ss:$16 sps:$4 sm:$0xff]   ;;  %v413_v49 = vld [vmem:[%s12037_s29 + $0x8] sm:$0xff]  ;;  %s13553_s24 = sld [smem:[#allocation15_spill]] }
  0xc0   : > { %v9890_v2 = vld [vmem:[%s12003_s26 + $0x204] ss:$16 sps:$4 sm:$0xff]   ;;  %6684 = vmatprep.subr.bf16.mxu0 %v9888_v1  ;;  %v9893_v4 = vld [vmem:[%s12003_s26 + $0x200] ss:$16 sps:$4 sm:$0xff]   ;;  %v12092_v52 = vcombine.high %v413_v49, %v413_v49 }
  0xc1   : > { %6725 = vmatprep.subr.bf16.mxu1 %v9890_v2  ;;  %v9894_v5 = vld [vmem:[%s12003_s26 + $0x24] ss:$16 sps:$4 sm:$0xff]   ;;  %6685 = vmatpush1.bf16.msra.mxu0 %v9892_v3  ;;  %v9898_v7 = vld [vmem:[%s12003_s26 + $0x20] ss:$16 sps:$4 sm:$0xff]  }
  0xc2   : > { %6726 = vmatpush1.bf16.msra.mxu1 %v9893_v4  ;;  %v9896_v6 = vld [vmem:[%s12003_s26 + $0x224] ss:$16 sps:$4 sm:$0xff]   ;;  %6686 = vmatprep.subr.bf16.mxu0 %v9894_v5  ;;  %v9899_v8 = vld [vmem:[%s12003_s26 + $0x220] ss:$16 sps:$4 sm:$0xff]  }
  0xc3   : > { %6727 = vmatprep.subr.bf16.mxu1 %v9896_v6  ;;  %v9900_v9 = vld [vmem:[%s12003_s26 + $0x44] ss:$16 sps:$4 sm:$0xff]   ;;  %v9904_v11 = vld [vmem:[%s12003_s26 + $0x40] ss:$16 sps:$4 sm:$0xff]   ;;  %6757 = vmatprep.mubr.bf16.mxu1 %v12092_v52 }
  0xc4   : > { %v9902_v10 = vld [vmem:[%s12003_s26 + $0x244] ss:$16 sps:$4 sm:$0xff]   ;;  %v9905_v12 = vld [vmem:[%s12003_s26 + $0x240] ss:$16 sps:$4 sm:$0xff]  }
  0xc5   : > { %6687 = vmatpush1.bf16.msra.mxu0 %v9898_v7  ;;  %v9906_v13 = vld [vmem:[%s12003_s26 + $0x64] ss:$16 sps:$4 sm:$0xff]   ;;  %v9910_v15 = vld [vmem:[%s12003_s26 + $0x60] ss:$16 sps:$4 sm:$0xff]   ;;  %p9630_p9 = scmp.ne.s32.totalorder %s13553_s24, 1 }
  0xc6   : > { %6728 = vmatpush1.bf16.msra.mxu1 %v9899_v8  ;;  %6688 = vmatprep.subr.bf16.mxu0 %v9900_v9  ;;  %v9908_v14 = vld [vmem:[%s12003_s26 + $0x264] ss:$16 sps:$4 sm:$0xff]   ;;  %v9911_v16 = vld [vmem:[%s12003_s26 + $0x260] ss:$16 sps:$4 sm:$0xff]   ;;  %v12116_v8 = vcombine.low %v413_v49, %v413_v49 }
  0xc7   : > { %6729 = vmatprep.subr.bf16.mxu1 %v9902_v10  ;;  %v9912_v17 = vld [vmem:[%s12003_s26 + $0x84] ss:$16 sps:$4 sm:$0xff]   ;;  %v9916_v19 = vld [vmem:[%s12003_s26 + $0x80] ss:$16 sps:$4 sm:$0xff]  }
  0xc8   : > { %v9914_v18 = vld [vmem:[%s12003_s26 + $0x284] ss:$16 sps:$4 sm:$0xff]   ;;  %v9917_v20 = vld [vmem:[%s12003_s26 + $0x280] ss:$16 sps:$4 sm:$0xff]  }
  0xc9   : > { %6689 = vmatpush1.bf16.msra.mxu0 %v9904_v11  ;;  %v9918_v21 = vld [vmem:[%s12003_s26 + $0xa4] ss:$16 sps:$4 sm:$0xff]   ;;  %v9922_v23 = vld [vmem:[%s12003_s26 + $0xa0] ss:$16 sps:$4 sm:$0xff]  }
  0xca   : > { %6730 = vmatpush1.bf16.msra.mxu1 %v9905_v12  ;;  %6690 = vmatprep.subr.bf16.mxu0 %v9906_v13  ;;  %v9920_v22 = vld [vmem:[%s12003_s26 + $0x2a4] ss:$16 sps:$4 sm:$0xff]   ;;  %v9923_v24 = vld [vmem:[%s12003_s26 + $0x2a0] ss:$16 sps:$4 sm:$0xff]  }
  0xcb   : > { %6731 = vmatprep.subr.bf16.mxu1 %v9908_v14  ;;  %v9924_v25 = vld [vmem:[%s12003_s26 + $0xc4] ss:$16 sps:$4 sm:$0xff]   ;;  %v9928_v27 = vld [vmem:[%s12003_s26 + $0xc0] ss:$16 sps:$4 sm:$0xff]  }
  0xcc   : > { %v9926_v26 = vld [vmem:[%s12003_s26 + $0x2c4] ss:$16 sps:$4 sm:$0xff]   ;;  %v9929_v28 = vld [vmem:[%s12003_s26 + $0x2c0] ss:$16 sps:$4 sm:$0xff]  }
  0xcd   : > { %6691 = vmatpush1.bf16.msra.mxu0 %v9910_v15  ;;  %v9930_v29 = vld [vmem:[%s12003_s26 + $0xe4] ss:$16 sps:$4 sm:$0xff]   ;;  %v9934_v31 = vld [vmem:[%s12003_s26 + $0xe0] ss:$16 sps:$4 sm:$0xff]  }
  0xce   : > { %6732 = vmatpush1.bf16.msra.mxu1 %v9911_v16  ;;  %6692 = vmatprep.subr.bf16.mxu0 %v9912_v17  ;;  %v9932_v30 = vld [vmem:[%s12003_s26 + $0x2e4] ss:$16 sps:$4 sm:$0xff]   ;;  %v9935_v32 = vld [vmem:[%s12003_s26 + $0x2e0] ss:$16 sps:$4 sm:$0xff]  }
  0xcf   : > { %6733 = vmatprep.subr.bf16.mxu1 %v9914_v18  ;;  %v9936_v33 = vld [vmem:[%s12003_s26 + $0x104] ss:$16 sps:$4 sm:$0xff]   ;;  %v9940_v35 = vld [vmem:[%s12003_s26 + $0x100] ss:$16 sps:$4 sm:$0xff]  }
  0xd0   : > { %v9938_v34 = vld [vmem:[%s12003_s26 + $0x304] ss:$16 sps:$4 sm:$0xff]   ;;  %v9941_v36 = vld [vmem:[%s12003_s26 + $0x300] ss:$16 sps:$4 sm:$0xff]  }
  0xd1   : > { %6693 = vmatpush1.bf16.msra.mxu0 %v9916_v19  ;;  %v9942_v37 = vld [vmem:[%s12003_s26 + $0x124] ss:$16 sps:$4 sm:$0xff]   ;;  %v9946_v39 = vld [vmem:[%s12003_s26 + $0x120] ss:$16 sps:$4 sm:$0xff]  }
  0xd2   : > { %6734 = vmatpush1.bf16.msra.mxu1 %v9917_v20  ;;  %6694 = vmatprep.subr.bf16.mxu0 %v9918_v21  ;;  %v9944_v38 = vld [vmem:[%s12003_s26 + $0x324] ss:$16 sps:$4 sm:$0xff]   ;;  %v9947_v40 = vld [vmem:[%s12003_s26 + $0x320] ss:$16 sps:$4 sm:$0xff]  }
  0xd3   : > { %6735 = vmatprep.subr.bf16.mxu1 %v9920_v22  ;;  %v9948_v41 = vld [vmem:[%s12003_s26 + $0x144] ss:$16 sps:$4 sm:$0xff]   ;;  %v9952_v43 = vld [vmem:[%s12003_s26 + $0x140] ss:$16 sps:$4 sm:$0xff]  }
  0xd4   : > { %v9950_v42 = vld [vmem:[%s12003_s26 + $0x344] ss:$16 sps:$4 sm:$0xff]   ;;  %v9953_v44 = vld [vmem:[%s12003_s26 + $0x340] ss:$16 sps:$4 sm:$0xff]  }
  0xd5   : > { %6695 = vmatpush1.bf16.msra.mxu0 %v9922_v23  ;;  %v9954_v45 = vld [vmem:[%s12003_s26 + $0x164] ss:$16 sps:$4 sm:$0xff]   ;;  %v9958_v50 = vld [vmem:[%s12003_s26 + $0x160] ss:$16 sps:$4 sm:$0xff]  }
  0xd6   : > { %6736 = vmatpush1.bf16.msra.mxu1 %v9923_v24  ;;  %6696 = vmatprep.subr.bf16.mxu0 %v9924_v25  ;;  %v9956_v46 = vld [vmem:[%s12003_s26 + $0x364] ss:$16 sps:$4 sm:$0xff]   ;;  %v9959_v51 = vld [vmem:[%s12003_s26 + $0x360] ss:$16 sps:$4 sm:$0xff]  }
  0xd7   : > { %6737 = vmatprep.subr.bf16.mxu1 %v9926_v26  ;;  %v412_v47 = vld [vmem:[%s12037_s29] sm:$0xff] }
  0xd8   : > { %v12087_v48 = vcombine.high %v412_v47, %v412_v47  ;;  %v9960_v53 = vld [vmem:[%s12003_s26 + $0x184] ss:$16 sps:$4 sm:$0xff]   ;;  %v9964_v55 = vld [vmem:[%s12003_s26 + $0x180] ss:$16 sps:$4 sm:$0xff]   ;;  %v12114_v7 = vcombine.low %v412_v47, %v412_v47 }
  0xd9   : > { %6697 = vmatpush1.bf16.msra.mxu0 %v9928_v27  ;;  %v9962_v54 = vld [vmem:[%s12003_s26 + $0x384] ss:$16 sps:$4 sm:$0xff]   ;;  %v9965_v56 = vld [vmem:[%s12003_s26 + $0x380] ss:$16 sps:$4 sm:$0xff]  }
  0xda   : > { %6738 = vmatpush1.bf16.msra.mxu1 %v9929_v28  ;;  %6698 = vmatprep.subr.bf16.mxu0 %v9930_v29  ;;  %v9966_v57 = vld [vmem:[%s12003_s26 + $0x1a4] ss:$16 sps:$4 sm:$0xff]   ;;  %v9970_v59 = vld [vmem:[%s12003_s26 + $0x1a0] ss:$16 sps:$4 sm:$0xff]  }
  0xdb   : > { %6739 = vmatprep.subr.bf16.mxu1 %v9932_v30  ;;  %6716 = vmatprep.mubr.bf16.mxu0 %v12087_v48  ;;  %v9968_v58 = vld [vmem:[%s12003_s26 + $0x3a4] ss:$16 sps:$4 sm:$0xff]   ;;  %v9971_v60 = vld [vmem:[%s12003_s26 + $0x3a0] ss:$16 sps:$4 sm:$0xff]  }
  0xdc   : > { %v9972_v61 = vld [vmem:[%s12003_s26 + $0x1c4] ss:$16 sps:$4 sm:$0xff]   ;;  %v9976_v63 = vld [vmem:[%s12003_s26 + $0x1c0] ss:$16 sps:$4 sm:$0xff]  }
  0xdd   : > { %6699 = vmatpush1.bf16.msra.mxu0 %v9934_v31  ;;  %v9974_v62 = vld [vmem:[%s12003_s26 + $0x3c4] ss:$16 sps:$4 sm:$0xff]   ;;  %v9977_v0 = vld [vmem:[%s12003_s26 + $0x3c0] ss:$16 sps:$4 sm:$0xff]  }
  0xde   : > { %6740 = vmatpush1.bf16.msra.mxu1 %v9935_v32  ;;  %6700 = vmatprep.subr.bf16.mxu0 %v9936_v33  ;;  %v9978_v1 = vld [vmem:[%s12003_s26 + $0x1e4] ss:$16 sps:$4 sm:$0xff]   ;;  %v9982_v3 = vld [vmem:[%s12003_s26 + $0x1e0] ss:$16 sps:$4 sm:$0xff]  }
  0xdf   : > { %6741 = vmatprep.subr.bf16.mxu1 %v9938_v34  ;;  %v9980_v2 = vld [vmem:[%s12003_s26 + $0x3e4] ss:$16 sps:$4 sm:$0xff]   ;;  %v9983_v4 = vld [vmem:[%s12003_s26 + $0x3e0] ss:$16 sps:$4 sm:$0xff]   ;;  %v12148_v34 = vld [vmem:[%s12037_s29 + $0x18] sm:$0xff] }
  0xe0   : > { %v9990_v5 = vld [vmem:[%s12003_s26 + $0x404] ss:$16 sps:$4 sm:$0xff]   ;;  %v9988_v9 = vld [vmem:[%s12003_s26 + $0x400] ss:$16 sps:$4 sm:$0xff]  }
  0xe1   : > { %6701 = vmatpush1.bf16.msra.mxu0 %v9940_v35  ;;  %v9993_v6 = vld [vmem:[%s12003_s26 + $0x604] ss:$16 sps:$4 sm:$0xff]   ;;  %v9991_v10 = vld [vmem:[%s12003_s26 + $0x600] ss:$16 sps:$4 sm:$0xff]  }
  0xe2   : > { %6742 = vmatpush1.bf16.msra.mxu1 %v9941_v36  ;;  %6702 = vmatprep.subr.bf16.mxu0 %v9942_v37  ;;  %v9996_v11 = vld [vmem:[%s12003_s26 + $0x424] ss:$16 sps:$4 sm:$0xff]   ;;  %v9994_v13 = vld [vmem:[%s12003_s26 + $0x420] ss:$16 sps:$4 sm:$0xff]  }
  0xe3   : > { %6743 = vmatprep.subr.bf16.mxu1 %v9944_v38  ;;  %v9999_v12 = vld [vmem:[%s12003_s26 + $0x624] ss:$16 sps:$4 sm:$0xff]   ;;  %v9997_v14 = vld [vmem:[%s12003_s26 + $0x620] ss:$16 sps:$4 sm:$0xff]   ;;  %v12158_v38 = vcombine.high %v12148_v34, %v12148_v34 }
  0xe4   : > { %v10002_v15 = vld [vmem:[%s12003_s26 + $0x444] ss:$16 sps:$4 sm:$0xff]   ;;  %v10000_v17 = vld [vmem:[%s12003_s26 + $0x440] ss:$16 sps:$4 sm:$0xff]  }
  0xe5   : > { %6703 = vmatpush1.bf16.msra.mxu0 %v9946_v39  ;;  %v10005_v16 = vld [vmem:[%s12003_s26 + $0x644] ss:$16 sps:$4 sm:$0xff]   ;;  %v10003_v18 = vld [vmem:[%s12003_s26 + $0x640] ss:$16 sps:$4 sm:$0xff]  }
  0xe6   : > { %6744 = vmatpush1.bf16.msra.mxu1 %v9947_v40  ;;  %6704 = vmatprep.subr.bf16.mxu0 %v9948_v41  ;;  %v10008_v19 = vld [vmem:[%s12003_s26 + $0x464] ss:$16 sps:$4 sm:$0xff]   ;;  %v10006_v21 = vld [vmem:[%s12003_s26 + $0x460] ss:$16 sps:$4 sm:$0xff]  }
  0xe7   : > { %6745 = vmatprep.subr.bf16.mxu1 %v9950_v42  ;;  %v10011_v20 = vld [vmem:[%s12003_s26 + $0x664] ss:$16 sps:$4 sm:$0xff]   ;;  %v10009_v22 = vld [vmem:[%s12003_s26 + $0x660] ss:$16 sps:$4 sm:$0xff]  }
  0xe8   : > { %v10014_v23 = vld [vmem:[%s12003_s26 + $0x484] ss:$16 sps:$4 sm:$0xff]   ;;  %v10012_v25 = vld [vmem:[%s12003_s26 + $0x480] ss:$16 sps:$4 sm:$0xff]  }
  0xe9   : > { %6705 = vmatpush1.bf16.msra.mxu0 %v9952_v43  ;;  %v10017_v24 = vld [vmem:[%s12003_s26 + $0x684] ss:$16 sps:$4 sm:$0xff]   ;;  %v10015_v26 = vld [vmem:[%s12003_s26 + $0x680] ss:$16 sps:$4 sm:$0xff]  }
  0xea   : > { %6746 = vmatpush1.bf16.msra.mxu1 %v9953_v44  ;;  %6706 = vmatprep.subr.bf16.mxu0 %v9954_v45  ;;  %v10020_v27 = vld [vmem:[%s12003_s26 + $0x4a4] ss:$16 sps:$4 sm:$0xff]   ;;  %v10018_v29 = vld [vmem:[%s12003_s26 + $0x4a0] ss:$16 sps:$4 sm:$0xff]  }
  0xeb   : > { %6747 = vmatprep.subr.bf16.mxu1 %v9956_v46  ;;  %v10023_v28 = vld [vmem:[%s12003_s26 + $0x6a4] ss:$16 sps:$4 sm:$0xff]   ;;  %v10021_v30 = vld [vmem:[%s12003_s26 + $0x6a0] ss:$16 sps:$4 sm:$0xff]  }
  0xec   : > { %v10026_v31 = vld [vmem:[%s12003_s26 + $0x4c4] ss:$16 sps:$4 sm:$0xff]   ;;  %v10024_v35 = vld [vmem:[%s12003_s26 + $0x4c0] ss:$16 sps:$4 sm:$0xff]  }
  0xed   : > { %6707 = vmatpush1.bf16.msra.mxu0 %v9958_v50  ;;  %v10029_v32 = vld [vmem:[%s12003_s26 + $0x6c4] ss:$16 sps:$4 sm:$0xff]   ;;  %v10027_v36 = vld [vmem:[%s12003_s26 + $0x6c0] ss:$16 sps:$4 sm:$0xff]  }
  0xee   : > { %6748 = vmatpush1.bf16.msra.mxu1 %v9959_v51  ;;  %6708 = vmatprep.subr.bf16.mxu0 %v9960_v53  ;;  %v12145_v33 = vld [vmem:[%s12037_s29 + $0x10] sm:$0xff] }
  0xef   : > { %6749 = vmatprep.subr.bf16.mxu1 %v9962_v54  ;;  %v12154_v37 = vcombine.high %v12145_v33, %v12145_v33  ;;  %v10032_v39 = vld [vmem:[%s12003_s26 + $0x4e4] ss:$16 sps:$4 sm:$0xff]   ;;  %v10030_v41 = vld [vmem:[%s12003_s26 + $0x4e0] ss:$16 sps:$4 sm:$0xff]  }
  0xf0   : > { %v10035_v40 = vld [vmem:[%s12003_s26 + $0x6e4] ss:$16 sps:$4 sm:$0xff]   ;;  %v10033_v42 = vld [vmem:[%s12003_s26 + $0x6e0] ss:$16 sps:$4 sm:$0xff]  }
  0xf1   : > { %6709 = vmatpush1.bf16.msra.mxu0 %v9964_v55  ;;  %v10038_v43 = vld [vmem:[%s12003_s26 + $0x504] ss:$16 sps:$4 sm:$0xff]   ;;  %v10036_v45 = vld [vmem:[%s12003_s26 + $0x500] ss:$16 sps:$4 sm:$0xff]  }
  0xf2   : > { %6750 = vmatpush1.bf16.msra.mxu1 %v9965_v56  ;;  %6710 = vmatprep.subr.bf16.mxu0 %v9966_v57  ;;  %v10041_v44 = vld [vmem:[%s12003_s26 + $0x704] ss:$16 sps:$4 sm:$0xff]   ;;  %v10039_v46 = vld [vmem:[%s12003_s26 + $0x700] ss:$16 sps:$4 sm:$0xff]  }
  0xf3   : > { %6751 = vmatprep.subr.bf16.mxu1 %v9968_v58  ;;  %v10044_v47 = vld [vmem:[%s12003_s26 + $0x524] ss:$16 sps:$4 sm:$0xff]   ;;  %v10042_v50 = vld [vmem:[%s12003_s26 + $0x520] ss:$16 sps:$4 sm:$0xff]  }
  0xf4   : > { %v10047_v49 = vld [vmem:[%s12003_s26 + $0x724] ss:$16 sps:$4 sm:$0xff]   ;;  %v10045_v51 = vld [vmem:[%s12003_s26 + $0x720] ss:$16 sps:$4 sm:$0xff]  }
  0xf5   : > { %6711 = vmatpush1.bf16.msra.mxu0 %v9970_v59  ;;  %v10050_v53 = vld [vmem:[%s12003_s26 + $0x544] ss:$16 sps:$4 sm:$0xff]   ;;  %v10048_v55 = vld [vmem:[%s12003_s26 + $0x540] ss:$16 sps:$4 sm:$0xff]  }
  0xf6   : > { %6752 = vmatpush1.bf16.msra.mxu1 %v9971_v60  ;;  %6712 = vmatprep.subr.bf16.mxu0 %v9972_v61  ;;  %v10053_v54 = vld [vmem:[%s12003_s26 + $0x744] ss:$16 sps:$4 sm:$0xff]   ;;  %v10051_v56 = vld [vmem:[%s12003_s26 + $0x740] ss:$16 sps:$4 sm:$0xff]  }
  0xf7   : > { %6753 = vmatprep.subr.bf16.mxu1 %v9974_v62  ;;  %v10056_v57 = vld [vmem:[%s12003_s26 + $0x564] ss:$16 sps:$4 sm:$0xff]   ;;  %v10054_v59 = vld [vmem:[%s12003_s26 + $0x560] ss:$16 sps:$4 sm:$0xff]  }
  0xf8   : > { %v10059_v58 = vld [vmem:[%s12003_s26 + $0x764] ss:$16 sps:$4 sm:$0xff]   ;;  %v10057_v60 = vld [vmem:[%s12003_s26 + $0x760] ss:$16 sps:$4 sm:$0xff]  }
  0xf9   : > { %6713 = vmatpush1.bf16.msra.mxu0 %v9976_v63  ;;  %v10062_v61 = vld [vmem:[%s12003_s26 + $0x584] ss:$16 sps:$4 sm:$0xff]   ;;  %v10060_v63 = vld [vmem:[%s12003_s26 + $0x580] ss:$16 sps:$4 sm:$0xff]  }
  0xfa   : > { %6754 = vmatpush1.bf16.msra.mxu1 %v9977_v0  ;;  %6714 = vmatprep.subr.bf16.mxu0 %v9978_v1  ;;  %v10065_v62 = vld [vmem:[%s12003_s26 + $0x784] ss:$16 sps:$4 sm:$0xff]   ;;  %v10063_v0 = vld [vmem:[%s12003_s26 + $0x780] ss:$16 sps:$4 sm:$0xff]  }
  0xfb   : > { %6755 = vmatprep.subr.bf16.mxu1 %v9980_v2  ;;  %v10068_v1 = vld [vmem:[%s12003_s26 + $0x5a4] ss:$16 sps:$4 sm:$0xff]  }
  0xfc   : > { %v10071_v2 = vld [vmem:[%s12003_s26 + $0x7a4] ss:$16 sps:$4 sm:$0xff]  }
  0xfd   : > { %6715 = vmatpush1.bf16.msra.mxu0 %v9982_v3  ;;  %v10066_v3 = vld [vmem:[%s12003_s26 + $0x5a0] ss:$16 sps:$4 sm:$0xff]  }
  0xfe   : > { %6756 = vmatpush1.bf16.msra.mxu1 %v9983_v4  ;;  %6766 = vmatprep.subr.bf16.mxu0 %v9990_v5  ;;  %v10069_v4 = vld [vmem:[%s12003_s26 + $0x7a0] ss:$16 sps:$4 sm:$0xff]   ;;  %v10074_v5 = vld [vmem:[%s12003_s26 + $0x5c4] ss:$16 sps:$4 sm:$0xff]  }
  0xff   : > { %6807 = vmatprep.subr.bf16.mxu1 %v9993_v6  ;;  %v10077_v6 = vld [vmem:[%s12003_s26 + $0x7c4] ss:$16 sps:$4 sm:$0xff]  }
 0x100   : > { %6717 = vmatmul.mubr.bf16.vlgmr.msra.gmra.mrb[0].mxu0 %v12114_v7 }
 0x101   : > { %6758 = vmatmul.mubr.bf16.vlgmr.msra.gmra.mrb[0].mxu1 %v12116_v8  ;;  %6767 = vmatpush1.bf16.msra.mxu0 %v9988_v9  ;;  %v10072_v9 = vld [vmem:[%s12003_s26 + $0x5c0] ss:$16 sps:$4 sm:$0xff]  }
 0x102   : > { %6808 = vmatpush1.bf16.msra.mxu1 %v9991_v10  ;;  %6768 = vmatprep.subr.bf16.mxu0 %v9996_v11  ;;  %v10075_v10 = vld [vmem:[%s12003_s26 + $0x7c0] ss:$16 sps:$4 sm:$0xff]   ;;  %v10080_v11 = vld [vmem:[%s12003_s26 + $0x5e4] ss:$16 sps:$4 sm:$0xff]  }
 0x103   : > { %6809 = vmatprep.subr.bf16.mxu1 %v9999_v12  ;;  %6798 = vmatprep.mubr.bf16.mxu0 %v12154_v37  ;;  %v10083_v12 = vld [vmem:[%s12003_s26 + $0x7e4] ss:$16 sps:$4 sm:$0xff]  }
 0x104   : > { %6839 = vmatprep.mubr.bf16.mxu1 %v12158_v38 }
 0x105   : > { %6769 = vmatpush1.bf16.msra.mxu0 %v9994_v13  ;;  %v10078_v13 = vld [vmem:[%s12003_s26 + $0x5e0] ss:$16 sps:$4 sm:$0xff]  }
 0x106   : > { %6810 = vmatpush1.bf16.msra.mxu1 %v9997_v14  ;;  %6770 = vmatprep.subr.bf16.mxu0 %v10002_v15  ;;  %v10081_v14 = vld [vmem:[%s12003_s26 + $0x7e0] ss:$16 sps:$4 sm:$0xff]   ;;  %v10090_v15 = vld [vmem:[%s12003_s26 + $0x804] ss:$16 sps:$4 sm:$0xff]  }
 0x107   : > { %6811 = vmatprep.subr.bf16.mxu1 %v10005_v16  ;;  %v10093_v16 = vld [vmem:[%s12003_s26 + $0xa04] ss:$16 sps:$4 sm:$0xff]  }
 0x109   : > { %6771 = vmatpush1.bf16.msra.mxu0 %v10000_v17  ;;  %v12202_v17 = vcombine.low %v12145_v33, %v12145_v33  ;;  %v10108_v33 = vld [vmem:[%s12003_s26 + $0x864] ss:$16 sps:$4 sm:$0xff]  }
 0x10a   : > { %6812 = vmatpush1.bf16.msra.mxu1 %v10003_v18  ;;  %6772 = vmatprep.subr.bf16.mxu0 %v10008_v19  ;;  %v12206_v18 = vcombine.low %v12148_v34, %v12148_v34  ;;  %v10088_v19 = vld [vmem:[%s12003_s26 + $0x800] ss:$16 sps:$4 sm:$0xff]   ;;  %v10111_v34 = vld [vmem:[%s12003_s26 + $0xa64] ss:$16 sps:$4 sm:$0xff]  }
 0x10b   : > { %6813 = vmatprep.subr.bf16.mxu1 %v10011_v20  ;;  %v10091_v20 = vld [vmem:[%s12003_s26 + $0xa00] ss:$16 sps:$4 sm:$0xff]  }
 0x10d   : > { %6773 = vmatpush1.bf16.msra.mxu0 %v10006_v21  ;;  %v10096_v21 = vld [vmem:[%s12003_s26 + $0x824] ss:$16 sps:$4 sm:$0xff]  }
 0x10e   : > { %6814 = vmatpush1.bf16.msra.mxu1 %v10009_v22  ;;  %6774 = vmatprep.subr.bf16.mxu0 %v10014_v23  ;;  %v10099_v22 = vld [vmem:[%s12003_s26 + $0xa24] ss:$16 sps:$4 sm:$0xff]  }
 0x10f   : > { %6815 = vmatprep.subr.bf16.mxu1 %v10017_v24  ;;  %v12213_v23 = vld [vmem:[%s12037_s29 + $0x20] sm:$0xff]  ;;  %v12216_v24 = vld [vmem:[%s12037_s29 + $0x28] sm:$0xff] }
 0x111   : > { %6775 = vmatpush1.bf16.msra.mxu0 %v10012_v25  ;;  %v12220_v25 = vcombine.high %v12213_v23, %v12213_v23 }
 0x112   : > { %6816 = vmatpush1.bf16.msra.mxu1 %v10015_v26  ;;  %6776 = vmatprep.subr.bf16.mxu0 %v10020_v27  ;;  %v12224_v26 = vcombine.high %v12216_v24, %v12216_v24  ;;  %v10094_v27 = vld [vmem:[%s12003_s26 + $0x820] ss:$16 sps:$4 sm:$0xff]  }
 0x113   : > { %6817 = vmatprep.subr.bf16.mxu1 %v10023_v28  ;;  %v10097_v28 = vld [vmem:[%s12003_s26 + $0xa20] ss:$16 sps:$4 sm:$0xff]  }
 0x115   : > { %6777 = vmatpush1.bf16.msra.mxu0 %v10018_v29  ;;  %v10102_v29 = vld [vmem:[%s12003_s26 + $0x844] ss:$16 sps:$4 sm:$0xff]  }
 0x116   : > { %6818 = vmatpush1.bf16.msra.mxu1 %v10021_v30  ;;  %6778 = vmatprep.subr.bf16.mxu0 %v10026_v31  ;;  %v10105_v30 = vld [vmem:[%s12003_s26 + $0xa44] ss:$16 sps:$4 sm:$0xff]   ;;  %v10100_v31 = vld [vmem:[%s12003_s26 + $0x840] ss:$16 sps:$4 sm:$0xff]  }
 0x117   : > { %6819 = vmatprep.subr.bf16.mxu1 %v10029_v32  ;;  %v10103_v32 = vld [vmem:[%s12003_s26 + $0xa40] ss:$16 sps:$4 sm:$0xff]  }
 0x119   : > { %6779 = vmatpush1.bf16.msra.mxu0 %v10024_v35  ;;  %v10106_v35 = vld [vmem:[%s12003_s26 + $0x860] ss:$16 sps:$4 sm:$0xff]  }
 0x11a   : > { %6820 = vmatpush1.bf16.msra.mxu1 %v10027_v36  ;;  %6780 = vmatprep.subr.bf16.mxu0 %v10032_v39  ;;  %v10109_v36 = vld [vmem:[%s12003_s26 + $0xa60] ss:$16 sps:$4 sm:$0xff]   ;;  %v10114_v39 = vld [vmem:[%s12003_s26 + $0x884] ss:$16 sps:$4 sm:$0xff]  }
 0x11b   : > { %6821 = vmatprep.subr.bf16.mxu1 %v10035_v40  ;;  %v10117_v40 = vld [vmem:[%s12003_s26 + $0xa84] ss:$16 sps:$4 sm:$0xff]  }
 0x11d   : > { %6781 = vmatpush1.bf16.msra.mxu0 %v10030_v41  ;;  %v10112_v41 = vld [vmem:[%s12003_s26 + $0x880] ss:$16 sps:$4 sm:$0xff]  }
 0x11e   : > { %6822 = vmatpush1.bf16.msra.mxu1 %v10033_v42  ;;  %6782 = vmatprep.subr.bf16.mxu0 %v10038_v43  ;;  %v10115_v42 = vld [vmem:[%s12003_s26 + $0xa80] ss:$16 sps:$4 sm:$0xff]   ;;  %v10120_v43 = vld [vmem:[%s12003_s26 + $0x8a4] ss:$16 sps:$4 sm:$0xff]  }
 0x11f   : > { %6823 = vmatprep.subr.bf16.mxu1 %v10041_v44  ;;  %v10123_v44 = vld [vmem:[%s12003_s26 + $0xaa4] ss:$16 sps:$4 sm:$0xff]  }
 0x121   : > { %6783 = vmatpush1.bf16.msra.mxu0 %v10036_v45  ;;  %v10118_v45 = vld [vmem:[%s12003_s26 + $0x8a0] ss:$16 sps:$4 sm:$0xff]  }
 0x122   : > { %6824 = vmatpush1.bf16.msra.mxu1 %v10039_v46  ;;  %6784 = vmatprep.subr.bf16.mxu0 %v10044_v47  ;;  %v10121_v46 = vld [vmem:[%s12003_s26 + $0xaa0] ss:$16 sps:$4 sm:$0xff]   ;;  %v10126_v47 = vld [vmem:[%s12003_s26 + $0x8c4] ss:$16 sps:$4 sm:$0xff]  }
 0x123   : > { %6825 = vmatprep.subr.bf16.mxu1 %v10047_v49  ;;  %v10129_v49 = vld [vmem:[%s12003_s26 + $0xac4] ss:$16 sps:$4 sm:$0xff]  }
 0x125   : > { %6785 = vmatpush1.bf16.msra.mxu0 %v10042_v50  ;;  %v10124_v50 = vld [vmem:[%s12003_s26 + $0x8c0] ss:$16 sps:$4 sm:$0xff]  }
 0x126   : > { %6826 = vmatpush1.bf16.msra.mxu1 %v10045_v51  ;;  %6786 = vmatprep.subr.bf16.mxu0 %v10050_v53  ;;  %v10127_v51 = vld [vmem:[%s12003_s26 + $0xac0] ss:$16 sps:$4 sm:$0xff]   ;;  %v10132_v53 = vld [vmem:[%s12003_s26 + $0x8e4] ss:$16 sps:$4 sm:$0xff]  }
 0x127   : > { %6827 = vmatprep.subr.bf16.mxu1 %v10053_v54  ;;  %v10135_v54 = vld [vmem:[%s12003_s26 + $0xae4] ss:$16 sps:$4 sm:$0xff]  }
 0x129   : > { %6787 = vmatpush1.bf16.msra.mxu0 %v10048_v55  ;;  %v10130_v55 = vld [vmem:[%s12003_s26 + $0x8e0] ss:$16 sps:$4 sm:$0xff]  }
 0x12a   : > { %6828 = vmatpush1.bf16.msra.mxu1 %v10051_v56  ;;  %6788 = vmatprep.subr.bf16.mxu0 %v10056_v57  ;;  %v10133_v56 = vld [vmem:[%s12003_s26 + $0xae0] ss:$16 sps:$4 sm:$0xff]   ;;  %v10138_v57 = vld [vmem:[%s12003_s26 + $0x904] ss:$16 sps:$4 sm:$0xff]  }
 0x12b   : > { %6829 = vmatprep.subr.bf16.mxu1 %v10059_v58  ;;  %v10141_v58 = vld [vmem:[%s12003_s26 + $0xb04] ss:$16 sps:$4 sm:$0xff]  }
 0x12d   : > { %6789 = vmatpush1.bf16.msra.mxu0 %v10054_v59  ;;  %v10136_v59 = vld [vmem:[%s12003_s26 + $0x900] ss:$16 sps:$4 sm:$0xff]  }
 0x12e   : > { %6830 = vmatpush1.bf16.msra.mxu1 %v10057_v60  ;;  %6790 = vmatprep.subr.bf16.mxu0 %v10062_v61  ;;  %v10139_v60 = vld [vmem:[%s12003_s26 + $0xb00] ss:$16 sps:$4 sm:$0xff]   ;;  %v10144_v61 = vld [vmem:[%s12003_s26 + $0x924] ss:$16 sps:$4 sm:$0xff]  }
 0x12f   : > { %6831 = vmatprep.subr.bf16.mxu1 %v10065_v62  ;;  %v10147_v62 = vld [vmem:[%s12003_s26 + $0xb24] ss:$16 sps:$4 sm:$0xff]  }
 0x131   : > { %6791 = vmatpush1.bf16.msra.mxu0 %v10060_v63  ;;  %v10142_v63 = vld [vmem:[%s12003_s26 + $0x920] ss:$16 sps:$4 sm:$0xff]  }
 0x132   : > { %6832 = vmatpush1.bf16.msra.mxu1 %v10063_v0  ;;  %6792 = vmatprep.subr.bf16.mxu0 %v10068_v1  ;;  %v10145_v0 = vld [vmem:[%s12003_s26 + $0xb20] ss:$16 sps:$4 sm:$0xff]   ;;  %v10150_v1 = vld [vmem:[%s12003_s26 + $0x944] ss:$16 sps:$4 sm:$0xff]  }
 0x133   : > { %6833 = vmatprep.subr.bf16.mxu1 %v10071_v2  ;;  %v10153_v2 = vld [vmem:[%s12003_s26 + $0xb44] ss:$16 sps:$4 sm:$0xff]  }
 0x135   : > { %6793 = vmatpush1.bf16.msra.mxu0 %v10066_v3  ;;  %v10148_v3 = vld [vmem:[%s12003_s26 + $0x940] ss:$16 sps:$4 sm:$0xff]  }
 0x136   : > { %6834 = vmatpush1.bf16.msra.mxu1 %v10069_v4  ;;  %6794 = vmatprep.subr.bf16.mxu0 %v10074_v5  ;;  %v10151_v4 = vld [vmem:[%s12003_s26 + $0xb40] ss:$16 sps:$4 sm:$0xff]   ;;  %v10156_v5 = vld [vmem:[%s12003_s26 + $0x964] ss:$16 sps:$4 sm:$0xff]  }
 0x137   : > { %6835 = vmatprep.subr.bf16.mxu1 %v10077_v6  ;;  %v10159_v6 = vld [vmem:[%s12003_s26 + $0xb64] ss:$16 sps:$4 sm:$0xff]  }
 0x139   : > { %6795 = vmatpush1.bf16.msra.mxu0 %v10072_v9  ;;  %v10154_v9 = vld [vmem:[%s12003_s26 + $0x960] ss:$16 sps:$4 sm:$0xff]  }
 0x13a   : > { %6836 = vmatpush1.bf16.msra.mxu1 %v10075_v10  ;;  %6796 = vmatprep.subr.bf16.mxu0 %v10080_v11  ;;  %v10157_v10 = vld [vmem:[%s12003_s26 + $0xb60] ss:$16 sps:$4 sm:$0xff]   ;;  %v10162_v11 = vld [vmem:[%s12003_s26 + $0x984] ss:$16 sps:$4 sm:$0xff]  }
 0x13b   : > { %6837 = vmatprep.subr.bf16.mxu1 %v10083_v12  ;;  %v10165_v12 = vld [vmem:[%s12003_s26 + $0xb84] ss:$16 sps:$4 sm:$0xff]  }
 0x13d   : > { %6797 = vmatpush1.bf16.msra.mxu0 %v10078_v13  ;;  %v10160_v13 = vld [vmem:[%s12003_s26 + $0x980] ss:$16 sps:$4 sm:$0xff]  }
 0x13e   : > { %6838 = vmatpush1.bf16.msra.mxu1 %v10081_v14  ;;  %6848 = vmatprep.subr.bf16.mxu0 %v10090_v15  ;;  %v10163_v14 = vld [vmem:[%s12003_s26 + $0xb80] ss:$16 sps:$4 sm:$0xff]   ;;  %v10168_v15 = vld [vmem:[%s12003_s26 + $0x9a4] ss:$16 sps:$4 sm:$0xff]  }
 0x13f   : > { %6889 = vmatprep.subr.bf16.mxu1 %v10093_v16  ;;  %v10171_v16 = vld [vmem:[%s12003_s26 + $0xba4] ss:$16 sps:$4 sm:$0xff]  }
 0x140   : > { %6799 = vmatmul.mubr.bf16.vlgmr.msra.gmra.mrb[4].mxu0 %v12202_v17 }
 0x141   : > { %6840 = vmatmul.mubr.bf16.vlgmr.msra.gmra.mrb[4].mxu1 %v12206_v18  ;;  %6849 = vmatpush1.bf16.msra.mxu0 %v10088_v19  ;;  %v10166_v19 = vld [vmem:[%s12003_s26 + $0x9a0] ss:$16 sps:$4 sm:$0xff]  }
 0x142   : > { %6890 = vmatpush1.bf16.msra.mxu1 %v10091_v20  ;;  %6850 = vmatprep.subr.bf16.mxu0 %v10096_v21  ;;  %v10169_v20 = vld [vmem:[%s12003_s26 + $0xba0] ss:$16 sps:$4 sm:$0xff]   ;;  %v10174_v21 = vld [vmem:[%s12003_s26 + $0x9c4] ss:$16 sps:$4 sm:$0xff]  }
 0x143   : > { %6891 = vmatprep.subr.bf16.mxu1 %v10099_v22  ;;  %6880 = vmatprep.mubr.bf16.mxu0 %v12220_v25  ;;  %v10177_v22 = vld [vmem:[%s12003_s26 + $0xbc4] ss:$16 sps:$4 sm:$0xff]  }
 0x144   : > { %6921 = vmatprep.mubr.bf16.mxu1 %v12224_v26 }
 0x145   : > { %6851 = vmatpush1.bf16.msra.mxu0 %v10094_v27  ;;  %v10172_v27 = vld [vmem:[%s12003_s26 + $0x9c0] ss:$16 sps:$4 sm:$0xff]  }
 0x146   : > { %6892 = vmatpush1.bf16.msra.mxu1 %v10097_v28  ;;  %6852 = vmatprep.subr.bf16.mxu0 %v10102_v29  ;;  %v10175_v28 = vld [vmem:[%s12003_s26 + $0xbc0] ss:$16 sps:$4 sm:$0xff]   ;;  %v10180_v29 = vld [vmem:[%s12003_s26 + $0x9e4] ss:$16 sps:$4 sm:$0xff]  }
 0x147   : > { %6893 = vmatprep.subr.bf16.mxu1 %v10105_v30  ;;  %v10183_v30 = vld [vmem:[%s12003_s26 + $0xbe4] ss:$16 sps:$4 sm:$0xff]  }
 0x149   : > { %6853 = vmatpush1.bf16.msra.mxu0 %v10100_v31  ;;  %v10178_v31 = vld [vmem:[%s12003_s26 + $0x9e0] ss:$16 sps:$4 sm:$0xff]  }
 0x14a   : > { %6894 = vmatpush1.bf16.msra.mxu1 %v10103_v32  ;;  %6854 = vmatprep.subr.bf16.mxu0 %v10108_v33  ;;  %v10181_v32 = vld [vmem:[%s12003_s26 + $0xbe0] ss:$16 sps:$4 sm:$0xff]   ;;  %v10190_v33 = vld [vmem:[%s12003_s26 + $0xc04] ss:$16 sps:$4 sm:$0xff]  }
 0x14b   : > { %6895 = vmatprep.subr.bf16.mxu1 %v10111_v34  ;;  %v10193_v34 = vld [vmem:[%s12003_s26 + $0xe04] ss:$16 sps:$4 sm:$0xff]  }
 0x14d   : > { %6855 = vmatpush1.bf16.msra.mxu0 %v10106_v35  ;;  %v10188_v35 = vld [vmem:[%s12003_s26 + $0xc00] ss:$16 sps:$4 sm:$0xff]  }
 0x14e   : > { %6896 = vmatpush1.bf16.msra.mxu1 %v10109_v36  ;;  %6856 = vmatprep.subr.bf16.mxu0 %v10114_v39  ;;  %v10191_v36 = vld [vmem:[%s12003_s26 + $0xe00] ss:$16 sps:$4 sm:$0xff]   ;;  %v12294_v39 = vcombine.low %v12213_v23, %v12213_v23 }
 0x14f   : > { %6897 = vmatprep.subr.bf16.mxu1 %v10117_v40  ;;  %v12298_v40 = vcombine.low %v12216_v24, %v12216_v24 }
 0x151   : > { %6857 = vmatpush1.bf16.msra.mxu0 %v10112_v41  ;;  %v12301_v41 = vld [vmem:[%s12037_s29 + $0x30] sm:$0xff] }
 0x152   : > { %6898 = vmatpush1.bf16.msra.mxu1 %v10115_v42  ;;  %6858 = vmatprep.subr.bf16.mxu0 %v10120_v43  ;;  %v12304_v42 = vld [vmem:[%s12037_s29 + $0x38] sm:$0xff]  ;;  %v10196_v43 = vld [vmem:[%s12003_s26 + $0xc24] ss:$16 sps:$4 sm:$0xff]   ;;  %v12310_v23 = vcombine.high %v12301_v41, %v12301_v41 }
 0x153   : > { %6899 = vmatprep.subr.bf16.mxu1 %v10123_v44  ;;  %v10199_v44 = vld [vmem:[%s12003_s26 + $0xe24] ss:$16 sps:$4 sm:$0xff]   ;;  %v12314_v24 = vcombine.high %v12304_v42, %v12304_v42 }
 0x155   : > { %6859 = vmatpush1.bf16.msra.mxu0 %v10118_v45  ;;  %v10194_v45 = vld [vmem:[%s12003_s26 + $0xc20] ss:$16 sps:$4 sm:$0xff]  }
 0x156   : > { %6900 = vmatpush1.bf16.msra.mxu1 %v10121_v46  ;;  %6860 = vmatprep.subr.bf16.mxu0 %v10126_v47  ;;  %v10197_v46 = vld [vmem:[%s12003_s26 + $0xe20] ss:$16 sps:$4 sm:$0xff]   ;;  %v10202_v47 = vld [vmem:[%s12003_s26 + $0xc44] ss:$16 sps:$4 sm:$0xff]  }
 0x157   : > { %6901 = vmatprep.subr.bf16.mxu1 %v10129_v49  ;;  %v10205_v49 = vld [vmem:[%s12003_s26 + $0xe44] ss:$16 sps:$4 sm:$0xff]  }
 0x159   : > { %6861 = vmatpush1.bf16.msra.mxu0 %v10124_v50  ;;  %v10200_v50 = vld [vmem:[%s12003_s26 + $0xc40] ss:$16 sps:$4 sm:$0xff]  }
 0x15a   : > { %6902 = vmatpush1.bf16.msra.mxu1 %v10127_v51  ;;  %6862 = vmatprep.subr.bf16.mxu0 %v10132_v53  ;;  %v10203_v51 = vld [vmem:[%s12003_s26 + $0xe40] ss:$16 sps:$4 sm:$0xff]   ;;  %v10208_v53 = vld [vmem:[%s12003_s26 + $0xc64] ss:$16 sps:$4 sm:$0xff]  }
 0x15b   : > { %6903 = vmatprep.subr.bf16.mxu1 %v10135_v54  ;;  %v10211_v54 = vld [vmem:[%s12003_s26 + $0xe64] ss:$16 sps:$4 sm:$0xff]  }
 0x15d   : > { %6863 = vmatpush1.bf16.msra.mxu0 %v10130_v55  ;;  %v10206_v55 = vld [vmem:[%s12003_s26 + $0xc60] ss:$16 sps:$4 sm:$0xff]  }
 0x15e   : > { %6904 = vmatpush1.bf16.msra.mxu1 %v10133_v56  ;;  %6864 = vmatprep.subr.bf16.mxu0 %v10138_v57  ;;  %v10209_v56 = vld [vmem:[%s12003_s26 + $0xe60] ss:$16 sps:$4 sm:$0xff]   ;;  %v10214_v57 = vld [vmem:[%s12003_s26 + $0xc84] ss:$16 sps:$4 sm:$0xff]  }
 0x15f   : > { %6905 = vmatprep.subr.bf16.mxu1 %v10141_v58  ;;  %v10217_v58 = vld [vmem:[%s12003_s26 + $0xe84] ss:$16 sps:$4 sm:$0xff]  }
 0x161   : > { %6865 = vmatpush1.bf16.msra.mxu0 %v10136_v59  ;;  %v10212_v59 = vld [vmem:[%s12003_s26 + $0xc80] ss:$16 sps:$4 sm:$0xff]  }
 0x162   : > { %6906 = vmatpush1.bf16.msra.mxu1 %v10139_v60  ;;  %6866 = vmatprep.subr.bf16.mxu0 %v10144_v61  ;;  %v10215_v60 = vld [vmem:[%s12003_s26 + $0xe80] ss:$16 sps:$4 sm:$0xff]   ;;  %v10220_v61 = vld [vmem:[%s12003_s26 + $0xca4] ss:$16 sps:$4 sm:$0xff]  }
 0x163   : > { %6907 = vmatprep.subr.bf16.mxu1 %v10147_v62  ;;  %v10223_v62 = vld [vmem:[%s12003_s26 + $0xea4] ss:$16 sps:$4 sm:$0xff]  }
 0x165   : > { %6867 = vmatpush1.bf16.msra.mxu0 %v10142_v63  ;;  %v10218_v63 = vld [vmem:[%s12003_s26 + $0xca0] ss:$16 sps:$4 sm:$0xff]  }
 0x166   : > { %6908 = vmatpush1.bf16.msra.mxu1 %v10145_v0  ;;  %6868 = vmatprep.subr.bf16.mxu0 %v10150_v1  ;;  %v10221_v0 = vld [vmem:[%s12003_s26 + $0xea0] ss:$16 sps:$4 sm:$0xff]   ;;  %v10226_v1 = vld [vmem:[%s12003_s26 + $0xcc4] ss:$16 sps:$4 sm:$0xff]  }
 0x167   : > { %6909 = vmatprep.subr.bf16.mxu1 %v10153_v2  ;;  %v10229_v2 = vld [vmem:[%s12003_s26 + $0xec4] ss:$16 sps:$4 sm:$0xff]  }
 0x169   : > { %6869 = vmatpush1.bf16.msra.mxu0 %v10148_v3  ;;  %v10224_v3 = vld [vmem:[%s12003_s26 + $0xcc0] ss:$16 sps:$4 sm:$0xff]  }
 0x16a   : > { %6910 = vmatpush1.bf16.msra.mxu1 %v10151_v4  ;;  %6870 = vmatprep.subr.bf16.mxu0 %v10156_v5  ;;  %v10227_v4 = vld [vmem:[%s12003_s26 + $0xec0] ss:$16 sps:$4 sm:$0xff]   ;;  %v10232_v5 = vld [vmem:[%s12003_s26 + $0xce4] ss:$16 sps:$4 sm:$0xff]  }
 0x16b   : > { %6911 = vmatprep.subr.bf16.mxu1 %v10159_v6  ;;  %v10235_v6 = vld [vmem:[%s12003_s26 + $0xee4] ss:$16 sps:$4 sm:$0xff]  }
 0x16d   : > { %6871 = vmatpush1.bf16.msra.mxu0 %v10154_v9  ;;  %v10230_v9 = vld [vmem:[%s12003_s26 + $0xce0] ss:$16 sps:$4 sm:$0xff]  }
 0x16e   : > { %6912 = vmatpush1.bf16.msra.mxu1 %v10157_v10  ;;  %6872 = vmatprep.subr.bf16.mxu0 %v10162_v11  ;;  %v10233_v10 = vld [vmem:[%s12003_s26 + $0xee0] ss:$16 sps:$4 sm:$0xff]   ;;  %v10238_v11 = vld [vmem:[%s12003_s26 + $0xd04] ss:$16 sps:$4 sm:$0xff]  }
 0x16f   : > { %6913 = vmatprep.subr.bf16.mxu1 %v10165_v12  ;;  %v10241_v12 = vld [vmem:[%s12003_s26 + $0xf04] ss:$16 sps:$4 sm:$0xff]  }
 0x171   : > { %6873 = vmatpush1.bf16.msra.mxu0 %v10160_v13  ;;  %v10236_v13 = vld [vmem:[%s12003_s26 + $0xd00] ss:$16 sps:$4 sm:$0xff]  }
 0x172   : > { %6914 = vmatpush1.bf16.msra.mxu1 %v10163_v14  ;;  %6874 = vmatprep.subr.bf16.mxu0 %v10168_v15  ;;  %v10239_v14 = vld [vmem:[%s12003_s26 + $0xf00] ss:$16 sps:$4 sm:$0xff]   ;;  %v10244_v15 = vld [vmem:[%s12003_s26 + $0xd24] ss:$16 sps:$4 sm:$0xff]  }
 0x173   : > { %6915 = vmatprep.subr.bf16.mxu1 %v10171_v16  ;;  %v10247_v16 = vld [vmem:[%s12003_s26 + $0xf24] ss:$16 sps:$4 sm:$0xff]  }
 0x175   : > { %6875 = vmatpush1.bf16.msra.mxu0 %v10166_v19  ;;  %v10242_v19 = vld [vmem:[%s12003_s26 + $0xd20] ss:$16 sps:$4 sm:$0xff]  }
 0x176   : > { %6916 = vmatpush1.bf16.msra.mxu1 %v10169_v20  ;;  %6876 = vmatprep.subr.bf16.mxu0 %v10174_v21  ;;  %v10245_v20 = vld [vmem:[%s12003_s26 + $0xf20] ss:$16 sps:$4 sm:$0xff]   ;;  %v10250_v21 = vld [vmem:[%s12003_s26 + $0xd44] ss:$16 sps:$4 sm:$0xff]  }
 0x177   : > { %6917 = vmatprep.subr.bf16.mxu1 %v10177_v22  ;;  %v10253_v22 = vld [vmem:[%s12003_s26 + $0xf44] ss:$16 sps:$4 sm:$0xff]  }
 0x179   : > { %6877 = vmatpush1.bf16.msra.mxu0 %v10172_v27  ;;  %v10248_v27 = vld [vmem:[%s12003_s26 + $0xd40] ss:$16 sps:$4 sm:$0xff]  }
 0x17a   : > { %6918 = vmatpush1.bf16.msra.mxu1 %v10175_v28  ;;  %6878 = vmatprep.subr.bf16.mxu0 %v10180_v29  ;;  %v10251_v28 = vld [vmem:[%s12003_s26 + $0xf40] ss:$16 sps:$4 sm:$0xff]   ;;  %v10256_v29 = vld [vmem:[%s12003_s26 + $0xd64] ss:$16 sps:$4 sm:$0xff]  }
 0x17b   : > { %6919 = vmatprep.subr.bf16.mxu1 %v10183_v30  ;;  %v10259_v30 = vld [vmem:[%s12003_s26 + $0xf64] ss:$16 sps:$4 sm:$0xff]  }
 0x17d   : > { %6879 = vmatpush1.bf16.msra.mxu0 %v10178_v31  ;;  %v10254_v31 = vld [vmem:[%s12003_s26 + $0xd60] ss:$16 sps:$4 sm:$0xff]  }
 0x17e   : > { %6920 = vmatpush1.bf16.msra.mxu1 %v10181_v32  ;;  %6930 = vmatprep.subr.bf16.mxu0 %v10190_v33  ;;  %v10257_v32 = vld [vmem:[%s12003_s26 + $0xf60] ss:$16 sps:$4 sm:$0xff]   ;;  %v10262_v33 = vld [vmem:[%s12003_s26 + $0xd84] ss:$16 sps:$4 sm:$0xff]  }
 0x17f   : > { %6971 = vmatprep.subr.bf16.mxu1 %v10193_v34  ;;  %v10265_v34 = vld [vmem:[%s12003_s26 + $0xf84] ss:$16 sps:$4 sm:$0xff]  }
 0x180   : > { %6881 = vmatmul.mubr.bf16.vlgmr.msra.gmra.mrb[8].mxu0 %v12294_v39 }
 0x181   : > { %6922 = vmatmul.mubr.bf16.vlgmr.msra.gmra.mrb[8].mxu1 %v12298_v40  ;;  %6931 = vmatpush1.bf16.msra.mxu0 %v10188_v35  ;;  %v10260_v35 = vld [vmem:[%s12003_s26 + $0xd80] ss:$16 sps:$4 sm:$0xff]  }
 0x182   : > { %6972 = vmatpush1.bf16.msra.mxu1 %v10191_v36  ;;  %6932 = vmatprep.subr.bf16.mxu0 %v10196_v43  ;;  %v10263_v36 = vld [vmem:[%s12003_s26 + $0xf80] ss:$16 sps:$4 sm:$0xff]   ;;  %v10268_v43 = vld [vmem:[%s12003_s26 + $0xda4] ss:$16 sps:$4 sm:$0xff]  }
 0x183   : > { %6973 = vmatprep.subr.bf16.mxu1 %v10199_v44  ;;  %6962 = vmatprep.mubr.bf16.mxu0 %v12310_v23  ;;  %v10271_v44 = vld [vmem:[%s12003_s26 + $0xfa4] ss:$16 sps:$4 sm:$0xff]  }
 0x184   : > { %7003 = vmatprep.mubr.bf16.mxu1 %v12314_v24 }
 0x185   : > { %6933 = vmatpush1.bf16.msra.mxu0 %v10194_v45  ;;  %v10266_v45 = vld [vmem:[%s12003_s26 + $0xda0] ss:$16 sps:$4 sm:$0xff]  }
 0x186   : > { %6974 = vmatpush1.bf16.msra.mxu1 %v10197_v46  ;;  %6934 = vmatprep.subr.bf16.mxu0 %v10202_v47  ;;  %v10269_v46 = vld [vmem:[%s12003_s26 + $0xfa0] ss:$16 sps:$4 sm:$0xff]   ;;  %v10274_v47 = vld [vmem:[%s12003_s26 + $0xdc4] ss:$16 sps:$4 sm:$0xff]  }
 0x187   : > { %6975 = vmatprep.subr.bf16.mxu1 %v10205_v49  ;;  %v10277_v49 = vld [vmem:[%s12003_s26 + $0xfc4] ss:$16 sps:$4 sm:$0xff]  }
 0x189   : > { %6935 = vmatpush1.bf16.msra.mxu0 %v10200_v50  ;;  %v10272_v50 = vld [vmem:[%s12003_s26 + $0xdc0] ss:$16 sps:$4 sm:$0xff]  }
 0x18a   : > { %6976 = vmatpush1.bf16.msra.mxu1 %v10203_v51  ;;  %6936 = vmatprep.subr.bf16.mxu0 %v10208_v53  ;;  %v10275_v51 = vld [vmem:[%s12003_s26 + $0xfc0] ss:$16 sps:$4 sm:$0xff]   ;;  %v10280_v53 = vld [vmem:[%s12003_s26 + $0xde4] ss:$16 sps:$4 sm:$0xff]  }
 0x18b   : > { %6977 = vmatprep.subr.bf16.mxu1 %v10211_v54  ;;  %v10283_v54 = vld [vmem:[%s12003_s26 + $0xfe4] ss:$16 sps:$4 sm:$0xff]  }
 0x18d   : > { %6937 = vmatpush1.bf16.msra.mxu0 %v10206_v55  ;;  %v10278_v55 = vld [vmem:[%s12003_s26 + $0xde0] ss:$16 sps:$4 sm:$0xff]  }
 0x18e   : > { %6978 = vmatpush1.bf16.msra.mxu1 %v10209_v56  ;;  %6938 = vmatprep.subr.bf16.mxu0 %v10214_v57  ;;  %v10281_v56 = vld [vmem:[%s12003_s26 + $0xfe0] ss:$16 sps:$4 sm:$0xff]   ;;  %v10290_v57 = vld [vmem:[%s12003_s26 + $0x1004] ss:$16 sps:$4 sm:$0xff]  }
 0x18f   : > { %6979 = vmatprep.subr.bf16.mxu1 %v10217_v58  ;;  %v10293_v58 = vld [vmem:[%s12003_s26 + $0x1204] ss:$16 sps:$4 sm:$0xff]  }
 0x191   : > { %6939 = vmatpush1.bf16.msra.mxu0 %v10212_v59  ;;  %v12381_v59 = vld [vmem:[%s12037_s29 + $0x40] sm:$0xff] }
 0x192   : > { %6980 = vmatpush1.bf16.msra.mxu1 %v10215_v60  ;;  %6940 = vmatprep.subr.bf16.mxu0 %v10220_v61  ;;  %v12385_v60 = vcombine.low %v12301_v41, %v12301_v41  ;;  %v12389_v61 = vcombine.low %v12304_v42, %v12304_v42  ;;  %v12400_v41 = vcombine.high %v12381_v59, %v12381_v59 }
 0x193   : > { %6981 = vmatprep.subr.bf16.mxu1 %v10223_v62  ;;  %v12392_v62 = vld [vmem:[%s12037_s29 + $0x48] sm:$0xff] }
 0x194   : > { %v12404_v42 = vcombine.high %v12392_v62, %v12392_v62 }
 0x195   : > { %6941 = vmatpush1.bf16.msra.mxu0 %v10218_v63  ;;  %v10288_v63 = vld [vmem:[%s12003_s26 + $0x1000] ss:$16 sps:$4 sm:$0xff]  }
 0x196   : > { %6982 = vmatpush1.bf16.msra.mxu1 %v10221_v0  ;;  %6942 = vmatprep.subr.bf16.mxu0 %v10226_v1  ;;  %v10291_v0 = vld [vmem:[%s12003_s26 + $0x1200] ss:$16 sps:$4 sm:$0xff]   ;;  %v10296_v1 = vld [vmem:[%s12003_s26 + $0x1024] ss:$16 sps:$4 sm:$0xff]  }
 0x197   : > { %6983 = vmatprep.subr.bf16.mxu1 %v10229_v2  ;;  %v10299_v2 = vld [vmem:[%s12003_s26 + $0x1224] ss:$16 sps:$4 sm:$0xff]  }
 0x199   : > { %6943 = vmatpush1.bf16.msra.mxu0 %v10224_v3  ;;  %v10294_v3 = vld [vmem:[%s12003_s26 + $0x1020] ss:$16 sps:$4 sm:$0xff]  }
 0x19a   : > { %6984 = vmatpush1.bf16.msra.mxu1 %v10227_v4  ;;  %6944 = vmatprep.subr.bf16.mxu0 %v10232_v5  ;;  %v10297_v4 = vld [vmem:[%s12003_s26 + $0x1220] ss:$16 sps:$4 sm:$0xff]   ;;  %v10302_v5 = vld [vmem:[%s12003_s26 + $0x1044] ss:$16 sps:$4 sm:$0xff]  }
 0x19b   : > { %6985 = vmatprep.subr.bf16.mxu1 %v10235_v6  ;;  %v10305_v6 = vld [vmem:[%s12003_s26 + $0x1244] ss:$16 sps:$4 sm:$0xff]  }
 0x19d   : > { %6945 = vmatpush1.bf16.msra.mxu0 %v10230_v9  ;;  %v10300_v9 = vld [vmem:[%s12003_s26 + $0x1040] ss:$16 sps:$4 sm:$0xff]  }
 0x19e   : > { %6986 = vmatpush1.bf16.msra.mxu1 %v10233_v10  ;;  %6946 = vmatprep.subr.bf16.mxu0 %v10238_v11  ;;  %v10303_v10 = vld [vmem:[%s12003_s26 + $0x1240] ss:$16 sps:$4 sm:$0xff]   ;;  %v10308_v11 = vld [vmem:[%s12003_s26 + $0x1064] ss:$16 sps:$4 sm:$0xff]  }
 0x19f   : > { %6987 = vmatprep.subr.bf16.mxu1 %v10241_v12  ;;  %v10311_v12 = vld [vmem:[%s12003_s26 + $0x1264] ss:$16 sps:$4 sm:$0xff]  }
 0x1a1   : > { %6947 = vmatpush1.bf16.msra.mxu0 %v10236_v13  ;;  %v10306_v13 = vld [vmem:[%s12003_s26 + $0x1060] ss:$16 sps:$4 sm:$0xff]  }
 0x1a2   : > { %6988 = vmatpush1.bf16.msra.mxu1 %v10239_v14  ;;  %6948 = vmatprep.subr.bf16.mxu0 %v10244_v15  ;;  %v10309_v14 = vld [vmem:[%s12003_s26 + $0x1260] ss:$16 sps:$4 sm:$0xff]   ;;  %v10314_v15 = vld [vmem:[%s12003_s26 + $0x1084] ss:$16 sps:$4 sm:$0xff]  }
 0x1a3   : > { %6989 = vmatprep.subr.bf16.mxu1 %v10247_v16  ;;  %v10317_v16 = vld [vmem:[%s12003_s26 + $0x1284] ss:$16 sps:$4 sm:$0xff]  }
 0x1a5   : > { %6949 = vmatpush1.bf16.msra.mxu0 %v10242_v19  ;;  %v10312_v19 = vld [vmem:[%s12003_s26 + $0x1080] ss:$16 sps:$4 sm:$0xff]  }
 0x1a6   : > { %6990 = vmatpush1.bf16.msra.mxu1 %v10245_v20  ;;  %6950 = vmatprep.subr.bf16.mxu0 %v10250_v21  ;;  %v10315_v20 = vld [vmem:[%s12003_s26 + $0x1280] ss:$16 sps:$4 sm:$0xff]   ;;  %v10320_v21 = vld [vmem:[%s12003_s26 + $0x10a4] ss:$16 sps:$4 sm:$0xff]  }
 0x1a7   : > { %6991 = vmatprep.subr.bf16.mxu1 %v10253_v22  ;;  %v10323_v22 = vld [vmem:[%s12003_s26 + $0x12a4] ss:$16 sps:$4 sm:$0xff]  }
 0x1a9   : > { %6951 = vmatpush1.bf16.msra.mxu0 %v10248_v27  ;;  %v10318_v27 = vld [vmem:[%s12003_s26 + $0x10a0] ss:$16 sps:$4 sm:$0xff]  }
 0x1aa   : > { %6992 = vmatpush1.bf16.msra.mxu1 %v10251_v28  ;;  %6952 = vmatprep.subr.bf16.mxu0 %v10256_v29  ;;  %v10321_v28 = vld [vmem:[%s12003_s26 + $0x12a0] ss:$16 sps:$4 sm:$0xff]   ;;  %v10326_v29 = vld [vmem:[%s12003_s26 + $0x10c4] ss:$16 sps:$4 sm:$0xff]  }
 0x1ab   : > { %6993 = vmatprep.subr.bf16.mxu1 %v10259_v30  ;;  %v10329_v30 = vld [vmem:[%s12003_s26 + $0x12c4] ss:$16 sps:$4 sm:$0xff]  }
 0x1ad   : > { %6953 = vmatpush1.bf16.msra.mxu0 %v10254_v31 }
 0x1ae   : > { %6994 = vmatpush1.bf16.msra.mxu1 %v10257_v32  ;;  %6954 = vmatprep.subr.bf16.mxu0 %v10262_v33  ;;  %v10324_v33 = vld [vmem:[%s12003_s26 + $0x10c0] ss:$16 sps:$4 sm:$0xff]  }
 0x1af   : > { %6995 = vmatprep.subr.bf16.mxu1 %v10265_v34  ;;  %v10327_v34 = vld [vmem:[%s12003_s26 + $0x12c0] ss:$16 sps:$4 sm:$0xff]  }
 0x1b1   : > { %6955 = vmatpush1.bf16.msra.mxu0 %v10260_v35 }
 0x1b2   : > { %6996 = vmatpush1.bf16.msra.mxu1 %v10263_v36  ;;  %6956 = vmatprep.subr.bf16.mxu0 %v10268_v43 }
 0x1b3   : > { %6997 = vmatprep.subr.bf16.mxu1 %v10271_v44 }
 0x1b5   : > { %6957 = vmatpush1.bf16.msra.mxu0 %v10266_v45 }
 0x1b6   : > { %6998 = vmatpush1.bf16.msra.mxu1 %v10269_v46  ;;  %6958 = vmatprep.subr.bf16.mxu0 %v10274_v47 }
 0x1b7   : > { %6999 = vmatprep.subr.bf16.mxu1 %v10277_v49 }
 0x1b9   : > { %6959 = vmatpush1.bf16.msra.mxu0 %v10272_v50  ;;  %v10332_v50 = vld [vmem:[%s12003_s26 + $0x10e4] ss:$16 sps:$4 sm:$0xff]  }
 0x1ba   : > { %7000 = vmatpush1.bf16.msra.mxu1 %v10275_v51  ;;  %6960 = vmatprep.subr.bf16.mxu0 %v10280_v53  ;;  %v10335_v51 = vld [vmem:[%s12003_s26 + $0x12e4] ss:$16 sps:$4 sm:$0xff]   ;;  %v10330_v53 = vld [vmem:[%s12003_s26 + $0x10e0] ss:$16 sps:$4 sm:$0xff]  }
 0x1bb   : > { %7001 = vmatprep.subr.bf16.mxu1 %v10283_v54  ;;  %v10333_v54 = vld [vmem:[%s12003_s26 + $0x12e0] ss:$16 sps:$4 sm:$0xff]  }
 0x1bd   : > { %6961 = vmatpush1.bf16.msra.mxu0 %v10278_v55  ;;  %v10338_v55 = vld [vmem:[%s12003_s26 + $0x1104] ss:$16 sps:$4 sm:$0xff]  }
 0x1be   : > { %7002 = vmatpush1.bf16.msra.mxu1 %v10281_v56  ;;  %7012 = vmatprep.subr.bf16.mxu0 %v10290_v57  ;;  %v10341_v56 = vld [vmem:[%s12003_s26 + $0x1304] ss:$16 sps:$4 sm:$0xff]   ;;  %v10336_v57 = vld [vmem:[%s12003_s26 + $0x1100] ss:$16 sps:$4 sm:$0xff]  }
 0x1bf   : > { %7053 = vmatprep.subr.bf16.mxu1 %v10293_v58  ;;  %v10339_v58 = vld [vmem:[%s12003_s26 + $0x1300] ss:$16 sps:$4 sm:$0xff]  }
 0x1c0   : > { %6963 = vmatmul.mubr.bf16.vlgmr.msra.gmra.mrb[12].mxu0 %v12385_v60 }
 0x1c1   : > { %7004 = vmatmul.mubr.bf16.vlgmr.msra.gmra.mrb[12].mxu1 %v12389_v61  ;;  %7013 = vmatpush1.bf16.msra.mxu0 %v10288_v63  ;;  %v10344_v63 = vld [vmem:[%s12003_s26 + $0x1124] ss:$16 sps:$4 sm:$0xff]  }
 0x1c2   : > { %7054 = vmatpush1.bf16.msra.mxu1 %v10291_v0  ;;  %7014 = vmatprep.subr.bf16.mxu0 %v10296_v1  ;;  %v10347_v0 = vld [vmem:[%s12003_s26 + $0x1324] ss:$16 sps:$4 sm:$0xff]   ;;  %v10342_v1 = vld [vmem:[%s12003_s26 + $0x1120] ss:$16 sps:$4 sm:$0xff]  }
 0x1c3   : > { %7055 = vmatprep.subr.bf16.mxu1 %v10299_v2  ;;  %7044 = vmatprep.mubr.bf16.mxu0 %v12400_v41  ;;  %v10345_v2 = vld [vmem:[%s12003_s26 + $0x1320] ss:$16 sps:$4 sm:$0xff]  }
 0x1c4   : > { %7085 = vmatprep.mubr.bf16.mxu1 %v12404_v42 }
 0x1c5   : > { %7015 = vmatpush1.bf16.msra.mxu0 %v10294_v3  ;;  %v10350_v3 = vld [vmem:[%s12003_s26 + $0x1144] ss:$16 sps:$4 sm:$0xff]  }
 0x1c6   : > { %7056 = vmatpush1.bf16.msra.mxu1 %v10297_v4  ;;  %7016 = vmatprep.subr.bf16.mxu0 %v10302_v5  ;;  %v10353_v4 = vld [vmem:[%s12003_s26 + $0x1344] ss:$16 sps:$4 sm:$0xff]   ;;  %v10348_v5 = vld [vmem:[%s12003_s26 + $0x1140] ss:$16 sps:$4 sm:$0xff]  }
 0x1c7   : > { %7057 = vmatprep.subr.bf16.mxu1 %v10305_v6  ;;  %v10351_v6 = vld [vmem:[%s12003_s26 + $0x1340] ss:$16 sps:$4 sm:$0xff]  }
 0x1c9   : > { %7017 = vmatpush1.bf16.msra.mxu0 %v10300_v9  ;;  %v10356_v9 = vld [vmem:[%s12003_s26 + $0x1164] ss:$16 sps:$4 sm:$0xff]  }
 0x1ca   : > { %7058 = vmatpush1.bf16.msra.mxu1 %v10303_v10  ;;  %7018 = vmatprep.subr.bf16.mxu0 %v10308_v11  ;;  %v10359_v10 = vld [vmem:[%s12003_s26 + $0x1364] ss:$16 sps:$4 sm:$0xff]   ;;  %v10354_v11 = vld [vmem:[%s12003_s26 + $0x1160] ss:$16 sps:$4 sm:$0xff]  }
 0x1cb   : > { %7059 = vmatprep.subr.bf16.mxu1 %v10311_v12  ;;  %v10357_v12 = vld [vmem:[%s12003_s26 + $0x1360] ss:$16 sps:$4 sm:$0xff]  }
 0x1cd   : > { %7019 = vmatpush1.bf16.msra.mxu0 %v10306_v13  ;;  %v10362_v13 = vld [vmem:[%s12003_s26 + $0x1184] ss:$16 sps:$4 sm:$0xff]  }
 0x1ce   : > { %7060 = vmatpush1.bf16.msra.mxu1 %v10309_v14  ;;  %7020 = vmatprep.subr.bf16.mxu0 %v10314_v15  ;;  %v10365_v14 = vld [vmem:[%s12003_s26 + $0x1384] ss:$16 sps:$4 sm:$0xff]   ;;  %v10360_v15 = vld [vmem:[%s12003_s26 + $0x1180] ss:$16 sps:$4 sm:$0xff]  }
 0x1cf   : > { %7061 = vmatprep.subr.bf16.mxu1 %v10317_v16  ;;  %v10363_v16 = vld [vmem:[%s12003_s26 + $0x1380] ss:$16 sps:$4 sm:$0xff]  }
 0x1d1   : > { %7021 = vmatpush1.bf16.msra.mxu0 %v10312_v19  ;;  %v10368_v19 = vld [vmem:[%s12003_s26 + $0x11a4] ss:$16 sps:$4 sm:$0xff]  }
 0x1d2   : > { %7062 = vmatpush1.bf16.msra.mxu1 %v10315_v20  ;;  %7022 = vmatprep.subr.bf16.mxu0 %v10320_v21  ;;  %v10371_v20 = vld [vmem:[%s12003_s26 + $0x13a4] ss:$16 sps:$4 sm:$0xff]   ;;  %v10366_v21 = vld [vmem:[%s12003_s26 + $0x11a0] ss:$16 sps:$4 sm:$0xff]  }
 0x1d3   : > { %7063 = vmatprep.subr.bf16.mxu1 %v10323_v22  ;;  %v6718_v31 = vpop.f32.mrb[0].mxu0  ;;  %v10369_v22 = vld [vmem:[%s12003_s26 + $0x13a0] ss:$16 sps:$4 sm:$0xff]  }
 0x1d4   : > { %v6759_v32 = vpop.f32.mrb[0].mxu1  ;;  %v6720_v36 = vpop.f32.mrb[1].mxu0 }
 0x1d5   : > { %v12432_v35 = vadd.f32 %v6759_v32, %v6718_v31  ;;  %v6761_v43 = vpop.f32.mrb[1].mxu1  ;;  %v6722_v45 = vpop.f32.mrb[2].mxu0  ;;  %7023 = vmatpush1.bf16.msra.mxu0 %v10318_v27  ;;  %v10374_v27 = vld [vmem:[%s12003_s26 + $0x11c4] ss:$16 sps:$4 sm:$0xff]  }
 0x1d6   : > { %v12434_v44 = vadd.f32 %v6761_v43, %v6720_v36  ;;  %v6763_v46 = vpop.f32.mrb[2].mxu1  ;;  %7064 = vmatpush1.bf16.msra.mxu1 %v10321_v28  ;;  %v6723_v47 = vpop.f32.mrb[3].mxu0  ;;  %7024 = vmatprep.subr.bf16.mxu0 %v10326_v29  ;;  %v10377_v28 = vld [vmem:[%s12003_s26 + $0x13c4] ss:$16 sps:$4 sm:$0xff]   ;;  %v10372_v29 = vld [vmem:[%s12003_s26 + $0x11c0] ss:$16 sps:$4 sm:$0xff]  }
 0x1d7   : > { %v6764_v49 = vpop.f32.mrb[3].mxu1  ;;  %7065 = vmatprep.subr.bf16.mxu1 %v10329_v30  ;;  %v10375_v30 = vld [vmem:[%s12003_s26 + $0x13c0] ss:$16 sps:$4 sm:$0xff]   ;;  %v10380_v31 = vld [vmem:[%s12003_s26 + $0x11e4] ss:$16 sps:$4 sm:$0xff]   ;;  %v12478_v47 = vcombine.low %v12381_v59, %v12381_v59 }
 0x1d8   : > { %v10383_v32 = vld [vmem:[%s12003_s26 + $0x13e4] ss:$16 sps:$4 sm:$0xff]   ;;  %v10388_v45 = vld [vmem:[%s12003_s26 + $0x1400] ss:$16 sps:$4 sm:$0xff]   ;;  %v12482_v49 = vcombine.low %v12392_v62, %v12392_v62 }
 0x1d9   : > { %7025 = vmatpush1.bf16.msra.mxu0 %v10324_v33  ;;  %v10378_v33 = vld [vmem:[%s12003_s26 + $0x11e0] ss:$16 sps:$4 sm:$0xff]   ;;  %v10390_v36 = vld [vmem:[%s12003_s26 + $0x1404] ss:$16 sps:$4 sm:$0xff]  }
 0x1da   : > { %7066 = vmatpush1.bf16.msra.mxu1 %v10327_v34  ;;  %7026 = vmatprep.subr.bf16.mxu0 %v10332_v50  ;;  %v10381_v34 = vld [vmem:[%s12003_s26 + $0x13e0] ss:$16 sps:$4 sm:$0xff]   ;;  %v10393_v43 = vld [vmem:[%s12003_s26 + $0x1604] ss:$16 sps:$4 sm:$0xff]  }
 0x1db   : > { %7067 = vmatprep.subr.bf16.mxu1 %v10335_v51  ;;  %v10391_v46 = vld [vmem:[%s12003_s26 + $0x1600] ss:$16 sps:$4 sm:$0xff]   ;;  %v12488_v51 = vld [vmem:[%s12037_s29 + $0x58] sm:$0xff] }
 0x1dc   : > { %v12485_v50 = vld [vmem:[%s12037_s29 + $0x50] sm:$0xff]  ;;  %v12498_v62 = vcombine.high %v12488_v51, %v12488_v51 }
 0x1dd   : > { %7027 = vmatpush1.bf16.msra.mxu0 %v10330_v53  ;;  %v10396_v53 = vld [vmem:[%s12003_s26 + $0x1424] ss:$16 sps:$4 sm:$0xff]   ;;  %v12494_v59 = vcombine.high %v12485_v50, %v12485_v50 }
 0x1de   : > { %7068 = vmatpush1.bf16.msra.mxu1 %v10333_v54  ;;  %7028 = vmatprep.subr.bf16.mxu0 %v10338_v55  ;;  %v10399_v54 = vld [vmem:[%s12003_s26 + $0x1624] ss:$16 sps:$4 sm:$0xff]   ;;  %v10394_v55 = vld [vmem:[%s12003_s26 + $0x1420] ss:$16 sps:$4 sm:$0xff]  }
 0x1df   : > { %7069 = vmatprep.subr.bf16.mxu1 %v10341_v56  ;;  %v10397_v56 = vld [vmem:[%s12003_s26 + $0x1620] ss:$16 sps:$4 sm:$0xff]  }
 0x1e1   : > { %7029 = vmatpush1.bf16.msra.mxu0 %v10336_v57  ;;  %v10402_v57 = vld [vmem:[%s12003_s26 + $0x1444] ss:$16 sps:$4 sm:$0xff]  }
 0x1e2   : > { %7070 = vmatpush1.bf16.msra.mxu1 %v10339_v58  ;;  %7030 = vmatprep.subr.bf16.mxu0 %v10344_v63  ;;  %v10405_v58 = vld [vmem:[%s12003_s26 + $0x1644] ss:$16 sps:$4 sm:$0xff]   ;;  %v10400_v63 = vld [vmem:[%s12003_s26 + $0x1440] ss:$16 sps:$4 sm:$0xff]  }
 0x1e3   : > { %7071 = vmatprep.subr.bf16.mxu1 %v10347_v0  ;;  %v10403_v0 = vld [vmem:[%s12003_s26 + $0x1640] ss:$16 sps:$4 sm:$0xff]  }
 0x1e5   : > { %7031 = vmatpush1.bf16.msra.mxu0 %v10342_v1  ;;  %v10408_v1 = vld [vmem:[%s12003_s26 + $0x1464] ss:$16 sps:$4 sm:$0xff]  }
 0x1e6   : > { %7072 = vmatpush1.bf16.msra.mxu1 %v10345_v2  ;;  %7032 = vmatprep.subr.bf16.mxu0 %v10350_v3  ;;  %v10411_v2 = vld [vmem:[%s12003_s26 + $0x1664] ss:$16 sps:$4 sm:$0xff]   ;;  %v10406_v3 = vld [vmem:[%s12003_s26 + $0x1460] ss:$16 sps:$4 sm:$0xff]  }
 0x1e7   : > { %7073 = vmatprep.subr.bf16.mxu1 %v10353_v4  ;;  %v10409_v4 = vld [vmem:[%s12003_s26 + $0x1660] ss:$16 sps:$4 sm:$0xff]  }
 0x1e9   : > { %7033 = vmatpush1.bf16.msra.mxu0 %v10348_v5  ;;  %v10414_v5 = vld [vmem:[%s12003_s26 + $0x1484] ss:$16 sps:$4 sm:$0xff]  }
 0x1ea   : > { %7074 = vmatpush1.bf16.msra.mxu1 %v10351_v6  ;;  %7034 = vmatprep.subr.bf16.mxu0 %v10356_v9  ;;  %v10417_v6 = vld [vmem:[%s12003_s26 + $0x1684] ss:$16 sps:$4 sm:$0xff]   ;;  %v10412_v9 = vld [vmem:[%s12003_s26 + $0x1480] ss:$16 sps:$4 sm:$0xff]  }
 0x1eb   : > { %7075 = vmatprep.subr.bf16.mxu1 %v10359_v10  ;;  %v10415_v10 = vld [vmem:[%s12003_s26 + $0x1680] ss:$16 sps:$4 sm:$0xff]  }
 0x1ed   : > { %7035 = vmatpush1.bf16.msra.mxu0 %v10354_v11  ;;  %v10420_v11 = vld [vmem:[%s12003_s26 + $0x14a4] ss:$16 sps:$4 sm:$0xff]  }
 0x1ee   : > { %7076 = vmatpush1.bf16.msra.mxu1 %v10357_v12  ;;  %7036 = vmatprep.subr.bf16.mxu0 %v10362_v13  ;;  %v10423_v12 = vld [vmem:[%s12003_s26 + $0x16a4] ss:$16 sps:$4 sm:$0xff]   ;;  %v10418_v13 = vld [vmem:[%s12003_s26 + $0x14a0] ss:$16 sps:$4 sm:$0xff]  }
 0x1ef   : > { %7077 = vmatprep.subr.bf16.mxu1 %v10365_v14  ;;  %v10421_v14 = vld [vmem:[%s12003_s26 + $0x16a0] ss:$16 sps:$4 sm:$0xff]  }
 0x1f1   : > { %7037 = vmatpush1.bf16.msra.mxu0 %v10360_v15  ;;  %v10426_v15 = vld [vmem:[%s12003_s26 + $0x14c4] ss:$16 sps:$4 sm:$0xff]  }
 0x1f2   : > { %7078 = vmatpush1.bf16.msra.mxu1 %v10363_v16  ;;  %7038 = vmatprep.subr.bf16.mxu0 %v10368_v19  ;;  %v10429_v16 = vld [vmem:[%s12003_s26 + $0x16c4] ss:$16 sps:$4 sm:$0xff]  }
 0x1f3   : > { %7079 = vmatprep.subr.bf16.mxu1 %v10371_v20 }
 0x1f5   : > { %7039 = vmatpush1.bf16.msra.mxu0 %v10366_v21  ;;  %v10424_v21 = vld [vmem:[%s12003_s26 + $0x14c0] ss:$16 sps:$4 sm:$0xff]  }
 0x1f6   : > { %7080 = vmatpush1.bf16.msra.mxu1 %v10369_v22  ;;  %7040 = vmatprep.subr.bf16.mxu0 %v10374_v27  ;;  %v10427_v22 = vld [vmem:[%s12003_s26 + $0x16c0] ss:$16 sps:$4 sm:$0xff]  }
 0x1f7   : > { %7081 = vmatprep.subr.bf16.mxu1 %v10377_v28 }
 0x1f9   : > { %7041 = vmatpush1.bf16.msra.mxu0 %v10372_v29 }
 0x1fa   : > { %7082 = vmatpush1.bf16.msra.mxu1 %v10375_v30  ;;  %7042 = vmatprep.subr.bf16.mxu0 %v10380_v31 }
 0x1fb   : > { %7083 = vmatprep.subr.bf16.mxu1 %v10383_v32 }
 0x1fd   : > { %7043 = vmatpush1.bf16.msra.mxu0 %v10378_v33 }
 0x1fe   : > { %7084 = vmatpush1.bf16.msra.mxu1 %v10381_v34  ;;  %7094 = vmatprep.subr.bf16.mxu0 %v10390_v36 }
 0x1ff   : > { %7135 = vmatprep.subr.bf16.mxu1 %v10393_v43  ;;  %v10435_v43 = vld [vmem:[%s12003_s26 + $0x16e4] ss:$16 sps:$4 sm:$0xff]  }
 0x200   : > { %7045 = vmatmul.mubr.bf16.vlgmr.msra.gmra.mrb[16].mxu0 %v12478_v47 }
 0x201   : > { %7086 = vmatmul.mubr.bf16.vlgmr.msra.gmra.mrb[16].mxu1 %v12482_v49  ;;  %7095 = vmatpush1.bf16.msra.mxu0 %v10388_v45 }
 0x202   : > { %7136 = vmatpush1.bf16.msra.mxu1 %v10391_v46  ;;  %7096 = vmatprep.subr.bf16.mxu0 %v10396_v53  ;;  %v10433_v46 = vld [vmem:[%s12003_s26 + $0x16e0] ss:$16 sps:$4 sm:$0xff]   ;;  %v10438_v53 = vld [vmem:[%s12003_s26 + $0x1504] ss:$16 sps:$4 sm:$0xff]  }
 0x203   : > { %7137 = vmatprep.subr.bf16.mxu1 %v10399_v54  ;;  %7126 = vmatprep.mubr.bf16.mxu0 %v12494_v59  ;;  %v10441_v54 = vld [vmem:[%s12003_s26 + $0x1704] ss:$16 sps:$4 sm:$0xff]  }
 0x204   : > { %7167 = vmatprep.mubr.bf16.mxu1 %v12498_v62 }
 0x205   : > { %7097 = vmatpush1.bf16.msra.mxu0 %v10394_v55  ;;  %v10436_v55 = vld [vmem:[%s12003_s26 + $0x1500] ss:$16 sps:$4 sm:$0xff]  }
 0x206   : > { %7138 = vmatpush1.bf16.msra.mxu1 %v10397_v56  ;;  %7098 = vmatprep.subr.bf16.mxu0 %v10402_v57  ;;  %v10439_v56 = vld [vmem:[%s12003_s26 + $0x1700] ss:$16 sps:$4 sm:$0xff]   ;;  %v10444_v57 = vld [vmem:[%s12003_s26 + $0x1524] ss:$16 sps:$4 sm:$0xff]  }
 0x207   : > { %7139 = vmatprep.subr.bf16.mxu1 %v10405_v58  ;;  %v10447_v58 = vld [vmem:[%s12003_s26 + $0x1724] ss:$16 sps:$4 sm:$0xff]  }
 0x209   : > { %7099 = vmatpush1.bf16.msra.mxu0 %v10400_v63  ;;  %v10442_v63 = vld [vmem:[%s12003_s26 + $0x1520] ss:$16 sps:$4 sm:$0xff]  }
 0x20a   : > { %7140 = vmatpush1.bf16.msra.mxu1 %v10403_v0  ;;  %7100 = vmatprep.subr.bf16.mxu0 %v10408_v1  ;;  %v10445_v0 = vld [vmem:[%s12003_s26 + $0x1720] ss:$16 sps:$4 sm:$0xff]   ;;  %v10450_v1 = vld [vmem:[%s12003_s26 + $0x1544] ss:$16 sps:$4 sm:$0xff]  }
 0x20b   : > { %7141 = vmatprep.subr.bf16.mxu1 %v10411_v2  ;;  %v10453_v2 = vld [vmem:[%s12003_s26 + $0x1744] ss:$16 sps:$4 sm:$0xff]  }
 0x20d   : > { %7101 = vmatpush1.bf16.msra.mxu0 %v10406_v3  ;;  %v10448_v3 = vld [vmem:[%s12003_s26 + $0x1540] ss:$16 sps:$4 sm:$0xff]  }
 0x20e   : > { %7142 = vmatpush1.bf16.msra.mxu1 %v10409_v4  ;;  %7102 = vmatprep.subr.bf16.mxu0 %v10414_v5  ;;  %v10451_v4 = vld [vmem:[%s12003_s26 + $0x1740] ss:$16 sps:$4 sm:$0xff]   ;;  %v10456_v5 = vld [vmem:[%s12003_s26 + $0x1564] ss:$16 sps:$4 sm:$0xff]  }
 0x20f   : > { %7143 = vmatprep.subr.bf16.mxu1 %v10417_v6  ;;  %v10459_v6 = vld [vmem:[%s12003_s26 + $0x1764] ss:$16 sps:$4 sm:$0xff]  }
 0x211   : > { %7103 = vmatpush1.bf16.msra.mxu0 %v10412_v9  ;;  %v10454_v9 = vld [vmem:[%s12003_s26 + $0x1560] ss:$16 sps:$4 sm:$0xff]  }
 0x212   : > { %7144 = vmatpush1.bf16.msra.mxu1 %v10415_v10  ;;  %7104 = vmatprep.subr.bf16.mxu0 %v10420_v11  ;;  %v10457_v10 = vld [vmem:[%s12003_s26 + $0x1760] ss:$16 sps:$4 sm:$0xff]   ;;  %v10462_v11 = vld [vmem:[%s12003_s26 + $0x1584] ss:$16 sps:$4 sm:$0xff]  }
 0x213   : > { %7145 = vmatprep.subr.bf16.mxu1 %v10423_v12  ;;  %v6800_v19 = vpop.f32.mrb[4].mxu0  ;;  %v10465_v12 = vld [vmem:[%s12003_s26 + $0x1784] ss:$16 sps:$4 sm:$0xff]  }
 0x214   : > { %v6841_v20 = vpop.f32.mrb[4].mxu1  ;;  %v6801_v27 = vadd.f32 %v6800_v19, %v12432_v35  ;;  %v6802_v28 = vpop.f32.mrb[5].mxu0  ;;  %v10432_v35 = vld [vmem:[%s12003_s26 + $0x14e4] ss:$16 sps:$4 sm:$0xff]   ;;  %v10466_v19 = vld [vmem:[%s12003_s26 + $0x15a0] ss:$16 sps:$4 sm:$0xff]  }
 0x215   : > { %v6843_v29 = vpop.f32.mrb[5].mxu1  ;;  %v6803_v30 = vadd.f32 %v6802_v28, %v12434_v44  ;;  %v6804_v31 = vpop.f32.mrb[6].mxu0  ;;  %7105 = vmatpush1.bf16.msra.mxu0 %v10418_v13  ;;  %v10430_v44 = vld [vmem:[%s12003_s26 + $0x14e0] ss:$16 sps:$4 sm:$0xff]  }
 0x216   : > { %v6845_v32 = vpop.f32.mrb[6].mxu1  ;;  %7146 = vmatpush1.bf16.msra.mxu1 %v10421_v14  ;;  %v12528_v33 = vadd.f32 %v6841_v20, %v6801_v27  ;;  %v6805_v34 = vpop.f32.mrb[7].mxu0  ;;  %7106 = vmatprep.subr.bf16.mxu0 %v10426_v15  ;;  %v10460_v13 = vld [vmem:[%s12003_s26 + $0x1580] ss:$16 sps:$4 sm:$0xff]   ;;  %v10468_v15 = vld [vmem:[%s12003_s26 + $0x15a4] ss:$16 sps:$4 sm:$0xff]  }
 0x217   : > { %v6846_v36 = vpop.f32.mrb[7].mxu1  ;;  %7147 = vmatprep.subr.bf16.mxu1 %v10429_v16  ;;  %v12532_v45 = vadd.f32 %v6843_v29, %v6803_v30  ;;  %v10463_v14 = vld [vmem:[%s12003_s26 + $0x1780] ss:$16 sps:$4 sm:$0xff]   ;;  %v10471_v16 = vld [vmem:[%s12003_s26 + $0x17a4] ss:$16 sps:$4 sm:$0xff]  }
 0x218   : > { %v10469_v20 = vld [vmem:[%s12003_s26 + $0x17a0] ss:$16 sps:$4 sm:$0xff]   ;;  %v10480_v29 = vld [vmem:[%s12003_s26 + $0x15e4] ss:$16 sps:$4 sm:$0xff]  }
 0x219   : > { %7107 = vmatpush1.bf16.msra.mxu0 %v10424_v21  ;;  %v10474_v21 = vld [vmem:[%s12003_s26 + $0x15c4] ss:$16 sps:$4 sm:$0xff]   ;;  %v10472_v27 = vld [vmem:[%s12003_s26 + $0x15c0] ss:$16 sps:$4 sm:$0xff]  }
 0x21a   : > { %7148 = vmatpush1.bf16.msra.mxu1 %v10427_v22  ;;  %7108 = vmatprep.subr.bf16.mxu0 %v10432_v35  ;;  %v10477_v22 = vld [vmem:[%s12003_s26 + $0x17c4] ss:$16 sps:$4 sm:$0xff]   ;;  %v10475_v28 = vld [vmem:[%s12003_s26 + $0x17c0] ss:$16 sps:$4 sm:$0xff]  }
 0x21b   : > { %7149 = vmatprep.subr.bf16.mxu1 %v10435_v43  ;;  %v10483_v30 = vld [vmem:[%s12003_s26 + $0x17e4] ss:$16 sps:$4 sm:$0xff]   ;;  %v10478_v31 = vld [vmem:[%s12003_s26 + $0x15e0] ss:$16 sps:$4 sm:$0xff]  }
 0x21c   : > { %v10481_v32 = vld [vmem:[%s12003_s26 + $0x17e0] ss:$16 sps:$4 sm:$0xff]   ;;  %v10490_v34 = vld [vmem:[%s12003_s26 + $0x1804] ss:$16 sps:$4 sm:$0xff]  }
 0x21d   : > { %7109 = vmatpush1.bf16.msra.mxu0 %v10430_v44  ;;  %v10493_v36 = vld [vmem:[%s12003_s26 + $0x1a04] ss:$16 sps:$4 sm:$0xff]   ;;  %v10488_v35 = vld [vmem:[%s12003_s26 + $0x1800] ss:$16 sps:$4 sm:$0xff]   ;;  %v12574_v44 = vcombine.low %v12485_v50, %v12485_v50 }
 0x21e   : > { %7150 = vmatpush1.bf16.msra.mxu1 %v10433_v46  ;;  %7110 = vmatprep.subr.bf16.mxu0 %v10438_v53  ;;  %v10491_v43 = vld [vmem:[%s12003_s26 + $0x1a00] ss:$16 sps:$4 sm:$0xff]   ;;  %v12578_v46 = vcombine.low %v12488_v51, %v12488_v51 }
 0x21f   : > { %7151 = vmatprep.subr.bf16.mxu1 %v10441_v54  ;;  %v12581_v53 = vld [vmem:[%s12037_s29 + $0x60] sm:$0xff]  ;;  %v12584_v54 = vld [vmem:[%s12037_s29 + $0x68] sm:$0xff] }
 0x220   : > { %v12590_v50 = vcombine.high %v12581_v53, %v12581_v53  ;;  %v12594_v51 = vcombine.high %v12584_v54, %v12584_v54 }
 0x221   : > { %7111 = vmatpush1.bf16.msra.mxu0 %v10436_v55  ;;  %v10496_v55 = vld [vmem:[%s12003_s26 + $0x1824] ss:$16 sps:$4 sm:$0xff]  }
 0x222   : > { %7152 = vmatpush1.bf16.msra.mxu1 %v10439_v56  ;;  %7112 = vmatprep.subr.bf16.mxu0 %v10444_v57  ;;  %v10499_v56 = vld [vmem:[%s12003_s26 + $0x1a24] ss:$16 sps:$4 sm:$0xff]   ;;  %v10494_v57 = vld [vmem:[%s12003_s26 + $0x1820] ss:$16 sps:$4 sm:$0xff]  }
 0x223   : > { %7153 = vmatprep.subr.bf16.mxu1 %v10447_v58  ;;  %v10497_v58 = vld [vmem:[%s12003_s26 + $0x1a20] ss:$16 sps:$4 sm:$0xff]  }
 0x225   : > { %7113 = vmatpush1.bf16.msra.mxu0 %v10442_v63  ;;  %v10502_v63 = vld [vmem:[%s12003_s26 + $0x1844] ss:$16 sps:$4 sm:$0xff]  }
 0x226   : > { %7154 = vmatpush1.bf16.msra.mxu1 %v10445_v0  ;;  %7114 = vmatprep.subr.bf16.mxu0 %v10450_v1  ;;  %v10505_v0 = vld [vmem:[%s12003_s26 + $0x1a44] ss:$16 sps:$4 sm:$0xff]   ;;  %v10500_v1 = vld [vmem:[%s12003_s26 + $0x1840] ss:$16 sps:$4 sm:$0xff]  }
 0x227   : > { %7155 = vmatprep.subr.bf16.mxu1 %v10453_v2  ;;  %v10503_v2 = vld [vmem:[%s12003_s26 + $0x1a40] ss:$16 sps:$4 sm:$0xff]  }
 0x229   : > { %7115 = vmatpush1.bf16.msra.mxu0 %v10448_v3  ;;  %v10508_v3 = vld [vmem:[%s12003_s26 + $0x1864] ss:$16 sps:$4 sm:$0xff]  }
 0x22a   : > { %7156 = vmatpush1.bf16.msra.mxu1 %v10451_v4  ;;  %7116 = vmatprep.subr.bf16.mxu0 %v10456_v5  ;;  %v10511_v4 = vld [vmem:[%s12003_s26 + $0x1a64] ss:$16 sps:$4 sm:$0xff]   ;;  %v10506_v5 = vld [vmem:[%s12003_s26 + $0x1860] ss:$16 sps:$4 sm:$0xff]  }
 0x22b   : > { %7157 = vmatprep.subr.bf16.mxu1 %v10459_v6  ;;  %v10509_v6 = vld [vmem:[%s12003_s26 + $0x1a60] ss:$16 sps:$4 sm:$0xff]  }
 0x22d   : > { %7117 = vmatpush1.bf16.msra.mxu0 %v10454_v9  ;;  %v10514_v9 = vld [vmem:[%s12003_s26 + $0x1884] ss:$16 sps:$4 sm:$0xff]  }
 0x22e   : > { %7158 = vmatpush1.bf16.msra.mxu1 %v10457_v10  ;;  %7118 = vmatprep.subr.bf16.mxu0 %v10462_v11  ;;  %v10517_v10 = vld [vmem:[%s12003_s26 + $0x1a84] ss:$16 sps:$4 sm:$0xff]   ;;  %v10512_v11 = vld [vmem:[%s12003_s26 + $0x1880] ss:$16 sps:$4 sm:$0xff]  }
 0x22f   : > { %7159 = vmatprep.subr.bf16.mxu1 %v10465_v12  ;;  %v10515_v12 = vld [vmem:[%s12003_s26 + $0x1a80] ss:$16 sps:$4 sm:$0xff]  }
 0x231   : > { %7119 = vmatpush1.bf16.msra.mxu0 %v10460_v13  ;;  %v10520_v13 = vld [vmem:[%s12003_s26 + $0x18a4] ss:$16 sps:$4 sm:$0xff]  }
 0x232   : > { %7160 = vmatpush1.bf16.msra.mxu1 %v10463_v14  ;;  %7120 = vmatprep.subr.bf16.mxu0 %v10468_v15  ;;  %v10523_v14 = vld [vmem:[%s12003_s26 + $0x1aa4] ss:$16 sps:$4 sm:$0xff]   ;;  %v10518_v15 = vld [vmem:[%s12003_s26 + $0x18a0] ss:$16 sps:$4 sm:$0xff]  }
 0x233   : > { %7161 = vmatprep.subr.bf16.mxu1 %v10471_v16  ;;  %v10521_v16 = vld [vmem:[%s12003_s26 + $0x1aa0] ss:$16 sps:$4 sm:$0xff]  }
 0x235   : > { %7121 = vmatpush1.bf16.msra.mxu0 %v10466_v19  ;;  %v10526_v19 = vld [vmem:[%s12003_s26 + $0x18c4] ss:$16 sps:$4 sm:$0xff]  }
 0x236   : > { %7162 = vmatpush1.bf16.msra.mxu1 %v10469_v20  ;;  %7122 = vmatprep.subr.bf16.mxu0 %v10474_v21  ;;  %v10529_v20 = vld [vmem:[%s12003_s26 + $0x1ac4] ss:$16 sps:$4 sm:$0xff]  }
 0x237   : > { %7163 = vmatprep.subr.bf16.mxu1 %v10477_v22 }
 0x239   : > { %7123 = vmatpush1.bf16.msra.mxu0 %v10472_v27  ;;  %v10524_v27 = vld [vmem:[%s12003_s26 + $0x18c0] ss:$16 sps:$4 sm:$0xff]  }
 0x23a   : > { %7164 = vmatpush1.bf16.msra.mxu1 %v10475_v28  ;;  %7124 = vmatprep.subr.bf16.mxu0 %v10480_v29  ;;  %v10527_v28 = vld [vmem:[%s12003_s26 + $0x1ac0] ss:$16 sps:$4 sm:$0xff]  }
 0x23b   : > { %7165 = vmatprep.subr.bf16.mxu1 %v10483_v30 }
 0x23d   : > { %7125 = vmatpush1.bf16.msra.mxu0 %v10478_v31 }
 0x23e   : > { %7166 = vmatpush1.bf16.msra.mxu1 %v10481_v32  ;;  %7176 = vmatprep.subr.bf16.mxu0 %v10490_v34 }
 0x23f   : > { %7217 = vmatprep.subr.bf16.mxu1 %v10493_v36 }
 0x240   : > { %7127 = vmatmul.mubr.bf16.vlgmr.msra.gmra.mrb[20].mxu0 %v12574_v44 }
 0x241   : > { %7168 = vmatmul.mubr.bf16.vlgmr.msra.gmra.mrb[20].mxu1 %v12578_v46  ;;  %7177 = vmatpush1.bf16.msra.mxu0 %v10488_v35 }
 0x242   : > { %7218 = vmatpush1.bf16.msra.mxu1 %v10491_v43  ;;  %7178 = vmatprep.subr.bf16.mxu0 %v10496_v55 }
 0x243   : > { %7219 = vmatprep.subr.bf16.mxu1 %v10499_v56  ;;  %7208 = vmatprep.mubr.bf16.mxu0 %v12590_v50  ;;  %v10535_v56 = vld [vmem:[%s12003_s26 + $0x1ae4] ss:$16 sps:$4 sm:$0xff]  }
 0x244   : > { %7249 = vmatprep.mubr.bf16.mxu1 %v12594_v51 }
 0x245   : > { %7179 = vmatpush1.bf16.msra.mxu0 %v10494_v57 }
 0x246   : > { %7220 = vmatpush1.bf16.msra.mxu1 %v10497_v58  ;;  %7180 = vmatprep.subr.bf16.mxu0 %v10502_v63  ;;  %v10533_v58 = vld [vmem:[%s12003_s26 + $0x1ae0] ss:$16 sps:$4 sm:$0xff]   ;;  %v10538_v63 = vld [vmem:[%s12003_s26 + $0x1904] ss:$16 sps:$4 sm:$0xff]  }
 0x247   : > { %7221 = vmatprep.subr.bf16.mxu1 %v10505_v0  ;;  %v10541_v0 = vld [vmem:[%s12003_s26 + $0x1b04] ss:$16 sps:$4 sm:$0xff]  }
 0x249   : > { %7181 = vmatpush1.bf16.msra.mxu0 %v10500_v1  ;;  %v10536_v1 = vld [vmem:[%s12003_s26 + $0x1900] ss:$16 sps:$4 sm:$0xff]  }
 0x24a   : > { %7222 = vmatpush1.bf16.msra.mxu1 %v10503_v2  ;;  %7182 = vmatprep.subr.bf16.mxu0 %v10508_v3  ;;  %v10539_v2 = vld [vmem:[%s12003_s26 + $0x1b00] ss:$16 sps:$4 sm:$0xff]   ;;  %v10544_v3 = vld [vmem:[%s12003_s26 + $0x1924] ss:$16 sps:$4 sm:$0xff]  }
 0x24b   : > { %7223 = vmatprep.subr.bf16.mxu1 %v10511_v4  ;;  %v10547_v4 = vld [vmem:[%s12003_s26 + $0x1b24] ss:$16 sps:$4 sm:$0xff]  }
 0x24d   : > { %7183 = vmatpush1.bf16.msra.mxu0 %v10506_v5  ;;  %v10542_v5 = vld [vmem:[%s12003_s26 + $0x1920] ss:$16 sps:$4 sm:$0xff]  }
 0x24e   : > { %7224 = vmatpush1.bf16.msra.mxu1 %v10509_v6  ;;  %7184 = vmatprep.subr.bf16.mxu0 %v10514_v9  ;;  %v10545_v6 = vld [vmem:[%s12003_s26 + $0x1b20] ss:$16 sps:$4 sm:$0xff]   ;;  %v10550_v9 = vld [vmem:[%s12003_s26 + $0x1944] ss:$16 sps:$4 sm:$0xff]  }
 0x24f   : > { %7225 = vmatprep.subr.bf16.mxu1 %v10517_v10  ;;  %v10553_v10 = vld [vmem:[%s12003_s26 + $0x1b44] ss:$16 sps:$4 sm:$0xff]  }
 0x251   : > { %7185 = vmatpush1.bf16.msra.mxu0 %v10512_v11  ;;  %v10548_v11 = vld [vmem:[%s12003_s26 + $0x1940] ss:$16 sps:$4 sm:$0xff]  }
 0x252   : > { %7226 = vmatpush1.bf16.msra.mxu1 %v10515_v12  ;;  %7186 = vmatprep.subr.bf16.mxu0 %v10520_v13  ;;  %v10551_v12 = vld [vmem:[%s12003_s26 + $0x1b40] ss:$16 sps:$4 sm:$0xff]   ;;  %v10556_v13 = vld [vmem:[%s12003_s26 + $0x1964] ss:$16 sps:$4 sm:$0xff]  }
 0x253   : > { %7227 = vmatprep.subr.bf16.mxu1 %v10523_v14  ;;  %v6882_v21 = vpop.f32.mrb[8].mxu0  ;;  %v10559_v14 = vld [vmem:[%s12003_s26 + $0x1b64] ss:$16 sps:$4 sm:$0xff]  }
 0x254   : > { %v6923_v22 = vpop.f32.mrb[8].mxu1  ;;  %v6883_v29 = vadd.f32 %v6882_v21, %v12528_v33  ;;  %v6884_v30 = vpop.f32.mrb[9].mxu0  ;;  %v10532_v33 = vld [vmem:[%s12003_s26 + $0x18e4] ss:$16 sps:$4 sm:$0xff]   ;;  %v10560_v21 = vld [vmem:[%s12003_s26 + $0x1980] ss:$16 sps:$4 sm:$0xff]  }
 0x255   : > { %v6925_v31 = vpop.f32.mrb[9].mxu1  ;;  %v6885_v32 = vadd.f32 %v6884_v30, %v12532_v45  ;;  %v6886_v34 = vpop.f32.mrb[10].mxu0  ;;  %7187 = vmatpush1.bf16.msra.mxu0 %v10518_v15  ;;  %v10530_v45 = vld [vmem:[%s12003_s26 + $0x18e0] ss:$16 sps:$4 sm:$0xff]  }
 0x256   : > { %v6927_v36 = vpop.f32.mrb[10].mxu1  ;;  %7228 = vmatpush1.bf16.msra.mxu1 %v10521_v16  ;;  %v12624_v35 = vadd.f32 %v6923_v22, %v6883_v29  ;;  %v6887_v43 = vpop.f32.mrb[11].mxu0  ;;  %7188 = vmatprep.subr.bf16.mxu0 %v10526_v19  ;;  %v10554_v15 = vld [vmem:[%s12003_s26 + $0x1960] ss:$16 sps:$4 sm:$0xff]   ;;  %v10562_v19 = vld [vmem:[%s12003_s26 + $0x1984] ss:$16 sps:$4 sm:$0xff]  }
 0x257   : > { %v6928_v55 = vpop.f32.mrb[11].mxu1  ;;  %7229 = vmatprep.subr.bf16.mxu1 %v10529_v20  ;;  %v12628_v57 = vadd.f32 %v6925_v31, %v6885_v32  ;;  %v10557_v16 = vld [vmem:[%s12003_s26 + $0x1b60] ss:$16 sps:$4 sm:$0xff]   ;;  %v10565_v20 = vld [vmem:[%s12003_s26 + $0x1b84] ss:$16 sps:$4 sm:$0xff]  }
 0x258   : > { %v10563_v22 = vld [vmem:[%s12003_s26 + $0x1b80] ss:$16 sps:$4 sm:$0xff]   ;;  %v10574_v31 = vld [vmem:[%s12003_s26 + $0x19c4] ss:$16 sps:$4 sm:$0xff]  }
 0x259   : > { %7189 = vmatpush1.bf16.msra.mxu0 %v10524_v27  ;;  %v10568_v27 = vld [vmem:[%s12003_s26 + $0x19a4] ss:$16 sps:$4 sm:$0xff]   ;;  %v10566_v29 = vld [vmem:[%s12003_s26 + $0x19a0] ss:$16 sps:$4 sm:$0xff]  }
 0x25a   : > { %7230 = vmatpush1.bf16.msra.mxu1 %v10527_v28  ;;  %7190 = vmatprep.subr.bf16.mxu0 %v10532_v33  ;;  %v10571_v28 = vld [vmem:[%s12003_s26 + $0x1ba4] ss:$16 sps:$4 sm:$0xff]   ;;  %v10569_v30 = vld [vmem:[%s12003_s26 + $0x1ba0] ss:$16 sps:$4 sm:$0xff]  }
 0x25b   : > { %7231 = vmatprep.subr.bf16.mxu1 %v10535_v56  ;;  %v10577_v32 = vld [vmem:[%s12003_s26 + $0x1bc4] ss:$16 sps:$4 sm:$0xff]   ;;  %v10572_v34 = vld [vmem:[%s12003_s26 + $0x19c0] ss:$16 sps:$4 sm:$0xff]  }
 0x25c   : > { %v10575_v36 = vld [vmem:[%s12003_s26 + $0x1bc0] ss:$16 sps:$4 sm:$0xff]   ;;  %v10580_v43 = vld [vmem:[%s12003_s26 + $0x19e4] ss:$16 sps:$4 sm:$0xff]  }
 0x25d   : > { %7191 = vmatpush1.bf16.msra.mxu0 %v10530_v45  ;;  %v10583_v55 = vld [vmem:[%s12003_s26 + $0x1be4] ss:$16 sps:$4 sm:$0xff]   ;;  %v10578_v33 = vld [vmem:[%s12003_s26 + $0x19e0] ss:$16 sps:$4 sm:$0xff]  }
 0x25e   : > { %7232 = vmatpush1.bf16.msra.mxu1 %v10533_v58  ;;  %7192 = vmatprep.subr.bf16.mxu0 %v10538_v63  ;;  %v10581_v56 = vld [vmem:[%s12003_s26 + $0x1be0] ss:$16 sps:$4 sm:$0xff]   ;;  %v10590_v45 = vld [vmem:[%s12003_s26 + $0x1c04] ss:$16 sps:$4 sm:$0xff]  }
 0x25f   : > { %7233 = vmatprep.subr.bf16.mxu1 %v10541_v0  ;;  %v10593_v58 = vld [vmem:[%s12003_s26 + $0x1e04] ss:$16 sps:$4 sm:$0xff]   ;;  %v12670_v0 = vld [vmem:[%s12037_s29 + $0x78] sm:$0xff] }
 0x260   : > { %v12667_v63 = vld [vmem:[%s12037_s29 + $0x70] sm:$0xff] }
 0x261   : > { %7193 = vmatpush1.bf16.msra.mxu0 %v10536_v1  ;;  %v10588_v1 = vld [vmem:[%s12003_s26 + $0x1c00] ss:$16 sps:$4 sm:$0xff]  }
 0x262   : > { %7234 = vmatpush1.bf16.msra.mxu1 %v10539_v2  ;;  %7194 = vmatprep.subr.bf16.mxu0 %v10544_v3  ;;  %v10591_v2 = vld [vmem:[%s12003_s26 + $0x1e00] ss:$16 sps:$4 sm:$0xff]   ;;  %v12676_v3 = vcombine.low %v12581_v53, %v12581_v53  ;;  %v12690_v53 = vcombine.high %v12670_v0, %v12670_v0 }
 0x263   : > { %7235 = vmatprep.subr.bf16.mxu1 %v10547_v4  ;;  %v12680_v4 = vcombine.low %v12584_v54, %v12584_v54  ;;  %v10594_v54 = vld [vmem:[%s12003_s26 + $0x1c20] ss:$16 sps:$4 sm:$0xff]  }
 0x265   : > { %7195 = vmatpush1.bf16.msra.mxu0 %v10542_v5  ;;  %v10596_v5 = vld [vmem:[%s12003_s26 + $0x1c24] ss:$16 sps:$4 sm:$0xff]  }
 0x266   : > { %7236 = vmatpush1.bf16.msra.mxu1 %v10545_v6  ;;  %7196 = vmatprep.subr.bf16.mxu0 %v10550_v9  ;;  %v10599_v6 = vld [vmem:[%s12003_s26 + $0x1e24] ss:$16 sps:$4 sm:$0xff]   ;;  %v12686_v9 = vcombine.high %v12667_v63, %v12667_v63 }
 0x267   : > { %7237 = vmatprep.subr.bf16.mxu1 %v10553_v10  ;;  %v10597_v10 = vld [vmem:[%s12003_s26 + $0x1e20] ss:$16 sps:$4 sm:$0xff]  }
 0x269   : > { %7197 = vmatpush1.bf16.msra.mxu0 %v10548_v11  ;;  %v10602_v11 = vld [vmem:[%s12003_s26 + $0x1c44] ss:$16 sps:$4 sm:$0xff]  }
 0x26a   : > { %7238 = vmatpush1.bf16.msra.mxu1 %v10551_v12  ;;  %7198 = vmatprep.subr.bf16.mxu0 %v10556_v13  ;;  %v10605_v12 = vld [vmem:[%s12003_s26 + $0x1e44] ss:$16 sps:$4 sm:$0xff]   ;;  %v10600_v13 = vld [vmem:[%s12003_s26 + $0x1c40] ss:$16 sps:$4 sm:$0xff]  }
 0x26b   : > { %7239 = vmatprep.subr.bf16.mxu1 %v10559_v14  ;;  %v10603_v14 = vld [vmem:[%s12003_s26 + $0x1e40] ss:$16 sps:$4 sm:$0xff]  }
 0x26d   : > { %7199 = vmatpush1.bf16.msra.mxu0 %v10554_v15  ;;  %v10608_v15 = vld [vmem:[%s12003_s26 + $0x1c64] ss:$16 sps:$4 sm:$0xff]  }
 0x26e   : > { %7240 = vmatpush1.bf16.msra.mxu1 %v10557_v16  ;;  %7200 = vmatprep.subr.bf16.mxu0 %v10562_v19  ;;  %v10611_v16 = vld [vmem:[%s12003_s26 + $0x1e64] ss:$16 sps:$4 sm:$0xff]   ;;  %v10606_v19 = vld [vmem:[%s12003_s26 + $0x1c60] ss:$16 sps:$4 sm:$0xff]  }
 0x26f   : > { %7241 = vmatprep.subr.bf16.mxu1 %v10565_v20  ;;  %v10609_v20 = vld [vmem:[%s12003_s26 + $0x1e60] ss:$16 sps:$4 sm:$0xff]  }
 0x271   : > { %7201 = vmatpush1.bf16.msra.mxu0 %v10560_v21  ;;  %v10614_v21 = vld [vmem:[%s12003_s26 + $0x1c84] ss:$16 sps:$4 sm:$0xff]  }
 0x272   : > { %7242 = vmatpush1.bf16.msra.mxu1 %v10563_v22  ;;  %7202 = vmatprep.subr.bf16.mxu0 %v10568_v27  ;;  %v10617_v22 = vld [vmem:[%s12003_s26 + $0x1e84] ss:$16 sps:$4 sm:$0xff]   ;;  %v10612_v27 = vld [vmem:[%s12003_s26 + $0x1c80] ss:$16 sps:$4 sm:$0xff]  }
 0x273   : > { %7243 = vmatprep.subr.bf16.mxu1 %v10571_v28  ;;  %v10615_v28 = vld [vmem:[%s12003_s26 + $0x1e80] ss:$16 sps:$4 sm:$0xff]  }
 0x275   : > { %7203 = vmatpush1.bf16.msra.mxu0 %v10566_v29  ;;  %v10620_v29 = vld [vmem:[%s12003_s26 + $0x1ca4] ss:$16 sps:$4 sm:$0xff]  }
 0x276   : > { %7244 = vmatpush1.bf16.msra.mxu1 %v10569_v30  ;;  %7204 = vmatprep.subr.bf16.mxu0 %v10574_v31  ;;  %v10623_v30 = vld [vmem:[%s12003_s26 + $0x1ea4] ss:$16 sps:$4 sm:$0xff]   ;;  %v10618_v31 = vld [vmem:[%s12003_s26 + $0x1ca0] ss:$16 sps:$4 sm:$0xff]  }
 0x277   : > { %7245 = vmatprep.subr.bf16.mxu1 %v10577_v32  ;;  %v10621_v32 = vld [vmem:[%s12003_s26 + $0x1ea0] ss:$16 sps:$4 sm:$0xff]  }
 0x279   : > { %7205 = vmatpush1.bf16.msra.mxu0 %v10572_v34  ;;  %v10626_v34 = vld [vmem:[%s12003_s26 + $0x1cc4] ss:$16 sps:$4 sm:$0xff]  }
 0x27a   : > { %7246 = vmatpush1.bf16.msra.mxu1 %v10575_v36  ;;  %7206 = vmatprep.subr.bf16.mxu0 %v10580_v43  ;;  %v10629_v36 = vld [vmem:[%s12003_s26 + $0x1ec4] ss:$16 sps:$4 sm:$0xff]  }
 0x27b   : > { %7247 = vmatprep.subr.bf16.mxu1 %v10583_v55 }
 0x27d   : > { %7207 = vmatpush1.bf16.msra.mxu0 %v10578_v33  ;;  %v10624_v33 = vld [vmem:[%s12003_s26 + $0x1cc0] ss:$16 sps:$4 sm:$0xff]  }
 0x27e   : > { %7248 = vmatpush1.bf16.msra.mxu1 %v10581_v56  ;;  %7258 = vmatprep.subr.bf16.mxu0 %v10590_v45  ;;  %v10627_v56 = vld [vmem:[%s12003_s26 + $0x1ec0] ss:$16 sps:$4 sm:$0xff]  }
 0x27f   : > { %7299 = vmatprep.subr.bf16.mxu1 %v10593_v58 }
 0x280   : > { %7209 = vmatmul.mubr.bf16.vlgmr.msra.gmra.mrb[24].mxu0 %v12676_v3 }
 0x281   : > { %7250 = vmatmul.mubr.bf16.vlgmr.msra.gmra.mrb[24].mxu1 %v12680_v4  ;;  %7259 = vmatpush1.bf16.msra.mxu0 %v10588_v1 }
 0x282   : > { %7300 = vmatpush1.bf16.msra.mxu1 %v10591_v2  ;;  %7260 = vmatprep.subr.bf16.mxu0 %v10596_v5 }
 0x283   : > { %7301 = vmatprep.subr.bf16.mxu1 %v10599_v6  ;;  %7290 = vmatprep.mubr.bf16.mxu0 %v12686_v9 }
 0x284   : > { %7331 = vmatprep.mubr.bf16.mxu1 %v12690_v53 }
 0x285   : > { %7261 = vmatpush1.bf16.msra.mxu0 %v10594_v54 }
 0x286   : > { %7302 = vmatpush1.bf16.msra.mxu1 %v10597_v10  ;;  %7262 = vmatprep.subr.bf16.mxu0 %v10602_v11 }
 0x287   : > { %7303 = vmatprep.subr.bf16.mxu1 %v10605_v12  ;;  %v10635_v12 = vld [vmem:[%s12003_s26 + $0x1ee4] ss:$16 sps:$4 sm:$0xff]  }
 0x289   : > { %7263 = vmatpush1.bf16.msra.mxu0 %v10600_v13 }
 0x28a   : > { %7304 = vmatpush1.bf16.msra.mxu1 %v10603_v14  ;;  %7264 = vmatprep.subr.bf16.mxu0 %v10608_v15  ;;  %v10633_v14 = vld [vmem:[%s12003_s26 + $0x1ee0] ss:$16 sps:$4 sm:$0xff]   ;;  %v10638_v15 = vld [vmem:[%s12003_s26 + $0x1d04] ss:$16 sps:$4 sm:$0xff]  }
 0x28b   : > { %7305 = vmatprep.subr.bf16.mxu1 %v10611_v16  ;;  %v10641_v16 = vld [vmem:[%s12003_s26 + $0x1f04] ss:$16 sps:$4 sm:$0xff]  }
 0x28d   : > { %7265 = vmatpush1.bf16.msra.mxu0 %v10606_v19  ;;  %v10636_v19 = vld [vmem:[%s12003_s26 + $0x1d00] ss:$16 sps:$4 sm:$0xff]  }
 0x28e   : > { %7306 = vmatpush1.bf16.msra.mxu1 %v10609_v20  ;;  %7266 = vmatprep.subr.bf16.mxu0 %v10614_v21  ;;  %v10639_v20 = vld [vmem:[%s12003_s26 + $0x1f00] ss:$16 sps:$4 sm:$0xff]   ;;  %v10644_v21 = vld [vmem:[%s12003_s26 + $0x1d24] ss:$16 sps:$4 sm:$0xff]  }
 0x28f   : > { %7307 = vmatprep.subr.bf16.mxu1 %v10617_v22  ;;  %v10647_v22 = vld [vmem:[%s12003_s26 + $0x1f24] ss:$16 sps:$4 sm:$0xff]  }
 0x291   : > { %7267 = vmatpush1.bf16.msra.mxu0 %v10612_v27  ;;  %v10642_v27 = vld [vmem:[%s12003_s26 + $0x1d20] ss:$16 sps:$4 sm:$0xff]  }
 0x292   : > { %7308 = vmatpush1.bf16.msra.mxu1 %v10615_v28  ;;  %7268 = vmatprep.subr.bf16.mxu0 %v10620_v29  ;;  %v10645_v28 = vld [vmem:[%s12003_s26 + $0x1f20] ss:$16 sps:$4 sm:$0xff]   ;;  %v10650_v29 = vld [vmem:[%s12003_s26 + $0x1d44] ss:$16 sps:$4 sm:$0xff]  }
 0x293   : > { %7309 = vmatprep.subr.bf16.mxu1 %v10623_v30  ;;  %v6964_v43 = vpop.f32.mrb[12].mxu0  ;;  %v10653_v30 = vld [vmem:[%s12003_s26 + $0x1f44] ss:$16 sps:$4 sm:$0xff]  }
 0x294   : > { %v7005_v55 = vpop.f32.mrb[12].mxu1  ;;  %v6965_v45 = vadd.f32 %v6964_v43, %v12624_v35  ;;  %v6966_v58 = vpop.f32.mrb[13].mxu0  ;;  %v10632_v35 = vld [vmem:[%s12003_s26 + $0x1ce4] ss:$16 sps:$4 sm:$0xff]   ;;  %v10654_v43 = vld [vmem:[%s12003_s26 + $0x1d60] ss:$16 sps:$4 sm:$0xff]  }
 0x295   : > { %v7007_v1 = vpop.f32.mrb[13].mxu1  ;;  %v6967_v2 = vadd.f32 %v6966_v58, %v12628_v57  ;;  %v6968_v5 = vpop.f32.mrb[14].mxu0  ;;  %7269 = vmatpush1.bf16.msra.mxu0 %v10618_v31  ;;  %v10630_v57 = vld [vmem:[%s12003_s26 + $0x1ce0] ss:$16 sps:$4 sm:$0xff]  }
 0x296   : > { %v7009_v6 = vpop.f32.mrb[14].mxu1  ;;  %7310 = vmatpush1.bf16.msra.mxu1 %v10621_v32  ;;  %v12720_v54 = vadd.f32 %v7005_v55, %v6965_v45  ;;  %v6969_v10 = vpop.f32.mrb[15].mxu0  ;;  %7270 = vmatprep.subr.bf16.mxu0 %v10626_v34  ;;  %v10648_v31 = vld [vmem:[%s12003_s26 + $0x1d40] ss:$16 sps:$4 sm:$0xff]   ;;  %v10656_v34 = vld [vmem:[%s12003_s26 + $0x1d64] ss:$16 sps:$4 sm:$0xff]  }
 0x297   : > { %v7010_v11 = vpop.f32.mrb[15].mxu1  ;;  %7311 = vmatprep.subr.bf16.mxu1 %v10629_v36  ;;  %v12724_v13 = vadd.f32 %v7007_v1, %v6967_v2  ;;  %v10651_v32 = vld [vmem:[%s12003_s26 + $0x1f40] ss:$16 sps:$4 sm:$0xff]   ;;  %v10659_v36 = vld [vmem:[%s12003_s26 + $0x1f64] ss:$16 sps:$4 sm:$0xff]  }
 0x298   : > { %v10657_v55 = vld [vmem:[%s12003_s26 + $0x1f60] ss:$16 sps:$4 sm:$0xff]   ;;  %v10668_v1 = vld [vmem:[%s12003_s26 + $0x1da4] ss:$16 sps:$4 sm:$0xff]  }
 0x299   : > { %7271 = vmatpush1.bf16.msra.mxu0 %v10624_v33  ;;  %v10662_v33 = vld [vmem:[%s12003_s26 + $0x1d84] ss:$16 sps:$4 sm:$0xff]   ;;  %v10660_v45 = vld [vmem:[%s12003_s26 + $0x1d80] ss:$16 sps:$4 sm:$0xff]  }
 0x29a   : > { %7312 = vmatpush1.bf16.msra.mxu1 %v10627_v56  ;;  %7272 = vmatprep.subr.bf16.mxu0 %v10632_v35  ;;  %v10665_v56 = vld [vmem:[%s12003_s26 + $0x1f84] ss:$16 sps:$4 sm:$0xff]   ;;  %v10663_v58 = vld [vmem:[%s12003_s26 + $0x1f80] ss:$16 sps:$4 sm:$0xff]  }
 0x29b   : > { %7313 = vmatprep.subr.bf16.mxu1 %v10635_v12  ;;  %v10671_v2 = vld [vmem:[%s12003_s26 + $0x1fa4] ss:$16 sps:$4 sm:$0xff]   ;;  %v10666_v5 = vld [vmem:[%s12003_s26 + $0x1da0] ss:$16 sps:$4 sm:$0xff]  }
 0x29c   : > { %v10669_v6 = vld [vmem:[%s12003_s26 + $0x1fa0] ss:$16 sps:$4 sm:$0xff]   ;;  %v10674_v10 = vld [vmem:[%s12003_s26 + $0x1dc4] ss:$16 sps:$4 sm:$0xff]  }
 0x29d   : > { %7273 = vmatpush1.bf16.msra.mxu0 %v10630_v57  ;;  %v10677_v11 = vld [vmem:[%s12003_s26 + $0x1fc4] ss:$16 sps:$4 sm:$0xff]   ;;  %v10672_v35 = vld [vmem:[%s12003_s26 + $0x1dc0] ss:$16 sps:$4 sm:$0xff]  }
 0x29e   : > { %7314 = vmatpush1.bf16.msra.mxu1 %v10633_v14  ;;  %7274 = vmatprep.subr.bf16.mxu0 %v10638_v15  ;;  %v10675_v12 = vld [vmem:[%s12003_s26 + $0x1fc0] ss:$16 sps:$4 sm:$0xff]   ;;  %v10680_v57 = vld [vmem:[%s12003_s26 + $0x1de4] ss:$16 sps:$4 sm:$0xff]  }
 0x29f   : > { %7315 = vmatprep.subr.bf16.mxu1 %v10641_v16  ;;  %v10683_v14 = vld [vmem:[%s12003_s26 + $0x1fe4] ss:$16 sps:$4 sm:$0xff]   ;;  %v10678_v15 = vld [vmem:[%s12003_s26 + $0x1de0] ss:$16 sps:$4 sm:$0xff]  }
 0x2a0   : > { %v10681_v16 = vld [vmem:[%s12003_s26 + $0x1fe0] ss:$16 sps:$4 sm:$0xff]  }
 0x2a1   : > { %7275 = vmatpush1.bf16.msra.mxu0 %v10636_v19  ;;  %v10690_v19 = vld [vmem:[%s12003_s26 + $0xc] ss:$16 sps:$4 sm:$0xff]  }
 0x2a2   : > { %7316 = vmatpush1.bf16.msra.mxu1 %v10639_v20  ;;  %7276 = vmatprep.subr.bf16.mxu0 %v10644_v21  ;;  %v10693_v20 = vld [vmem:[%s12003_s26 + $0x20c] ss:$16 sps:$4 sm:$0xff]   ;;  %v10688_v21 = vld [vmem:[%s12003_s26 + $0x8] ss:$16 sps:$4 sm:$0xff]  }
 0x2a3   : > { %7317 = vmatprep.subr.bf16.mxu1 %v10647_v22  ;;  %v10691_v22 = vld [vmem:[%s12003_s26 + $0x208] ss:$16 sps:$4 sm:$0xff]  }
 0x2a5   : > { %7277 = vmatpush1.bf16.msra.mxu0 %v10642_v27  ;;  %v12766_v27 = vcombine.low %v12667_v63, %v12667_v63  ;;  %v10694_v63 = vld [vmem:[%s12003_s26 + $0x28] ss:$16 sps:$4 sm:$0xff]  }
 0x2a6   : > { %7318 = vmatpush1.bf16.msra.mxu1 %v10645_v28  ;;  %7278 = vmatprep.subr.bf16.mxu0 %v10650_v29  ;;  %v12770_v28 = vcombine.low %v12670_v0, %v12670_v0  ;;  %v10696_v29 = vld [vmem:[%s12003_s26 + $0x2c] ss:$16 sps:$4 sm:$0xff]   ;;  %v10697_v0 = vld [vmem:[%s12003_s26 + $0x228] ss:$16 sps:$4 sm:$0xff]  }
 0x2a7   : > { %7319 = vmatprep.subr.bf16.mxu1 %v10653_v30  ;;  %v10699_v30 = vld [vmem:[%s12003_s26 + $0x22c] ss:$16 sps:$4 sm:$0xff]  }
 0x2a9   : > { %7279 = vmatpush1.bf16.msra.mxu0 %v10648_v31  ;;  %v10702_v31 = vld [vmem:[%s12003_s26 + $0x4c] ss:$16 sps:$4 sm:$0xff]  }
 0x2aa   : > { %7320 = vmatpush1.bf16.msra.mxu1 %v10651_v32  ;;  %7280 = vmatprep.subr.bf16.mxu0 %v10656_v34  ;;  %v10705_v32 = vld [vmem:[%s12003_s26 + $0x24c] ss:$16 sps:$4 sm:$0xff]   ;;  %v10700_v34 = vld [vmem:[%s12003_s26 + $0x48] ss:$16 sps:$4 sm:$0xff]  }
 0x2ab   : > { %7321 = vmatprep.subr.bf16.mxu1 %v10659_v36  ;;  %v10703_v36 = vld [vmem:[%s12003_s26 + $0x248] ss:$16 sps:$4 sm:$0xff]  }
 0x2ad   : > { %7281 = vmatpush1.bf16.msra.mxu0 %v10654_v43  ;;  %v10708_v43 = vld [vmem:[%s12003_s26 + $0x6c] ss:$16 sps:$4 sm:$0xff]  }
 0x2ae   : > { %7322 = vmatpush1.bf16.msra.mxu1 %v10657_v55  ;;  %7282 = vmatprep.subr.bf16.mxu0 %v10662_v33  ;;  %v10711_v55 = vld [vmem:[%s12003_s26 + $0x26c] ss:$16 sps:$4 sm:$0xff]   ;;  %v10709_v33 = vld [vmem:[%s12003_s26 + $0x268] ss:$16 sps:$4 sm:$0xff]  }
 0x2af   : > { %7323 = vmatprep.subr.bf16.mxu1 %v10665_v56  ;;  %v10717_v56 = vld [vmem:[%s12003_s26 + $0x28c] ss:$16 sps:$4 sm:$0xff]  }
 0x2b1   : > { %7283 = vmatpush1.bf16.msra.mxu0 %v10660_v45  ;;  %v10712_v45 = vld [vmem:[%s12003_s26 + $0x88] ss:$16 sps:$4 sm:$0xff]  }
 0x2b2   : > { %7324 = vmatpush1.bf16.msra.mxu1 %v10663_v58  ;;  %7284 = vmatprep.subr.bf16.mxu0 %v10668_v1  ;;  %v10715_v58 = vld [vmem:[%s12003_s26 + $0x288] ss:$16 sps:$4 sm:$0xff]   ;;  %v10720_v1 = vld [vmem:[%s12003_s26 + $0xac] ss:$16 sps:$4 sm:$0xff]  }
 0x2b3   : > { %7325 = vmatprep.subr.bf16.mxu1 %v10671_v2  ;;  %v10723_v2 = vld [vmem:[%s12003_s26 + $0x2ac] ss:$16 sps:$4 sm:$0xff]  }
 0x2b5   : > { %7285 = vmatpush1.bf16.msra.mxu0 %v10666_v5  ;;  %v10718_v5 = vld [vmem:[%s12003_s26 + $0xa8] ss:$16 sps:$4 sm:$0xff]  }
 0x2b6   : > { %7326 = vmatpush1.bf16.msra.mxu1 %v10669_v6  ;;  %7286 = vmatprep.subr.bf16.mxu0 %v10674_v10  ;;  %v10721_v6 = vld [vmem:[%s12003_s26 + $0x2a8] ss:$16 sps:$4 sm:$0xff]   ;;  %v10726_v10 = vld [vmem:[%s12003_s26 + $0xcc] ss:$16 sps:$4 sm:$0xff]  }
 0x2b7   : > { %7327 = vmatprep.subr.bf16.mxu1 %v10677_v11  ;;  %v10729_v11 = vld [vmem:[%s12003_s26 + $0x2cc] ss:$16 sps:$4 sm:$0xff]  }
 0x2b9   : > { %7287 = vmatpush1.bf16.msra.mxu0 %v10672_v35 }
 0x2ba   : > { %7328 = vmatpush1.bf16.msra.mxu1 %v10675_v12  ;;  %7288 = vmatprep.subr.bf16.mxu0 %v10680_v57  ;;  %v10724_v57 = vld [vmem:[%s12003_s26 + $0xc8] ss:$16 sps:$4 sm:$0xff]  }
 0x2bb   : > { %7329 = vmatprep.subr.bf16.mxu1 %v10683_v14  ;;  %v10727_v14 = vld [vmem:[%s12003_s26 + $0x2c8] ss:$16 sps:$4 sm:$0xff]  }
 0x2bd   : > { %7289 = vmatpush1.bf16.msra.mxu0 %v10678_v15 }
 0x2be   : > { %7330 = vmatpush1.bf16.msra.mxu1 %v10681_v16  ;;  %7340 = vmatprep.subr.bf16.mxu0 %v10690_v19 }
 0x2bf   : > { %7381 = vmatprep.subr.bf16.mxu1 %v10693_v20 }
 0x2c0   : > { %7291 = vmatmul.mubr.bf16.vlgmr.msra.gmra.mrb[28].mxu0 %v12766_v27 }
 0x2c1   : > { %7332 = vmatmul.mubr.bf16.vlgmr.msra.gmra.mrb[28].mxu1 %v12770_v28  ;;  %7341 = vmatpush1.bf16.msra.mxu0 %v10688_v21 }
 0x2c2   : > { %7382 = vmatpush1.bf16.msra.mxu1 %v10691_v22  ;;  %7342 = vmatprep.subr.bf16.mxu0 %v10696_v29 }
 0x2c3   : > { %7383 = vmatprep.subr.bf16.mxu1 %v10699_v30  ;;  %7372 = vmatprep.mubr.bf16.mxu0 %v12087_v48  ;;  %v10706_v48 = vld [vmem:[%s12003_s26 + $0x68] ss:$16 sps:$4 sm:$0xff]  }
 0x2c4   : > { %7413 = vmatprep.mubr.bf16.mxu1 %v12092_v52  ;;  %v10714_v52 = vld [vmem:[%s12003_s26 + $0x8c] ss:$16 sps:$4 sm:$0xff]  }
 0x2c5   : > { %7343 = vmatpush1.bf16.msra.mxu0 %v10694_v63 }
 0x2c6   : > { %7384 = vmatpush1.bf16.msra.mxu1 %v10697_v0  ;;  %7344 = vmatprep.subr.bf16.mxu0 %v10702_v31  ;;  %v10735_v0 = vld [vmem:[%s12003_s26 + $0x2ec] ss:$16 sps:$4 sm:$0xff]  }
 0x2c7   : > { %7385 = vmatprep.subr.bf16.mxu1 %v10705_v32  ;;  %v10733_v32 = vld [vmem:[%s12003_s26 + $0x2e8] ss:$16 sps:$4 sm:$0xff]  }
 0x2c9   : > { %7345 = vmatpush1.bf16.msra.mxu0 %v10700_v34  ;;  %v10738_v34 = vld [vmem:[%s12003_s26 + $0x10c] ss:$16 sps:$4 sm:$0xff]  }
 0x2ca   : > { %7386 = vmatpush1.bf16.msra.mxu1 %v10703_v36  ;;  %7346 = vmatprep.subr.bf16.mxu0 %v10708_v43  ;;  %v10741_v36 = vld [vmem:[%s12003_s26 + $0x30c] ss:$16 sps:$4 sm:$0xff]   ;;  %v10736_v43 = vld [vmem:[%s12003_s26 + $0x108] ss:$16 sps:$4 sm:$0xff]  }
 0x2cb   : > { %7387 = vmatprep.subr.bf16.mxu1 %v10711_v55  ;;  %v10739_v55 = vld [vmem:[%s12003_s26 + $0x308] ss:$16 sps:$4 sm:$0xff]  }
 0x2cd   : > { %7347 = vmatpush1.bf16.msra.mxu0 %v10706_v48  ;;  %v10744_v48 = vld [vmem:[%s12003_s26 + $0x12c] ss:$16 sps:$4 sm:$0xff]  }
 0x2ce   : > { %7388 = vmatpush1.bf16.msra.mxu1 %v10709_v33  ;;  %7348 = vmatprep.subr.bf16.mxu0 %v10714_v52  ;;  %v10747_v33 = vld [vmem:[%s12003_s26 + $0x32c] ss:$16 sps:$4 sm:$0xff]   ;;  %v10742_v52 = vld [vmem:[%s12003_s26 + $0x128] ss:$16 sps:$4 sm:$0xff]  }
 0x2cf   : > { %7389 = vmatprep.subr.bf16.mxu1 %v10717_v56  ;;  %v10745_v56 = vld [vmem:[%s12003_s26 + $0x328] ss:$16 sps:$4 sm:$0xff]  }
 0x2d1   : > { %7349 = vmatpush1.bf16.msra.mxu0 %v10712_v45  ;;  %v10750_v45 = vld [vmem:[%s12003_s26 + $0x14c] ss:$16 sps:$4 sm:$0xff]  }
 0x2d2   : > { %7390 = vmatpush1.bf16.msra.mxu1 %v10715_v58  ;;  %7350 = vmatprep.subr.bf16.mxu0 %v10720_v1  ;;  %v10753_v58 = vld [vmem:[%s12003_s26 + $0x34c] ss:$16 sps:$4 sm:$0xff]   ;;  %v10748_v1 = vld [vmem:[%s12003_s26 + $0x148] ss:$16 sps:$4 sm:$0xff]  }
 0x2d3   : > { %7391 = vmatprep.subr.bf16.mxu1 %v10723_v2  ;;  %v7046_v35 = vpop.f32.mrb[16].mxu0  ;;  %v10751_v2 = vld [vmem:[%s12003_s26 + $0x348] ss:$16 sps:$4 sm:$0xff]  }
 0x2d4   : > { %v7087_v12 = vpop.f32.mrb[16].mxu1  ;;  %v7047_v15 = vadd.f32 %v7046_v35, %v12720_v54  ;;  %v7048_v16 = vpop.f32.mrb[17].mxu0  ;;  %v10732_v54 = vld [vmem:[%s12003_s26 + $0xec] ss:$16 sps:$4 sm:$0xff]  }
 0x2d5   : > { %v7089_v19 = vpop.f32.mrb[17].mxu1  ;;  %v7049_v20 = vadd.f32 %v7048_v16, %v12724_v13  ;;  %v7050_v21 = vpop.f32.mrb[18].mxu0  ;;  %7351 = vmatpush1.bf16.msra.mxu0 %v10718_v5  ;;  %v10730_v13 = vld [vmem:[%s12003_s26 + $0xe8] ss:$16 sps:$4 sm:$0xff]   ;;  %v10756_v5 = vld [vmem:[%s12003_s26 + $0x16c] ss:$16 sps:$4 sm:$0xff]  }
 0x2d6   : > { %v7091_v22 = vpop.f32.mrb[18].mxu1  ;;  %7392 = vmatpush1.bf16.msra.mxu1 %v10721_v6  ;;  %v12802_v29 = vadd.f32 %v7087_v12, %v7047_v15  ;;  %v7051_v30 = vpop.f32.mrb[19].mxu0  ;;  %7352 = vmatprep.subr.bf16.mxu0 %v10726_v10  ;;  %v10759_v6 = vld [vmem:[%s12003_s26 + $0x36c] ss:$16 sps:$4 sm:$0xff]   ;;  %v10754_v10 = vld [vmem:[%s12003_s26 + $0x168] ss:$16 sps:$4 sm:$0xff]  }
 0x2d7   : > { %v7092_v63 = vpop.f32.mrb[19].mxu1  ;;  %7393 = vmatprep.subr.bf16.mxu1 %v10729_v11  ;;  %v12806_v31 = vadd.f32 %v7089_v19, %v7049_v20  ;;  %v10757_v11 = vld [vmem:[%s12003_s26 + $0x368] ss:$16 sps:$4 sm:$0xff]   ;;  %v10762_v35 = vld [vmem:[%s12003_s26 + $0x18c] ss:$16 sps:$4 sm:$0xff]  }
 0x2d8   : > { %v10765_v12 = vld [vmem:[%s12003_s26 + $0x38c] ss:$16 sps:$4 sm:$0xff]   ;;  %v10766_v19 = vld [vmem:[%s12003_s26 + $0x1a8] ss:$16 sps:$4 sm:$0xff]  }
 0x2d9   : > { %7353 = vmatpush1.bf16.msra.mxu0 %v10724_v57  ;;  %v10760_v57 = vld [vmem:[%s12003_s26 + $0x188] ss:$16 sps:$4 sm:$0xff]   ;;  %v10768_v15 = vld [vmem:[%s12003_s26 + $0x1ac] ss:$16 sps:$4 sm:$0xff]  }
 0x2da   : > { %7394 = vmatpush1.bf16.msra.mxu1 %v10727_v14  ;;  %7354 = vmatprep.subr.bf16.mxu0 %v10732_v54  ;;  %v10763_v14 = vld [vmem:[%s12003_s26 + $0x388] ss:$16 sps:$4 sm:$0xff]   ;;  %v10771_v16 = vld [vmem:[%s12003_s26 + $0x3ac] ss:$16 sps:$4 sm:$0xff]  }
 0x2db   : > { %7395 = vmatprep.subr.bf16.mxu1 %v10735_v0  ;;  %v10769_v20 = vld [vmem:[%s12003_s26 + $0x3a8] ss:$16 sps:$4 sm:$0xff]   ;;  %v10774_v21 = vld [vmem:[%s12003_s26 + $0x1cc] ss:$16 sps:$4 sm:$0xff]  }
 0x2dc   : > { %v10777_v22 = vld [vmem:[%s12003_s26 + $0x3cc] ss:$16 sps:$4 sm:$0xff]   ;;  %v10772_v30 = vld [vmem:[%s12003_s26 + $0x1c8] ss:$16 sps:$4 sm:$0xff]  }
 0x2dd   : > { %7355 = vmatpush1.bf16.msra.mxu0 %v10730_v13  ;;  %v10775_v63 = vld [vmem:[%s12003_s26 + $0x3c8] ss:$16 sps:$4 sm:$0xff]   ;;  %v10780_v54 = vld [vmem:[%s12003_s26 + $0x1ec] ss:$16 sps:$4 sm:$0xff]  }
 0x2de   : > { %7396 = vmatpush1.bf16.msra.mxu1 %v10733_v32  ;;  %7356 = vmatprep.subr.bf16.mxu0 %v10738_v34  ;;  %v10783_v0 = vld [vmem:[%s12003_s26 + $0x3ec] ss:$16 sps:$4 sm:$0xff]   ;;  %v10778_v13 = vld [vmem:[%s12003_s26 + $0x1e8] ss:$16 sps:$4 sm:$0xff]  }
 0x2df   : > { %7397 = vmatprep.subr.bf16.mxu1 %v10741_v36  ;;  %v10781_v32 = vld [vmem:[%s12003_s26 + $0x3e8] ss:$16 sps:$4 sm:$0xff]   ;;  %v10786_v34 = vld [vmem:[%s12003_s26 + $0x40c] ss:$16 sps:$4 sm:$0xff]  }
 0x2e0   : > { %v10789_v36 = vld [vmem:[%s12003_s26 + $0x60c] ss:$16 sps:$4 sm:$0xff]  }
 0x2e1   : > { %7357 = vmatpush1.bf16.msra.mxu0 %v10736_v43  ;;  %v10784_v43 = vld [vmem:[%s12003_s26 + $0x408] ss:$16 sps:$4 sm:$0xff]  }
 0x2e2   : > { %7398 = vmatpush1.bf16.msra.mxu1 %v10739_v55  ;;  %7358 = vmatprep.subr.bf16.mxu0 %v10744_v48  ;;  %v10787_v55 = vld [vmem:[%s12003_s26 + $0x608] ss:$16 sps:$4 sm:$0xff]   ;;  %v10792_v48 = vld [vmem:[%s12003_s26 + $0x42c] ss:$16 sps:$4 sm:$0xff]  }
 0x2e3   : > { %7399 = vmatprep.subr.bf16.mxu1 %v10747_v33  ;;  %v10795_v33 = vld [vmem:[%s12003_s26 + $0x62c] ss:$16 sps:$4 sm:$0xff]  }
 0x2e5   : > { %7359 = vmatpush1.bf16.msra.mxu0 %v10742_v52  ;;  %v10790_v52 = vld [vmem:[%s12003_s26 + $0x428] ss:$16 sps:$4 sm:$0xff]  }
 0x2e6   : > { %7400 = vmatpush1.bf16.msra.mxu1 %v10745_v56  ;;  %7360 = vmatprep.subr.bf16.mxu0 %v10750_v45  ;;  %v10793_v56 = vld [vmem:[%s12003_s26 + $0x628] ss:$16 sps:$4 sm:$0xff]   ;;  %v10798_v45 = vld [vmem:[%s12003_s26 + $0x44c] ss:$16 sps:$4 sm:$0xff]  }
 0x2e7   : > { %7401 = vmatprep.subr.bf16.mxu1 %v10753_v58  ;;  %v10801_v58 = vld [vmem:[%s12003_s26 + $0x64c] ss:$16 sps:$4 sm:$0xff]  }
 0x2e9   : > { %7361 = vmatpush1.bf16.msra.mxu0 %v10748_v1  ;;  %v10804_v1 = vld [vmem:[%s12003_s26 + $0x46c] ss:$16 sps:$4 sm:$0xff]  }
 0x2ea   : > { %7402 = vmatpush1.bf16.msra.mxu1 %v10751_v2  ;;  %7362 = vmatprep.subr.bf16.mxu0 %v10756_v5  ;;  %v10807_v2 = vld [vmem:[%s12003_s26 + $0x66c] ss:$16 sps:$4 sm:$0xff]   ;;  %v10802_v5 = vld [vmem:[%s12003_s26 + $0x468] ss:$16 sps:$4 sm:$0xff]  }
 0x2eb   : > { %7403 = vmatprep.subr.bf16.mxu1 %v10759_v6  ;;  %v10813_v6 = vld [vmem:[%s12003_s26 + $0x68c] ss:$16 sps:$4 sm:$0xff]  }
 0x2ed   : > { %7363 = vmatpush1.bf16.msra.mxu0 %v10754_v10  ;;  %v10808_v10 = vld [vmem:[%s12003_s26 + $0x488] ss:$16 sps:$4 sm:$0xff]  }
 0x2ee   : > { %7404 = vmatpush1.bf16.msra.mxu1 %v10757_v11  ;;  %7364 = vmatprep.subr.bf16.mxu0 %v10762_v35  ;;  %v10811_v11 = vld [vmem:[%s12003_s26 + $0x688] ss:$16 sps:$4 sm:$0xff]   ;;  %v10816_v35 = vld [vmem:[%s12003_s26 + $0x4ac] ss:$16 sps:$4 sm:$0xff]  }
 0x2ef   : > { %7405 = vmatprep.subr.bf16.mxu1 %v10765_v12  ;;  %v10819_v12 = vld [vmem:[%s12003_s26 + $0x6ac] ss:$16 sps:$4 sm:$0xff]  }
 0x2f1   : > { %7365 = vmatpush1.bf16.msra.mxu0 %v10760_v57  ;;  %v10814_v57 = vld [vmem:[%s12003_s26 + $0x4a8] ss:$16 sps:$4 sm:$0xff]  }
 0x2f2   : > { %7406 = vmatpush1.bf16.msra.mxu1 %v10763_v14  ;;  %7366 = vmatprep.subr.bf16.mxu0 %v10768_v15  ;;  %v10817_v14 = vld [vmem:[%s12003_s26 + $0x6a8] ss:$16 sps:$4 sm:$0xff]   ;;  %v10822_v15 = vld [vmem:[%s12003_s26 + $0x4cc] ss:$16 sps:$4 sm:$0xff]  }
 0x2f3   : > { %7407 = vmatprep.subr.bf16.mxu1 %v10771_v16  ;;  %v10825_v16 = vld [vmem:[%s12003_s26 + $0x6cc] ss:$16 sps:$4 sm:$0xff]  }
 0x2f5   : > { %7367 = vmatpush1.bf16.msra.mxu0 %v10766_v19 }
 0x2f6   : > { %7408 = vmatpush1.bf16.msra.mxu1 %v10769_v20  ;;  %7368 = vmatprep.subr.bf16.mxu0 %v10774_v21 }
 0x2f7   : > { %7409 = vmatprep.subr.bf16.mxu1 %v10777_v22 }
 0x2f9   : > { %7369 = vmatpush1.bf16.msra.mxu0 %v10772_v30 }
 0x2fa   : > { %7410 = vmatpush1.bf16.msra.mxu1 %v10775_v63  ;;  %7370 = vmatprep.subr.bf16.mxu0 %v10780_v54 }
 0x2fb   : > { %7411 = vmatprep.subr.bf16.mxu1 %v10783_v0 }
 0x2fd   : > { %7371 = vmatpush1.bf16.msra.mxu0 %v10778_v13  ;;  %v10820_v13 = vld [vmem:[%s12003_s26 + $0x4c8] ss:$16 sps:$4 sm:$0xff]  }
 0x2fe   : > { %7412 = vmatpush1.bf16.msra.mxu1 %v10781_v32  ;;  %7422 = vmatprep.subr.bf16.mxu0 %v10786_v34  ;;  %v10823_v32 = vld [vmem:[%s12003_s26 + $0x6c8] ss:$16 sps:$4 sm:$0xff]  }
 0x2ff   : > { %7463 = vmatprep.subr.bf16.mxu1 %v10789_v36 }
 0x300   : > { %7373 = vmatmul.mubr.bf16.vlgmr.msra.gmra.mrb[32].mxu0 %v12114_v7  ;;  %v10796_v7 = vld [vmem:[%s12003_s26 + $0x448] ss:$16 sps:$4 sm:$0xff]  }
 0x301   : > { %7414 = vmatmul.mubr.bf16.vlgmr.msra.gmra.mrb[32].mxu1 %v12116_v8  ;;  %7423 = vmatpush1.bf16.msra.mxu0 %v10784_v43  ;;  %v10799_v8 = vld [vmem:[%s12003_s26 + $0x648] ss:$16 sps:$4 sm:$0xff]  }
 0x302   : > { %7464 = vmatpush1.bf16.msra.mxu1 %v10787_v55  ;;  %7424 = vmatprep.subr.bf16.mxu0 %v10792_v48  ;;  %v10826_v48 = vld [vmem:[%s12003_s26 + $0x4e8] ss:$16 sps:$4 sm:$0xff]  }
 0x303   : > { %7465 = vmatprep.subr.bf16.mxu1 %v10795_v33  ;;  %7454 = vmatprep.mubr.bf16.mxu0 %v12154_v37  ;;  %v10805_v37 = vld [vmem:[%s12003_s26 + $0x668] ss:$16 sps:$4 sm:$0xff]  }
 0x304   : > { %7495 = vmatprep.mubr.bf16.mxu1 %v12158_v38  ;;  %v10810_v38 = vld [vmem:[%s12003_s26 + $0x48c] ss:$16 sps:$4 sm:$0xff]   ;;  %v10829_v33 = vld [vmem:[%s12003_s26 + $0x6e8] ss:$16 sps:$4 sm:$0xff]  }
 0x305   : > { %7425 = vmatpush1.bf16.msra.mxu0 %v10790_v52  ;;  %v10834_v52 = vld [vmem:[%s12003_s26 + $0x50c] ss:$16 sps:$4 sm:$0xff]  }
 0x306   : > { %7466 = vmatpush1.bf16.msra.mxu1 %v10793_v56  ;;  %7426 = vmatprep.subr.bf16.mxu0 %v10798_v45  ;;  %v10837_v56 = vld [vmem:[%s12003_s26 + $0x70c] ss:$16 sps:$4 sm:$0xff]   ;;  %v10832_v45 = vld [vmem:[%s12003_s26 + $0x508] ss:$16 sps:$4 sm:$0xff]  }
 0x307   : > { %7467 = vmatprep.subr.bf16.mxu1 %v10801_v58  ;;  %v10835_v58 = vld [vmem:[%s12003_s26 + $0x708] ss:$16 sps:$4 sm:$0xff]  }
 0x309   : > { %7427 = vmatpush1.bf16.msra.mxu0 %v10796_v7  ;;  %v10840_v7 = vld [vmem:[%s12003_s26 + $0x52c] ss:$16 sps:$4 sm:$0xff]  }
 0x30a   : > { %7468 = vmatpush1.bf16.msra.mxu1 %v10799_v8  ;;  %7428 = vmatprep.subr.bf16.mxu0 %v10804_v1  ;;  %v10843_v8 = vld [vmem:[%s12003_s26 + $0x72c] ss:$16 sps:$4 sm:$0xff]   ;;  %v10838_v1 = vld [vmem:[%s12003_s26 + $0x528] ss:$16 sps:$4 sm:$0xff]  }
 0x30b   : > { %7469 = vmatprep.subr.bf16.mxu1 %v10807_v2  ;;  %v10841_v2 = vld [vmem:[%s12003_s26 + $0x728] ss:$16 sps:$4 sm:$0xff]  }
 0x30d   : > { %7429 = vmatpush1.bf16.msra.mxu0 %v10802_v5  ;;  %v10846_v5 = vld [vmem:[%s12003_s26 + $0x54c] ss:$16 sps:$4 sm:$0xff]  }
 0x30e   : > { %7470 = vmatpush1.bf16.msra.mxu1 %v10805_v37  ;;  %7430 = vmatprep.subr.bf16.mxu0 %v10810_v38  ;;  %v10849_v37 = vld [vmem:[%s12003_s26 + $0x74c] ss:$16 sps:$4 sm:$0xff]   ;;  %v10844_v38 = vld [vmem:[%s12003_s26 + $0x548] ss:$16 sps:$4 sm:$0xff]  }
 0x30f   : > { %7471 = vmatprep.subr.bf16.mxu1 %v10813_v6  ;;  %v10847_v6 = vld [vmem:[%s12003_s26 + $0x748] ss:$16 sps:$4 sm:$0xff]  }
 0x311   : > { %7431 = vmatpush1.bf16.msra.mxu0 %v10808_v10  ;;  %v10852_v10 = vld [vmem:[%s12003_s26 + $0x56c] ss:$16 sps:$4 sm:$0xff]  }
 0x312   : > { %7472 = vmatpush1.bf16.msra.mxu1 %v10811_v11  ;;  %7432 = vmatprep.subr.bf16.mxu0 %v10816_v35  ;;  %v10855_v11 = vld [vmem:[%s12003_s26 + $0x76c] ss:$16 sps:$4 sm:$0xff]   ;;  %v10850_v35 = vld [vmem:[%s12003_s26 + $0x568] ss:$16 sps:$4 sm:$0xff]  }
 0x313   : > { %7473 = vmatprep.subr.bf16.mxu1 %v10819_v12  ;;  %v7128_v19 = vpop.f32.mrb[20].mxu0  ;;  %v10853_v12 = vld [vmem:[%s12003_s26 + $0x768] ss:$16 sps:$4 sm:$0xff]  }
 0x314   : > { %v7169_v20 = vpop.f32.mrb[20].mxu1  ;;  %v7129_v21 = vadd.f32 %v7128_v19, %v12802_v29  ;;  %v7130_v22 = vpop.f32.mrb[21].mxu0  ;;  %v10828_v29 = vld [vmem:[%s12003_s26 + $0x4ec] ss:$16 sps:$4 sm:$0xff]  }
 0x315   : > { %v7171_v30 = vpop.f32.mrb[21].mxu1  ;;  %v7131_v63 = vadd.f32 %v7130_v22, %v12806_v31  ;;  %v7132_v54 = vpop.f32.mrb[22].mxu0  ;;  %7433 = vmatpush1.bf16.msra.mxu0 %v10814_v57  ;;  %v10831_v31 = vld [vmem:[%s12003_s26 + $0x6ec] ss:$16 sps:$4 sm:$0xff]   ;;  %v10865_v22 = vld [vmem:[%s12003_s26 + $0x7a8] ss:$16 sps:$4 sm:$0xff]  }
 0x316   : > { %v7173_v0 = vpop.f32.mrb[22].mxu1  ;;  %7474 = vmatpush1.bf16.msra.mxu1 %v10817_v14  ;;  %v12876_v34 = vadd.f32 %v7169_v20, %v7129_v21  ;;  %v7133_v36 = vpop.f32.mrb[23].mxu0  ;;  %7434 = vmatprep.subr.bf16.mxu0 %v10822_v15  ;;  %v10858_v57 = vld [vmem:[%s12003_s26 + $0x58c] ss:$16 sps:$4 sm:$0xff]   ;;  %v10856_v15 = vld [vmem:[%s12003_s26 + $0x588] ss:$16 sps:$4 sm:$0xff]  }
 0x317   : > { %v7174_v43 = vpop.f32.mrb[23].mxu1  ;;  %7475 = vmatprep.subr.bf16.mxu1 %v10825_v16  ;;  %v12880_v55 = vadd.f32 %v7171_v30, %v7131_v63  ;;  %v10861_v14 = vld [vmem:[%s12003_s26 + $0x78c] ss:$16 sps:$4 sm:$0xff]   ;;  %v10859_v16 = vld [vmem:[%s12003_s26 + $0x788] ss:$16 sps:$4 sm:$0xff]  }
 0x318   : > { %v10864_v19 = vld [vmem:[%s12003_s26 + $0x5ac] ss:$16 sps:$4 sm:$0xff]   ;;  %v10862_v21 = vld [vmem:[%s12003_s26 + $0x5a8] ss:$16 sps:$4 sm:$0xff]  }
 0x319   : > { %7435 = vmatpush1.bf16.msra.mxu0 %v10820_v13  ;;  %v10867_v20 = vld [vmem:[%s12003_s26 + $0x7ac] ss:$16 sps:$4 sm:$0xff]   ;;  %v10868_v54 = vld [vmem:[%s12003_s26 + $0x5c8] ss:$16 sps:$4 sm:$0xff]  }
 0x31a   : > { %7476 = vmatpush1.bf16.msra.mxu1 %v10823_v32  ;;  %7436 = vmatprep.subr.bf16.mxu0 %v10828_v29  ;;  %v10870_v30 = vld [vmem:[%s12003_s26 + $0x5cc] ss:$16 sps:$4 sm:$0xff]   ;;  %v10871_v0 = vld [vmem:[%s12003_s26 + $0x7c8] ss:$16 sps:$4 sm:$0xff]  }
 0x31b   : > { %7477 = vmatprep.subr.bf16.mxu1 %v10831_v31  ;;  %v10873_v63 = vld [vmem:[%s12003_s26 + $0x7cc] ss:$16 sps:$4 sm:$0xff]   ;;  %v10874_v36 = vld [vmem:[%s12003_s26 + $0x5e8] ss:$16 sps:$4 sm:$0xff]  }
 0x31c   : > { %v10876_v13 = vld [vmem:[%s12003_s26 + $0x5ec] ss:$16 sps:$4 sm:$0xff]   ;;  %v10877_v43 = vld [vmem:[%s12003_s26 + $0x7e8] ss:$16 sps:$4 sm:$0xff]  }
 0x31d   : > { %7437 = vmatpush1.bf16.msra.mxu0 %v10826_v48  ;;  %v10879_v32 = vld [vmem:[%s12003_s26 + $0x7ec] ss:$16 sps:$4 sm:$0xff]   ;;  %v10880_v48 = vld [vmem:[%s12003_s26 + $0x808] ss:$16 sps:$4 sm:$0xff]  }
 0x31e   : > { %7478 = vmatpush1.bf16.msra.mxu1 %v10829_v33  ;;  %7438 = vmatprep.subr.bf16.mxu0 %v10834_v52  ;;  %v10882_v29 = vld [vmem:[%s12003_s26 + $0x80c] ss:$16 sps:$4 sm:$0xff]   ;;  %v10883_v33 = vld [vmem:[%s12003_s26 + $0xa08] ss:$16 sps:$4 sm:$0xff]  }
 0x31f   : > { %7479 = vmatprep.subr.bf16.mxu1 %v10837_v56  ;;  %v10885_v31 = vld [vmem:[%s12003_s26 + $0xa0c] ss:$16 sps:$4 sm:$0xff]  }
 0x320   : > { %v10888_v52 = vld [vmem:[%s12003_s26 + $0x82c] ss:$16 sps:$4 sm:$0xff]  }
 0x321   : > { %7439 = vmatpush1.bf16.msra.mxu0 %v10832_v45  ;;  %v10891_v56 = vld [vmem:[%s12003_s26 + $0xa2c] ss:$16 sps:$4 sm:$0xff]   ;;  %v10886_v45 = vld [vmem:[%s12003_s26 + $0x828] ss:$16 sps:$4 sm:$0xff]  }
 0x322   : > { %7480 = vmatpush1.bf16.msra.mxu1 %v10835_v58  ;;  %7440 = vmatprep.subr.bf16.mxu0 %v10840_v7  ;;  %v10889_v58 = vld [vmem:[%s12003_s26 + $0xa28] ss:$16 sps:$4 sm:$0xff]   ;;  %v10894_v7 = vld [vmem:[%s12003_s26 + $0x84c] ss:$16 sps:$4 sm:$0xff]  }
 0x323   : > { %7481 = vmatprep.subr.bf16.mxu1 %v10843_v8  ;;  %v10897_v8 = vld [vmem:[%s12003_s26 + $0xa4c] ss:$16 sps:$4 sm:$0xff]  }
 0x325   : > { %7441 = vmatpush1.bf16.msra.mxu0 %v10838_v1  ;;  %v10900_v1 = vld [vmem:[%s12003_s26 + $0x86c] ss:$16 sps:$4 sm:$0xff]  }
 0x326   : > { %7482 = vmatpush1.bf16.msra.mxu1 %v10841_v2  ;;  %7442 = vmatprep.subr.bf16.mxu0 %v10846_v5  ;;  %v10903_v2 = vld [vmem:[%s12003_s26 + $0xa6c] ss:$16 sps:$4 sm:$0xff]   ;;  %v10898_v5 = vld [vmem:[%s12003_s26 + $0x868] ss:$16 sps:$4 sm:$0xff]  }
 0x327   : > { %7483 = vmatprep.subr.bf16.mxu1 %v10849_v37  ;;  %v10909_v37 = vld [vmem:[%s12003_s26 + $0xa8c] ss:$16 sps:$4 sm:$0xff]  }
 0x329   : > { %7443 = vmatpush1.bf16.msra.mxu0 %v10844_v38  ;;  %v10904_v38 = vld [vmem:[%s12003_s26 + $0x888] ss:$16 sps:$4 sm:$0xff]  }
 0x32a   : > { %7484 = vmatpush1.bf16.msra.mxu1 %v10847_v6  ;;  %7444 = vmatprep.subr.bf16.mxu0 %v10852_v10  ;;  %v10907_v6 = vld [vmem:[%s12003_s26 + $0xa88] ss:$16 sps:$4 sm:$0xff]   ;;  %v10912_v10 = vld [vmem:[%s12003_s26 + $0x8ac] ss:$16 sps:$4 sm:$0xff]  }
 0x32b   : > { %7485 = vmatprep.subr.bf16.mxu1 %v10855_v11  ;;  %v10915_v11 = vld [vmem:[%s12003_s26 + $0xaac] ss:$16 sps:$4 sm:$0xff]  }
 0x32d   : > { %7445 = vmatpush1.bf16.msra.mxu0 %v10850_v35  ;;  %v10910_v35 = vld [vmem:[%s12003_s26 + $0x8a8] ss:$16 sps:$4 sm:$0xff]  }
 0x32e   : > { %7486 = vmatpush1.bf16.msra.mxu1 %v10853_v12  ;;  %7446 = vmatprep.subr.bf16.mxu0 %v10858_v57  ;;  %v10913_v12 = vld [vmem:[%s12003_s26 + $0xaa8] ss:$16 sps:$4 sm:$0xff]   ;;  %v10918_v57 = vld [vmem:[%s12003_s26 + $0x8cc] ss:$16 sps:$4 sm:$0xff]  }
 0x32f   : > { %7487 = vmatprep.subr.bf16.mxu1 %v10861_v14  ;;  %v10921_v14 = vld [vmem:[%s12003_s26 + $0xacc] ss:$16 sps:$4 sm:$0xff]  }
 0x331   : > { %7447 = vmatpush1.bf16.msra.mxu0 %v10856_v15 }
 0x332   : > { %7488 = vmatpush1.bf16.msra.mxu1 %v10859_v16  ;;  %7448 = vmatprep.subr.bf16.mxu0 %v10864_v19 }
 0x333   : > { %7489 = vmatprep.subr.bf16.mxu1 %v10867_v20 }
 0x335   : > { %7449 = vmatpush1.bf16.msra.mxu0 %v10862_v21 }
 0x336   : > { %7490 = vmatpush1.bf16.msra.mxu1 %v10865_v22  ;;  %7450 = vmatprep.subr.bf16.mxu0 %v10870_v30 }
 0x337   : > { %7491 = vmatprep.subr.bf16.mxu1 %v10873_v63 }
 0x339   : > { %7451 = vmatpush1.bf16.msra.mxu0 %v10868_v54  ;;  %v10916_v54 = vld [vmem:[%s12003_s26 + $0x8c8] ss:$16 sps:$4 sm:$0xff]  }
 0x33a   : > { %7492 = vmatpush1.bf16.msra.mxu1 %v10871_v0  ;;  %7452 = vmatprep.subr.bf16.mxu0 %v10876_v13  ;;  %v10919_v0 = vld [vmem:[%s12003_s26 + $0xac8] ss:$16 sps:$4 sm:$0xff]  }
 0x33b   : > { %7493 = vmatprep.subr.bf16.mxu1 %v10879_v32 }
 0x33d   : > { %7453 = vmatpush1.bf16.msra.mxu0 %v10874_v36 }
 0x33e   : > { %7494 = vmatpush1.bf16.msra.mxu1 %v10877_v43  ;;  %7504 = vmatprep.subr.bf16.mxu0 %v10882_v29  ;;  %v10922_v29 = vld [vmem:[%s12003_s26 + $0x8e8] ss:$16 sps:$4 sm:$0xff]  }
 0x33f   : > { %7545 = vmatprep.subr.bf16.mxu1 %v10885_v31  ;;  %v10925_v31 = vld [vmem:[%s12003_s26 + $0xae8] ss:$16 sps:$4 sm:$0xff]  }
 0x340   : > { %7455 = vmatmul.mubr.bf16.vlgmr.msra.gmra.mrb[36].mxu0 %v12202_v17  ;;  %v10892_v17 = vld [vmem:[%s12003_s26 + $0x848] ss:$16 sps:$4 sm:$0xff]  }
 0x341   : > { %7496 = vmatmul.mubr.bf16.vlgmr.msra.gmra.mrb[36].mxu1 %v12206_v18  ;;  %7505 = vmatpush1.bf16.msra.mxu0 %v10880_v48  ;;  %v10895_v18 = vld [vmem:[%s12003_s26 + $0xa48] ss:$16 sps:$4 sm:$0xff]   ;;  %v10930_v48 = vld [vmem:[%s12003_s26 + $0x90c] ss:$16 sps:$4 sm:$0xff]  }
 0x342   : > { %7546 = vmatpush1.bf16.msra.mxu1 %v10883_v33  ;;  %7506 = vmatprep.subr.bf16.mxu0 %v10888_v52  ;;  %v10933_v33 = vld [vmem:[%s12003_s26 + $0xb0c] ss:$16 sps:$4 sm:$0xff]   ;;  %v10928_v52 = vld [vmem:[%s12003_s26 + $0x908] ss:$16 sps:$4 sm:$0xff]  }
 0x343   : > { %7547 = vmatprep.subr.bf16.mxu1 %v10891_v56  ;;  %7536 = vmatprep.mubr.bf16.mxu0 %v12220_v25  ;;  %v10901_v25 = vld [vmem:[%s12003_s26 + $0xa68] ss:$16 sps:$4 sm:$0xff]  }
 0x344   : > { %7577 = vmatprep.mubr.bf16.mxu1 %v12224_v26  ;;  %v10906_v26 = vld [vmem:[%s12003_s26 + $0x88c] ss:$16 sps:$4 sm:$0xff]   ;;  %v10931_v56 = vld [vmem:[%s12003_s26 + $0xb08] ss:$16 sps:$4 sm:$0xff]  }
 0x345   : > { %7507 = vmatpush1.bf16.msra.mxu0 %v10886_v45  ;;  %v10936_v45 = vld [vmem:[%s12003_s26 + $0x92c] ss:$16 sps:$4 sm:$0xff]  }
 0x346   : > { %7548 = vmatpush1.bf16.msra.mxu1 %v10889_v58  ;;  %7508 = vmatprep.subr.bf16.mxu0 %v10894_v7  ;;  %v10939_v58 = vld [vmem:[%s12003_s26 + $0xb2c] ss:$16 sps:$4 sm:$0xff]   ;;  %v10934_v7 = vld [vmem:[%s12003_s26 + $0x928] ss:$16 sps:$4 sm:$0xff]  }
 0x347   : > { %7549 = vmatprep.subr.bf16.mxu1 %v10897_v8  ;;  %v10937_v8 = vld [vmem:[%s12003_s26 + $0xb28] ss:$16 sps:$4 sm:$0xff]  }
 0x349   : > { %7509 = vmatpush1.bf16.msra.mxu0 %v10892_v17  ;;  %v10942_v17 = vld [vmem:[%s12003_s26 + $0x94c] ss:$16 sps:$4 sm:$0xff]  }
 0x34a   : > { %7550 = vmatpush1.bf16.msra.mxu1 %v10895_v18  ;;  %7510 = vmatprep.subr.bf16.mxu0 %v10900_v1  ;;  %v10945_v18 = vld [vmem:[%s12003_s26 + $0xb4c] ss:$16 sps:$4 sm:$0xff]   ;;  %v10940_v1 = vld [vmem:[%s12003_s26 + $0x948] ss:$16 sps:$4 sm:$0xff]  }
 0x34b   : > { %7551 = vmatprep.subr.bf16.mxu1 %v10903_v2  ;;  %v10943_v2 = vld [vmem:[%s12003_s26 + $0xb48] ss:$16 sps:$4 sm:$0xff]  }
 0x34d   : > { %7511 = vmatpush1.bf16.msra.mxu0 %v10898_v5  ;;  %v10948_v5 = vld [vmem:[%s12003_s26 + $0x96c] ss:$16 sps:$4 sm:$0xff]  }
 0x34e   : > { %7552 = vmatpush1.bf16.msra.mxu1 %v10901_v25  ;;  %7512 = vmatprep.subr.bf16.mxu0 %v10906_v26  ;;  %v10951_v25 = vld [vmem:[%s12003_s26 + $0xb6c] ss:$16 sps:$4 sm:$0xff]   ;;  %v10946_v26 = vld [vmem:[%s12003_s26 + $0x968] ss:$16 sps:$4 sm:$0xff]  }
 0x34f   : > { %7553 = vmatprep.subr.bf16.mxu1 %v10909_v37  ;;  %v10949_v37 = vld [vmem:[%s12003_s26 + $0xb68] ss:$16 sps:$4 sm:$0xff]  }
 0x351   : > { %7513 = vmatpush1.bf16.msra.mxu0 %v10904_v38  ;;  %v10954_v38 = vld [vmem:[%s12003_s26 + $0x98c] ss:$16 sps:$4 sm:$0xff]  }
 0x352   : > { %7554 = vmatpush1.bf16.msra.mxu1 %v10907_v6  ;;  %7514 = vmatprep.subr.bf16.mxu0 %v10912_v10  ;;  %v10957_v6 = vld [vmem:[%s12003_s26 + $0xb8c] ss:$16 sps:$4 sm:$0xff]   ;;  %v10952_v10 = vld [vmem:[%s12003_s26 + $0x988] ss:$16 sps:$4 sm:$0xff]  }
 0x353   : > { %7555 = vmatprep.subr.bf16.mxu1 %v10915_v11  ;;  %v7210_v15 = vpop.f32.mrb[24].mxu0  ;;  %v10955_v11 = vld [vmem:[%s12003_s26 + $0xb88] ss:$16 sps:$4 sm:$0xff]  }
 0x354   : > { %v7251_v16 = vpop.f32.mrb[24].mxu1  ;;  %v7211_v19 = vadd.f32 %v7210_v15, %v12876_v34  ;;  %v7212_v20 = vpop.f32.mrb[25].mxu0  ;;  %v10924_v34 = vld [vmem:[%s12003_s26 + $0x8ec] ss:$16 sps:$4 sm:$0xff]  }
 0x355   : > { %v7253_v21 = vpop.f32.mrb[25].mxu1  ;;  %v7213_v22 = vadd.f32 %v7212_v20, %v12880_v55  ;;  %v7214_v30 = vpop.f32.mrb[26].mxu0  ;;  %7515 = vmatpush1.bf16.msra.mxu0 %v10910_v35  ;;  %v10927_v55 = vld [vmem:[%s12003_s26 + $0xaec] ss:$16 sps:$4 sm:$0xff]   ;;  %v10967_v20 = vld [vmem:[%s12003_s26 + $0xbc8] ss:$16 sps:$4 sm:$0xff]  }
 0x356   : > { %v7255_v63 = vpop.f32.mrb[26].mxu1  ;;  %7556 = vmatpush1.bf16.msra.mxu1 %v10913_v12  ;;  %v12950_v13 = vadd.f32 %v7251_v16, %v7211_v19  ;;  %v7215_v32 = vpop.f32.mrb[27].mxu0  ;;  %7516 = vmatprep.subr.bf16.mxu0 %v10918_v57  ;;  %v10960_v35 = vld [vmem:[%s12003_s26 + $0x9ac] ss:$16 sps:$4 sm:$0xff]   ;;  %v10958_v57 = vld [vmem:[%s12003_s26 + $0x9a8] ss:$16 sps:$4 sm:$0xff]  }
 0x357   : > { %v7256_v36 = vpop.f32.mrb[27].mxu1  ;;  %7557 = vmatprep.subr.bf16.mxu1 %v10921_v14  ;;  %v12954_v43 = vadd.f32 %v7253_v21, %v7213_v22  ;;  %v10963_v12 = vld [vmem:[%s12003_s26 + $0xbac] ss:$16 sps:$4 sm:$0xff]   ;;  %v10961_v14 = vld [vmem:[%s12003_s26 + $0xba8] ss:$16 sps:$4 sm:$0xff]  }
 0x358   : > { %v10966_v15 = vld [vmem:[%s12003_s26 + $0x9cc] ss:$16 sps:$4 sm:$0xff]   ;;  %v10964_v19 = vld [vmem:[%s12003_s26 + $0x9c8] ss:$16 sps:$4 sm:$0xff]  }
 0x359   : > { %7517 = vmatpush1.bf16.msra.mxu0 %v10916_v54  ;;  %v10969_v16 = vld [vmem:[%s12003_s26 + $0xbcc] ss:$16 sps:$4 sm:$0xff]   ;;  %v10970_v30 = vld [vmem:[%s12003_s26 + $0x9e8] ss:$16 sps:$4 sm:$0xff]  }
 0x35a   : > { %7558 = vmatpush1.bf16.msra.mxu1 %v10919_v0  ;;  %7518 = vmatprep.subr.bf16.mxu0 %v10924_v34  ;;  %v10972_v21 = vld [vmem:[%s12003_s26 + $0x9ec] ss:$16 sps:$4 sm:$0xff]   ;;  %v10973_v63 = vld [vmem:[%s12003_s26 + $0xbe8] ss:$16 sps:$4 sm:$0xff]  }
 0x35b   : > { %7559 = vmatprep.subr.bf16.mxu1 %v10927_v55  ;;  %v10975_v22 = vld [vmem:[%s12003_s26 + $0xbec] ss:$16 sps:$4 sm:$0xff]   ;;  %v10976_v32 = vld [vmem:[%s12003_s26 + $0xc08] ss:$16 sps:$4 sm:$0xff]  }
 0x35c   : > { %v10978_v54 = vld [vmem:[%s12003_s26 + $0xc0c] ss:$16 sps:$4 sm:$0xff]   ;;  %v10979_v36 = vld [vmem:[%s12003_s26 + $0xe08] ss:$16 sps:$4 sm:$0xff]  }
 0x35d   : > { %7519 = vmatpush1.bf16.msra.mxu0 %v10922_v29  ;;  %v10981_v0 = vld [vmem:[%s12003_s26 + $0xe0c] ss:$16 sps:$4 sm:$0xff]   ;;  %v10982_v29 = vld [vmem:[%s12003_s26 + $0xc28] ss:$16 sps:$4 sm:$0xff]  }
 0x35e   : > { %7560 = vmatpush1.bf16.msra.mxu1 %v10925_v31  ;;  %7520 = vmatprep.subr.bf16.mxu0 %v10930_v48  ;;  %v10984_v34 = vld [vmem:[%s12003_s26 + $0xc2c] ss:$16 sps:$4 sm:$0xff]   ;;  %v10985_v31 = vld [vmem:[%s12003_s26 + $0xe28] ss:$16 sps:$4 sm:$0xff]  }
 0x35f   : > { %7561 = vmatprep.subr.bf16.mxu1 %v10933_v33  ;;  %v10987_v55 = vld [vmem:[%s12003_s26 + $0xe2c] ss:$16 sps:$4 sm:$0xff]  }
 0x360   : > { %v10990_v48 = vld [vmem:[%s12003_s26 + $0xc4c] ss:$16 sps:$4 sm:$0xff]  }
 0x361   : > { %7521 = vmatpush1.bf16.msra.mxu0 %v10928_v52  ;;  %v10993_v33 = vld [vmem:[%s12003_s26 + $0xe4c] ss:$16 sps:$4 sm:$0xff]  }
 0x362   : > { %7562 = vmatpush1.bf16.msra.mxu1 %v10931_v56  ;;  %7522 = vmatprep.subr.bf16.mxu0 %v10936_v45  ;;  %v10996_v52 = vld [vmem:[%s12003_s26 + $0xc6c] ss:$16 sps:$4 sm:$0xff]   ;;  %v10994_v45 = vld [vmem:[%s12003_s26 + $0xc68] ss:$16 sps:$4 sm:$0xff]  }
 0x363   : > { %7563 = vmatprep.subr.bf16.mxu1 %v10939_v58  ;;  %v10999_v56 = vld [vmem:[%s12003_s26 + $0xe6c] ss:$16 sps:$4 sm:$0xff]  }
 0x364   : > { %v11005_v58 = vld [vmem:[%s12003_s26 + $0xe8c] ss:$16 sps:$4 sm:$0xff]  }
 0x365   : > { %7523 = vmatpush1.bf16.msra.mxu0 %v10934_v7  ;;  %v11000_v7 = vld [vmem:[%s12003_s26 + $0xc88] ss:$16 sps:$4 sm:$0xff]  }
 0x366   : > { %7564 = vmatpush1.bf16.msra.mxu1 %v10937_v8  ;;  %7524 = vmatprep.subr.bf16.mxu0 %v10942_v17  ;;  %v11003_v8 = vld [vmem:[%s12003_s26 + $0xe88] ss:$16 sps:$4 sm:$0xff]   ;;  %v11008_v17 = vld [vmem:[%s12003_s26 + $0xcac] ss:$16 sps:$4 sm:$0xff]  }
 0x367   : > { %7565 = vmatprep.subr.bf16.mxu1 %v10945_v18  ;;  %v11011_v18 = vld [vmem:[%s12003_s26 + $0xeac] ss:$16 sps:$4 sm:$0xff]  }
 0x369   : > { %7525 = vmatpush1.bf16.msra.mxu0 %v10940_v1  ;;  %v11006_v1 = vld [vmem:[%s12003_s26 + $0xca8] ss:$16 sps:$4 sm:$0xff]  }
 0x36a   : > { %7566 = vmatpush1.bf16.msra.mxu1 %v10943_v2  ;;  %7526 = vmatprep.subr.bf16.mxu0 %v10948_v5  ;;  %v11009_v2 = vld [vmem:[%s12003_s26 + $0xea8] ss:$16 sps:$4 sm:$0xff]   ;;  %v11014_v5 = vld [vmem:[%s12003_s26 + $0xccc] ss:$16 sps:$4 sm:$0xff]  }
 0x36b   : > { %7567 = vmatprep.subr.bf16.mxu1 %v10951_v25  ;;  %v11017_v25 = vld [vmem:[%s12003_s26 + $0xecc] ss:$16 sps:$4 sm:$0xff]  }
 0x36d   : > { %7527 = vmatpush1.bf16.msra.mxu0 %v10946_v26 }
 0x36e   : > { %7568 = vmatpush1.bf16.msra.mxu1 %v10949_v37  ;;  %7528 = vmatprep.subr.bf16.mxu0 %v10954_v38 }
 0x36f   : > { %7569 = vmatprep.subr.bf16.mxu1 %v10957_v6 }
 0x371   : > { %7529 = vmatpush1.bf16.msra.mxu0 %v10952_v10 }
 0x372   : > { %7570 = vmatpush1.bf16.msra.mxu1 %v10955_v11  ;;  %7530 = vmatprep.subr.bf16.mxu0 %v10960_v35  ;;  %v11012_v11 = vld [vmem:[%s12003_s26 + $0xcc8] ss:$16 sps:$4 sm:$0xff]   ;;  %v408_v35 = vld [vmem:[#allocation2] sm:$0xff] }
 0x373   : > { %7571 = vmatprep.subr.bf16.mxu1 %v10963_v12 }
 0x375   : > { %7531 = vmatpush1.bf16.msra.mxu0 %v10958_v57  ;;  %v409_v57 = vld [vmem:[#allocation2 + $0x8] sm:$0xff] }
 0x376   : > { %7572 = vmatpush1.bf16.msra.mxu1 %v10961_v14  ;;  %7532 = vmatprep.subr.bf16.mxu0 %v10966_v15 }
 0x377   : > { %7573 = vmatprep.subr.bf16.mxu1 %v10969_v16  ;;  %v11015_v16 = vld [vmem:[%s12003_s26 + $0xec8] ss:$16 sps:$4 sm:$0xff]  }
 0x379   : > { %7533 = vmatpush1.bf16.msra.mxu0 %v10964_v19 }
 0x37a   : > { %7574 = vmatpush1.bf16.msra.mxu1 %v10967_v20  ;;  %7534 = vmatprep.subr.bf16.mxu0 %v10972_v21  ;;  %v11020_v21 = vld [vmem:[%s12003_s26 + $0xcec] ss:$16 sps:$4 sm:$0xff]  }
 0x37b   : > { %7575 = vmatprep.subr.bf16.mxu1 %v10975_v22  ;;  %v11023_v22 = vld [vmem:[%s12003_s26 + $0xeec] ss:$16 sps:$4 sm:$0xff]  }
 0x37d   : > { %7535 = vmatpush1.bf16.msra.mxu0 %v10970_v30 }
 0x37e   : > { %7576 = vmatpush1.bf16.msra.mxu1 %v10973_v63  ;;  %7586 = vmatprep.subr.bf16.mxu0 %v10978_v54  ;;  %v11018_v54 = vld [vmem:[%s12003_s26 + $0xce8] ss:$16 sps:$4 sm:$0xff]  }
 0x37f   : > { %7627 = vmatprep.subr.bf16.mxu1 %v10981_v0  ;;  %v11021_v0 = vld [vmem:[%s12003_s26 + $0xee8] ss:$16 sps:$4 sm:$0xff]  }
 0x380   : > { %7537 = vmatmul.mubr.bf16.vlgmr.msra.gmra.mrb[40].mxu0 %v12294_v39  ;;  %v10988_v39 = vld [vmem:[%s12003_s26 + $0xc48] ss:$16 sps:$4 sm:$0xff]  }
 0x381   : > { %7578 = vmatmul.mubr.bf16.vlgmr.msra.gmra.mrb[40].mxu1 %v12298_v40  ;;  %7587 = vmatpush1.bf16.msra.mxu0 %v10976_v32  ;;  %v10991_v40 = vld [vmem:[%s12003_s26 + $0xe48] ss:$16 sps:$4 sm:$0xff]   ;;  %v11026_v32 = vld [vmem:[%s12003_s26 + $0xd0c] ss:$16 sps:$4 sm:$0xff]  }
 0x382   : > { %7628 = vmatpush1.bf16.msra.mxu1 %v10979_v36  ;;  %7588 = vmatprep.subr.bf16.mxu0 %v10984_v34  ;;  %v11029_v36 = vld [vmem:[%s12003_s26 + $0xf0c] ss:$16 sps:$4 sm:$0xff]   ;;  %v11024_v34 = vld [vmem:[%s12003_s26 + $0xd08] ss:$16 sps:$4 sm:$0xff]  }
 0x383   : > { %7629 = vmatprep.subr.bf16.mxu1 %v10987_v55  ;;  %7618 = vmatprep.mubr.bf16.mxu0 %v12310_v23  ;;  %v10997_v23 = vld [vmem:[%s12003_s26 + $0xe68] ss:$16 sps:$4 sm:$0xff]  }
 0x384   : > { %7659 = vmatprep.mubr.bf16.mxu1 %v12314_v24  ;;  %v11002_v24 = vld [vmem:[%s12003_s26 + $0xc8c] ss:$16 sps:$4 sm:$0xff]   ;;  %v11027_v55 = vld [vmem:[%s12003_s26 + $0xf08] ss:$16 sps:$4 sm:$0xff]  }
 0x385   : > { %7589 = vmatpush1.bf16.msra.mxu0 %v10982_v29  ;;  %v11032_v29 = vld [vmem:[%s12003_s26 + $0xd2c] ss:$16 sps:$4 sm:$0xff]  }
 0x386   : > { %7630 = vmatpush1.bf16.msra.mxu1 %v10985_v31  ;;  %7590 = vmatprep.subr.bf16.mxu0 %v10990_v48  ;;  %v11035_v31 = vld [vmem:[%s12003_s26 + $0xf2c] ss:$16 sps:$4 sm:$0xff]   ;;  %v11030_v48 = vld [vmem:[%s12003_s26 + $0xd28] ss:$16 sps:$4 sm:$0xff]  }
 0x387   : > { %7631 = vmatprep.subr.bf16.mxu1 %v10993_v33  ;;  %v11033_v33 = vld [vmem:[%s12003_s26 + $0xf28] ss:$16 sps:$4 sm:$0xff]  }
 0x389   : > { %7591 = vmatpush1.bf16.msra.mxu0 %v10988_v39  ;;  %v11038_v39 = vld [vmem:[%s12003_s26 + $0xd4c] ss:$16 sps:$4 sm:$0xff]  }
 0x38a   : > { %7632 = vmatpush1.bf16.msra.mxu1 %v10991_v40  ;;  %7592 = vmatprep.subr.bf16.mxu0 %v10996_v52  ;;  %v11041_v40 = vld [vmem:[%s12003_s26 + $0xf4c] ss:$16 sps:$4 sm:$0xff]   ;;  %v11036_v52 = vld [vmem:[%s12003_s26 + $0xd48] ss:$16 sps:$4 sm:$0xff]  }
 0x38b   : > { %7633 = vmatprep.subr.bf16.mxu1 %v10999_v56  ;;  %v11039_v56 = vld [vmem:[%s12003_s26 + $0xf48] ss:$16 sps:$4 sm:$0xff]  }
 0x38d   : > { %7593 = vmatpush1.bf16.msra.mxu0 %v10994_v45  ;;  %v11044_v45 = vld [vmem:[%s12003_s26 + $0xd6c] ss:$16 sps:$4 sm:$0xff]  }
 0x38e   : > { %7634 = vmatpush1.bf16.msra.mxu1 %v10997_v23  ;;  %7594 = vmatprep.subr.bf16.mxu0 %v11002_v24  ;;  %v11047_v23 = vld [vmem:[%s12003_s26 + $0xf6c] ss:$16 sps:$4 sm:$0xff]   ;;  %v11042_v24 = vld [vmem:[%s12003_s26 + $0xd68] ss:$16 sps:$4 sm:$0xff]  }
 0x38f   : > { %7635 = vmatprep.subr.bf16.mxu1 %v11005_v58  ;;  %v11045_v58 = vld [vmem:[%s12003_s26 + $0xf68] ss:$16 sps:$4 sm:$0xff]  }
 0x391   : > { %7595 = vmatpush1.bf16.msra.mxu0 %v11000_v7  ;;  %v11050_v7 = vld [vmem:[%s12003_s26 + $0xd8c] ss:$16 sps:$4 sm:$0xff]  }
 0x392   : > { %7636 = vmatpush1.bf16.msra.mxu1 %v11003_v8  ;;  %7596 = vmatprep.subr.bf16.mxu0 %v11008_v17  ;;  %v11053_v8 = vld [vmem:[%s12003_s26 + $0xf8c] ss:$16 sps:$4 sm:$0xff]   ;;  %v11048_v17 = vld [vmem:[%s12003_s26 + $0xd88] ss:$16 sps:$4 sm:$0xff]  }
 0x393   : > { %7637 = vmatprep.subr.bf16.mxu1 %v11011_v18  ;;  %v7292_v26 = vpop.f32.mrb[28].mxu0  ;;  %v11051_v18 = vld [vmem:[%s12003_s26 + $0xf88] ss:$16 sps:$4 sm:$0xff]  }
 0x394   : > { %v7333_v37 = vpop.f32.mrb[28].mxu1  ;;  %v7293_v38 = vadd.f32 %v7292_v26, %v12950_v13  ;;  %v7294_v6 = vpop.f32.mrb[29].mxu0  ;;  %v11062_v26 = vld [vmem:[%s12003_s26 + $0xdcc] ss:$16 sps:$4 sm:$0xff]  }
 0x395   : > { %v7335_v10 = vpop.f32.mrb[29].mxu1  ;;  %v7295_v12 = vadd.f32 %v7294_v6, %v12954_v43  ;;  %v7296_v14 = vpop.f32.mrb[30].mxu0  ;;  %7597 = vmatpush1.bf16.msra.mxu0 %v11006_v1  ;;  %v11056_v1 = vld [vmem:[%s12003_s26 + $0xdac] ss:$16 sps:$4 sm:$0xff]   ;;  %v11063_v6 = vld [vmem:[%s12003_s26 + $0xfc8] ss:$16 sps:$4 sm:$0xff]  }
 0x396   : > { %v7337_v15 = vpop.f32.mrb[30].mxu1  ;;  %7638 = vmatpush1.bf16.msra.mxu1 %v11009_v2  ;;  %v7334_v19 = vadd.f32 %v7333_v37, %v7293_v38  ;;  %v7297_v20 = vpop.f32.mrb[31].mxu0  ;;  %7598 = vmatprep.subr.bf16.mxu0 %v11014_v5  ;;  %v11059_v2 = vld [vmem:[%s12003_s26 + $0xfac] ss:$16 sps:$4 sm:$0xff]   ;;  %v11054_v5 = vld [vmem:[%s12003_s26 + $0xda8] ss:$16 sps:$4 sm:$0xff]  }
 0x397   : > { %v7338_v13 = vpop.f32.mrb[31].mxu1  ;;  %7639 = vmatprep.subr.bf16.mxu1 %v11017_v25  ;;  %v7336_v30 = vadd.f32 %v7335_v10, %v7295_v12  ;;  %v11057_v25 = vld [vmem:[%s12003_s26 + $0xfa8] ss:$16 sps:$4 sm:$0xff]   ;;  %v11065_v37 = vld [vmem:[%s12003_s26 + $0xfcc] ss:$16 sps:$4 sm:$0xff]  }
 0x398   : > { %v7996_v43 = vadd.f32 %v7334_v19, %v408_v35  ;;  %v11060_v38 = vld [vmem:[%s12003_s26 + $0xdc8] ss:$16 sps:$4 sm:$0xff]   ;;  %v11068_v10 = vld [vmem:[%s12003_s26 + $0xdec] ss:$16 sps:$4 sm:$0xff]  }
 0x399   : > { %v7997_v63 = vadd.f32 %v7336_v30, %v409_v57  ;;  %7599 = vmatpush1.bf16.msra.mxu0 %v11012_v11  ;;  %v11071_v11 = vld [vmem:[%s12003_s26 + $0xfec] ss:$16 sps:$4 sm:$0xff]   ;;  %v11066_v35 = vld [vmem:[%s12003_s26 + $0xde8] ss:$16 sps:$4 sm:$0xff]  }
 0x39a   : > { %7640 = vmatpush1.bf16.msra.mxu1 %v11015_v16  ;;  %8000 = vst [vmem:[#allocation2] sm:$0xff] %v7996_v43  ;;  %7600 = vmatprep.subr.bf16.mxu0 %v11020_v21  ;;  %v11069_v12 = vld [vmem:[%s12003_s26 + $0xfe8] ss:$16 sps:$4 sm:$0xff]   ;;  %v11074_v57 = vld [vmem:[%s12003_s26 + $0x100c] ss:$16 sps:$4 sm:$0xff]  }
 0x39b   : > { %7641 = vmatprep.subr.bf16.mxu1 %v11023_v22  ;;  %8001 = vst [vmem:[#allocation2 + $0x8] sm:$0xff] %v7997_v63  ;;  %v11077_v14 = vld [vmem:[%s12003_s26 + $0x120c] ss:$16 sps:$4 sm:$0xff]   ;;  %v11072_v15 = vld [vmem:[%s12003_s26 + $0x1008] ss:$16 sps:$4 sm:$0xff]  }
 0x39c   : > { %v11075_v16 = vld [vmem:[%s12003_s26 + $0x1208] ss:$16 sps:$4 sm:$0xff]   ;;  %v11080_v19 = vld [vmem:[%s12003_s26 + $0x102c] ss:$16 sps:$4 sm:$0xff]  }
 0x39d   : > { %7601 = vmatpush1.bf16.msra.mxu0 %v11018_v54  ;;  %v11083_v20 = vld [vmem:[%s12003_s26 + $0x122c] ss:$16 sps:$4 sm:$0xff]   ;;  %v11078_v13 = vld [vmem:[%s12003_s26 + $0x1028] ss:$16 sps:$4 sm:$0xff]  }
 0x39e   : > { %7642 = vmatpush1.bf16.msra.mxu1 %v11021_v0  ;;  %7602 = vmatprep.subr.bf16.mxu0 %v11026_v32  ;;  %v11081_v21 = vld [vmem:[%s12003_s26 + $0x1228] ss:$16 sps:$4 sm:$0xff]   ;;  %v11086_v22 = vld [vmem:[%s12003_s26 + $0x104c] ss:$16 sps:$4 sm:$0xff]  }
 0x39f   : > { %7643 = vmatprep.subr.bf16.mxu1 %v11029_v36  ;;  %v11089_v30 = vld [vmem:[%s12003_s26 + $0x124c] ss:$16 sps:$4 sm:$0xff]   ;;  %v11090_v54 = vld [vmem:[%s12003_s26 + $0x1068] ss:$16 sps:$4 sm:$0xff]  }
 0x3a0   : > { %v11092_v43 = vld [vmem:[%s12003_s26 + $0x106c] ss:$16 sps:$4 sm:$0xff]   ;;  %v11096_v32 = vld [vmem:[%s12003_s26 + $0x1088] ss:$16 sps:$4 sm:$0xff]  }
 0x3a1   : > { %7603 = vmatpush1.bf16.msra.mxu0 %v11024_v34  ;;  %v11095_v63 = vld [vmem:[%s12003_s26 + $0x126c] ss:$16 sps:$4 sm:$0xff]   ;;  %v11099_v36 = vld [vmem:[%s12003_s26 + $0x1288] ss:$16 sps:$4 sm:$0xff]  }
 0x3a2   : > { %7644 = vmatpush1.bf16.msra.mxu1 %v11027_v55  ;;  %7604 = vmatprep.subr.bf16.mxu0 %v11032_v29  ;;  %v11101_v0 = vld [vmem:[%s12003_s26 + $0x128c] ss:$16 sps:$4 sm:$0xff]   ;;  %v11102_v29 = vld [vmem:[%s12003_s26 + $0x10a8] ss:$16 sps:$4 sm:$0xff]  }
 0x3a3   : > { %7645 = vmatprep.subr.bf16.mxu1 %v11035_v31  ;;  %v11104_v34 = vld [vmem:[%s12003_s26 + $0x10ac] ss:$16 sps:$4 sm:$0xff]   ;;  %v11105_v31 = vld [vmem:[%s12003_s26 + $0x12a8] ss:$16 sps:$4 sm:$0xff]  }
 0x3a4   : > { %v11107_v55 = vld [vmem:[%s12003_s26 + $0x12ac] ss:$16 sps:$4 sm:$0xff]  }
 0x3a5   : > { %7605 = vmatpush1.bf16.msra.mxu0 %v11030_v48  ;;  %v11110_v48 = vld [vmem:[%s12003_s26 + $0x10cc] ss:$16 sps:$4 sm:$0xff]  }
 0x3a6   : > { %7646 = vmatpush1.bf16.msra.mxu1 %v11033_v33  ;;  %7606 = vmatprep.subr.bf16.mxu0 %v11038_v39  ;;  %v11113_v33 = vld [vmem:[%s12003_s26 + $0x12cc] ss:$16 sps:$4 sm:$0xff]  }
 0x3a7   : > { %7647 = vmatprep.subr.bf16.mxu1 %v11041_v40 }
 0x3a9   : > { %7607 = vmatpush1.bf16.msra.mxu0 %v11036_v52 }
 0x3aa   : > { %7648 = vmatpush1.bf16.msra.mxu1 %v11039_v56  ;;  %7608 = vmatprep.subr.bf16.mxu0 %v11044_v45 }
 0x3ab   : > { %7649 = vmatprep.subr.bf16.mxu1 %v11047_v23 }
 0x3ad   : > { %7609 = vmatpush1.bf16.msra.mxu0 %v11042_v24 }
 0x3ae   : > { %7650 = vmatpush1.bf16.msra.mxu1 %v11045_v58  ;;  %7610 = vmatprep.subr.bf16.mxu0 %v11050_v7  ;;  %v11108_v7 = vld [vmem:[%s12003_s26 + $0x10c8] ss:$16 sps:$4 sm:$0xff]  }
 0x3af   : > { %7651 = vmatprep.subr.bf16.mxu1 %v11053_v8  ;;  %v11111_v8 = vld [vmem:[%s12003_s26 + $0x12c8] ss:$16 sps:$4 sm:$0xff]  }
 0x3b1   : > { %7611 = vmatpush1.bf16.msra.mxu0 %v11048_v17 }
 0x3b2   : > { %7652 = vmatpush1.bf16.msra.mxu1 %v11051_v18  ;;  %7612 = vmatprep.subr.bf16.mxu0 %v11056_v1  ;;  %v11116_v1 = vld [vmem:[%s12003_s26 + $0x10ec] ss:$16 sps:$4 sm:$0xff]  }
 0x3b3   : > { %7653 = vmatprep.subr.bf16.mxu1 %v11059_v2  ;;  %v11119_v2 = vld [vmem:[%s12003_s26 + $0x12ec] ss:$16 sps:$4 sm:$0xff]  }
 0x3b5   : > { %7613 = vmatpush1.bf16.msra.mxu0 %v11054_v5  ;;  %v11114_v5 = vld [vmem:[%s12003_s26 + $0x10e8] ss:$16 sps:$4 sm:$0xff]  }
 0x3b6   : > { %7654 = vmatpush1.bf16.msra.mxu1 %v11057_v25  ;;  %7614 = vmatprep.subr.bf16.mxu0 %v11062_v26  ;;  %v11117_v25 = vld [vmem:[%s12003_s26 + $0x12e8] ss:$16 sps:$4 sm:$0xff]   ;;  %v11122_v26 = vld [vmem:[%s12003_s26 + $0x110c] ss:$16 sps:$4 sm:$0xff]  }
 0x3b7   : > { %7655 = vmatprep.subr.bf16.mxu1 %v11065_v37  ;;  %v11125_v37 = vld [vmem:[%s12003_s26 + $0x130c] ss:$16 sps:$4 sm:$0xff]  }
 0x3b9   : > { %7615 = vmatpush1.bf16.msra.mxu0 %v11060_v38  ;;  %v11120_v38 = vld [vmem:[%s12003_s26 + $0x1108] ss:$16 sps:$4 sm:$0xff]  }
 0x3ba   : > { %7656 = vmatpush1.bf16.msra.mxu1 %v11063_v6  ;;  %7616 = vmatprep.subr.bf16.mxu0 %v11068_v10  ;;  %v11123_v6 = vld [vmem:[%s12003_s26 + $0x1308] ss:$16 sps:$4 sm:$0xff]   ;;  %v11128_v10 = vld [vmem:[%s12003_s26 + $0x112c] ss:$16 sps:$4 sm:$0xff]  }
 0x3bb   : > { %7657 = vmatprep.subr.bf16.mxu1 %v11071_v11  ;;  %v11131_v11 = vld [vmem:[%s12003_s26 + $0x132c] ss:$16 sps:$4 sm:$0xff]  }
 0x3bd   : > { %7617 = vmatpush1.bf16.msra.mxu0 %v11066_v35  ;;  %v11126_v35 = vld [vmem:[%s12003_s26 + $0x1128] ss:$16 sps:$4 sm:$0xff]  }
 0x3be   : > { %7658 = vmatpush1.bf16.msra.mxu1 %v11069_v12  ;;  %7668 = vmatprep.subr.bf16.mxu0 %v11074_v57  ;;  %v11129_v12 = vld [vmem:[%s12003_s26 + $0x1328] ss:$16 sps:$4 sm:$0xff]   ;;  %v11134_v57 = vld [vmem:[%s12003_s26 + $0x114c] ss:$16 sps:$4 sm:$0xff]  }
 0x3bf   : > { %7709 = vmatprep.subr.bf16.mxu1 %v11077_v14  ;;  %v11137_v14 = vld [vmem:[%s12003_s26 + $0x134c] ss:$16 sps:$4 sm:$0xff]  }
 0x3c0   : > { %7619 = vmatmul.mubr.bf16.vlgmr.msra.gmra.mrb[44].mxu0 %v12385_v60  ;;  %v11084_v60 = vld [vmem:[%s12003_s26 + $0x1048] ss:$16 sps:$4 sm:$0xff]  }
 0x3c1   : > { %7660 = vmatmul.mubr.bf16.vlgmr.msra.gmra.mrb[44].mxu1 %v12389_v61  ;;  %7669 = vmatpush1.bf16.msra.mxu0 %v11072_v15  ;;  %v11087_v61 = vld [vmem:[%s12003_s26 + $0x1248] ss:$16 sps:$4 sm:$0xff]  }
 0x3c2   : > { %7710 = vmatpush1.bf16.msra.mxu1 %v11075_v16  ;;  %7670 = vmatprep.subr.bf16.mxu0 %v11080_v19  ;;  %v11132_v15 = vld [vmem:[%s12003_s26 + $0x1148] ss:$16 sps:$4 sm:$0xff]   ;;  %v11140_v19 = vld [vmem:[%s12003_s26 + $0x116c] ss:$16 sps:$4 sm:$0xff]  }
 0x3c3   : > { %7711 = vmatprep.subr.bf16.mxu1 %v11083_v20  ;;  %7700 = vmatprep.mubr.bf16.mxu0 %v12400_v41  ;;  %v11093_v41 = vld [vmem:[%s12003_s26 + $0x1268] ss:$16 sps:$4 sm:$0xff]   ;;  %v11143_v20 = vld [vmem:[%s12003_s26 + $0x136c] ss:$16 sps:$4 sm:$0xff]  }
 0x3c4   : > { %7741 = vmatprep.mubr.bf16.mxu1 %v12404_v42  ;;  %v11098_v42 = vld [vmem:[%s12003_s26 + $0x108c] ss:$16 sps:$4 sm:$0xff]   ;;  %v11135_v16 = vld [vmem:[%s12003_s26 + $0x1348] ss:$16 sps:$4 sm:$0xff]  }
 0x3c5   : > { %7671 = vmatpush1.bf16.msra.mxu0 %v11078_v13  ;;  %v11138_v13 = vld [vmem:[%s12003_s26 + $0x1168] ss:$16 sps:$4 sm:$0xff]  }
 0x3c6   : > { %7712 = vmatpush1.bf16.msra.mxu1 %v11081_v21  ;;  %7672 = vmatprep.subr.bf16.mxu0 %v11086_v22  ;;  %v11141_v21 = vld [vmem:[%s12003_s26 + $0x1368] ss:$16 sps:$4 sm:$0xff]   ;;  %v11146_v22 = vld [vmem:[%s12003_s26 + $0x118c] ss:$16 sps:$4 sm:$0xff]  }
 0x3c7   : > { %7713 = vmatprep.subr.bf16.mxu1 %v11089_v30  ;;  %v11149_v30 = vld [vmem:[%s12003_s26 + $0x138c] ss:$16 sps:$4 sm:$0xff]  }
 0x3c9   : > { %7673 = vmatpush1.bf16.msra.mxu0 %v11084_v60  ;;  %v11144_v60 = vld [vmem:[%s12003_s26 + $0x1188] ss:$16 sps:$4 sm:$0xff]  }
 0x3ca   : > { %7714 = vmatpush1.bf16.msra.mxu1 %v11087_v61  ;;  %7674 = vmatprep.subr.bf16.mxu0 %v11092_v43  ;;  %v11147_v61 = vld [vmem:[%s12003_s26 + $0x1388] ss:$16 sps:$4 sm:$0xff]   ;;  %v11152_v43 = vld [vmem:[%s12003_s26 + $0x11ac] ss:$16 sps:$4 sm:$0xff]  }
 0x3cb   : > { %7715 = vmatprep.subr.bf16.mxu1 %v11095_v63  ;;  %v11155_v63 = vld [vmem:[%s12003_s26 + $0x13ac] ss:$16 sps:$4 sm:$0xff]  }
 0x3cd   : > { %7675 = vmatpush1.bf16.msra.mxu0 %v11090_v54  ;;  %v11150_v54 = vld [vmem:[%s12003_s26 + $0x11a8] ss:$16 sps:$4 sm:$0xff]  }
 0x3ce   : > { %7716 = vmatpush1.bf16.msra.mxu1 %v11093_v41  ;;  %7676 = vmatprep.subr.bf16.mxu0 %v11098_v42  ;;  %v11153_v41 = vld [vmem:[%s12003_s26 + $0x13a8] ss:$16 sps:$4 sm:$0xff]   ;;  %v11158_v42 = vld [vmem:[%s12003_s26 + $0x11cc] ss:$16 sps:$4 sm:$0xff]  }
 0x3cf   : > { %7717 = vmatprep.subr.bf16.mxu1 %v11101_v0  ;;  %v11161_v0 = vld [vmem:[%s12003_s26 + $0x13cc] ss:$16 sps:$4 sm:$0xff]  }
 0x3d1   : > { %7677 = vmatpush1.bf16.msra.mxu0 %v11096_v32  ;;  %v11156_v32 = vld [vmem:[%s12003_s26 + $0x11c8] ss:$16 sps:$4 sm:$0xff]  }
 0x3d2   : > { %7718 = vmatpush1.bf16.msra.mxu1 %v11099_v36  ;;  %7678 = vmatprep.subr.bf16.mxu0 %v11104_v34  ;;  %v11159_v36 = vld [vmem:[%s12003_s26 + $0x13c8] ss:$16 sps:$4 sm:$0xff]   ;;  %v11164_v34 = vld [vmem:[%s12003_s26 + $0x11ec] ss:$16 sps:$4 sm:$0xff]  }
 0x3d3   : > { %7719 = vmatprep.subr.bf16.mxu1 %v11107_v55  ;;  %v7374_v39 = vpop.f32.mrb[32].mxu0  ;;  %v11167_v55 = vld [vmem:[%s12003_s26 + $0x13ec] ss:$16 sps:$4 sm:$0xff]  }
 0x3d4   : > { %v7415_v40 = vpop.f32.mrb[32].mxu1  ;;  %v7376_v56 = vpop.f32.mrb[33].mxu0 }
 0x3d5   : > { %v13090_v52 = vadd.f32 %v7415_v40, %v7374_v39  ;;  %v7417_v45 = vpop.f32.mrb[33].mxu1  ;;  %v7378_v24 = vpop.f32.mrb[34].mxu0  ;;  %7679 = vmatpush1.bf16.msra.mxu0 %v11102_v29  ;;  %v11162_v29 = vld [vmem:[%s12003_s26 + $0x11e8] ss:$16 sps:$4 sm:$0xff]  }
 0x3d6   : > { %v13092_v23 = vadd.f32 %v7417_v45, %v7376_v56  ;;  %v7419_v58 = vpop.f32.mrb[34].mxu1  ;;  %7720 = vmatpush1.bf16.msra.mxu1 %v11105_v31  ;;  %v7379_v17 = vpop.f32.mrb[35].mxu0  ;;  %7680 = vmatprep.subr.bf16.mxu0 %v11110_v48  ;;  %v11165_v31 = vld [vmem:[%s12003_s26 + $0x13e8] ss:$16 sps:$4 sm:$0xff]   ;;  %v11170_v48 = vld [vmem:[%s12003_s26 + $0x140c] ss:$16 sps:$4 sm:$0xff]  }
 0x3d7   : > { %v7420_v18 = vpop.f32.mrb[35].mxu1  ;;  %7721 = vmatprep.subr.bf16.mxu1 %v11113_v33  ;;  %v11173_v33 = vld [vmem:[%s12003_s26 + $0x160c] ss:$16 sps:$4 sm:$0xff]   ;;  %v11168_v39 = vld [vmem:[%s12003_s26 + $0x1408] ss:$16 sps:$4 sm:$0xff]  }
 0x3d8   : > { %v11171_v40 = vld [vmem:[%s12003_s26 + $0x1608] ss:$16 sps:$4 sm:$0xff]   ;;  %v11176_v56 = vld [vmem:[%s12003_s26 + $0x142c] ss:$16 sps:$4 sm:$0xff]  }
 0x3d9   : > { %7681 = vmatpush1.bf16.msra.mxu0 %v11108_v7  ;;  %v11179_v45 = vld [vmem:[%s12003_s26 + $0x162c] ss:$16 sps:$4 sm:$0xff]   ;;  %v11174_v24 = vld [vmem:[%s12003_s26 + $0x1428] ss:$16 sps:$4 sm:$0xff]  }
 0x3da   : > { %7722 = vmatpush1.bf16.msra.mxu1 %v11111_v8  ;;  %7682 = vmatprep.subr.bf16.mxu0 %v11116_v1  ;;  %v11177_v58 = vld [vmem:[%s12003_s26 + $0x1628] ss:$16 sps:$4 sm:$0xff]   ;;  %v11182_v7 = vld [vmem:[%s12003_s26 + $0x144c] ss:$16 sps:$4 sm:$0xff]  }
 0x3db   : > { %7723 = vmatprep.subr.bf16.mxu1 %v11119_v2  ;;  %v11185_v8 = vld [vmem:[%s12003_s26 + $0x164c] ss:$16 sps:$4 sm:$0xff]   ;;  %v11186_v1 = vld [vmem:[%s12003_s26 + $0x1468] ss:$16 sps:$4 sm:$0xff]  }
 0x3dc   : > { %v11188_v17 = vld [vmem:[%s12003_s26 + $0x146c] ss:$16 sps:$4 sm:$0xff]  }
 0x3dd   : > { %7683 = vmatpush1.bf16.msra.mxu0 %v11114_v5  ;;  %v11191_v18 = vld [vmem:[%s12003_s26 + $0x166c] ss:$16 sps:$4 sm:$0xff]   ;;  %v11192_v5 = vld [vmem:[%s12003_s26 + $0x1488] ss:$16 sps:$4 sm:$0xff]  }
 0x3de   : > { %7724 = vmatpush1.bf16.msra.mxu1 %v11117_v25  ;;  %7684 = vmatprep.subr.bf16.mxu0 %v11122_v26  ;;  %v11197_v2 = vld [vmem:[%s12003_s26 + $0x168c] ss:$16 sps:$4 sm:$0xff]   ;;  %v11195_v25 = vld [vmem:[%s12003_s26 + $0x1688] ss:$16 sps:$4 sm:$0xff]  }
 0x3df   : > { %7725 = vmatprep.subr.bf16.mxu1 %v11125_v37  ;;  %v11200_v26 = vld [vmem:[%s12003_s26 + $0x14ac] ss:$16 sps:$4 sm:$0xff]  }
 0x3e0   : > { %v11203_v37 = vld [vmem:[%s12003_s26 + $0x16ac] ss:$16 sps:$4 sm:$0xff]  }
 0x3e1   : > { %7685 = vmatpush1.bf16.msra.mxu0 %v11120_v38  ;;  %v11198_v38 = vld [vmem:[%s12003_s26 + $0x14a8] ss:$16 sps:$4 sm:$0xff]  }
 0x3e2   : > { %7726 = vmatpush1.bf16.msra.mxu1 %v11123_v6  ;;  %7686 = vmatprep.subr.bf16.mxu0 %v11128_v10  ;;  %v11201_v6 = vld [vmem:[%s12003_s26 + $0x16a8] ss:$16 sps:$4 sm:$0xff]   ;;  %v11206_v10 = vld [vmem:[%s12003_s26 + $0x14cc] ss:$16 sps:$4 sm:$0xff]  }
 0x3e3   : > { %7727 = vmatprep.subr.bf16.mxu1 %v11131_v11  ;;  %v11209_v11 = vld [vmem:[%s12003_s26 + $0x16cc] ss:$16 sps:$4 sm:$0xff]  }
 0x3e5   : > { %7687 = vmatpush1.bf16.msra.mxu0 %v11126_v35 }
 0x3e6   : > { %7728 = vmatpush1.bf16.msra.mxu1 %v11129_v12  ;;  %7688 = vmatprep.subr.bf16.mxu0 %v11134_v57 }
 0x3e7   : > { %7729 = vmatprep.subr.bf16.mxu1 %v11137_v14 }
 0x3e9   : > { %7689 = vmatpush1.bf16.msra.mxu0 %v11132_v15 }
 0x3ea   : > { %7730 = vmatpush1.bf16.msra.mxu1 %v11135_v16  ;;  %7690 = vmatprep.subr.bf16.mxu0 %v11140_v19 }
 0x3eb   : > { %7731 = vmatprep.subr.bf16.mxu1 %v11143_v20 }
 0x3ed   : > { %7691 = vmatpush1.bf16.msra.mxu0 %v11138_v13  ;;  %v11204_v13 = vld [vmem:[%s12003_s26 + $0x14c8] ss:$16 sps:$4 sm:$0xff]  }
 0x3ee   : > { %7732 = vmatpush1.bf16.msra.mxu1 %v11141_v21  ;;  %7692 = vmatprep.subr.bf16.mxu0 %v11146_v22  ;;  %v11207_v21 = vld [vmem:[%s12003_s26 + $0x16c8] ss:$16 sps:$4 sm:$0xff]  }
 0x3ef   : > { %7733 = vmatprep.subr.bf16.mxu1 %v11149_v30 }
 0x3f1   : > { %7693 = vmatpush1.bf16.msra.mxu0 %v11144_v60 }
 0x3f2   : > { %7734 = vmatpush1.bf16.msra.mxu1 %v11147_v61  ;;  %7694 = vmatprep.subr.bf16.mxu0 %v11152_v43  ;;  %v11210_v43 = vld [vmem:[%s12003_s26 + $0x14e8] ss:$16 sps:$4 sm:$0xff]  }
 0x3f3   : > { %7735 = vmatprep.subr.bf16.mxu1 %v11155_v63  ;;  %v11213_v63 = vld [vmem:[%s12003_s26 + $0x16e8] ss:$16 sps:$4 sm:$0xff]  }
 0x3f5   : > { %7695 = vmatpush1.bf16.msra.mxu0 %v11150_v54  ;;  %v11218_v54 = vld [vmem:[%s12003_s26 + $0x150c] ss:$16 sps:$4 sm:$0xff]  }
 0x3f6   : > { %7736 = vmatpush1.bf16.msra.mxu1 %v11153_v41  ;;  %7696 = vmatprep.subr.bf16.mxu0 %v11158_v42  ;;  %v11221_v41 = vld [vmem:[%s12003_s26 + $0x170c] ss:$16 sps:$4 sm:$0xff]   ;;  %v11216_v42 = vld [vmem:[%s12003_s26 + $0x1508] ss:$16 sps:$4 sm:$0xff]  }
 0x3f7   : > { %7737 = vmatprep.subr.bf16.mxu1 %v11161_v0  ;;  %v11219_v0 = vld [vmem:[%s12003_s26 + $0x1708] ss:$16 sps:$4 sm:$0xff]  }
 0x3f9   : > { %7697 = vmatpush1.bf16.msra.mxu0 %v11156_v32  ;;  %v11224_v32 = vld [vmem:[%s12003_s26 + $0x152c] ss:$16 sps:$4 sm:$0xff]  }
 0x3fa   : > { %7738 = vmatpush1.bf16.msra.mxu1 %v11159_v36  ;;  %7698 = vmatprep.subr.bf16.mxu0 %v11164_v34  ;;  %v11227_v36 = vld [vmem:[%s12003_s26 + $0x172c] ss:$16 sps:$4 sm:$0xff]   ;;  %v11222_v34 = vld [vmem:[%s12003_s26 + $0x1528] ss:$16 sps:$4 sm:$0xff]  }
 0x3fb   : > { %7739 = vmatprep.subr.bf16.mxu1 %v11167_v55  ;;  %v11225_v55 = vld [vmem:[%s12003_s26 + $0x1728] ss:$16 sps:$4 sm:$0xff]  }
 0x3fd   : > { %7699 = vmatpush1.bf16.msra.mxu0 %v11162_v29  ;;  %v11230_v29 = vld [vmem:[%s12003_s26 + $0x154c] ss:$16 sps:$4 sm:$0xff]  }
 0x3fe   : > { %7740 = vmatpush1.bf16.msra.mxu1 %v11165_v31  ;;  %7750 = vmatprep.subr.bf16.mxu0 %v11170_v48  ;;  %v11233_v31 = vld [vmem:[%s12003_s26 + $0x174c] ss:$16 sps:$4 sm:$0xff]   ;;  %v11228_v48 = vld [vmem:[%s12003_s26 + $0x1548] ss:$16 sps:$4 sm:$0xff]  }
 0x3ff   : > { %7791 = vmatprep.subr.bf16.mxu1 %v11173_v33  ;;  %v11231_v33 = vld [vmem:[%s12003_s26 + $0x1748] ss:$16 sps:$4 sm:$0xff]  }
 0x400   : > { %7701 = vmatmul.mubr.bf16.vlgmr.msra.gmra.mrb[48].mxu0 %v12478_v47  ;;  %v11180_v47 = vld [vmem:[%s12003_s26 + $0x1448] ss:$16 sps:$4 sm:$0xff]  }
 0x401   : > { %7742 = vmatmul.mubr.bf16.vlgmr.msra.gmra.mrb[48].mxu1 %v12482_v49  ;;  %7751 = vmatpush1.bf16.msra.mxu0 %v11168_v39  ;;  %v11183_v49 = vld [vmem:[%s12003_s26 + $0x1648] ss:$16 sps:$4 sm:$0xff]   ;;  %v11236_v39 = vld [vmem:[%s12003_s26 + $0x156c] ss:$16 sps:$4 sm:$0xff]  }
 0x402   : > { %7792 = vmatpush1.bf16.msra.mxu1 %v11171_v40  ;;  %7752 = vmatprep.subr.bf16.mxu0 %v11176_v56  ;;  %v11239_v40 = vld [vmem:[%s12003_s26 + $0x176c] ss:$16 sps:$4 sm:$0xff]   ;;  %v11234_v56 = vld [vmem:[%s12003_s26 + $0x1568] ss:$16 sps:$4 sm:$0xff]  }
 0x403   : > { %7793 = vmatprep.subr.bf16.mxu1 %v11179_v45  ;;  %7782 = vmatprep.mubr.bf16.mxu0 %v12494_v59  ;;  %v11189_v59 = vld [vmem:[%s12003_s26 + $0x1668] ss:$16 sps:$4 sm:$0xff]  }
 0x404   : > { %7823 = vmatprep.mubr.bf16.mxu1 %v12498_v62  ;;  %v11194_v62 = vld [vmem:[%s12003_s26 + $0x148c] ss:$16 sps:$4 sm:$0xff]   ;;  %v11237_v45 = vld [vmem:[%s12003_s26 + $0x1768] ss:$16 sps:$4 sm:$0xff]  }
 0x405   : > { %7753 = vmatpush1.bf16.msra.mxu0 %v11174_v24  ;;  %v11242_v24 = vld [vmem:[%s12003_s26 + $0x158c] ss:$16 sps:$4 sm:$0xff]  }
 0x406   : > { %7794 = vmatpush1.bf16.msra.mxu1 %v11177_v58  ;;  %7754 = vmatprep.subr.bf16.mxu0 %v11182_v7  ;;  %v11245_v58 = vld [vmem:[%s12003_s26 + $0x178c] ss:$16 sps:$4 sm:$0xff]   ;;  %v11240_v7 = vld [vmem:[%s12003_s26 + $0x1588] ss:$16 sps:$4 sm:$0xff]  }
 0x407   : > { %7795 = vmatprep.subr.bf16.mxu1 %v11185_v8  ;;  %v11243_v8 = vld [vmem:[%s12003_s26 + $0x1788] ss:$16 sps:$4 sm:$0xff]  }
 0x409   : > { %7755 = vmatpush1.bf16.msra.mxu0 %v11180_v47  ;;  %v11248_v47 = vld [vmem:[%s12003_s26 + $0x15ac] ss:$16 sps:$4 sm:$0xff]  }
 0x40a   : > { %7796 = vmatpush1.bf16.msra.mxu1 %v11183_v49  ;;  %7756 = vmatprep.subr.bf16.mxu0 %v11188_v17  ;;  %v11251_v49 = vld [vmem:[%s12003_s26 + $0x17ac] ss:$16 sps:$4 sm:$0xff]   ;;  %v11246_v17 = vld [vmem:[%s12003_s26 + $0x15a8] ss:$16 sps:$4 sm:$0xff]  }
 0x40b   : > { %7797 = vmatprep.subr.bf16.mxu1 %v11191_v18  ;;  %v11249_v18 = vld [vmem:[%s12003_s26 + $0x17a8] ss:$16 sps:$4 sm:$0xff]  }
 0x40d   : > { %7757 = vmatpush1.bf16.msra.mxu0 %v11186_v1  ;;  %v11254_v1 = vld [vmem:[%s12003_s26 + $0x15cc] ss:$16 sps:$4 sm:$0xff]  }
 0x40e   : > { %7798 = vmatpush1.bf16.msra.mxu1 %v11189_v59  ;;  %7758 = vmatprep.subr.bf16.mxu0 %v11194_v62  ;;  %v11257_v59 = vld [vmem:[%s12003_s26 + $0x17cc] ss:$16 sps:$4 sm:$0xff]   ;;  %v11252_v62 = vld [vmem:[%s12003_s26 + $0x15c8] ss:$16 sps:$4 sm:$0xff]  }
 0x40f   : > { %7799 = vmatprep.subr.bf16.mxu1 %v11197_v2  ;;  %v11255_v2 = vld [vmem:[%s12003_s26 + $0x17c8] ss:$16 sps:$4 sm:$0xff]  }
 0x411   : > { %7759 = vmatpush1.bf16.msra.mxu0 %v11192_v5  ;;  %v11260_v5 = vld [vmem:[%s12003_s26 + $0x15ec] ss:$16 sps:$4 sm:$0xff]  }
 0x412   : > { %7800 = vmatpush1.bf16.msra.mxu1 %v11195_v25  ;;  %7760 = vmatprep.subr.bf16.mxu0 %v11200_v26  ;;  %v11263_v25 = vld [vmem:[%s12003_s26 + $0x17ec] ss:$16 sps:$4 sm:$0xff]   ;;  %v11258_v26 = vld [vmem:[%s12003_s26 + $0x15e8] ss:$16 sps:$4 sm:$0xff]  }
 0x413   : > { %7801 = vmatprep.subr.bf16.mxu1 %v11203_v37  ;;  %v7456_v35 = vpop.f32.mrb[36].mxu0  ;;  %v11261_v37 = vld [vmem:[%s12003_s26 + $0x17e8] ss:$16 sps:$4 sm:$0xff]  }
 0x414   : > { %v7497_v12 = vpop.f32.mrb[36].mxu1  ;;  %v7457_v57 = vadd.f32 %v7456_v35, %v13090_v52  ;;  %v7458_v14 = vpop.f32.mrb[37].mxu0  ;;  %v11212_v52 = vld [vmem:[%s12003_s26 + $0x14ec] ss:$16 sps:$4 sm:$0xff]  }
 0x415   : > { %v7499_v15 = vpop.f32.mrb[37].mxu1  ;;  %v7459_v16 = vadd.f32 %v7458_v14, %v13092_v23  ;;  %v7460_v19 = vpop.f32.mrb[38].mxu0  ;;  %7761 = vmatpush1.bf16.msra.mxu0 %v11198_v38  ;;  %v11215_v23 = vld [vmem:[%s12003_s26 + $0x16ec] ss:$16 sps:$4 sm:$0xff]   ;;  %v11273_v14 = vld [vmem:[%s12003_s26 + $0x1a28] ss:$16 sps:$4 sm:$0xff]  }
 0x416   : > { %v7501_v20 = vpop.f32.mrb[38].mxu1  ;;  %7802 = vmatpush1.bf16.msra.mxu1 %v11201_v6  ;;  %v13166_v22 = vadd.f32 %v7497_v12, %v7457_v57  ;;  %v7461_v30 = vpop.f32.mrb[39].mxu0  ;;  %7762 = vmatprep.subr.bf16.mxu0 %v11206_v10  ;;  %v11266_v38 = vld [vmem:[%s12003_s26 + $0x180c] ss:$16 sps:$4 sm:$0xff]   ;;  %v11264_v10 = vld [vmem:[%s12003_s26 + $0x1808] ss:$16 sps:$4 sm:$0xff]  }
 0x417   : > { %v7502_v60 = vpop.f32.mrb[39].mxu1  ;;  %7803 = vmatprep.subr.bf16.mxu1 %v11209_v11  ;;  %v13170_v61 = vadd.f32 %v7499_v15, %v7459_v16  ;;  %v11269_v6 = vld [vmem:[%s12003_s26 + $0x1a0c] ss:$16 sps:$4 sm:$0xff]   ;;  %v11267_v11 = vld [vmem:[%s12003_s26 + $0x1a08] ss:$16 sps:$4 sm:$0xff]  }
 0x418   : > { %v11272_v35 = vld [vmem:[%s12003_s26 + $0x182c] ss:$16 sps:$4 sm:$0xff]   ;;  %v11270_v57 = vld [vmem:[%s12003_s26 + $0x1828] ss:$16 sps:$4 sm:$0xff]  }
 0x419   : > { %7763 = vmatpush1.bf16.msra.mxu0 %v11204_v13  ;;  %v11275_v12 = vld [vmem:[%s12003_s26 + $0x1a2c] ss:$16 sps:$4 sm:$0xff]   ;;  %v11282_v13 = vld [vmem:[%s12003_s26 + $0x1868] ss:$16 sps:$4 sm:$0xff]  }
 0x41a   : > { %7804 = vmatpush1.bf16.msra.mxu1 %v11207_v21  ;;  %7764 = vmatprep.subr.bf16.mxu0 %v11212_v52  ;;  %v11278_v15 = vld [vmem:[%s12003_s26 + $0x184c] ss:$16 sps:$4 sm:$0xff]   ;;  %v11288_v30 = vld [vmem:[%s12003_s26 + $0x1888] ss:$16 sps:$4 sm:$0xff]  }
 0x41b   : > { %7805 = vmatprep.subr.bf16.mxu1 %v11215_v23  ;;  %v11281_v16 = vld [vmem:[%s12003_s26 + $0x1a4c] ss:$16 sps:$4 sm:$0xff]   ;;  %v11291_v60 = vld [vmem:[%s12003_s26 + $0x1a88] ss:$16 sps:$4 sm:$0xff]  }
 0x41c   : > { %v11284_v19 = vld [vmem:[%s12003_s26 + $0x186c] ss:$16 sps:$4 sm:$0xff]  }
 0x41d   : > { %7765 = vmatpush1.bf16.msra.mxu0 %v11210_v43  ;;  %v11287_v20 = vld [vmem:[%s12003_s26 + $0x1a6c] ss:$16 sps:$4 sm:$0xff]   ;;  %v11294_v43 = vld [vmem:[%s12003_s26 + $0x18a8] ss:$16 sps:$4 sm:$0xff]  }
 0x41e   : > { %7806 = vmatpush1.bf16.msra.mxu1 %v11213_v63  ;;  %7766 = vmatprep.subr.bf16.mxu0 %v11218_v54  ;;  %v11293_v21 = vld [vmem:[%s12003_s26 + $0x1a8c] ss:$16 sps:$4 sm:$0xff]   ;;  %v11297_v63 = vld [vmem:[%s12003_s26 + $0x1aa8] ss:$16 sps:$4 sm:$0xff]  }
 0x41f   : > { %7807 = vmatprep.subr.bf16.mxu1 %v11221_v41  ;;  %v11296_v52 = vld [vmem:[%s12003_s26 + $0x18ac] ss:$16 sps:$4 sm:$0xff]  }
 0x420   : > { %v11299_v23 = vld [vmem:[%s12003_s26 + $0x1aac] ss:$16 sps:$4 sm:$0xff]  }
 0x421   : > { %7767 = vmatpush1.bf16.msra.mxu0 %v11216_v42  ;;  %v11302_v54 = vld [vmem:[%s12003_s26 + $0x18cc] ss:$16 sps:$4 sm:$0xff]  }
 0x422   : > { %7808 = vmatpush1.bf16.msra.mxu1 %v11219_v0  ;;  %7768 = vmatprep.subr.bf16.mxu0 %v11224_v32  ;;  %v11305_v41 = vld [vmem:[%s12003_s26 + $0x1acc] ss:$16 sps:$4 sm:$0xff]  }
 0x423   : > { %7809 = vmatprep.subr.bf16.mxu1 %v11227_v36 }
 0x425   : > { %7769 = vmatpush1.bf16.msra.mxu0 %v11222_v34 }
 0x426   : > { %7810 = vmatpush1.bf16.msra.mxu1 %v11225_v55  ;;  %7770 = vmatprep.subr.bf16.mxu0 %v11230_v29 }
 0x427   : > { %7811 = vmatprep.subr.bf16.mxu1 %v11233_v31 }
 0x429   : > { %7771 = vmatpush1.bf16.msra.mxu0 %v11228_v48  ;;  %v11300_v48 = vld [vmem:[%s12003_s26 + $0x18c8] ss:$16 sps:$4 sm:$0xff]  }
 0x42a   : > { %7812 = vmatpush1.bf16.msra.mxu1 %v11231_v33  ;;  %7772 = vmatprep.subr.bf16.mxu0 %v11236_v39  ;;  %v11303_v33 = vld [vmem:[%s12003_s26 + $0x1ac8] ss:$16 sps:$4 sm:$0xff]  }
 0x42b   : > { %7813 = vmatprep.subr.bf16.mxu1 %v11239_v40 }
 0x42d   : > { %7773 = vmatpush1.bf16.msra.mxu0 %v11234_v56 }
 0x42e   : > { %7814 = vmatpush1.bf16.msra.mxu1 %v11237_v45  ;;  %7774 = vmatprep.subr.bf16.mxu0 %v11242_v24  ;;  %v11306_v24 = vld [vmem:[%s12003_s26 + $0x18e8] ss:$16 sps:$4 sm:$0xff]  }
 0x42f   : > { %7815 = vmatprep.subr.bf16.mxu1 %v11245_v58  ;;  %v11309_v58 = vld [vmem:[%s12003_s26 + $0x1ae8] ss:$16 sps:$4 sm:$0xff]  }
 0x431   : > { %7775 = vmatpush1.bf16.msra.mxu0 %v11240_v7  ;;  %v11314_v7 = vld [vmem:[%s12003_s26 + $0x190c] ss:$16 sps:$4 sm:$0xff]  }
 0x432   : > { %7816 = vmatpush1.bf16.msra.mxu1 %v11243_v8  ;;  %7776 = vmatprep.subr.bf16.mxu0 %v11248_v47  ;;  %v11317_v8 = vld [vmem:[%s12003_s26 + $0x1b0c] ss:$16 sps:$4 sm:$0xff]   ;;  %v11312_v47 = vld [vmem:[%s12003_s26 + $0x1908] ss:$16 sps:$4 sm:$0xff]  }
 0x433   : > { %7817 = vmatprep.subr.bf16.mxu1 %v11251_v49  ;;  %v11315_v49 = vld [vmem:[%s12003_s26 + $0x1b08] ss:$16 sps:$4 sm:$0xff]  }
 0x435   : > { %7777 = vmatpush1.bf16.msra.mxu0 %v11246_v17  ;;  %v11320_v17 = vld [vmem:[%s12003_s26 + $0x192c] ss:$16 sps:$4 sm:$0xff]  }
 0x436   : > { %7818 = vmatpush1.bf16.msra.mxu1 %v11249_v18  ;;  %7778 = vmatprep.subr.bf16.mxu0 %v11254_v1  ;;  %v11323_v18 = vld [vmem:[%s12003_s26 + $0x1b2c] ss:$16 sps:$4 sm:$0xff]   ;;  %v11318_v1 = vld [vmem:[%s12003_s26 + $0x1928] ss:$16 sps:$4 sm:$0xff]  }
 0x437   : > { %7819 = vmatprep.subr.bf16.mxu1 %v11257_v59  ;;  %v11321_v59 = vld [vmem:[%s12003_s26 + $0x1b28] ss:$16 sps:$4 sm:$0xff]  }
 0x439   : > { %7779 = vmatpush1.bf16.msra.mxu0 %v11252_v62  ;;  %v11326_v62 = vld [vmem:[%s12003_s26 + $0x194c] ss:$16 sps:$4 sm:$0xff]  }
 0x43a   : > { %7820 = vmatpush1.bf16.msra.mxu1 %v11255_v2  ;;  %7780 = vmatprep.subr.bf16.mxu0 %v11260_v5  ;;  %v11329_v2 = vld [vmem:[%s12003_s26 + $0x1b4c] ss:$16 sps:$4 sm:$0xff]   ;;  %v11324_v5 = vld [vmem:[%s12003_s26 + $0x1948] ss:$16 sps:$4 sm:$0xff]  }
 0x43b   : > { %7821 = vmatprep.subr.bf16.mxu1 %v11263_v25  ;;  %v11327_v25 = vld [vmem:[%s12003_s26 + $0x1b48] ss:$16 sps:$4 sm:$0xff]  }
 0x43d   : > { %7781 = vmatpush1.bf16.msra.mxu0 %v11258_v26  ;;  %v11332_v26 = vld [vmem:[%s12003_s26 + $0x196c] ss:$16 sps:$4 sm:$0xff]  }
 0x43e   : > { %7822 = vmatpush1.bf16.msra.mxu1 %v11261_v37  ;;  %7832 = vmatprep.subr.bf16.mxu0 %v11266_v38  ;;  %v11335_v37 = vld [vmem:[%s12003_s26 + $0x1b6c] ss:$16 sps:$4 sm:$0xff]   ;;  %v11330_v38 = vld [vmem:[%s12003_s26 + $0x1968] ss:$16 sps:$4 sm:$0xff]  }
 0x43f   : > { %7873 = vmatprep.subr.bf16.mxu1 %v11269_v6  ;;  %v11333_v6 = vld [vmem:[%s12003_s26 + $0x1b68] ss:$16 sps:$4 sm:$0xff]  }
 0x440   : > { %7783 = vmatmul.mubr.bf16.vlgmr.msra.gmra.mrb[52].mxu0 %v12574_v44  ;;  %v11276_v44 = vld [vmem:[%s12003_s26 + $0x1848] ss:$16 sps:$4 sm:$0xff]  }
 0x441   : > { %7824 = vmatmul.mubr.bf16.vlgmr.msra.gmra.mrb[52].mxu1 %v12578_v46  ;;  %7833 = vmatpush1.bf16.msra.mxu0 %v11264_v10  ;;  %v11279_v46 = vld [vmem:[%s12003_s26 + $0x1a48] ss:$16 sps:$4 sm:$0xff]   ;;  %v11338_v10 = vld [vmem:[%s12003_s26 + $0x198c] ss:$16 sps:$4 sm:$0xff]  }
 0x442   : > { %7874 = vmatpush1.bf16.msra.mxu1 %v11267_v11  ;;  %7834 = vmatprep.subr.bf16.mxu0 %v11272_v35  ;;  %v11341_v11 = vld [vmem:[%s12003_s26 + $0x1b8c] ss:$16 sps:$4 sm:$0xff]   ;;  %v11336_v35 = vld [vmem:[%s12003_s26 + $0x1988] ss:$16 sps:$4 sm:$0xff]  }
 0x443   : > { %7875 = vmatprep.subr.bf16.mxu1 %v11275_v12  ;;  %7864 = vmatprep.mubr.bf16.mxu0 %v12590_v50  ;;  %v11285_v50 = vld [vmem:[%s12003_s26 + $0x1a68] ss:$16 sps:$4 sm:$0xff]  }
 0x444   : > { %7905 = vmatprep.mubr.bf16.mxu1 %v12594_v51  ;;  %v11290_v51 = vld [vmem:[%s12003_s26 + $0x188c] ss:$16 sps:$4 sm:$0xff]   ;;  %v11339_v12 = vld [vmem:[%s12003_s26 + $0x1b88] ss:$16 sps:$4 sm:$0xff]  }
 0x445   : > { %7835 = vmatpush1.bf16.msra.mxu0 %v11270_v57  ;;  %v11344_v57 = vld [vmem:[%s12003_s26 + $0x19ac] ss:$16 sps:$4 sm:$0xff]  }
 0x446   : > { %7876 = vmatpush1.bf16.msra.mxu1 %v11273_v14  ;;  %7836 = vmatprep.subr.bf16.mxu0 %v11278_v15  ;;  %v11347_v14 = vld [vmem:[%s12003_s26 + $0x1bac] ss:$16 sps:$4 sm:$0xff]   ;;  %v11342_v15 = vld [vmem:[%s12003_s26 + $0x19a8] ss:$16 sps:$4 sm:$0xff]  }
 0x447   : > { %7877 = vmatprep.subr.bf16.mxu1 %v11281_v16  ;;  %v11345_v16 = vld [vmem:[%s12003_s26 + $0x1ba8] ss:$16 sps:$4 sm:$0xff]  }
 0x449   : > { %7837 = vmatpush1.bf16.msra.mxu0 %v11276_v44  ;;  %v11350_v44 = vld [vmem:[%s12003_s26 + $0x19cc] ss:$16 sps:$4 sm:$0xff]  }
 0x44a   : > { %7878 = vmatpush1.bf16.msra.mxu1 %v11279_v46  ;;  %7838 = vmatprep.subr.bf16.mxu0 %v11284_v19  ;;  %v11353_v46 = vld [vmem:[%s12003_s26 + $0x1bcc] ss:$16 sps:$4 sm:$0xff]   ;;  %v11348_v19 = vld [vmem:[%s12003_s26 + $0x19c8] ss:$16 sps:$4 sm:$0xff]  }
 0x44b   : > { %7879 = vmatprep.subr.bf16.mxu1 %v11287_v20  ;;  %v11351_v20 = vld [vmem:[%s12003_s26 + $0x1bc8] ss:$16 sps:$4 sm:$0xff]  }
 0x44d   : > { %7839 = vmatpush1.bf16.msra.mxu0 %v11282_v13  ;;  %v11356_v13 = vld [vmem:[%s12003_s26 + $0x19ec] ss:$16 sps:$4 sm:$0xff]  }
 0x44e   : > { %7880 = vmatpush1.bf16.msra.mxu1 %v11285_v50  ;;  %7840 = vmatprep.subr.bf16.mxu0 %v11290_v51  ;;  %v11359_v50 = vld [vmem:[%s12003_s26 + $0x1bec] ss:$16 sps:$4 sm:$0xff]   ;;  %v11354_v51 = vld [vmem:[%s12003_s26 + $0x19e8] ss:$16 sps:$4 sm:$0xff]  }
 0x44f   : > { %7881 = vmatprep.subr.bf16.mxu1 %v11293_v21  ;;  %v11357_v21 = vld [vmem:[%s12003_s26 + $0x1be8] ss:$16 sps:$4 sm:$0xff]  }
 0x451   : > { %7841 = vmatpush1.bf16.msra.mxu0 %v11288_v30  ;;  %v11362_v30 = vld [vmem:[%s12003_s26 + $0x1c0c] ss:$16 sps:$4 sm:$0xff]  }
 0x452   : > { %7882 = vmatpush1.bf16.msra.mxu1 %v11291_v60  ;;  %7842 = vmatprep.subr.bf16.mxu0 %v11296_v52  ;;  %v11365_v60 = vld [vmem:[%s12003_s26 + $0x1e0c] ss:$16 sps:$4 sm:$0xff]   ;;  %v11360_v52 = vld [vmem:[%s12003_s26 + $0x1c08] ss:$16 sps:$4 sm:$0xff]  }
 0x453   : > { %7883 = vmatprep.subr.bf16.mxu1 %v11299_v23  ;;  %v7538_v42 = vpop.f32.mrb[40].mxu0  ;;  %v11363_v23 = vld [vmem:[%s12003_s26 + $0x1e08] ss:$16 sps:$4 sm:$0xff]  }
 0x454   : > { %v7579_v0 = vpop.f32.mrb[40].mxu1  ;;  %v7539_v32 = vadd.f32 %v7538_v42, %v13166_v22  ;;  %v7540_v36 = vpop.f32.mrb[41].mxu0  ;;  %v11308_v22 = vld [vmem:[%s12003_s26 + $0x18ec] ss:$16 sps:$4 sm:$0xff]  }
 0x455   : > { %v7581_v34 = vpop.f32.mrb[41].mxu1  ;;  %v7541_v55 = vadd.f32 %v7540_v36, %v13170_v61  ;;  %v7542_v29 = vpop.f32.mrb[42].mxu0  ;;  %7843 = vmatpush1.bf16.msra.mxu0 %v11294_v43  ;;  %v11311_v61 = vld [vmem:[%s12003_s26 + $0x1aec] ss:$16 sps:$4 sm:$0xff]  }
 0x456   : > { %v7583_v31 = vpop.f32.mrb[42].mxu1  ;;  %7884 = vmatpush1.bf16.msra.mxu1 %v11297_v63  ;;  %v13240_v39 = vadd.f32 %v7579_v0, %v7539_v32  ;;  %v7543_v40 = vpop.f32.mrb[43].mxu0  ;;  %7844 = vmatprep.subr.bf16.mxu0 %v11302_v54  ;;  %v11368_v43 = vld [vmem:[%s12003_s26 + $0x1c2c] ss:$16 sps:$4 sm:$0xff]   ;;  %v11366_v54 = vld [vmem:[%s12003_s26 + $0x1c28] ss:$16 sps:$4 sm:$0xff]  }
 0x457   : > { %v7584_v56 = vpop.f32.mrb[43].mxu1  ;;  %7885 = vmatprep.subr.bf16.mxu1 %v11305_v41  ;;  %v13244_v45 = vadd.f32 %v7581_v34, %v7541_v55  ;;  %v11371_v63 = vld [vmem:[%s12003_s26 + $0x1e2c] ss:$16 sps:$4 sm:$0xff]   ;;  %v11369_v41 = vld [vmem:[%s12003_s26 + $0x1e28] ss:$16 sps:$4 sm:$0xff]  }
 0x458   : > { %v11374_v42 = vld [vmem:[%s12003_s26 + $0x1c4c] ss:$16 sps:$4 sm:$0xff]   ;;  %v11378_v34 = vld [vmem:[%s12003_s26 + $0x1c68] ss:$16 sps:$4 sm:$0xff]  }
 0x459   : > { %7845 = vmatpush1.bf16.msra.mxu0 %v11300_v48  ;;  %v11377_v0 = vld [vmem:[%s12003_s26 + $0x1e4c] ss:$16 sps:$4 sm:$0xff]   ;;  %v11384_v29 = vld [vmem:[%s12003_s26 + $0x1c88] ss:$16 sps:$4 sm:$0xff]  }
 0x45a   : > { %7886 = vmatpush1.bf16.msra.mxu1 %v11303_v33  ;;  %7846 = vmatprep.subr.bf16.mxu0 %v11308_v22  ;;  %v11380_v32 = vld [vmem:[%s12003_s26 + $0x1c6c] ss:$16 sps:$4 sm:$0xff]   ;;  %v11387_v31 = vld [vmem:[%s12003_s26 + $0x1e88] ss:$16 sps:$4 sm:$0xff]  }
 0x45b   : > { %7887 = vmatprep.subr.bf16.mxu1 %v11311_v61  ;;  %v11383_v36 = vld [vmem:[%s12003_s26 + $0x1e6c] ss:$16 sps:$4 sm:$0xff]   ;;  %v11390_v40 = vld [vmem:[%s12003_s26 + $0x1ca8] ss:$16 sps:$4 sm:$0xff]  }
 0x45c   : > { %v11389_v55 = vld [vmem:[%s12003_s26 + $0x1e8c] ss:$16 sps:$4 sm:$0xff]   ;;  %v11393_v56 = vld [vmem:[%s12003_s26 + $0x1ea8] ss:$16 sps:$4 sm:$0xff]  }
 0x45d   : > { %7847 = vmatpush1.bf16.msra.mxu0 %v11306_v24  ;;  %v11392_v48 = vld [vmem:[%s12003_s26 + $0x1cac] ss:$16 sps:$4 sm:$0xff]  }
 0x45e   : > { %7888 = vmatpush1.bf16.msra.mxu1 %v11309_v58  ;;  %7848 = vmatprep.subr.bf16.mxu0 %v11314_v7  ;;  %v11395_v33 = vld [vmem:[%s12003_s26 + $0x1eac] ss:$16 sps:$4 sm:$0xff]  }
 0x45f   : > { %7889 = vmatprep.subr.bf16.mxu1 %v11317_v8  ;;  %v11398_v22 = vld [vmem:[%s12003_s26 + $0x1ccc] ss:$16 sps:$4 sm:$0xff]  }
 0x460   : > { %v11401_v61 = vld [vmem:[%s12003_s26 + $0x1ecc] ss:$16 sps:$4 sm:$0xff]  }
 0x461   : > { %7849 = vmatpush1.bf16.msra.mxu0 %v11312_v47 }
 0x462   : > { %7890 = vmatpush1.bf16.msra.mxu1 %v11315_v49  ;;  %7850 = vmatprep.subr.bf16.mxu0 %v11320_v17 }
 0x463   : > { %7891 = vmatprep.subr.bf16.mxu1 %v11323_v18 }
 0x465   : > { %7851 = vmatpush1.bf16.msra.mxu0 %v11318_v1  ;;  %v11396_v1 = vld [vmem:[%s12003_s26 + $0x1cc8] ss:$16 sps:$4 sm:$0xff]  }
 0x466   : > { %7892 = vmatpush1.bf16.msra.mxu1 %v11321_v59  ;;  %7852 = vmatprep.subr.bf16.mxu0 %v11326_v62  ;;  %v11399_v59 = vld [vmem:[%s12003_s26 + $0x1ec8] ss:$16 sps:$4 sm:$0xff]  }
 0x467   : > { %7893 = vmatprep.subr.bf16.mxu1 %v11329_v2 }
 0x469   : > { %7853 = vmatpush1.bf16.msra.mxu0 %v11324_v5 }
 0x46a   : > { %7894 = vmatpush1.bf16.msra.mxu1 %v11327_v25  ;;  %7854 = vmatprep.subr.bf16.mxu0 %v11332_v26  ;;  %v11402_v26 = vld [vmem:[%s12003_s26 + $0x1ce8] ss:$16 sps:$4 sm:$0xff]  }
 0x46b   : > { %7895 = vmatprep.subr.bf16.mxu1 %v11335_v37  ;;  %v11405_v37 = vld [vmem:[%s12003_s26 + $0x1ee8] ss:$16 sps:$4 sm:$0xff]  }
 0x46d   : > { %7855 = vmatpush1.bf16.msra.mxu0 %v11330_v38  ;;  %v11410_v38 = vld [vmem:[%s12003_s26 + $0x1d0c] ss:$16 sps:$4 sm:$0xff]  }
 0x46e   : > { %7896 = vmatpush1.bf16.msra.mxu1 %v11333_v6  ;;  %7856 = vmatprep.subr.bf16.mxu0 %v11338_v10  ;;  %v11413_v6 = vld [vmem:[%s12003_s26 + $0x1f0c] ss:$16 sps:$4 sm:$0xff]   ;;  %v11408_v10 = vld [vmem:[%s12003_s26 + $0x1d08] ss:$16 sps:$4 sm:$0xff]  }
 0x46f   : > { %7897 = vmatprep.subr.bf16.mxu1 %v11341_v11  ;;  %v11411_v11 = vld [vmem:[%s12003_s26 + $0x1f08] ss:$16 sps:$4 sm:$0xff]  }
 0x471   : > { %7857 = vmatpush1.bf16.msra.mxu0 %v11336_v35  ;;  %v11416_v35 = vld [vmem:[%s12003_s26 + $0x1d2c] ss:$16 sps:$4 sm:$0xff]  }
 0x472   : > { %7898 = vmatpush1.bf16.msra.mxu1 %v11339_v12  ;;  %7858 = vmatprep.subr.bf16.mxu0 %v11344_v57  ;;  %v11419_v12 = vld [vmem:[%s12003_s26 + $0x1f2c] ss:$16 sps:$4 sm:$0xff]   ;;  %v11414_v57 = vld [vmem:[%s12003_s26 + $0x1d28] ss:$16 sps:$4 sm:$0xff]  }
 0x473   : > { %7899 = vmatprep.subr.bf16.mxu1 %v11347_v14  ;;  %v11417_v14 = vld [vmem:[%s12003_s26 + $0x1f28] ss:$16 sps:$4 sm:$0xff]  }
 0x475   : > { %7859 = vmatpush1.bf16.msra.mxu0 %v11342_v15  ;;  %v11422_v15 = vld [vmem:[%s12003_s26 + $0x1d4c] ss:$16 sps:$4 sm:$0xff]  }
 0x476   : > { %7900 = vmatpush1.bf16.msra.mxu1 %v11345_v16  ;;  %7860 = vmatprep.subr.bf16.mxu0 %v11350_v44  ;;  %v11425_v16 = vld [vmem:[%s12003_s26 + $0x1f4c] ss:$16 sps:$4 sm:$0xff]   ;;  %v11420_v44 = vld [vmem:[%s12003_s26 + $0x1d48] ss:$16 sps:$4 sm:$0xff]  }
 0x477   : > { %7901 = vmatprep.subr.bf16.mxu1 %v11353_v46  ;;  %v11423_v46 = vld [vmem:[%s12003_s26 + $0x1f48] ss:$16 sps:$4 sm:$0xff]  }
 0x479   : > { %7861 = vmatpush1.bf16.msra.mxu0 %v11348_v19  ;;  %v11428_v19 = vld [vmem:[%s12003_s26 + $0x1d6c] ss:$16 sps:$4 sm:$0xff]  }
 0x47a   : > { %7902 = vmatpush1.bf16.msra.mxu1 %v11351_v20  ;;  %7862 = vmatprep.subr.bf16.mxu0 %v11356_v13  ;;  %v11431_v20 = vld [vmem:[%s12003_s26 + $0x1f6c] ss:$16 sps:$4 sm:$0xff]   ;;  %v11426_v13 = vld [vmem:[%s12003_s26 + $0x1d68] ss:$16 sps:$4 sm:$0xff]  }
 0x47b   : > { %7903 = vmatprep.subr.bf16.mxu1 %v11359_v50  ;;  %v11429_v50 = vld [vmem:[%s12003_s26 + $0x1f68] ss:$16 sps:$4 sm:$0xff]  }
 0x47d   : > { %7863 = vmatpush1.bf16.msra.mxu0 %v11354_v51  ;;  %v11434_v51 = vld [vmem:[%s12003_s26 + $0x1d8c] ss:$16 sps:$4 sm:$0xff]  }
 0x47e   : > { %7904 = vmatpush1.bf16.msra.mxu1 %v11357_v21  ;;  %7914 = vmatprep.subr.bf16.mxu0 %v11362_v30  ;;  %v11437_v21 = vld [vmem:[%s12003_s26 + $0x1f8c] ss:$16 sps:$4 sm:$0xff]   ;;  %v11432_v30 = vld [vmem:[%s12003_s26 + $0x1d88] ss:$16 sps:$4 sm:$0xff]  }
 0x47f   : > { %7955 = vmatprep.subr.bf16.mxu1 %v11365_v60  ;;  %v11435_v60 = vld [vmem:[%s12003_s26 + $0x1f88] ss:$16 sps:$4 sm:$0xff]  }
 0x480   : > { %7865 = vmatmul.mubr.bf16.vlgmr.msra.gmra.mrb[56].mxu0 %v12676_v3  ;;  %v11372_v3 = vld [vmem:[%s12003_s26 + $0x1c48] ss:$16 sps:$4 sm:$0xff]  }
 0x481   : > { %7906 = vmatmul.mubr.bf16.vlgmr.msra.gmra.mrb[56].mxu1 %v12680_v4  ;;  %7915 = vmatpush1.bf16.msra.mxu0 %v11360_v52  ;;  %v11375_v4 = vld [vmem:[%s12003_s26 + $0x1e48] ss:$16 sps:$4 sm:$0xff]   ;;  %v11440_v52 = vld [vmem:[%s12003_s26 + $0x1dac] ss:$16 sps:$4 sm:$0xff]  }
 0x482   : > { %7956 = vmatpush1.bf16.msra.mxu1 %v11363_v23  ;;  %7916 = vmatprep.subr.bf16.mxu0 %v11368_v43  ;;  %v11443_v23 = vld [vmem:[%s12003_s26 + $0x1fac] ss:$16 sps:$4 sm:$0xff]   ;;  %v11438_v43 = vld [vmem:[%s12003_s26 + $0x1da8] ss:$16 sps:$4 sm:$0xff]  }
 0x483   : > { %7957 = vmatprep.subr.bf16.mxu1 %v11371_v63  ;;  %7946 = vmatprep.mubr.bf16.mxu0 %v12686_v9  ;;  %v11381_v9 = vld [vmem:[%s12003_s26 + $0x1e68] ss:$16 sps:$4 sm:$0xff]  }
 0x484   : > { %7987 = vmatprep.mubr.bf16.mxu1 %v12690_v53  ;;  %v11386_v53 = vld [vmem:[%s12003_s26 + $0x1c8c] ss:$16 sps:$4 sm:$0xff]   ;;  %v11441_v63 = vld [vmem:[%s12003_s26 + $0x1fa8] ss:$16 sps:$4 sm:$0xff]  }
 0x485   : > { %7917 = vmatpush1.bf16.msra.mxu0 %v11366_v54  ;;  %v11446_v54 = vld [vmem:[%s12003_s26 + $0x1dcc] ss:$16 sps:$4 sm:$0xff]  }
 0x486   : > { %7958 = vmatpush1.bf16.msra.mxu1 %v11369_v41  ;;  %7918 = vmatprep.subr.bf16.mxu0 %v11374_v42  ;;  %v11449_v41 = vld [vmem:[%s12003_s26 + $0x1fcc] ss:$16 sps:$4 sm:$0xff]   ;;  %v11444_v42 = vld [vmem:[%s12003_s26 + $0x1dc8] ss:$16 sps:$4 sm:$0xff]  }
 0x487   : > { %7959 = vmatprep.subr.bf16.mxu1 %v11377_v0  ;;  %v11447_v0 = vld [vmem:[%s12003_s26 + $0x1fc8] ss:$16 sps:$4 sm:$0xff]  }
 0x489   : > { %7919 = vmatpush1.bf16.msra.mxu0 %v11372_v3  ;;  %v11452_v3 = vld [vmem:[%s12003_s26 + $0x1dec] ss:$16 sps:$4 sm:$0xff]  }
 0x48a   : > { %7960 = vmatpush1.bf16.msra.mxu1 %v11375_v4  ;;  %7920 = vmatprep.subr.bf16.mxu0 %v11380_v32  ;;  %v11455_v4 = vld [vmem:[%s12003_s26 + $0x1fec] ss:$16 sps:$4 sm:$0xff]   ;;  %v11450_v32 = vld [vmem:[%s12003_s26 + $0x1de8] ss:$16 sps:$4 sm:$0xff]  }
 0x48b   : > { %7961 = vmatprep.subr.bf16.mxu1 %v11383_v36  ;;  %v11453_v36 = vld [vmem:[%s12003_s26 + $0x1fe8] ss:$16 sps:$4 sm:$0xff]  }
 0x48d   : > { %7921 = vmatpush1.bf16.msra.mxu0 %v11378_v34 }
 0x48e   : > { %7962 = vmatpush1.bf16.msra.mxu1 %v11381_v9  ;;  %7922 = vmatprep.subr.bf16.mxu0 %v11386_v53 }
 0x48f   : > { %7963 = vmatprep.subr.bf16.mxu1 %v11389_v55 }
 0x491   : > { %7923 = vmatpush1.bf16.msra.mxu0 %v11384_v29 }
 0x492   : > { %7964 = vmatpush1.bf16.msra.mxu1 %v11387_v31  ;;  %7924 = vmatprep.subr.bf16.mxu0 %v11392_v48 }
 0x493   : > { %7965 = vmatprep.subr.bf16.mxu1 %v11395_v33  ;;  %v7620_v24 = vpop.f32.mrb[44].mxu0 }
 0x494   : > { %v7661_v58 = vpop.f32.mrb[44].mxu1  ;;  %v7621_v7 = vadd.f32 %v7620_v24, %v13240_v39  ;;  %v7622_v8 = vpop.f32.mrb[45].mxu0  ;;  %v11404_v39 = vld [vmem:[%s12003_s26 + $0x1cec] ss:$16 sps:$4 sm:$0xff]  }
 0x495   : > { %v7663_v47 = vpop.f32.mrb[45].mxu1  ;;  %v7623_v49 = vadd.f32 %v7622_v8, %v13244_v45  ;;  %v7624_v17 = vpop.f32.mrb[46].mxu0  ;;  %7925 = vmatpush1.bf16.msra.mxu0 %v11390_v40  ;;  %v11407_v45 = vld [vmem:[%s12003_s26 + $0x1eec] ss:$16 sps:$4 sm:$0xff]  }
 0x496   : > { %v7665_v18 = vpop.f32.mrb[46].mxu1  ;;  %7966 = vmatpush1.bf16.msra.mxu1 %v11393_v56  ;;  %v13314_v62 = vadd.f32 %v7661_v58, %v7621_v7  ;;  %v7625_v2 = vpop.f32.mrb[47].mxu0  ;;  %7926 = vmatprep.subr.bf16.mxu0 %v11398_v22 }
 0x497   : > { %v7666_v5 = vpop.f32.mrb[47].mxu1  ;;  %7967 = vmatprep.subr.bf16.mxu1 %v11401_v61  ;;  %v13318_v25 = vadd.f32 %v7663_v47, %v7623_v49 }
 0x499   : > { %7927 = vmatpush1.bf16.msra.mxu0 %v11396_v1 }
 0x49a   : > { %7968 = vmatpush1.bf16.msra.mxu1 %v11399_v59  ;;  %7928 = vmatprep.subr.bf16.mxu0 %v11404_v39 }
 0x49b   : > { %7969 = vmatprep.subr.bf16.mxu1 %v11407_v45 }
 0x49d   : > { %7929 = vmatpush1.bf16.msra.mxu0 %v11402_v26 }
 0x49e   : > { %7970 = vmatpush1.bf16.msra.mxu1 %v11405_v37  ;;  %7930 = vmatprep.subr.bf16.mxu0 %v11410_v38 }
 0x49f   : > { %7971 = vmatprep.subr.bf16.mxu1 %v11413_v6 }
 0x4a1   : > { %7931 = vmatpush1.bf16.msra.mxu0 %v11408_v10 }
 0x4a2   : > { %7972 = vmatpush1.bf16.msra.mxu1 %v11411_v11  ;;  %7932 = vmatprep.subr.bf16.mxu0 %v11416_v35 }
 0x4a3   : > { %7973 = vmatprep.subr.bf16.mxu1 %v11419_v12 }
 0x4a5   : > { %7933 = vmatpush1.bf16.msra.mxu0 %v11414_v57 }
 0x4a6   : > { %7974 = vmatpush1.bf16.msra.mxu1 %v11417_v14  ;;  %7934 = vmatprep.subr.bf16.mxu0 %v11422_v15 }
 0x4a7   : > { %7975 = vmatprep.subr.bf16.mxu1 %v11425_v16  ;;  %v410_v16 = vld [vmem:[#allocation2 + $0x10] sm:$0xff] }
 0x4a9   : > { %7935 = vmatpush1.bf16.msra.mxu0 %v11420_v44 }
 0x4aa   : > { %7976 = vmatpush1.bf16.msra.mxu1 %v11423_v46  ;;  %7936 = vmatprep.subr.bf16.mxu0 %v11428_v19 }
 0x4ab   : > { %7977 = vmatprep.subr.bf16.mxu1 %v11431_v20 }
 0x4ad   : > { %7937 = vmatpush1.bf16.msra.mxu0 %v11426_v13  ;;  %v411_v13 = vld [vmem:[#allocation2 + $0x18] sm:$0xff] }
 0x4ae   : > { %7978 = vmatpush1.bf16.msra.mxu1 %v11429_v50  ;;  %7938 = vmatprep.subr.bf16.mxu0 %v11434_v51 }
 0x4af   : > { %7979 = vmatprep.subr.bf16.mxu1 %v11437_v21 }
 0x4b1   : > { %7939 = vmatpush1.bf16.msra.mxu0 %v11432_v30 }
 0x4b2   : > { %7980 = vmatpush1.bf16.msra.mxu1 %v11435_v60  ;;  %7940 = vmatprep.subr.bf16.mxu0 %v11440_v52  ;;  %v8201_v52 = vld [vmem:[%s12020_s14 + $0x80] sm:$0xff] (!%p9630_p9) }
 0x4b3   : > { %7981 = vmatprep.subr.bf16.mxu1 %v11443_v23  ;;  %v8202_v23 = vld [vmem:[%s12020_s14 + $0x88] sm:$0xff] (!%p9630_p9) }
 0x4b5   : > { %7941 = vmatpush1.bf16.msra.mxu0 %v11438_v43  ;;  %v8233_v43 = vld [vmem:[%s12020_s14 + $0x180] sm:$0xff] (!%p9630_p9) }
 0x4b6   : > { %7982 = vmatpush1.bf16.msra.mxu1 %v11441_v63  ;;  %7942 = vmatprep.subr.bf16.mxu0 %v11446_v54  ;;  %v9707_v63 = vpack.c.bf16 (!%p9630_p9), %v8202_v23, %v8201_v52  ;;  %v8234_v54 = vld [vmem:[%s12020_s14 + $0x188] sm:$0xff] (!%p9630_p9)  ;;  %v8195_v23 = vld [vmem:[%s12020_s14 + $0x50] sm:$0xff] (!%p9630_p9) }
 0x4b7   : > { %7983 = vmatprep.subr.bf16.mxu1 %v11449_v41  ;;  %v8185_v41 = vld [vmem:[%s12020_s14] sm:$0xff] (!%p9630_p9) }
 0x4b9   : > { %7943 = vmatpush1.bf16.msra.mxu0 %v11444_v42  ;;  %v8186_v42 = vld [vmem:[%s12020_s14 + $0x8] sm:$0xff] (!%p9630_p9) }
 0x4ba   : > { %7984 = vmatpush1.bf16.msra.mxu1 %v11447_v0  ;;  %7944 = vmatprep.subr.bf16.mxu0 %v11452_v3  ;;  %v9739_v0 = vpack.c.bf16 (!%p9630_p9), %v8234_v54, %v8233_v43  ;;  %v9709_v3 = vpack.c.bf16 (!%p9630_p9), %v8186_v42, %v8185_v41  ;;  %v8196_v43 = vld [vmem:[%s12020_s14 + $0x58] sm:$0xff] (!%p9630_p9)  ;;  %v8213_v42 = vld [vmem:[%s12020_s14 + $0xe0] sm:$0xff] (!%p9630_p9) }
 0x4bb   : > { %7985 = vmatprep.subr.bf16.mxu1 %v11455_v4  ;;  %v8217_v4 = vld [vmem:[%s12020_s14 + $0x100] sm:$0xff] (!%p9630_p9)  ;;  %v8228_v41 = vld [vmem:[%s12020_s14 + $0x158] sm:$0xff] (!%p9630_p9) }
 0x4bd   : > { %7945 = vmatpush1.bf16.msra.mxu0 %v11450_v32  ;;  %v8218_v32 = vld [vmem:[%s12020_s14 + $0x108] sm:$0xff] (!%p9630_p9) }
 0x4be   : > { %7986 = vmatpush1.bf16.msra.mxu1 %v11453_v36  ;;  %v8203_v36 = vld [vmem:[%s12020_s14 + $0x90] sm:$0xff] (!%p9630_p9)  ;;  %9708 = vmatprep.subr.bf16.mxu0 (!%p9630_p9), %v9707_v63 }
 0x4bf   : > { %9740 = vmatprep.subr.bf16.mxu1 (!%p9630_p9), %v9739_v0  ;;  %v8227_v63 = vld [vmem:[%s12020_s14 + $0x150] sm:$0xff] (!%p9630_p9)  ;;  %v8214_v0 = vld [vmem:[%s12020_s14 + $0xe8] sm:$0xff] (!%p9630_p9) }
 0x4c0   : > { %7947 = vmatmul.mubr.bf16.vlgmr.msra.gmra.mrb[60].mxu0 %v12766_v27 }
 0x4c1   : > { %7988 = vmatmul.mubr.bf16.vlgmr.msra.gmra.mrb[60].mxu1 %v12770_v28  ;;  %9710 = vmatpush3.bf16.msra.mxu0 (!%p9630_p9), %v9709_v3  ;;  %v8245_v3 = vld [vmem:[%s12020_s14 + $0x1e0] sm:$0xff] (!%p9630_p9) }
 0x4d3   : > { %v7702_v34 = vpop.f32.mrb[48].mxu0 }
 0x4d4   : > { %v7743_v9 = vpop.f32.mrb[48].mxu1  ;;  %v7703_v53 = vadd.f32 %v7702_v34, %v13314_v62  ;;  %v7704_v55 = vpop.f32.mrb[49].mxu0  ;;  %v9741_v34 = vpack.c.bf16 (!%p9630_p9), %v8218_v32, %v8217_v4  ;;  %v8246_v4 = vld [vmem:[%s12020_s14 + $0x1e8] sm:$0xff] (!%p9630_p9)  ;;  %v8197_v32 = vld [vmem:[%s12020_s14 + $0x60] sm:$0xff] (!%p9630_p9) }
 0x4d5   : > { %v7745_v29 = vpop.f32.mrb[49].mxu1  ;;  %v7705_v31 = vadd.f32 %v7704_v55, %v13318_v25  ;;  %v7706_v48 = vpop.f32.mrb[50].mxu0  ;;  %v8236_v55 = vld [vmem:[%s12020_s14 + $0x198] sm:$0xff] (!%p9630_p9) }
 0x4d6   : > { %v7747_v33 = vpop.f32.mrb[50].mxu1  ;;  %v7744_v40 = vadd.f32 %v7743_v9, %v7703_v53  ;;  %v7707_v56 = vpop.f32.mrb[51].mxu0  ;;  %v8204_v9 = vld [vmem:[%s12020_s14 + $0x98] sm:$0xff] (!%p9630_p9)  ;;  %v8235_v53 = vld [vmem:[%s12020_s14 + $0x190] sm:$0xff] (!%p9630_p9)  ;;  %9742 = vmatpush3.bf16.msra.mxu1 (!%p9630_p9), %v9741_v34  ;;  %v8198_v34 = vld [vmem:[%s12020_s14 + $0x68] sm:$0xff] (!%p9630_p9) }
 0x4d7   : > { %v7748_v22 = vpop.f32.mrb[51].mxu1  ;;  %v7746_v61 = vadd.f32 %v7745_v29, %v7705_v31  ;;  %v9711_v29 = vpack.c.bf16 (!%p9630_p9), %v8204_v9, %v8203_v36  ;;  %v9743_v31 = vpack.c.bf16 (!%p9630_p9), %v8236_v55, %v8235_v53  ;;  %v8187_v48 = vld [vmem:[%s12020_s14 + $0x10] sm:$0xff] (!%p9630_p9)  ;;  %v8188_v33 = vld [vmem:[%s12020_s14 + $0x18] sm:$0xff] (!%p9630_p9)  ;;  %v9729_v36 = vpack.c.bf16 (!%p9630_p9), %v8196_v43, %v8195_v23  ;;  %v8229_v9 = vld [vmem:[%s12020_s14 + $0x160] sm:$0xff] (!%p9630_p9) }
 0x4d8   : > { %v9713_v56 = vpack.c.bf16 (!%p9630_p9), %v8188_v33, %v8187_v48  ;;  %v8220_v22 = vld [vmem:[%s12020_s14 + $0x118] sm:$0xff] (!%p9630_p9)  ;;  %v8230_v53 = vld [vmem:[%s12020_s14 + $0x168] sm:$0xff] (!%p9630_p9)  ;;  %v9761_v55 = vpack.c.bf16 (!%p9630_p9), %v8228_v41, %v8227_v63  ;;  %v13416_v48 = vld [vmem:[#allocation2] sm:$0xff] (!%p9630_p9) }
 0x4d9   : > { %9712 = vmatprep.subr.bf16.mxu0 (!%p9630_p9), %v9711_v29  ;;  %9744 = vmatprep.subr.bf16.mxu1 (!%p9630_p9), %v9743_v31  ;;  %v9731_v29 = vpack.c.bf16 (!%p9630_p9), %v8214_v0, %v8213_v42  ;;  %v8215_v31 = vld [vmem:[%s12020_s14 + $0xf0] sm:$0xff] (!%p9630_p9)  ;;  %v13418_v33 = vld [vmem:[#allocation2 + $0x8] sm:$0xff] (!%p9630_p9) }
 0x4da   : > { %9714 = vmatpush3.bf16.msra.mxu0 (!%p9630_p9), %v9713_v56  ;;  %v8216_v56 = vld [vmem:[%s12020_s14 + $0xf8] sm:$0xff] (!%p9630_p9) }
 0x513   : > { %v7784_v24 = vpop.f32.mrb[52].mxu0 }
 0x514   : > { %v7825_v58 = vpop.f32.mrb[52].mxu1  ;;  %v7785_v7 = vadd.f32 %v7784_v24, %v7744_v40  ;;  %v7786_v27 = vpop.f32.mrb[53].mxu0  ;;  %v8219_v40 = vld [vmem:[%s12020_s14 + $0x110] sm:$0xff] (!%p9630_p9)  ;;  %v8206_v24 = vld [vmem:[%s12020_s14 + $0xa8] sm:$0xff] (!%p9630_p9) }
 0x515   : > { %v7827_v8 = vpop.f32.mrb[53].mxu1  ;;  %v7787_v28 = vadd.f32 %v7786_v27, %v7746_v61  ;;  %v7788_v47 = vpop.f32.mrb[54].mxu0  ;;  %v8205_v61 = vld [vmem:[%s12020_s14 + $0xa0] sm:$0xff] (!%p9630_p9) }
 0x516   : > { %v7829_v49 = vpop.f32.mrb[54].mxu1  ;;  %v7826_v17 = vadd.f32 %v7825_v58, %v7785_v7  ;;  %v7789_v18 = vpop.f32.mrb[55].mxu0  ;;  %v9745_v58 = vpack.c.bf16 (!%p9630_p9), %v8220_v22, %v8219_v40  ;;  %v9715_v7 = vpack.c.bf16 (!%p9630_p9), %v8206_v24, %v8205_v61  ;;  %v8237_v27 = vld [vmem:[%s12020_s14 + $0x1a0] sm:$0xff] (!%p9630_p9)  ;;  %v9763_v40 = vpack.c.bf16 (!%p9630_p9), %v8246_v4, %v8245_v3 }
 0x517   : > { %v7830_v1 = vpop.f32.mrb[55].mxu1  ;;  %v7828_v59 = vadd.f32 %v7827_v8, %v7787_v28  ;;  %v8238_v8 = vld [vmem:[%s12020_s14 + $0x1a8] sm:$0xff] (!%p9630_p9)  ;;  %v8189_v28 = vld [vmem:[%s12020_s14 + $0x20] sm:$0xff] (!%p9630_p9)  ;;  %v8012_v24 = vrot.slane (!%p9630_p9), %v13416_v48, 4 }
 0x518   : > { %v9747_v47 = vpack.c.bf16 (!%p9630_p9), %v8238_v8, %v8237_v27  ;;  %v8190_v49 = vld [vmem:[%s12020_s14 + $0x28] sm:$0xff] (!%p9630_p9)  ;;  %9746 = vmatpush3.bf16.msra.mxu1 (!%p9630_p9), %v9745_v58  ;;  %9716 = vmatprep.subr.bf16.mxu0 (!%p9630_p9), %v9715_v7  ;;  %v8018_v58 = vrot.slane (!%p9630_p9), %v13418_v33, 4  ;;  %v8247_v7 = vld [vmem:[%s12020_s14 + $0x1f0] sm:$0xff] (!%p9630_p9)  ;;  %v8248_v27 = vld [vmem:[%s12020_s14 + $0x1f8] sm:$0xff] (!%p9630_p9) }
 0x519   : > { %v8222_v18 = vld [vmem:[%s12020_s14 + $0x128] sm:$0xff] (!%p9630_p9)  ;;  %v9717_v1 = vpack.c.bf16 (!%p9630_p9), %v8190_v49, %v8189_v28  ;;  %v9765_v49 = vpack.c.bf16 (!%p9630_p9), %v8230_v53, %v8229_v9 }
 0x51a   : > { %9748 = vmatprep.subr.bf16.mxu1 (!%p9630_p9), %v9747_v47  ;;  %v9733_v47 = vpack.c.bf16 (!%p9630_p9), %v8198_v34, %v8197_v32 }
 0x51b   : > { %9718 = vmatpush3.bf16.msra.mxu0 (!%p9630_p9), %v9717_v1  ;;  %v9735_v1 = vpack.c.bf16 (!%p9630_p9), %v8216_v56, %v8215_v31 }
 0x553   : > { %v7866_v62 = vpop.f32.mrb[56].mxu0 }
 0x554   : > { %v7907_v2 = vpop.f32.mrb[56].mxu1  ;;  %v7867_v5 = vadd.f32 %v7866_v62, %v7826_v17  ;;  %v7868_v39 = vpop.f32.mrb[57].mxu0  ;;  %v8221_v17 = vld [vmem:[%s12020_s14 + $0x120] sm:$0xff] (!%p9630_p9)  ;;  %v8208_v62 = vld [vmem:[%s12020_s14 + $0xb8] sm:$0xff] (!%p9630_p9) }
 0x555   : > { %v7909_v45 = vpop.f32.mrb[57].mxu1  ;;  %v7869_v25 = vadd.f32 %v7868_v39, %v7828_v59  ;;  %v7870_v26 = vpop.f32.mrb[58].mxu0  ;;  %v8207_v59 = vld [vmem:[%s12020_s14 + $0xb0] sm:$0xff] (!%p9630_p9) }
 0x556   : > { %v7911_v37 = vpop.f32.mrb[58].mxu1  ;;  %v7908_v38 = vadd.f32 %v7907_v2, %v7867_v5  ;;  %v7871_v6 = vpop.f32.mrb[59].mxu0  ;;  %v8239_v2 = vld [vmem:[%s12020_s14 + $0x1b0] sm:$0xff] (!%p9630_p9)  ;;  %v9749_v5 = vpack.c.bf16 (!%p9630_p9), %v8222_v18, %v8221_v17  ;;  %v9719_v39 = vpack.c.bf16 (!%p9630_p9), %v8208_v62, %v8207_v59  ;;  %v8192_v26 = vld [vmem:[%s12020_s14 + $0x38] sm:$0xff] (!%p9630_p9)  ;;  %v8013_v17 = vadd.f32 (!%p9630_p9), %v8012_v24, %v13416_v48 }
 0x557   : > { %v7912_v10 = vpop.f32.mrb[59].mxu1  ;;  %v7910_v11 = vadd.f32 %v7909_v45, %v7869_v25  ;;  %v8240_v45 = vld [vmem:[%s12020_s14 + $0x1b8] sm:$0xff] (!%p9630_p9)  ;;  %v8191_v25 = vld [vmem:[%s12020_s14 + $0x30] sm:$0xff] (!%p9630_p9)  ;;  %v8019_v18 = vadd.f32 (!%p9630_p9), %v8018_v58, %v13418_v33 }
 0x558   : > { %v9751_v37 = vpack.c.bf16 (!%p9630_p9), %v8240_v45, %v8239_v2  ;;  %v8224_v6 = vld [vmem:[%s12020_s14 + $0x138] sm:$0xff] (!%p9630_p9)  ;;  %v8209_v10 = vld [vmem:[%s12020_s14 + $0xc0] sm:$0xff] (!%p9630_p9)  ;;  %9750 = vmatpush3.bf16.msra.mxu1 (!%p9630_p9), %v9749_v5  ;;  %9720 = vmatprep.subr.bf16.mxu0 (!%p9630_p9), %v9719_v39  ;;  %v8199_v59 = vld [vmem:[%s12020_s14 + $0x70] sm:$0xff] (!%p9630_p9)  ;;  %v9767_v39 = vpack.c.bf16 (!%p9630_p9), %v8248_v27, %v8247_v7 }
 0x559   : > { %v8200_v62 = vld [vmem:[%s12020_s14 + $0x78] sm:$0xff] (!%p9630_p9)  ;;  %v8231_v45 = vld [vmem:[%s12020_s14 + $0x170] sm:$0xff] (!%p9630_p9) }
 0x55a   : > { %9752 = vmatprep.subr.bf16.mxu1 (!%p9630_p9), %v9751_v37  ;;  %v8020_v37 = vrot.slane (!%p9630_p9), %v8019_v18, 2 }
 0x593   : > { %v7948_v35 = vpop.f32.mrb[60].mxu0 }
 0x594   : > { %v7989_v12 = vpop.f32.mrb[60].mxu1  ;;  %v7949_v57 = vadd.f32 %v7948_v35, %v7908_v38  ;;  %v7950_v14 = vpop.f32.mrb[61].mxu0  ;;  %v8223_v38 = vld [vmem:[%s12020_s14 + $0x130] sm:$0xff] (!%p9630_p9)  ;;  %v8241_v35 = vld [vmem:[%s12020_s14 + $0x1c0] sm:$0xff] (!%p9630_p9) }
 0x595   : > { %v7991_v15 = vpop.f32.mrb[61].mxu1  ;;  %v7951_v44 = vadd.f32 %v7950_v14, %v7910_v11  ;;  %v7952_v46 = vpop.f32.mrb[62].mxu0  ;;  %8007 = sbr.rel (%p9630_p9) target bundleno = 1727 (0x6bf), region = 64  ;;  %v8210_v11 = vld [vmem:[%s12020_s14 + $0xc8] sm:$0xff] (!%p9630_p9)  ;;  %v9753_v14 = vpack.c.bf16 (!%p9630_p9), %v8224_v6, %v8223_v38 }
 0x596   : > { %v7993_v19 = vpop.f32.mrb[62].mxu1  ;;  %v7990_v20 = vadd.f32 %v7989_v12, %v7949_v57  ;;  %v7953_v50 = vpop.f32.mrb[63].mxu0  ;;  %v8242_v12 = vld [vmem:[%s12020_s14 + $0x1c8] sm:$0xff] (!%p9630_p9)  ;;  %v9721_v57 = vpack.c.bf16 (!%p9630_p9), %v8192_v26, %v8191_v25  ;;  %v8225_v46 = vld [vmem:[%s12020_s14 + $0x140] sm:$0xff] (!%p9630_p9)  ;;  %v8232_v25 = vld [vmem:[%s12020_s14 + $0x178] sm:$0xff] (!%p9630_p9)  ;;  %v8014_v26 = vrot.slane (!%p9630_p9), %v8013_v17, 2 }
 0x597   : > { %v7994_v51 = vpop.f32.mrb[63].mxu1  ;;  %v7992_v21 = vadd.f32 %v7991_v15, %v7951_v44  ;;  %v9723_v15 = vpack.c.bf16 (!%p9630_p9), %v8210_v11, %v8209_v10  ;;  %v8194_v44 = vld [vmem:[%s12020_s14 + $0x48] sm:$0xff] (!%p9630_p9)  ;;  %v9755_v19 = vpack.c.bf16 (!%p9630_p9), %v8242_v12, %v8241_v35  ;;  %v8212_v50 = vld [vmem:[%s12020_s14 + $0xd8] sm:$0xff] (!%p9630_p9)  ;;  %9754 = vmatpush3.bf16.msra.mxu1 (!%p9630_p9), %v9753_v14  ;;  %v8040_v10 = vlaneseq (!%p9630_p9) }
 0x598   : > { %v7998_v30 = vadd.f32 %v7990_v20, %v410_v16  ;;  %v8193_v16 = vld [vmem:[%s12020_s14 + $0x40] sm:$0xff] (!%p9630_p9)  ;;  %v8226_v20 = vld [vmem:[%s12020_s14 + $0x148] sm:$0xff] (!%p9630_p9)  ;;  %v8243_v51 = vld [vmem:[%s12020_s14 + $0x1d0] sm:$0xff] (!%p9630_p9)  ;;  %9722 = vmatpush3.bf16.msra.mxu0 (!%p9630_p9), %v9721_v57  ;;  %v9737_v11 = vpack.c.bf16 (!%p9630_p9), %v8200_v62, %v8199_v59  ;;  %v8015_v35 = vadd.f32 (!%p9630_p9), %v8014_v26, %v8013_v17  ;;  %v8021_v12 = vadd.f32 (!%p9630_p9), %v8020_v37, %v8019_v18 }
 0x599   : > { %v7999_v60 = vadd.f32 %v7992_v21, %v411_v13  ;;  %v8211_v13 = vld [vmem:[%s12020_s14 + $0xd0] sm:$0xff] (!%p9630_p9)  ;;  %v8244_v21 = vld [vmem:[%s12020_s14 + $0x1d8] sm:$0xff] (!%p9630_p9)  ;;  %9724 = vmatprep.subr.bf16.mxu0 (!%p9630_p9), %v9723_v15  ;;  %9756 = vmatprep.subr.bf16.mxu1 (!%p9630_p9), %v9755_v19  ;;  %v9769_v57 = vpack.c.bf16 (!%p9630_p9), %v8232_v25, %v8231_v45 }
 0x59a   : > { %8002 = vst [vmem:[#allocation2 + $0x10] sm:$0xff] %v7998_v30  ;;  %v9725_v30 = vpack.c.bf16 (!%p9630_p9), %v8194_v44, %v8193_v16  ;;  %v9727_v52 = vpack.c.bf16 (!%p9630_p9), %v8212_v50, %v8211_v13  ;;  %v9759_v54 = vpack.c.bf16 (!%p9630_p9), %v8244_v21, %v8243_v51  ;;  %v8016_v16 = vrot.slane (!%p9630_p9), %v8015_v35, 1 }
 0x59b   : > { %8003 = vst [vmem:[#allocation2 + $0x18] sm:$0xff] %v7999_v60  ;;  %v9757_v60 = vpack.c.bf16 (!%p9630_p9), %v8226_v20, %v8225_v46  ;;  %v8022_v44 = vrot.slane (!%p9630_p9), %v8021_v12, 1  ;;  %v13431_v20 = vshrl.u32 (!%p9630_p9), %v8040_v10, 7  ;;  %v11694_v10 = vmov (!%p9630_p9), 1966171168  }
 0x59c   : > { %9726 = vmatpush3.bf16.msra.mxu0 %v9725_v30  ;;  %v8017_v13 = vadd.f32 %v8016_v16, %v8015_v35 }
 0x59d   : > { %9758 = vmatpush3.bf16.msra.mxu1 %v9757_v60  ;;  %9728 = vmatprep.subr.bf16.mxu0 %v9727_v52  ;;  %v8023_v50 = vadd.f32 %v8022_v44, %v8021_v12  ;;  %vm8042_vm0 = vcmp.lt.s32.totalorder %v13431_v20, 4 }
 0x59e   : > { %9760 = vmatprep.subr.bf16.mxu1 %v9759_v54  ;;  %v8036_v30 = vmul.f32 0.25, %v8017_v13 }
 0x59f   : > { %v8037_v60 = vmul.f32 0.25, %v8023_v50 }
 0x5a0   : > { %9730 = vmatpush3.bf16.msra.mxu0 %v9729_v36  ;;  %v8043_v43 = vsub.f32 %v13416_v48, %v8036_v30 }
 0x5a1   : > { %v8010_v22 = vld [vmem:[#allocation2 + $0x10] sm:$0xff]  ;;  %9762 = vmatpush3.bf16.msra.mxu1 %v9761_v55  ;;  %9732 = vmatprep.subr.bf16.mxu0 %v9731_v29  ;;  %v8044_v63 = vsub.f32 %v13418_v33, %v8037_v60  ;;  %v8147_v60 = vld [vmem:[%s12018_s0] sm:$0xf] }
 0x5a2   : > { %v8011_v61 = vld [vmem:[#allocation2 + $0x18] sm:$0xff]  ;;  %v8024_v8 = vrot.slane %v8010_v22, 4  ;;  %9764 = vmatprep.subr.bf16.mxu1 %v9763_v40  ;;  %v13436_v42 = vsel %vm8042_vm0, %v8043_v43, 0.0  ;;  %v8133_v43 = vsub.s32 2, %v13431_v20 }
 0x5a3   : > { %v8030_v28 = vrot.slane %v8011_v61, 4  ;;  %v13438_v0 = vsel %vm8042_vm0, %v8044_v63, 0.0  ;;  %v8051_v32 = vmul.f32 %v13436_v42, %v13436_v42 }
 0x5a4   : > { %v8025_v2 = vadd.f32 %v8024_v8, %v8010_v22  ;;  %9734 = vmatpush3.bf16.msra.mxu0 %v9733_v47  ;;  %v8052_v36 = vmul.f32 %v13438_v0, %v13438_v0 }
 0x5a5   : > { %v8031_v5 = vadd.f32 %v8030_v28, %v8011_v61  ;;  %9766 = vmatpush3.bf16.msra.mxu1 %v9765_v49  ;;  %9736 = vmatprep.subr.bf16.mxu0 %v9735_v1  ;;  %v8055_v53 = vrot.slane %v8051_v32, 4 }
 0x5a6   : > { %v8026_v38 = vrot.slane %v8025_v2, 2  ;;  %9768 = vmatprep.subr.bf16.mxu1 %v9767_v39  ;;  %v8061_v55 = vrot.slane %v8052_v36, 4 }
 0x5a7   : > { %v8032_v6 = vrot.slane %v8031_v5, 2  ;;  %v8056_v48 = vadd.f32 %v8055_v53, %v8051_v32 }
 0x5a8   : > { %v8027_v14 = vadd.f32 %v8026_v38, %v8025_v2  ;;  %9738 = vmatpush3.bf16.msra.mxu0 %v9737_v11  ;;  %v8062_v33 = vadd.f32 %v8061_v55, %v8052_v36  ;;  %v8099_v11 = vunpack.c.l.s4 %v11694_v10  ;;  %v8160_v36 = vrot.slane %v8147_v60, %v8133_v43 }
 0x5a9   : > { %v8033_v15 = vadd.f32 %v8032_v6, %v8031_v5  ;;  %9770 = vmatpush3.bf16.msra.mxu1 %v9769_v57 }
 0x5aa   : > { %v8028_v46 = vrot.slane %v8027_v14, 1  ;;  %v8100_v35 = vunpack.c.0.s8 %v8099_v11 }
 0x5ab   : > { %v8034_v19 = vrot.slane %v8033_v15, 1 }
 0x5ac   : > { %v8029_v51 = vadd.f32 %v8028_v46, %v8027_v14  ;;  %v8103_v57 = vsub.s32 %v8100_v35, %v13431_v20 }
 0x5ad   : > { %v8035_v21 = vadd.f32 %v8034_v19, %v8033_v15 }
 0x5ae   : > { %v8038_v52 = vmul.f32 0.25, %v8029_v51  ;;  %v8083_v51 = vld [vmem:[%s12012_s21] sm:$0xf] }
 0x5af   : > { %v8039_v23 = vmul.f32 0.25, %v8035_v21  ;;  %v8129_v21 = vsub.s32 1, %v13431_v20 }
 0x5b0   : > { %v8045_v54 = vsub.f32 %v8010_v22, %v8038_v52  ;;  %v8057_v22 = vrot.slane %v8056_v48, 2  ;;  %v8137_v52 = vsub.s32 3, %v13431_v20 }
 0x5b1   : > { %v8046_v41 = vsub.f32 %v8011_v61, %v8039_v23  ;;  %v8063_v61 = vrot.slane %v8062_v33, 2  ;;  %v8125_v23 = vsub.s32 0, %v13431_v20 }
 0x5b2   : > { %v13440_v3 = vsel %vm8042_vm0, %v8045_v54, 0.0  ;;  %v8058_v7 = vadd.f32 %v8057_v22, %v8056_v48  ;;  %v8156_v54 = vrot.slane %v8147_v60, %v8129_v21 }
 0x5b3   : > { %v13442_v4 = vsel %vm8042_vm0, %v8046_v41, 0.0  ;;  %v8053_v34 = vmul.f32 %v13440_v3, %v13440_v3  ;;  %v8064_v27 = vadd.f32 %v8063_v61, %v8062_v33  ;;  %v8164_v41 = vrot.slane %v8147_v60, %v8137_v52 }
 0x5b4   : > { %v8054_v9 = vmul.f32 %v13442_v4, %v13442_v4  ;;  %v8059_v47 = vrot.slane %v8058_v7, 1  ;;  %v8152_v32 = vrot.slane %v8147_v60, %v8125_v23 }
 0x5b5   : > { %v8067_v29 = vrot.slane %v8053_v34, 4  ;;  %v8065_v49 = vrot.slane %v8064_v27, 1 }
 0x5b6   : > { %v8073_v31 = vrot.slane %v8054_v9, 4  ;;  %v8060_v1 = vadd.f32 %v8059_v47, %v8058_v7 }
 0x5b7   : > { %v8068_v40 = vadd.f32 %v8067_v29, %v8053_v34  ;;  %v8066_v59 = vadd.f32 %v8065_v49, %v8064_v27 }
 0x5b8   : > { %v8074_v56 = vadd.f32 %v8073_v31, %v8054_v9  ;;  %v8079_v5 = vmul.f32 0.25, %v8060_v1 }
 0x5b9   : > { %v8069_v24 = vrot.slane %v8068_v40, 2  ;;  %v8080_v39 = vmul.f32 0.25, %v8066_v59 }
 0x5ba   : > { %v8075_v58 = vrot.slane %v8074_v56, 2  ;;  %v8084_v26 = vadd.f32 1e-05, %v8079_v5 }
 0x5bb   : > { %v8070_v8 = vadd.f32 %v8069_v24, %v8068_v40  ;;  %v8085_v37 = vadd.f32 1e-05, %v8080_v39 }
 0x5bc   : > { %v8076_v28 = vadd.f32 %v8075_v58, %v8074_v56  ;;  %11456 = vrsqrt.f32 %v8084_v26 }
 0x5bd   : > { %v8071_v17 = vrot.slane %v8070_v8, 1  ;;  %11458 = vrsqrt.f32 %v8085_v37 }
 0x5be   : > { %v8077_v18 = vrot.slane %v8076_v28, 1 }
 0x5bf   : > { %v8072_v62 = vadd.f32 %v8071_v17, %v8070_v8 }
 0x5c0   : > { %v8078_v2 = vadd.f32 %v8077_v18, %v8076_v28 }
 0x5c1   : > { %v8081_v45 = vmul.f32 0.25, %v8072_v62 }
 0x5c2   : > { %v8082_v25 = vmul.f32 0.25, %v8078_v2 }
 0x5c3   : > { %v8086_v38 = vadd.f32 1e-05, %v8081_v45 }
 0x5c4   : > { %v8087_v6 = vadd.f32 1e-05, %v8082_v25 }
 0x5c5   : > { %11460 = vrsqrt.f32 %v8086_v38 }
 0x5c6   : > { %11462 = vrsqrt.f32 %v8087_v6  ;;  %v11457_v12 = vpop.eup %11456 }
 0x5c7   : > { %v11459_v14 = vpop.eup %11458 }
 0x5c8   : > { %v8096_v16 = vcombine.low %v11457_v12, %v11459_v14 }
 0x5ca   : > { %v8104_v19 = vrot.slane %v8096_v16, %v8103_v57 }
 0x5cf   : > { %v11461_v15 = vpop.eup %11460 }
 0x5d0   : > { %v11463_v44 = vpop.eup %11462 }
 0x5d1   : > { %v8097_v46 = vcombine.low %v11461_v15, %v11463_v44 }
 0x5d3   : > { %v8111_v13 = vrot.slane %v8097_v46, %v8103_v57 }
 0x5d5   : > { %v8112_v50 = vcombine.low %v8104_v19, %v8111_v13 }
 0x5d7   : > { %v8119_v30 = vrot.slane %v8112_v50, %v8103_v57 }
 0x5d9   : > { %v8121_v63 = vmul.f32 %v8119_v30, %v8083_v51 }
 0x5db   : > { %v8130_v34 = vrot.slane %v8121_v63, %v8129_v21  ;;  %v8138_v9 = vrot.slane %v8121_v63, %v8137_v52  ;;  %v8126_v53 = vrot.slane %v8121_v63, %v8125_v23  ;;  %v8134_v55 = vrot.slane %v8121_v63, %v8133_v43 }
 0x5dd   : > { %v8144_v29 = vmul.f32 %v8130_v34, %v13438_v0  ;;  %v8146_v31 = vmul.f32 %v8138_v9, %v13442_v4  ;;  %v8143_v48 = vmul.f32 %v8126_v53, %v13436_v42  ;;  %v8145_v33 = vmul.f32 %v8134_v55, %v13440_v3 }
 0x5df   : > { %v8170_v40 = vadd.f32 %v8156_v54, %v8144_v29  ;;  %v8172_v56 = vadd.f32 %v8164_v41, %v8146_v31  ;;  %v8169_v20 = vadd.f32 %v8152_v32, %v8143_v48  ;;  %v8171_v22 = vadd.f32 %v8160_v36, %v8145_v33 }
 0x5e1   : > { %vm8174_vm1 = vcmp.ge.f32.partialorder %v8170_v40, 0.0  ;;  %v8178_v61 = vmul.f32 0.2, %v8170_v40  ;;  %vm8176_vm2 = vcmp.ge.f32.partialorder %v8172_v56, 0.0  ;;  %v8180_v24 = vmul.f32 0.2, %v8172_v56 }
 0x5e2   : > { %vm8173_vm3 = vcmp.ge.f32.partialorder %v8169_v20, 0.0  ;;  %v8177_v58 = vmul.f32 0.2, %v8169_v20  ;;  %vm8175_vm4 = vcmp.ge.f32.partialorder %v8171_v22, 0.0  ;;  %v8179_v7 = vmul.f32 0.2, %v8171_v22 }
 0x5e3   : > { %v8182_v0 = vsel %vm8174_vm1, %v8170_v40, %v8178_v61  ;;  %v8184_v27 = vsel %vm8176_vm2, %v8172_v56, %v8180_v24 }
 0x5e4   : > { %8313 = vmatprep.mubr.f32.mxu0 %v8182_v0  ;;  %8383 = vmatprep.mubr.f32.mxu1 %v8184_v27  ;;  %v8181_v42 = vsel %vm8173_vm3, %v8169_v20, %v8177_v58  ;;  %v8183_v4 = vsel %vm8175_vm4, %v8171_v22, %v8179_v7 }
 0x5e5   : > { %8314 = vmatmul.mubr.f32.vlgmr.msra.gmra.mrb[0].mxu0 %v8181_v42  ;;  %8384 = vmatmul.mubr.f32.vlgmr.msra.gmra.mrb[0].mxu1 %v8183_v4 }
 0x6b8   : > { %v9669_v3 = vpop.f32.mrb[0].mxu0  ;;  %v9704_v8 = vpop.f32.mrb[0].mxu1 }
 0x6b9   : > { %v9670_v28 = vpop.f32.mrb[1].mxu0  ;;  %v9705_v47 = vpop.f32.mrb[1].mxu1 }
 0x6ba   : > { %v9671_v49 = vadd.f32 %v9670_v28, %v9669_v3  ;;  %v9706_v17 = vadd.f32 %v9705_v47, %v9704_v8 }
 0x6bc   : > { %v8386_v18 = vadd.f32 %v9706_v17, %v9671_v49 }
 0x6be   : > { %8389 = vst [vmem:[%s12032_s8] sm:$0xff] %v8386_v18 }
 0x6bf PF: > { %s24_s28 = sadd.s32 1, %s11682_s28   ;;  %s13554_s26 = sld [smem:[#allocation13_spill]] }
 0x6c0   : > { %p21_p2 = scmp.ge.s32.totalorder %s24_s28, 6   ;;  %s13555_s20 = sld [smem:[#allocation20_spill]] }
 0x6c1   : > { %s13556_s7 = sld [smem:[#allocation14_spill]]  ;;  %s13557_s23 = sld [smem:[#allocation21_spill]] }
 0x6c2   : > { %s13558_s24 = sld [smem:[#allocation17_spill]]  ;;  %s13559_s30 = sld [smem:[#allocation18_spill]] }
 0x6c3   : > { %s13560_s13 = sld [smem:[#allocation19_spill]]  ;;  %s13561_s18 = smov %s11646_s19 }
 0x6c4   : > { %s13563_s21 = smov %s11658_s22  ;;  %s13565_s25 = smov %s11678_s27 }
 0x6c5   : > { %s13562_s19 = smov %s13554_s26  ;;  %23 = sbr.rel (!%p21_p2) target bundleno = 16 (0x10), region = 128 }
 0x6c7   : > { %s13564_s22 = smov %s13556_s7 }
 0x6c8   : > { %s13566_s26 = smov %s13559_s30 }
 0x6c9   : > { %s13567_s27 = smov %s13560_s13 }
 0x6cc   :  { %8409 = vsyncpa [#allocation4], 1 }
 0x6cd   :  { %8411 = vsyncpa [#allocation4 + $0x1], 1 }
 0x6ce   :  { %8412 = vsyncpa [#allocation6], 1 }
 0x6cf   :  { %8414 = vsyncpa [#allocation6 + $0x1], 1 }
 0x6d0   :  { %8415 = vsyncpa [#allocation9], 1 }
 0x6d1   :  { %8417 = vsyncpa [#allocation9 + $0x1], 1 }

</bundles_post_ra>
